<compile_context>
chip_gen: v7x
topology: tpu7x:2x2x1
jax: 0.10.0
libtpu: 0.0.40
codegen_flags: <defaults>
</compile_context>

<pallas_src>
import math

import jax
import jax.numpy as jnp
from jax.experimental import pallas as pl
from jax.experimental.pallas import tpu as pltpu


# ----------------------------------------------------------------------------
# Pallas kernel: one full bidirectional LSTM layer (all timesteps, both
# directions) in a single invocation.  Gate order follows PyTorch: i, f, g, o.
#
#   x_ref   : (T, Bp, Din)      f32   input sequence (time-major, batch padded)
#   wih_ref : (2, Din, 4H)      bf16  W_ih^T, stacked [fwd, bwd]
#   whh_ref : (2, H,   4H)      bf16  W_hh^T, stacked [fwd, bwd]
#   b_ref   : (2, 1,   4H)      f32   b_ih + b_hh,   stacked [fwd, bwd]
#   y_ref   : (T, Bp, 2H)       f32   output; fwd -> [:, :, :H], bwd -> [:, :, H:]
#   gxf_ref / gxb_ref : (T, Bp, 4H) f32 VMEM scratch holding the precomputed
#   input projections for every timestep.
# ----------------------------------------------------------------------------
def _bilstm_layer_kernel(x_ref, wih_ref, whh_ref, b_ref, y_ref,
                         gxf_ref, gxb_ref):
    T, Bp, Din = x_ref.shape
    H = whh_ref.shape[1]

    # ---- Prologue: dense input projection for all timesteps & directions ----
    x2d = x_ref[...].reshape(T * Bp, Din).astype(jnp.bfloat16)       # (T*Bp, Din)
    gxf_ref[...] = (
        jnp.dot(x2d, wih_ref[0], preferred_element_type=jnp.float32) + b_ref[0]
    ).reshape(T, Bp, 4 * H)
    gxb_ref[...] = (
        jnp.dot(x2d, wih_ref[1], preferred_element_type=jnp.float32) + b_ref[1]
    ).reshape(T, Bp, 4 * H)

    whh_f = whh_ref[0]                                               # (H, 4H) bf16
    whh_b = whh_ref[1]

    # ---- Recurrence: only h @ W_hh^T remains inside the time loop ----------
    def run_direction(gx_ref, whh, col_lo, times):
        h = jnp.zeros((Bp, H), jnp.float32)
        c = jnp.zeros((Bp, H), jnp.float32)
        for t in times:                    # T is small & static -> full unroll
            g = gx_ref[t] + jnp.dot(h.astype(jnp.bfloat16), whh,
                                    preferred_element_type=jnp.float32)
            i_g = jax.nn.sigmoid(g[:, 0 * H:1 * H])
            f_g = jax.nn.sigmoid(g[:, 1 * H:2 * H])
            g_g = jnp.tanh(g[:, 2 * H:3 * H])
            o_g = jax.nn.sigmoid(g[:, 3 * H:4 * H])
            c = f_g * c + i_g * g_g
            h = o_g * jnp.tanh(c)
            y_ref[t, :, col_lo:col_lo + H] = h.astype(y_ref.dtype)

    run_direction(gxf_ref, whh_f, 0, range(T))                # forward in time
    run_direction(gxb_ref, whh_b, H, range(T - 1, -1, -1))    # backward in time


def bilstm_layer(x_tbd, wih, whh, b):
    """x_tbd: (T, Bp, Din) time-major, batch padded.  Returns (T, Bp, 2H)."""
    T, Bp, Din = x_tbd.shape
    H = whh.shape[1]
    return pl.pallas_call(
        _bilstm_layer_kernel,
        out_shape=jax.ShapeDtypeStruct((T, Bp, 2 * H), x_tbd.dtype),
        grid_spec=pltpu.PrefetchScalarGridSpec(
            num_scalar_prefetch=0,
            grid=(1,),                                  # single invocation
            in_specs=[
                pl.BlockSpec((T, Bp, Din), lambda i: (0, 0, 0)),      # x
                pl.BlockSpec((2, Din, 4 * H), lambda i: (0, 0, 0)),   # W_ih^T
                pl.BlockSpec((2, H, 4 * H), lambda i: (0, 0, 0)),     # W_hh^T
                pl.BlockSpec((2, 1, 4 * H), lambda i: (0, 0, 0)),     # bias
            ],
            out_specs=pl.BlockSpec((T, Bp, 2 * H), lambda i: (0, 0, 0)),
            scratch_shapes=[
                pltpu.VMEM((T, Bp, 4 * H), jnp.float32),   # fwd input proj
                pltpu.VMEM((T, Bp, 4 * H), jnp.float32),   # bwd input proj
            ],
        ),
        compiler_params=pltpu.CompilerParams(
            dimension_semantics=("arbitrary",),
        ),
    )(x_tbd, wih, whh, b)


# ----------------------------------------------------------------------------
# Parameter init (PyTorch-style uniform(-1/sqrt(H), 1/sqrt(H))), stored in the
# kernel-friendly layout: pre-transposed weights (bf16), pre-summed bias (f32),
# fwd/bwd stacked along a leading axis of size 2.
# ----------------------------------------------------------------------------
def init_lstm_params(key, input_size, hidden_size, num_layers,
                     bidirectional=True):
    num_dirs = 2 if bidirectional else 1
    assert num_dirs == 2, "fused kernel implements the bidirectional module"
    bound = 1.0 / math.sqrt(hidden_size)
    params = []
    for layer in range(num_layers):
        d_in = input_size if layer == 0 else hidden_size * num_dirs
        wih_dirs, whh_dirs, b_dirs = [], [], []
        for _ in range(num_dirs):
            key, k1, k2, k3, k4 = jax.random.split(key, 5)
            w_ih = jax.random.uniform(k1, (4 * hidden_size, d_in),
                                      jnp.float32, -bound, bound)
            w_hh = jax.random.uniform(k2, (4 * hidden_size, hidden_size),
                                      jnp.float32, -bound, bound)
            b_ih = jax.random.uniform(k3, (4 * hidden_size,),
                                      jnp.float32, -bound, bound)
            b_hh = jax.random.uniform(k4, (4 * hidden_size,),
                                      jnp.float32, -bound, bound)
            wih_dirs.append(jnp.transpose(w_ih).astype(jnp.bfloat16))  # (Din,4H)
            whh_dirs.append(jnp.transpose(w_hh).astype(jnp.bfloat16))  # (H,4H)
            b_dirs.append((b_ih + b_hh)[None, :])                      # (1,4H)
        params.append((jnp.stack(wih_dirs),        # (2, Din, 4H) bf16
                       jnp.stack(whh_dirs),        # (2, H,   4H) bf16
                       jnp.stack(b_dirs)))         # (2, 1,   4H) f32
    return params


# ----------------------------------------------------------------------------
# RNNModel.forward: output, _ = self.rnn(inputs); return output
# inputs: (B, T, input_size)  ->  output: (B, T, 2*hidden_size)
# ----------------------------------------------------------------------------
def rnn_model_forward(inputs_btd, params):
    B, T, _ = inputs_btd.shape
    Bp = max(8, ((B + 7) // 8) * 8)                    # pad batch to 8 sublanes
    x = jnp.transpose(inputs_btd, (1, 0, 2))           # (T, B, D) time-major
    if Bp != B:
        x = jnp.pad(x, ((0, 0), (0, Bp - B), (0, 0)))
    for (wih, whh, b) in params:
        x = bilstm_layer(x, wih, whh, b)               # (T, Bp, 2H)
    out = jnp.transpose(x, (1, 0, 2))                  # (Bp, T, 2H)
    return out[:B]
    # TODO(synk): fc1 (Linear(2H -> H)) exists in __init__ but is unused by
    # forward(), so it is intentionally not implemented here.


# ----------------------------------------------------------------------------
# Pure-JAX reference with matching numerics (bf16 matmul operands, f32 state)
# used only to sanity-check the kernel output.
# ----------------------------------------------------------------------------
def rnn_reference(inputs_btd, params):
    x = jnp.transpose(inputs_btd, (1, 0, 2)).astype(jnp.float32)   # (T, B, D)
    for (wih, whh, b) in params:
        T, B, _ = x.shape
        H = whh.shape[1]
        outs = []
        for d, times in ((0, range(T)), (1, range(T - 1, -1, -1))):
            h = jnp.zeros((B, H), jnp.float32)
            c = jnp.zeros((B, H), jnp.float32)
            ys = [None] * T
            for t in times:
                g = (jnp.dot(x[t].astype(jnp.bfloat16), wih[d],
                             preferred_element_type=jnp.float32) + b[d]
                     + jnp.dot(h.astype(jnp.bfloat16), whh[d],
                               preferred_element_type=jnp.float32))
                i_g = jax.nn.sigmoid(g[:, 0 * H:1 * H])
                f_g = jax.nn.sigmoid(g[:, 1 * H:2 * H])
                g_g = jnp.tanh(g[:, 2 * H:3 * H])
                o_g = jax.nn.sigmoid(g[:, 3 * H:4 * H])
                c = f_g * c + i_g * g_g
                h = o_g * jnp.tanh(c)
                ys[t] = h
            outs.append(jnp.stack(ys, axis=0))
        x = jnp.concatenate(outs, axis=-1)
    return jnp.transpose(x, (1, 0, 2))


if __name__ == "__main__":
    # Small shapes consistent with the module: batch=2, seq=8,
    # input_size=128, hidden_size=128, 2 layers, bidirectional.
    B, T = 2, 8
    INPUT_SIZE, HIDDEN_SIZE, NUM_LAYERS = 128, 128, 2

    key = jax.random.PRNGKey(0)
    key, pkey, xkey = jax.random.split(key, 3)

    params = init_lstm_params(pkey, INPUT_SIZE, HIDDEN_SIZE, NUM_LAYERS,
                              bidirectional=True)
    x = jax.random.normal(xkey, (B, T, INPUT_SIZE), jnp.float32)

    fwd = jax.jit(rnn_model_forward)
    out = jax.block_until_ready(fwd(x, params))

    assert out.shape == (B, T, 2 * HIDDEN_SIZE), out.shape
    assert bool(jnp.all(jnp.isfinite(out)))

    ref = rnn_reference(x, params)
    max_err = float(jnp.max(jnp.abs(out - ref)))
    assert max_err < 5e-2, f"max abs err vs reference: {max_err}"

    print("KERNEL_OK")
</pallas_src>

<mosaic_0001>
module attributes {stable_mosaic.version = 11 : i64} {
  func.func @_bilstm_layer_kernel(%arg0: i32, %arg1: memref<8x8x256xf32, #tpu.memory_space<vmem>>, %arg2: memref<2x256x512xbf16, #tpu.memory_space<vmem>>, %arg3: memref<2x128x512xbf16, #tpu.memory_space<vmem>>, %arg4: memref<2x1x512xf32, #tpu.memory_space<vmem>>, %arg5: memref<8x8x256xf32, #tpu.memory_space<vmem>>, %arg6: memref<8x8x512xf32, #tpu.memory_space<vmem>>, %arg7: memref<8x8x512xf32, #tpu.memory_space<vmem>>) attributes {dimension_semantics = [#tpu.dimension_semantics<arbitrary>], iteration_bounds = array<i64: 1>, scalar_prefetch = 0 : i64, scratch_operands = 2 : i64, tpu.core_type = #tpu.core_type<tc>, window_params = [{pipeline_mode = #tpu.pipeline_mode<synchronous>, transform_indices = @transform_0, window_bounds = array<i64: 8, 8, 256>}, {pipeline_mode = #tpu.pipeline_mode<synchronous>, transform_indices = @transform_1, window_bounds = array<i64: 2, 256, 512>}, {pipeline_mode = #tpu.pipeline_mode<synchronous>, transform_indices = @transform_2, window_bounds = array<i64: 2, 128, 512>}, {pipeline_mode = #tpu.pipeline_mode<synchronous>, transform_indices = @transform_3, window_bounds = array<i64: 2, 1, 512>}, {pipeline_mode = #tpu.pipeline_mode<synchronous>, transform_indices = @transform_4, window_bounds = array<i64: 8, 8, 256>}]} {
    %c0 = arith.constant 0 : index
    %c0_0 = arith.constant 0 : index
    %c0_1 = arith.constant 0 : index
    %0 = vector.load %arg1[%c0, %c0_0, %c0_1] : memref<8x8x256xf32, #tpu.memory_space<vmem>>, vector<8x8x256xf32>
    %1 = vector.shape_cast %0 : vector<8x8x256xf32> to vector<64x256xf32>
    %2 = arith.truncf %1 : vector<64x256xf32> to vector<64x256xbf16>
    %c0_2 = arith.constant 0 : index
    %c0_3 = arith.constant 0 : index
    %c0_4 = arith.constant 0 : index
    %3 = vector.load %arg2[%c0_2, %c0_3, %c0_4] : memref<2x256x512xbf16, #tpu.memory_space<vmem>>, vector<1x256x512xbf16>
    %4 = vector.shape_cast %3 : vector<1x256x512xbf16> to vector<256x512xbf16>
    %cst = arith.constant dense<0.000000e+00> : vector<64x512xf32>
    %5 = tpu.matmul %2, %4, %cst {dimension_numbers = #tpu.dot_dimension_numbers<[1], [0], [0], [1], [0, 0, 1, 1], [], []>} : vector<64x256xbf16>, vector<256x512xbf16>, vector<64x512xf32> -> vector<64x512xf32>
    %c0_5 = arith.constant 0 : index
    %c0_6 = arith.constant 0 : index
    %c0_7 = arith.constant 0 : index
    %6 = vector.load %arg4[%c0_5, %c0_6, %c0_7] : memref<2x1x512xf32, #tpu.memory_space<vmem>>, vector<1x1x512xf32>
    %7 = vector.shape_cast %6 : vector<1x1x512xf32> to vector<1x512xf32>
    %8 = vector.broadcast %7 : vector<1x512xf32> to vector<64x512xf32>
    %9 = arith.addf %5, %8 : vector<64x512xf32>
    %10 = vector.shape_cast %9 : vector<64x512xf32> to vector<8x8x512xf32>
    %c0_8 = arith.constant 0 : index
    %c0_9 = arith.constant 0 : index
    %c0_10 = arith.constant 0 : index
    %11 = vector.load %arg6[%c0_8, %c0_9, %c0_10] : memref<8x8x512xf32, #tpu.memory_space<vmem>>, vector<8x8x512xf32>
    tpu.vector_store %arg6[%c0_8, %c0_9, %c0_10], %10 {strides = array<i32>} : memref<8x8x512xf32, #tpu.memory_space<vmem>>, vector<8x8x512xf32>,
    %c1 = arith.constant 1 : index
    %c0_11 = arith.constant 0 : index
    %c0_12 = arith.constant 0 : index
    %12 = vector.load %arg2[%c1, %c0_11, %c0_12] : memref<2x256x512xbf16, #tpu.memory_space<vmem>>, vector<1x256x512xbf16>
    %13 = vector.shape_cast %12 : vector<1x256x512xbf16> to vector<256x512xbf16>
    %cst_13 = arith.constant dense<0.000000e+00> : vector<64x512xf32>
    %14 = tpu.matmul %2, %13, %cst_13 {dimension_numbers = #tpu.dot_dimension_numbers<[1], [0], [0], [1], [0, 0, 1, 1], [], []>} : vector<64x256xbf16>, vector<256x512xbf16>, vector<64x512xf32> -> vector<64x512xf32>
    %c1_14 = arith.constant 1 : index
    %c0_15 = arith.constant 0 : index
    %c0_16 = arith.constant 0 : index
    %15 = vector.load %arg4[%c1_14, %c0_15, %c0_16] : memref<2x1x512xf32, #tpu.memory_space<vmem>>, vector<1x1x512xf32>
    %16 = vector.shape_cast %15 : vector<1x1x512xf32> to vector<1x512xf32>
    %17 = vector.broadcast %16 : vector<1x512xf32> to vector<64x512xf32>
    %18 = arith.addf %14, %17 : vector<64x512xf32>
    %19 = vector.shape_cast %18 : vector<64x512xf32> to vector<8x8x512xf32>
    %c0_17 = arith.constant 0 : index
    %c0_18 = arith.constant 0 : index
    %c0_19 = arith.constant 0 : index
    %20 = vector.load %arg7[%c0_17, %c0_18, %c0_19] : memref<8x8x512xf32, #tpu.memory_space<vmem>>, vector<8x8x512xf32>
    tpu.vector_store %arg7[%c0_17, %c0_18, %c0_19], %19 {strides = array<i32>} : memref<8x8x512xf32, #tpu.memory_space<vmem>>, vector<8x8x512xf32>,
    %c0_20 = arith.constant 0 : index
    %c0_21 = arith.constant 0 : index
    %c0_22 = arith.constant 0 : index
    %21 = vector.load %arg3[%c0_20, %c0_21, %c0_22] : memref<2x128x512xbf16, #tpu.memory_space<vmem>>, vector<1x128x512xbf16>
    %22 = vector.shape_cast %21 : vector<1x128x512xbf16> to vector<128x512xbf16>
    %c1_23 = arith.constant 1 : index
    %c0_24 = arith.constant 0 : index
    %c0_25 = arith.constant 0 : index
    %23 = vector.load %arg3[%c1_23, %c0_24, %c0_25] : memref<2x128x512xbf16, #tpu.memory_space<vmem>>, vector<1x128x512xbf16>
    %24 = vector.shape_cast %23 : vector<1x128x512xbf16> to vector<128x512xbf16>
    %cst_26 = arith.constant 0.000000e+00 : f32
    %25 = vector.broadcast %cst_26 : f32 to vector<8x128xf32>
    %cst_27 = arith.constant 0.000000e+00 : f32
    %26 = vector.broadcast %cst_27 : f32 to vector<8x128xf32>
    %c0_28 = arith.constant 0 : index
    %c0_29 = arith.constant 0 : index
    %c0_30 = arith.constant 0 : index
    %27 = vector.load %arg6[%c0_28, %c0_29, %c0_30] : memref<8x8x512xf32, #tpu.memory_space<vmem>>, vector<1x8x512xf32>
    %28 = vector.shape_cast %27 : vector<1x8x512xf32> to vector<8x512xf32>
    %29 = arith.truncf %25 : vector<8x128xf32> to vector<8x128xbf16>
    %cst_31 = arith.constant dense<0.000000e+00> : vector<8x512xf32>
    %30 = tpu.matmul %29, %22, %cst_31 {dimension_numbers = #tpu.dot_dimension_numbers<[1], [0], [0], [1], [0, 0, 1, 1], [], []>} : vector<8x128xbf16>, vector<128x512xbf16>, vector<8x512xf32> -> vector<8x512xf32>
    %31 = arith.addf %28, %30 : vector<8x512xf32>
    %32 = vector.extract_strided_slice %31 {offsets = [0, 0], sizes = [8, 128], strides = [1, 1]} : vector<8x512xf32> to vector<8x128xf32>
    %33 = arith.negf %32 : vector<8x128xf32>
    %34 = math.exp %33 : vector<8x128xf32>
    %cst_32 = arith.constant 1.000000e+00 : f32
    %35 = vector.broadcast %cst_32 : f32 to vector<8x128xf32>
    %36 = arith.addf %35, %34 : vector<8x128xf32>
    %37 = arith.divf %35, %36 : vector<8x128xf32>
    %38 = vector.extract_strided_slice %31 {offsets = [0, 128], sizes = [8, 128], strides = [1, 1]} : vector<8x512xf32> to vector<8x128xf32>
    %39 = arith.negf %38 : vector<8x128xf32>
    %40 = math.exp %39 : vector<8x128xf32>
    %cst_33 = arith.constant 1.000000e+00 : f32
    %41 = vector.broadcast %cst_33 : f32 to vector<8x128xf32>
    %42 = arith.addf %41, %40 : vector<8x128xf32>
    %43 = arith.divf %41, %42 : vector<8x128xf32>
    %44 = vector.extract_strided_slice %31 {offsets = [0, 256], sizes = [8, 128], strides = [1, 1]} : vector<8x512xf32> to vector<8x128xf32>
    %45 = math.tanh %44 : vector<8x128xf32>
    %46 = vector.extract_strided_slice %31 {offsets = [0, 384], sizes = [8, 128], strides = [1, 1]} : vector<8x512xf32> to vector<8x128xf32>
    %47 = arith.negf %46 : vector<8x128xf32>
    %48 = math.exp %47 : vector<8x128xf32>
    %cst_34 = arith.constant 1.000000e+00 : f32
    %49 = vector.broadcast %cst_34 : f32 to vector<8x128xf32>
    %50 = arith.addf %49, %48 : vector<8x128xf32>
    %51 = arith.divf %49, %50 : vector<8x128xf32>
    %52 = arith.mulf %43, %26 : vector<8x128xf32>
    %53 = arith.mulf %37, %45 : vector<8x128xf32>
    %54 = arith.addf %52, %53 : vector<8x128xf32>
    %55 = math.tanh %54 : vector<8x128xf32>
    %56 = arith.mulf %51, %55 : vector<8x128xf32>
    %c0_35 = arith.constant 0 : index
    %c0_36 = arith.constant 0 : index
    %c0_37 = arith.constant 0 : index
    %57 = vector.load %arg5[%c0_35, %c0_36, %c0_37] : memref<8x8x256xf32, #tpu.memory_space<vmem>>, vector<1x8x128xf32>
    %58 = vector.shape_cast %57 : vector<1x8x128xf32> to vector<8x128xf32>
    %59 = vector.shape_cast %56 : vector<8x128xf32> to vector<1x8x128xf32>
    tpu.vector_store %arg5[%c0_35, %c0_36, %c0_37], %59 {strides = array<i32>} : memref<8x8x256xf32, #tpu.memory_space<vmem>>, vector<1x8x128xf32>,
    %c1_38 = arith.constant 1 : index
    %c0_39 = arith.constant 0 : index
    %c0_40 = arith.constant 0 : index
    %60 = vector.load %arg6[%c1_38, %c0_39, %c0_40] : memref<8x8x512xf32, #tpu.memory_space<vmem>>, vector<1x8x512xf32>
    %61 = vector.shape_cast %60 : vector<1x8x512xf32> to vector<8x512xf32>
    %62 = arith.truncf %56 : vector<8x128xf32> to vector<8x128xbf16>
    %cst_41 = arith.constant dense<0.000000e+00> : vector<8x512xf32>
    %63 = tpu.matmul %62, %22, %cst_41 {dimension_numbers = #tpu.dot_dimension_numbers<[1], [0], [0], [1], [0, 0, 1, 1], [], []>} : vector<8x128xbf16>, vector<128x512xbf16>, vector<8x512xf32> -> vector<8x512xf32>
    %64 = arith.addf %61, %63 : vector<8x512xf32>
    %65 = vector.extract_strided_slice %64 {offsets = [0, 0], sizes = [8, 128], strides = [1, 1]} : vector<8x512xf32> to vector<8x128xf32>
    %66 = arith.negf %65 : vector<8x128xf32>
    %67 = math.exp %66 : vector<8x128xf32>
    %cst_42 = arith.constant 1.000000e+00 : f32
    %68 = vector.broadcast %cst_42 : f32 to vector<8x128xf32>
    %69 = arith.addf %68, %67 : vector<8x128xf32>
    %70 = arith.divf %68, %69 : vector<8x128xf32>
    %71 = vector.extract_strided_slice %64 {offsets = [0, 128], sizes = [8, 128], strides = [1, 1]} : vector<8x512xf32> to vector<8x128xf32>
    %72 = arith.negf %71 : vector<8x128xf32>
    %73 = math.exp %72 : vector<8x128xf32>
    %cst_43 = arith.constant 1.000000e+00 : f32
    %74 = vector.broadcast %cst_43 : f32 to vector<8x128xf32>
    %75 = arith.addf %74, %73 : vector<8x128xf32>
    %76 = arith.divf %74, %75 : vector<8x128xf32>
    %77 = vector.extract_strided_slice %64 {offsets = [0, 256], sizes = [8, 128], strides = [1, 1]} : vector<8x512xf32> to vector<8x128xf32>
    %78 = math.tanh %77 : vector<8x128xf32>
    %79 = vector.extract_strided_slice %64 {offsets = [0, 384], sizes = [8, 128], strides = [1, 1]} : vector<8x512xf32> to vector<8x128xf32>
    %80 = arith.negf %79 : vector<8x128xf32>
    %81 = math.exp %80 : vector<8x128xf32>
    %cst_44 = arith.constant 1.000000e+00 : f32
    %82 = vector.broadcast %cst_44 : f32 to vector<8x128xf32>
    %83 = arith.addf %82, %81 : vector<8x128xf32>
    %84 = arith.divf %82, %83 : vector<8x128xf32>
    %85 = arith.mulf %76, %54 : vector<8x128xf32>
    %86 = arith.mulf %70, %78 : vector<8x128xf32>
    %87 = arith.addf %85, %86 : vector<8x128xf32>
    %88 = math.tanh %87 : vector<8x128xf32>
    %89 = arith.mulf %84, %88 : vector<8x128xf32>
    %c1_45 = arith.constant 1 : index
    %c0_46 = arith.constant 0 : index
    %c0_47 = arith.constant 0 : index
    %90 = vector.load %arg5[%c1_45, %c0_46, %c0_47] : memref<8x8x256xf32, #tpu.memory_space<vmem>>, vector<1x8x128xf32>
    %91 = vector.shape_cast %90 : vector<1x8x128xf32> to vector<8x128xf32>
    %92 = vector.shape_cast %89 : vector<8x128xf32> to vector<1x8x128xf32>
    tpu.vector_store %arg5[%c1_45, %c0_46, %c0_47], %92 {strides = array<i32>} : memref<8x8x256xf32, #tpu.memory_space<vmem>>, vector<1x8x128xf32>,
    %c2 = arith.constant 2 : index
    %c0_48 = arith.constant 0 : index
    %c0_49 = arith.constant 0 : index
    %93 = vector.load %arg6[%c2, %c0_48, %c0_49] : memref<8x8x512xf32, #tpu.memory_space<vmem>>, vector<1x8x512xf32>
    %94 = vector.shape_cast %93 : vector<1x8x512xf32> to vector<8x512xf32>
    %95 = arith.truncf %89 : vector<8x128xf32> to vector<8x128xbf16>
    %cst_50 = arith.constant dense<0.000000e+00> : vector<8x512xf32>
    %96 = tpu.matmul %95, %22, %cst_50 {dimension_numbers = #tpu.dot_dimension_numbers<[1], [0], [0], [1], [0, 0, 1, 1], [], []>} : vector<8x128xbf16>, vector<128x512xbf16>, vector<8x512xf32> -> vector<8x512xf32>
    %97 = arith.addf %94, %96 : vector<8x512xf32>
    %98 = vector.extract_strided_slice %97 {offsets = [0, 0], sizes = [8, 128], strides = [1, 1]} : vector<8x512xf32> to vector<8x128xf32>
    %99 = arith.negf %98 : vector<8x128xf32>
    %100 = math.exp %99 : vector<8x128xf32>
    %cst_51 = arith.constant 1.000000e+00 : f32
    %101 = vector.broadcast %cst_51 : f32 to vector<8x128xf32>
    %102 = arith.addf %101, %100 : vector<8x128xf32>
    %103 = arith.divf %101, %102 : vector<8x128xf32>
    %104 = vector.extract_strided_slice %97 {offsets = [0, 128], sizes = [8, 128], strides = [1, 1]} : vector<8x512xf32> to vector<8x128xf32>
    %105 = arith.negf %104 : vector<8x128xf32>
    %106 = math.exp %105 : vector<8x128xf32>
    %cst_52 = arith.constant 1.000000e+00 : f32
    %107 = vector.broadcast %cst_52 : f32 to vector<8x128xf32>
    %108 = arith.addf %107, %106 : vector<8x128xf32>
    %109 = arith.divf %107, %108 : vector<8x128xf32>
    %110 = vector.extract_strided_slice %97 {offsets = [0, 256], sizes = [8, 128], strides = [1, 1]} : vector<8x512xf32> to vector<8x128xf32>
    %111 = math.tanh %110 : vector<8x128xf32>
    %112 = vector.extract_strided_slice %97 {offsets = [0, 384], sizes = [8, 128], strides = [1, 1]} : vector<8x512xf32> to vector<8x128xf32>
    %113 = arith.negf %112 : vector<8x128xf32>
    %114 = math.exp %113 : vector<8x128xf32>
    %cst_53 = arith.constant 1.000000e+00 : f32
    %115 = vector.broadcast %cst_53 : f32 to vector<8x128xf32>
    %116 = arith.addf %115, %114 : vector<8x128xf32>
    %117 = arith.divf %115, %116 : vector<8x128xf32>
    %118 = arith.mulf %109, %87 : vector<8x128xf32>
    %119 = arith.mulf %103, %111 : vector<8x128xf32>
    %120 = arith.addf %118, %119 : vector<8x128xf32>
    %121 = math.tanh %120 : vector<8x128xf32>
    %122 = arith.mulf %117, %121 : vector<8x128xf32>
    %c2_54 = arith.constant 2 : index
    %c0_55 = arith.constant 0 : index
    %c0_56 = arith.constant 0 : index
    %123 = vector.load %arg5[%c2_54, %c0_55, %c0_56] : memref<8x8x256xf32, #tpu.memory_space<vmem>>, vector<1x8x128xf32>
    %124 = vector.shape_cast %123 : vector<1x8x128xf32> to vector<8x128xf32>
    %125 = vector.shape_cast %122 : vector<8x128xf32> to vector<1x8x128xf32>
    tpu.vector_store %arg5[%c2_54, %c0_55, %c0_56], %125 {strides = array<i32>} : memref<8x8x256xf32, #tpu.memory_space<vmem>>, vector<1x8x128xf32>,
    %c3 = arith.constant 3 : index
    %c0_57 = arith.constant 0 : index
    %c0_58 = arith.constant 0 : index
    %126 = vector.load %arg6[%c3, %c0_57, %c0_58] : memref<8x8x512xf32, #tpu.memory_space<vmem>>, vector<1x8x512xf32>
    %127 = vector.shape_cast %126 : vector<1x8x512xf32> to vector<8x512xf32>
    %128 = arith.truncf %122 : vector<8x128xf32> to vector<8x128xbf16>
    %cst_59 = arith.constant dense<0.000000e+00> : vector<8x512xf32>
    %129 = tpu.matmul %128, %22, %cst_59 {dimension_numbers = #tpu.dot_dimension_numbers<[1], [0], [0], [1], [0, 0, 1, 1], [], []>} : vector<8x128xbf16>, vector<128x512xbf16>, vector<8x512xf32> -> vector<8x512xf32>
    %130 = arith.addf %127, %129 : vector<8x512xf32>
    %131 = vector.extract_strided_slice %130 {offsets = [0, 0], sizes = [8, 128], strides = [1, 1]} : vector<8x512xf32> to vector<8x128xf32>
    %132 = arith.negf %131 : vector<8x128xf32>
    %133 = math.exp %132 : vector<8x128xf32>
    %cst_60 = arith.constant 1.000000e+00 : f32
    %134 = vector.broadcast %cst_60 : f32 to vector<8x128xf32>
    %135 = arith.addf %134, %133 : vector<8x128xf32>
    %136 = arith.divf %134, %135 : vector<8x128xf32>
    %137 = vector.extract_strided_slice %130 {offsets = [0, 128], sizes = [8, 128], strides = [1, 1]} : vector<8x512xf32> to vector<8x128xf32>
    %138 = arith.negf %137 : vector<8x128xf32>
    %139 = math.exp %138 : vector<8x128xf32>
    %cst_61 = arith.constant 1.000000e+00 : f32
    %140 = vector.broadcast %cst_61 : f32 to vector<8x128xf32>
    %141 = arith.addf %140, %139 : vector<8x128xf32>
    %142 = arith.divf %140, %141 : vector<8x128xf32>
    %143 = vector.extract_strided_slice %130 {offsets = [0, 256], sizes = [8, 128], strides = [1, 1]} : vector<8x512xf32> to vector<8x128xf32>
    %144 = math.tanh %143 : vector<8x128xf32>
    %145 = vector.extract_strided_slice %130 {offsets = [0, 384], sizes = [8, 128], strides = [1, 1]} : vector<8x512xf32> to vector<8x128xf32>
    %146 = arith.negf %145 : vector<8x128xf32>
    %147 = math.exp %146 : vector<8x128xf32>
    %cst_62 = arith.constant 1.000000e+00 : f32
    %148 = vector.broadcast %cst_62 : f32 to vector<8x128xf32>
    %149 = arith.addf %148, %147 : vector<8x128xf32>
    %150 = arith.divf %148, %149 : vector<8x128xf32>
    %151 = arith.mulf %142, %120 : vector<8x128xf32>
    %152 = arith.mulf %136, %144 : vector<8x128xf32>
    %153 = arith.addf %151, %152 : vector<8x128xf32>
    %154 = math.tanh %153 : vector<8x128xf32>
    %155 = arith.mulf %150, %154 : vector<8x128xf32>
    %c3_63 = arith.constant 3 : index
    %c0_64 = arith.constant 0 : index
    %c0_65 = arith.constant 0 : index
    %156 = vector.load %arg5[%c3_63, %c0_64, %c0_65] : memref<8x8x256xf32, #tpu.memory_space<vmem>>, vector<1x8x128xf32>
    %157 = vector.shape_cast %156 : vector<1x8x128xf32> to vector<8x128xf32>
    %158 = vector.shape_cast %155 : vector<8x128xf32> to vector<1x8x128xf32>
    tpu.vector_store %arg5[%c3_63, %c0_64, %c0_65], %158 {strides = array<i32>} : memref<8x8x256xf32, #tpu.memory_space<vmem>>, vector<1x8x128xf32>,
    %c4 = arith.constant 4 : index
    %c0_66 = arith.constant 0 : index
    %c0_67 = arith.constant 0 : index
    %159 = vector.load %arg6[%c4, %c0_66, %c0_67] : memref<8x8x512xf32, #tpu.memory_space<vmem>>, vector<1x8x512xf32>
    %160 = vector.shape_cast %159 : vector<1x8x512xf32> to vector<8x512xf32>
    %161 = arith.truncf %155 : vector<8x128xf32> to vector<8x128xbf16>
    %cst_68 = arith.constant dense<0.000000e+00> : vector<8x512xf32>
    %162 = tpu.matmul %161, %22, %cst_68 {dimension_numbers = #tpu.dot_dimension_numbers<[1], [0], [0], [1], [0, 0, 1, 1], [], []>} : vector<8x128xbf16>, vector<128x512xbf16>, vector<8x512xf32> -> vector<8x512xf32>
    %163 = arith.addf %160, %162 : vector<8x512xf32>
    %164 = vector.extract_strided_slice %163 {offsets = [0, 0], sizes = [8, 128], strides = [1, 1]} : vector<8x512xf32> to vector<8x128xf32>
    %165 = arith.negf %164 : vector<8x128xf32>
    %166 = math.exp %165 : vector<8x128xf32>
    %cst_69 = arith.constant 1.000000e+00 : f32
    %167 = vector.broadcast %cst_69 : f32 to vector<8x128xf32>
    %168 = arith.addf %167, %166 : vector<8x128xf32>
    %169 = arith.divf %167, %168 : vector<8x128xf32>
    %170 = vector.extract_strided_slice %163 {offsets = [0, 128], sizes = [8, 128], strides = [1, 1]} : vector<8x512xf32> to vector<8x128xf32>
    %171 = arith.negf %170 : vector<8x128xf32>
    %172 = math.exp %171 : vector<8x128xf32>
    %cst_70 = arith.constant 1.000000e+00 : f32
    %173 = vector.broadcast %cst_70 : f32 to vector<8x128xf32>
    %174 = arith.addf %173, %172 : vector<8x128xf32>
    %175 = arith.divf %173, %174 : vector<8x128xf32>
    %176 = vector.extract_strided_slice %163 {offsets = [0, 256], sizes = [8, 128], strides = [1, 1]} : vector<8x512xf32> to vector<8x128xf32>
    %177 = math.tanh %176 : vector<8x128xf32>
    %178 = vector.extract_strided_slice %163 {offsets = [0, 384], sizes = [8, 128], strides = [1, 1]} : vector<8x512xf32> to vector<8x128xf32>
    %179 = arith.negf %178 : vector<8x128xf32>
    %180 = math.exp %179 : vector<8x128xf32>
    %cst_71 = arith.constant 1.000000e+00 : f32
    %181 = vector.broadcast %cst_71 : f32 to vector<8x128xf32>
    %182 = arith.addf %181, %180 : vector<8x128xf32>
    %183 = arith.divf %181, %182 : vector<8x128xf32>
    %184 = arith.mulf %175, %153 : vector<8x128xf32>
    %185 = arith.mulf %169, %177 : vector<8x128xf32>
    %186 = arith.addf %184, %185 : vector<8x128xf32>
    %187 = math.tanh %186 : vector<8x128xf32>
    %188 = arith.mulf %183, %187 : vector<8x128xf32>
    %c4_72 = arith.constant 4 : index
    %c0_73 = arith.constant 0 : index
    %c0_74 = arith.constant 0 : index
    %189 = vector.load %arg5[%c4_72, %c0_73, %c0_74] : memref<8x8x256xf32, #tpu.memory_space<vmem>>, vector<1x8x128xf32>
    %190 = vector.shape_cast %189 : vector<1x8x128xf32> to vector<8x128xf32>
    %191 = vector.shape_cast %188 : vector<8x128xf32> to vector<1x8x128xf32>
    tpu.vector_store %arg5[%c4_72, %c0_73, %c0_74], %191 {strides = array<i32>} : memref<8x8x256xf32, #tpu.memory_space<vmem>>, vector<1x8x128xf32>,
    %c5 = arith.constant 5 : index
    %c0_75 = arith.constant 0 : index
    %c0_76 = arith.constant 0 : index
    %192 = vector.load %arg6[%c5, %c0_75, %c0_76] : memref<8x8x512xf32, #tpu.memory_space<vmem>>, vector<1x8x512xf32>
    %193 = vector.shape_cast %192 : vector<1x8x512xf32> to vector<8x512xf32>
    %194 = arith.truncf %188 : vector<8x128xf32> to vector<8x128xbf16>
    %cst_77 = arith.constant dense<0.000000e+00> : vector<8x512xf32>
    %195 = tpu.matmul %194, %22, %cst_77 {dimension_numbers = #tpu.dot_dimension_numbers<[1], [0], [0], [1], [0, 0, 1, 1], [], []>} : vector<8x128xbf16>, vector<128x512xbf16>, vector<8x512xf32> -> vector<8x512xf32>
    %196 = arith.addf %193, %195 : vector<8x512xf32>
    %197 = vector.extract_strided_slice %196 {offsets = [0, 0], sizes = [8, 128], strides = [1, 1]} : vector<8x512xf32> to vector<8x128xf32>
    %198 = arith.negf %197 : vector<8x128xf32>
    %199 = math.exp %198 : vector<8x128xf32>
    %cst_78 = arith.constant 1.000000e+00 : f32
    %200 = vector.broadcast %cst_78 : f32 to vector<8x128xf32>
    %201 = arith.addf %200, %199 : vector<8x128xf32>
    %202 = arith.divf %200, %201 : vector<8x128xf32>
    %203 = vector.extract_strided_slice %196 {offsets = [0, 128], sizes = [8, 128], strides = [1, 1]} : vector<8x512xf32> to vector<8x128xf32>
    %204 = arith.negf %203 : vector<8x128xf32>
    %205 = math.exp %204 : vector<8x128xf32>
    %cst_79 = arith.constant 1.000000e+00 : f32
    %206 = vector.broadcast %cst_79 : f32 to vector<8x128xf32>
    %207 = arith.addf %206, %205 : vector<8x128xf32>
    %208 = arith.divf %206, %207 : vector<8x128xf32>
    %209 = vector.extract_strided_slice %196 {offsets = [0, 256], sizes = [8, 128], strides = [1, 1]} : vector<8x512xf32> to vector<8x128xf32>
    %210 = math.tanh %209 : vector<8x128xf32>
    %211 = vector.extract_strided_slice %196 {offsets = [0, 384], sizes = [8, 128], strides = [1, 1]} : vector<8x512xf32> to vector<8x128xf32>
    %212 = arith.negf %211 : vector<8x128xf32>
    %213 = math.exp %212 : vector<8x128xf32>
    %cst_80 = arith.constant 1.000000e+00 : f32
    %214 = vector.broadcast %cst_80 : f32 to vector<8x128xf32>
    %215 = arith.addf %214, %213 : vector<8x128xf32>
    %216 = arith.divf %214, %215 : vector<8x128xf32>
    %217 = arith.mulf %208, %186 : vector<8x128xf32>
    %218 = arith.mulf %202, %210 : vector<8x128xf32>
    %219 = arith.addf %217, %218 : vector<8x128xf32>
    %220 = math.tanh %219 : vector<8x128xf32>
    %221 = arith.mulf %216, %220 : vector<8x128xf32>
    %c5_81 = arith.constant 5 : index
    %c0_82 = arith.constant 0 : index
    %c0_83 = arith.constant 0 : index
    %222 = vector.load %arg5[%c5_81, %c0_82, %c0_83] : memref<8x8x256xf32, #tpu.memory_space<vmem>>, vector<1x8x128xf32>
    %223 = vector.shape_cast %222 : vector<1x8x128xf32> to vector<8x128xf32>
    %224 = vector.shape_cast %221 : vector<8x128xf32> to vector<1x8x128xf32>
    tpu.vector_store %arg5[%c5_81, %c0_82, %c0_83], %224 {strides = array<i32>} : memref<8x8x256xf32, #tpu.memory_space<vmem>>, vector<1x8x128xf32>,
    %c6 = arith.constant 6 : index
    %c0_84 = arith.constant 0 : index
    %c0_85 = arith.constant 0 : index
    %225 = vector.load %arg6[%c6, %c0_84, %c0_85] : memref<8x8x512xf32, #tpu.memory_space<vmem>>, vector<1x8x512xf32>
    %226 = vector.shape_cast %225 : vector<1x8x512xf32> to vector<8x512xf32>
    %227 = arith.truncf %221 : vector<8x128xf32> to vector<8x128xbf16>
    %cst_86 = arith.constant dense<0.000000e+00> : vector<8x512xf32>
    %228 = tpu.matmul %227, %22, %cst_86 {dimension_numbers = #tpu.dot_dimension_numbers<[1], [0], [0], [1], [0, 0, 1, 1], [], []>} : vector<8x128xbf16>, vector<128x512xbf16>, vector<8x512xf32> -> vector<8x512xf32>
    %229 = arith.addf %226, %228 : vector<8x512xf32>
    %230 = vector.extract_strided_slice %229 {offsets = [0, 0], sizes = [8, 128], strides = [1, 1]} : vector<8x512xf32> to vector<8x128xf32>
    %231 = arith.negf %230 : vector<8x128xf32>
    %232 = math.exp %231 : vector<8x128xf32>
    %cst_87 = arith.constant 1.000000e+00 : f32
    %233 = vector.broadcast %cst_87 : f32 to vector<8x128xf32>
    %234 = arith.addf %233, %232 : vector<8x128xf32>
    %235 = arith.divf %233, %234 : vector<8x128xf32>
    %236 = vector.extract_strided_slice %229 {offsets = [0, 128], sizes = [8, 128], strides = [1, 1]} : vector<8x512xf32> to vector<8x128xf32>
    %237 = arith.negf %236 : vector<8x128xf32>
    %238 = math.exp %237 : vector<8x128xf32>
    %cst_88 = arith.constant 1.000000e+00 : f32
    %239 = vector.broadcast %cst_88 : f32 to vector<8x128xf32>
    %240 = arith.addf %239, %238 : vector<8x128xf32>
    %241 = arith.divf %239, %240 : vector<8x128xf32>
    %242 = vector.extract_strided_slice %229 {offsets = [0, 256], sizes = [8, 128], strides = [1, 1]} : vector<8x512xf32> to vector<8x128xf32>
    %243 = math.tanh %242 : vector<8x128xf32>
    %244 = vector.extract_strided_slice %229 {offsets = [0, 384], sizes = [8, 128], strides = [1, 1]} : vector<8x512xf32> to vector<8x128xf32>
    %245 = arith.negf %244 : vector<8x128xf32>
    %246 = math.exp %245 : vector<8x128xf32>
    %cst_89 = arith.constant 1.000000e+00 : f32
    %247 = vector.broadcast %cst_89 : f32 to vector<8x128xf32>
    %248 = arith.addf %247, %246 : vector<8x128xf32>
    %249 = arith.divf %247, %248 : vector<8x128xf32>
    %250 = arith.mulf %241, %219 : vector<8x128xf32>
    %251 = arith.mulf %235, %243 : vector<8x128xf32>
    %252 = arith.addf %250, %251 : vector<8x128xf32>
    %253 = math.tanh %252 : vector<8x128xf32>
    %254 = arith.mulf %249, %253 : vector<8x128xf32>
    %c6_90 = arith.constant 6 : index
    %c0_91 = arith.constant 0 : index
    %c0_92 = arith.constant 0 : index
    %255 = vector.load %arg5[%c6_90, %c0_91, %c0_92] : memref<8x8x256xf32, #tpu.memory_space<vmem>>, vector<1x8x128xf32>
    %256 = vector.shape_cast %255 : vector<1x8x128xf32> to vector<8x128xf32>
    %257 = vector.shape_cast %254 : vector<8x128xf32> to vector<1x8x128xf32>
    tpu.vector_store %arg5[%c6_90, %c0_91, %c0_92], %257 {strides = array<i32>} : memref<8x8x256xf32, #tpu.memory_space<vmem>>, vector<1x8x128xf32>,
    %c7 = arith.constant 7 : index
    %c0_93 = arith.constant 0 : index
    %c0_94 = arith.constant 0 : index
    %258 = vector.load %arg6[%c7, %c0_93, %c0_94] : memref<8x8x512xf32, #tpu.memory_space<vmem>>, vector<1x8x512xf32>
    %259 = vector.shape_cast %258 : vector<1x8x512xf32> to vector<8x512xf32>
    %260 = arith.truncf %254 : vector<8x128xf32> to vector<8x128xbf16>
    %cst_95 = arith.constant dense<0.000000e+00> : vector<8x512xf32>
    %261 = tpu.matmul %260, %22, %cst_95 {dimension_numbers = #tpu.dot_dimension_numbers<[1], [0], [0], [1], [0, 0, 1, 1], [], []>} : vector<8x128xbf16>, vector<128x512xbf16>, vector<8x512xf32> -> vector<8x512xf32>
    %262 = arith.addf %259, %261 : vector<8x512xf32>
    %263 = vector.extract_strided_slice %262 {offsets = [0, 0], sizes = [8, 128], strides = [1, 1]} : vector<8x512xf32> to vector<8x128xf32>
    %264 = arith.negf %263 : vector<8x128xf32>
    %265 = math.exp %264 : vector<8x128xf32>
    %cst_96 = arith.constant 1.000000e+00 : f32
    %266 = vector.broadcast %cst_96 : f32 to vector<8x128xf32>
    %267 = arith.addf %266, %265 : vector<8x128xf32>
    %268 = arith.divf %266, %267 : vector<8x128xf32>
    %269 = vector.extract_strided_slice %262 {offsets = [0, 128], sizes = [8, 128], strides = [1, 1]} : vector<8x512xf32> to vector<8x128xf32>
    %270 = arith.negf %269 : vector<8x128xf32>
    %271 = math.exp %270 : vector<8x128xf32>
    %cst_97 = arith.constant 1.000000e+00 : f32
    %272 = vector.broadcast %cst_97 : f32 to vector<8x128xf32>
    %273 = arith.addf %272, %271 : vector<8x128xf32>
    %274 = arith.divf %272, %273 : vector<8x128xf32>
    %275 = vector.extract_strided_slice %262 {offsets = [0, 256], sizes = [8, 128], strides = [1, 1]} : vector<8x512xf32> to vector<8x128xf32>
    %276 = math.tanh %275 : vector<8x128xf32>
    %277 = vector.extract_strided_slice %262 {offsets = [0, 384], sizes = [8, 128], strides = [1, 1]} : vector<8x512xf32> to vector<8x128xf32>
    %278 = arith.negf %277 : vector<8x128xf32>
    %279 = math.exp %278 : vector<8x128xf32>
    %cst_98 = arith.constant 1.000000e+00 : f32
    %280 = vector.broadcast %cst_98 : f32 to vector<8x128xf32>
    %281 = arith.addf %280, %279 : vector<8x128xf32>
    %282 = arith.divf %280, %281 : vector<8x128xf32>
    %283 = arith.mulf %274, %252 : vector<8x128xf32>
    %284 = arith.mulf %268, %276 : vector<8x128xf32>
    %285 = arith.addf %283, %284 : vector<8x128xf32>
    %286 = math.tanh %285 : vector<8x128xf32>
    %287 = arith.mulf %282, %286 : vector<8x128xf32>
    %c7_99 = arith.constant 7 : index
    %c0_100 = arith.constant 0 : index
    %c0_101 = arith.constant 0 : index
    %288 = vector.load %arg5[%c7_99, %c0_100, %c0_101] : memref<8x8x256xf32, #tpu.memory_space<vmem>>, vector<1x8x128xf32>
    %289 = vector.shape_cast %288 : vector<1x8x128xf32> to vector<8x128xf32>
    %290 = vector.shape_cast %287 : vector<8x128xf32> to vector<1x8x128xf32>
    tpu.vector_store %arg5[%c7_99, %c0_100, %c0_101], %290 {strides = array<i32>} : memref<8x8x256xf32, #tpu.memory_space<vmem>>, vector<1x8x128xf32>,
    %cst_102 = arith.constant 0.000000e+00 : f32
    %291 = vector.broadcast %cst_102 : f32 to vector<8x128xf32>
    %cst_103 = arith.constant 0.000000e+00 : f32
    %292 = vector.broadcast %cst_103 : f32 to vector<8x128xf32>
    %c7_104 = arith.constant 7 : index
    %c0_105 = arith.constant 0 : index
    %c0_106 = arith.constant 0 : index
    %293 = vector.load %arg7[%c7_104, %c0_105, %c0_106] : memref<8x8x512xf32, #tpu.memory_space<vmem>>, vector<1x8x512xf32>
    %294 = vector.shape_cast %293 : vector<1x8x512xf32> to vector<8x512xf32>
    %295 = arith.truncf %291 : vector<8x128xf32> to vector<8x128xbf16>
    %cst_107 = arith.constant dense<0.000000e+00> : vector<8x512xf32>
    %296 = tpu.matmul %295, %24, %cst_107 {dimension_numbers = #tpu.dot_dimension_numbers<[1], [0], [0], [1], [0, 0, 1, 1], [], []>} : vector<8x128xbf16>, vector<128x512xbf16>, vector<8x512xf32> -> vector<8x512xf32>
    %297 = arith.addf %294, %296 : vector<8x512xf32>
    %298 = vector.extract_strided_slice %297 {offsets = [0, 0], sizes = [8, 128], strides = [1, 1]} : vector<8x512xf32> to vector<8x128xf32>
    %299 = arith.negf %298 : vector<8x128xf32>
    %300 = math.exp %299 : vector<8x128xf32>
    %cst_108 = arith.constant 1.000000e+00 : f32
    %301 = vector.broadcast %cst_108 : f32 to vector<8x128xf32>
    %302 = arith.addf %301, %300 : vector<8x128xf32>
    %303 = arith.divf %301, %302 : vector<8x128xf32>
    %304 = vector.extract_strided_slice %297 {offsets = [0, 128], sizes = [8, 128], strides = [1, 1]} : vector<8x512xf32> to vector<8x128xf32>
    %305 = arith.negf %304 : vector<8x128xf32>
    %306 = math.exp %305 : vector<8x128xf32>
    %cst_109 = arith.constant 1.000000e+00 : f32
    %307 = vector.broadcast %cst_109 : f32 to vector<8x128xf32>
    %308 = arith.addf %307, %306 : vector<8x128xf32>
    %309 = arith.divf %307, %308 : vector<8x128xf32>
    %310 = vector.extract_strided_slice %297 {offsets = [0, 256], sizes = [8, 128], strides = [1, 1]} : vector<8x512xf32> to vector<8x128xf32>
    %311 = math.tanh %310 : vector<8x128xf32>
    %312 = vector.extract_strided_slice %297 {offsets = [0, 384], sizes = [8, 128], strides = [1, 1]} : vector<8x512xf32> to vector<8x128xf32>
    %313 = arith.negf %312 : vector<8x128xf32>
    %314 = math.exp %313 : vector<8x128xf32>
    %cst_110 = arith.constant 1.000000e+00 : f32
    %315 = vector.broadcast %cst_110 : f32 to vector<8x128xf32>
    %316 = arith.addf %315, %314 : vector<8x128xf32>
    %317 = arith.divf %315, %316 : vector<8x128xf32>
    %318 = arith.mulf %309, %292 : vector<8x128xf32>
    %319 = arith.mulf %303, %311 : vector<8x128xf32>
    %320 = arith.addf %318, %319 : vector<8x128xf32>
    %321 = math.tanh %320 : vector<8x128xf32>
    %322 = arith.mulf %317, %321 : vector<8x128xf32>
    %c7_111 = arith.constant 7 : index
    %c0_112 = arith.constant 0 : index
    %c128 = arith.constant 128 : index
    %323 = vector.load %arg5[%c7_111, %c0_112, %c128] : memref<8x8x256xf32, #tpu.memory_space<vmem>>, vector<1x8x128xf32>
    %324 = vector.shape_cast %323 : vector<1x8x128xf32> to vector<8x128xf32>
    %325 = vector.shape_cast %322 : vector<8x128xf32> to vector<1x8x128xf32>
    tpu.vector_store %arg5[%c7_111, %c0_112, %c128], %325 {strides = array<i32>} : memref<8x8x256xf32, #tpu.memory_space<vmem>>, vector<1x8x128xf32>,
    %c6_113 = arith.constant 6 : index
    %c0_114 = arith.constant 0 : index
    %c0_115 = arith.constant 0 : index
    %326 = vector.load %arg7[%c6_113, %c0_114, %c0_115] : memref<8x8x512xf32, #tpu.memory_space<vmem>>, vector<1x8x512xf32>
    %327 = vector.shape_cast %326 : vector<1x8x512xf32> to vector<8x512xf32>
    %328 = arith.truncf %322 : vector<8x128xf32> to vector<8x128xbf16>
    %cst_116 = arith.constant dense<0.000000e+00> : vector<8x512xf32>
    %329 = tpu.matmul %328, %24, %cst_116 {dimension_numbers = #tpu.dot_dimension_numbers<[1], [0], [0], [1], [0, 0, 1, 1], [], []>} : vector<8x128xbf16>, vector<128x512xbf16>, vector<8x512xf32> -> vector<8x512xf32>
    %330 = arith.addf %327, %329 : vector<8x512xf32>
    %331 = vector.extract_strided_slice %330 {offsets = [0, 0], sizes = [8, 128], strides = [1, 1]} : vector<8x512xf32> to vector<8x128xf32>
    %332 = arith.negf %331 : vector<8x128xf32>
    %333 = math.exp %332 : vector<8x128xf32>
    %cst_117 = arith.constant 1.000000e+00 : f32
    %334 = vector.broadcast %cst_117 : f32 to vector<8x128xf32>
    %335 = arith.addf %334, %333 : vector<8x128xf32>
    %336 = arith.divf %334, %335 : vector<8x128xf32>
    %337 = vector.extract_strided_slice %330 {offsets = [0, 128], sizes = [8, 128], strides = [1, 1]} : vector<8x512xf32> to vector<8x128xf32>
    %338 = arith.negf %337 : vector<8x128xf32>
    %339 = math.exp %338 : vector<8x128xf32>
    %cst_118 = arith.constant 1.000000e+00 : f32
    %340 = vector.broadcast %cst_118 : f32 to vector<8x128xf32>
    %341 = arith.addf %340, %339 : vector<8x128xf32>
    %342 = arith.divf %340, %341 : vector<8x128xf32>
    %343 = vector.extract_strided_slice %330 {offsets = [0, 256], sizes = [8, 128], strides = [1, 1]} : vector<8x512xf32> to vector<8x128xf32>
    %344 = math.tanh %343 : vector<8x128xf32>
    %345 = vector.extract_strided_slice %330 {offsets = [0, 384], sizes = [8, 128], strides = [1, 1]} : vector<8x512xf32> to vector<8x128xf32>
    %346 = arith.negf %345 : vector<8x128xf32>
    %347 = math.exp %346 : vector<8x128xf32>
    %cst_119 = arith.constant 1.000000e+00 : f32
    %348 = vector.broadcast %cst_119 : f32 to vector<8x128xf32>
    %349 = arith.addf %348, %347 : vector<8x128xf32>
    %350 = arith.divf %348, %349 : vector<8x128xf32>
    %351 = arith.mulf %342, %320 : vector<8x128xf32>
    %352 = arith.mulf %336, %344 : vector<8x128xf32>
    %353 = arith.addf %351, %352 : vector<8x128xf32>
    %354 = math.tanh %353 : vector<8x128xf32>
    %355 = arith.mulf %350, %354 : vector<8x128xf32>
    %c6_120 = arith.constant 6 : index
    %c0_121 = arith.constant 0 : index
    %c128_122 = arith.constant 128 : index
    %356 = vector.load %arg5[%c6_120, %c0_121, %c128_122] : memref<8x8x256xf32, #tpu.memory_space<vmem>>, vector<1x8x128xf32>
    %357 = vector.shape_cast %356 : vector<1x8x128xf32> to vector<8x128xf32>
    %358 = vector.shape_cast %355 : vector<8x128xf32> to vector<1x8x128xf32>
    tpu.vector_store %arg5[%c6_120, %c0_121, %c128_122], %358 {strides = array<i32>} : memref<8x8x256xf32, #tpu.memory_space<vmem>>, vector<1x8x128xf32>,
    %c5_123 = arith.constant 5 : index
    %c0_124 = arith.constant 0 : index
    %c0_125 = arith.constant 0 : index
    %359 = vector.load %arg7[%c5_123, %c0_124, %c0_125] : memref<8x8x512xf32, #tpu.memory_space<vmem>>, vector<1x8x512xf32>
    %360 = vector.shape_cast %359 : vector<1x8x512xf32> to vector<8x512xf32>
    %361 = arith.truncf %355 : vector<8x128xf32> to vector<8x128xbf16>
    %cst_126 = arith.constant dense<0.000000e+00> : vector<8x512xf32>
    %362 = tpu.matmul %361, %24, %cst_126 {dimension_numbers = #tpu.dot_dimension_numbers<[1], [0], [0], [1], [0, 0, 1, 1], [], []>} : vector<8x128xbf16>, vector<128x512xbf16>, vector<8x512xf32> -> vector<8x512xf32>
    %363 = arith.addf %360, %362 : vector<8x512xf32>
    %364 = vector.extract_strided_slice %363 {offsets = [0, 0], sizes = [8, 128], strides = [1, 1]} : vector<8x512xf32> to vector<8x128xf32>
    %365 = arith.negf %364 : vector<8x128xf32>
    %366 = math.exp %365 : vector<8x128xf32>
    %cst_127 = arith.constant 1.000000e+00 : f32
    %367 = vector.broadcast %cst_127 : f32 to vector<8x128xf32>
    %368 = arith.addf %367, %366 : vector<8x128xf32>
    %369 = arith.divf %367, %368 : vector<8x128xf32>
    %370 = vector.extract_strided_slice %363 {offsets = [0, 128], sizes = [8, 128], strides = [1, 1]} : vector<8x512xf32> to vector<8x128xf32>
    %371 = arith.negf %370 : vector<8x128xf32>
    %372 = math.exp %371 : vector<8x128xf32>
    %cst_128 = arith.constant 1.000000e+00 : f32
    %373 = vector.broadcast %cst_128 : f32 to vector<8x128xf32>
    %374 = arith.addf %373, %372 : vector<8x128xf32>
    %375 = arith.divf %373, %374 : vector<8x128xf32>
    %376 = vector.extract_strided_slice %363 {offsets = [0, 256], sizes = [8, 128], strides = [1, 1]} : vector<8x512xf32> to vector<8x128xf32>
    %377 = math.tanh %376 : vector<8x128xf32>
    %378 = vector.extract_strided_slice %363 {offsets = [0, 384], sizes = [8, 128], strides = [1, 1]} : vector<8x512xf32> to vector<8x128xf32>
    %379 = arith.negf %378 : vector<8x128xf32>
    %380 = math.exp %379 : vector<8x128xf32>
    %cst_129 = arith.constant 1.000000e+00 : f32
    %381 = vector.broadcast %cst_129 : f32 to vector<8x128xf32>
    %382 = arith.addf %381, %380 : vector<8x128xf32>
    %383 = arith.divf %381, %382 : vector<8x128xf32>
    %384 = arith.mulf %375, %353 : vector<8x128xf32>
    %385 = arith.mulf %369, %377 : vector<8x128xf32>
    %386 = arith.addf %384, %385 : vector<8x128xf32>
    %387 = math.tanh %386 : vector<8x128xf32>
    %388 = arith.mulf %383, %387 : vector<8x128xf32>
    %c5_130 = arith.constant 5 : index
    %c0_131 = arith.constant 0 : index
    %c128_132 = arith.constant 128 : index
    %389 = vector.load %arg5[%c5_130, %c0_131, %c128_132] : memref<8x8x256xf32, #tpu.memory_space<vmem>>, vector<1x8x128xf32>
    %390 = vector.shape_cast %389 : vector<1x8x128xf32> to vector<8x128xf32>
    %391 = vector.shape_cast %388 : vector<8x128xf32> to vector<1x8x128xf32>
    tpu.vector_store %arg5[%c5_130, %c0_131, %c128_132], %391 {strides = array<i32>} : memref<8x8x256xf32, #tpu.memory_space<vmem>>, vector<1x8x128xf32>,
    %c4_133 = arith.constant 4 : index
    %c0_134 = arith.constant 0 : index
    %c0_135 = arith.constant 0 : index
    %392 = vector.load %arg7[%c4_133, %c0_134, %c0_135] : memref<8x8x512xf32, #tpu.memory_space<vmem>>, vector<1x8x512xf32>
    %393 = vector.shape_cast %392 : vector<1x8x512xf32> to vector<8x512xf32>
    %394 = arith.truncf %388 : vector<8x128xf32> to vector<8x128xbf16>
    %cst_136 = arith.constant dense<0.000000e+00> : vector<8x512xf32>
    %395 = tpu.matmul %394, %24, %cst_136 {dimension_numbers = #tpu.dot_dimension_numbers<[1], [0], [0], [1], [0, 0, 1, 1], [], []>} : vector<8x128xbf16>, vector<128x512xbf16>, vector<8x512xf32> -> vector<8x512xf32>
    %396 = arith.addf %393, %395 : vector<8x512xf32>
    %397 = vector.extract_strided_slice %396 {offsets = [0, 0], sizes = [8, 128], strides = [1, 1]} : vector<8x512xf32> to vector<8x128xf32>
    %398 = arith.negf %397 : vector<8x128xf32>
    %399 = math.exp %398 : vector<8x128xf32>
    %cst_137 = arith.constant 1.000000e+00 : f32
    %400 = vector.broadcast %cst_137 : f32 to vector<8x128xf32>
    %401 = arith.addf %400, %399 : vector<8x128xf32>
    %402 = arith.divf %400, %401 : vector<8x128xf32>
    %403 = vector.extract_strided_slice %396 {offsets = [0, 128], sizes = [8, 128], strides = [1, 1]} : vector<8x512xf32> to vector<8x128xf32>
    %404 = arith.negf %403 : vector<8x128xf32>
    %405 = math.exp %404 : vector<8x128xf32>
    %cst_138 = arith.constant 1.000000e+00 : f32
    %406 = vector.broadcast %cst_138 : f32 to vector<8x128xf32>
    %407 = arith.addf %406, %405 : vector<8x128xf32>
    %408 = arith.divf %406, %407 : vector<8x128xf32>
    %409 = vector.extract_strided_slice %396 {offsets = [0, 256], sizes = [8, 128], strides = [1, 1]} : vector<8x512xf32> to vector<8x128xf32>
    %410 = math.tanh %409 : vector<8x128xf32>
    %411 = vector.extract_strided_slice %396 {offsets = [0, 384], sizes = [8, 128], strides = [1, 1]} : vector<8x512xf32> to vector<8x128xf32>
    %412 = arith.negf %411 : vector<8x128xf32>
    %413 = math.exp %412 : vector<8x128xf32>
    %cst_139 = arith.constant 1.000000e+00 : f32
    %414 = vector.broadcast %cst_139 : f32 to vector<8x128xf32>
    %415 = arith.addf %414, %413 : vector<8x128xf32>
    %416 = arith.divf %414, %415 : vector<8x128xf32>
    %417 = arith.mulf %408, %386 : vector<8x128xf32>
    %418 = arith.mulf %402, %410 : vector<8x128xf32>
    %419 = arith.addf %417, %418 : vector<8x128xf32>
    %420 = math.tanh %419 : vector<8x128xf32>
    %421 = arith.mulf %416, %420 : vector<8x128xf32>
    %c4_140 = arith.constant 4 : index
    %c0_141 = arith.constant 0 : index
    %c128_142 = arith.constant 128 : index
    %422 = vector.load %arg5[%c4_140, %c0_141, %c128_142] : memref<8x8x256xf32, #tpu.memory_space<vmem>>, vector<1x8x128xf32>
    %423 = vector.shape_cast %422 : vector<1x8x128xf32> to vector<8x128xf32>
    %424 = vector.shape_cast %421 : vector<8x128xf32> to vector<1x8x128xf32>
    tpu.vector_store %arg5[%c4_140, %c0_141, %c128_142], %424 {strides = array<i32>} : memref<8x8x256xf32, #tpu.memory_space<vmem>>, vector<1x8x128xf32>,
    %c3_143 = arith.constant 3 : index
    %c0_144 = arith.constant 0 : index
    %c0_145 = arith.constant 0 : index
    %425 = vector.load %arg7[%c3_143, %c0_144, %c0_145] : memref<8x8x512xf32, #tpu.memory_space<vmem>>, vector<1x8x512xf32>
    %426 = vector.shape_cast %425 : vector<1x8x512xf32> to vector<8x512xf32>
    %427 = arith.truncf %421 : vector<8x128xf32> to vector<8x128xbf16>
    %cst_146 = arith.constant dense<0.000000e+00> : vector<8x512xf32>
    %428 = tpu.matmul %427, %24, %cst_146 {dimension_numbers = #tpu.dot_dimension_numbers<[1], [0], [0], [1], [0, 0, 1, 1], [], []>} : vector<8x128xbf16>, vector<128x512xbf16>, vector<8x512xf32> -> vector<8x512xf32>
    %429 = arith.addf %426, %428 : vector<8x512xf32>
    %430 = vector.extract_strided_slice %429 {offsets = [0, 0], sizes = [8, 128], strides = [1, 1]} : vector<8x512xf32> to vector<8x128xf32>
    %431 = arith.negf %430 : vector<8x128xf32>
    %432 = math.exp %431 : vector<8x128xf32>
    %cst_147 = arith.constant 1.000000e+00 : f32
    %433 = vector.broadcast %cst_147 : f32 to vector<8x128xf32>
    %434 = arith.addf %433, %432 : vector<8x128xf32>
    %435 = arith.divf %433, %434 : vector<8x128xf32>
    %436 = vector.extract_strided_slice %429 {offsets = [0, 128], sizes = [8, 128], strides = [1, 1]} : vector<8x512xf32> to vector<8x128xf32>
    %437 = arith.negf %436 : vector<8x128xf32>
    %438 = math.exp %437 : vector<8x128xf32>
    %cst_148 = arith.constant 1.000000e+00 : f32
    %439 = vector.broadcast %cst_148 : f32 to vector<8x128xf32>
    %440 = arith.addf %439, %438 : vector<8x128xf32>
    %441 = arith.divf %439, %440 : vector<8x128xf32>
    %442 = vector.extract_strided_slice %429 {offsets = [0, 256], sizes = [8, 128], strides = [1, 1]} : vector<8x512xf32> to vector<8x128xf32>
    %443 = math.tanh %442 : vector<8x128xf32>
    %444 = vector.extract_strided_slice %429 {offsets = [0, 384], sizes = [8, 128], strides = [1, 1]} : vector<8x512xf32> to vector<8x128xf32>
    %445 = arith.negf %444 : vector<8x128xf32>
    %446 = math.exp %445 : vector<8x128xf32>
    %cst_149 = arith.constant 1.000000e+00 : f32
    %447 = vector.broadcast %cst_149 : f32 to vector<8x128xf32>
    %448 = arith.addf %447, %446 : vector<8x128xf32>
    %449 = arith.divf %447, %448 : vector<8x128xf32>
    %450 = arith.mulf %441, %419 : vector<8x128xf32>
    %451 = arith.mulf %435, %443 : vector<8x128xf32>
    %452 = arith.addf %450, %451 : vector<8x128xf32>
    %453 = math.tanh %452 : vector<8x128xf32>
    %454 = arith.mulf %449, %453 : vector<8x128xf32>
    %c3_150 = arith.constant 3 : index
    %c0_151 = arith.constant 0 : index
    %c128_152 = arith.constant 128 : index
    %455 = vector.load %arg5[%c3_150, %c0_151, %c128_152] : memref<8x8x256xf32, #tpu.memory_space<vmem>>, vector<1x8x128xf32>
    %456 = vector.shape_cast %455 : vector<1x8x128xf32> to vector<8x128xf32>
    %457 = vector.shape_cast %454 : vector<8x128xf32> to vector<1x8x128xf32>
    tpu.vector_store %arg5[%c3_150, %c0_151, %c128_152], %457 {strides = array<i32>} : memref<8x8x256xf32, #tpu.memory_space<vmem>>, vector<1x8x128xf32>,
    %c2_153 = arith.constant 2 : index
    %c0_154 = arith.constant 0 : index
    %c0_155 = arith.constant 0 : index
    %458 = vector.load %arg7[%c2_153, %c0_154, %c0_155] : memref<8x8x512xf32, #tpu.memory_space<vmem>>, vector<1x8x512xf32>
    %459 = vector.shape_cast %458 : vector<1x8x512xf32> to vector<8x512xf32>
    %460 = arith.truncf %454 : vector<8x128xf32> to vector<8x128xbf16>
    %cst_156 = arith.constant dense<0.000000e+00> : vector<8x512xf32>
    %461 = tpu.matmul %460, %24, %cst_156 {dimension_numbers = #tpu.dot_dimension_numbers<[1], [0], [0], [1], [0, 0, 1, 1], [], []>} : vector<8x128xbf16>, vector<128x512xbf16>, vector<8x512xf32> -> vector<8x512xf32>
    %462 = arith.addf %459, %461 : vector<8x512xf32>
    %463 = vector.extract_strided_slice %462 {offsets = [0, 0], sizes = [8, 128], strides = [1, 1]} : vector<8x512xf32> to vector<8x128xf32>
    %464 = arith.negf %463 : vector<8x128xf32>
    %465 = math.exp %464 : vector<8x128xf32>
    %cst_157 = arith.constant 1.000000e+00 : f32
    %466 = vector.broadcast %cst_157 : f32 to vector<8x128xf32>
    %467 = arith.addf %466, %465 : vector<8x128xf32>
    %468 = arith.divf %466, %467 : vector<8x128xf32>
    %469 = vector.extract_strided_slice %462 {offsets = [0, 128], sizes = [8, 128], strides = [1, 1]} : vector<8x512xf32> to vector<8x128xf32>
    %470 = arith.negf %469 : vector<8x128xf32>
    %471 = math.exp %470 : vector<8x128xf32>
    %cst_158 = arith.constant 1.000000e+00 : f32
    %472 = vector.broadcast %cst_158 : f32 to vector<8x128xf32>
    %473 = arith.addf %472, %471 : vector<8x128xf32>
    %474 = arith.divf %472, %473 : vector<8x128xf32>
    %475 = vector.extract_strided_slice %462 {offsets = [0, 256], sizes = [8, 128], strides = [1, 1]} : vector<8x512xf32> to vector<8x128xf32>
    %476 = math.tanh %475 : vector<8x128xf32>
    %477 = vector.extract_strided_slice %462 {offsets = [0, 384], sizes = [8, 128], strides = [1, 1]} : vector<8x512xf32> to vector<8x128xf32>
    %478 = arith.negf %477 : vector<8x128xf32>
    %479 = math.exp %478 : vector<8x128xf32>
    %cst_159 = arith.constant 1.000000e+00 : f32
    %480 = vector.broadcast %cst_159 : f32 to vector<8x128xf32>
    %481 = arith.addf %480, %479 : vector<8x128xf32>
    %482 = arith.divf %480, %481 : vector<8x128xf32>
    %483 = arith.mulf %474, %452 : vector<8x128xf32>
    %484 = arith.mulf %468, %476 : vector<8x128xf32>
    %485 = arith.addf %483, %484 : vector<8x128xf32>
    %486 = math.tanh %485 : vector<8x128xf32>
    %487 = arith.mulf %482, %486 : vector<8x128xf32>
    %c2_160 = arith.constant 2 : index
    %c0_161 = arith.constant 0 : index
    %c128_162 = arith.constant 128 : index
    %488 = vector.load %arg5[%c2_160, %c0_161, %c128_162] : memref<8x8x256xf32, #tpu.memory_space<vmem>>, vector<1x8x128xf32>
    %489 = vector.shape_cast %488 : vector<1x8x128xf32> to vector<8x128xf32>
    %490 = vector.shape_cast %487 : vector<8x128xf32> to vector<1x8x128xf32>
    tpu.vector_store %arg5[%c2_160, %c0_161, %c128_162], %490 {strides = array<i32>} : memref<8x8x256xf32, #tpu.memory_space<vmem>>, vector<1x8x128xf32>,
    %c1_163 = arith.constant 1 : index
    %c0_164 = arith.constant 0 : index
    %c0_165 = arith.constant 0 : index
    %491 = vector.load %arg7[%c1_163, %c0_164, %c0_165] : memref<8x8x512xf32, #tpu.memory_space<vmem>>, vector<1x8x512xf32>
    %492 = vector.shape_cast %491 : vector<1x8x512xf32> to vector<8x512xf32>
    %493 = arith.truncf %487 : vector<8x128xf32> to vector<8x128xbf16>
    %cst_166 = arith.constant dense<0.000000e+00> : vector<8x512xf32>
    %494 = tpu.matmul %493, %24, %cst_166 {dimension_numbers = #tpu.dot_dimension_numbers<[1], [0], [0], [1], [0, 0, 1, 1], [], []>} : vector<8x128xbf16>, vector<128x512xbf16>, vector<8x512xf32> -> vector<8x512xf32>
    %495 = arith.addf %492, %494 : vector<8x512xf32>
    %496 = vector.extract_strided_slice %495 {offsets = [0, 0], sizes = [8, 128], strides = [1, 1]} : vector<8x512xf32> to vector<8x128xf32>
    %497 = arith.negf %496 : vector<8x128xf32>
    %498 = math.exp %497 : vector<8x128xf32>
    %cst_167 = arith.constant 1.000000e+00 : f32
    %499 = vector.broadcast %cst_167 : f32 to vector<8x128xf32>
    %500 = arith.addf %499, %498 : vector<8x128xf32>
    %501 = arith.divf %499, %500 : vector<8x128xf32>
    %502 = vector.extract_strided_slice %495 {offsets = [0, 128], sizes = [8, 128], strides = [1, 1]} : vector<8x512xf32> to vector<8x128xf32>
    %503 = arith.negf %502 : vector<8x128xf32>
    %504 = math.exp %503 : vector<8x128xf32>
    %cst_168 = arith.constant 1.000000e+00 : f32
    %505 = vector.broadcast %cst_168 : f32 to vector<8x128xf32>
    %506 = arith.addf %505, %504 : vector<8x128xf32>
    %507 = arith.divf %505, %506 : vector<8x128xf32>
    %508 = vector.extract_strided_slice %495 {offsets = [0, 256], sizes = [8, 128], strides = [1, 1]} : vector<8x512xf32> to vector<8x128xf32>
    %509 = math.tanh %508 : vector<8x128xf32>
    %510 = vector.extract_strided_slice %495 {offsets = [0, 384], sizes = [8, 128], strides = [1, 1]} : vector<8x512xf32> to vector<8x128xf32>
    %511 = arith.negf %510 : vector<8x128xf32>
    %512 = math.exp %511 : vector<8x128xf32>
    %cst_169 = arith.constant 1.000000e+00 : f32
    %513 = vector.broadcast %cst_169 : f32 to vector<8x128xf32>
    %514 = arith.addf %513, %512 : vector<8x128xf32>
    %515 = arith.divf %513, %514 : vector<8x128xf32>
    %516 = arith.mulf %507, %485 : vector<8x128xf32>
    %517 = arith.mulf %501, %509 : vector<8x128xf32>
    %518 = arith.addf %516, %517 : vector<8x128xf32>
    %519 = math.tanh %518 : vector<8x128xf32>
    %520 = arith.mulf %515, %519 : vector<8x128xf32>
    %c1_170 = arith.constant 1 : index
    %c0_171 = arith.constant 0 : index
    %c128_172 = arith.constant 128 : index
    %521 = vector.load %arg5[%c1_170, %c0_171, %c128_172] : memref<8x8x256xf32, #tpu.memory_space<vmem>>, vector<1x8x128xf32>
    %522 = vector.shape_cast %521 : vector<1x8x128xf32> to vector<8x128xf32>
    %523 = vector.shape_cast %520 : vector<8x128xf32> to vector<1x8x128xf32>
    tpu.vector_store %arg5[%c1_170, %c0_171, %c128_172], %523 {strides = array<i32>} : memref<8x8x256xf32, #tpu.memory_space<vmem>>, vector<1x8x128xf32>,
    %c0_173 = arith.constant 0 : index
    %c0_174 = arith.constant 0 : index
    %c0_175 = arith.constant 0 : index
    %524 = vector.load %arg7[%c0_173, %c0_174, %c0_175] : memref<8x8x512xf32, #tpu.memory_space<vmem>>, vector<1x8x512xf32>
    %525 = vector.shape_cast %524 : vector<1x8x512xf32> to vector<8x512xf32>
    %526 = arith.truncf %520 : vector<8x128xf32> to vector<8x128xbf16>
    %cst_176 = arith.constant dense<0.000000e+00> : vector<8x512xf32>
    %527 = tpu.matmul %526, %24, %cst_176 {dimension_numbers = #tpu.dot_dimension_numbers<[1], [0], [0], [1], [0, 0, 1, 1], [], []>} : vector<8x128xbf16>, vector<128x512xbf16>, vector<8x512xf32> -> vector<8x512xf32>
    %528 = arith.addf %525, %527 : vector<8x512xf32>
    %529 = vector.extract_strided_slice %528 {offsets = [0, 0], sizes = [8, 128], strides = [1, 1]} : vector<8x512xf32> to vector<8x128xf32>
    %530 = arith.negf %529 : vector<8x128xf32>
    %531 = math.exp %530 : vector<8x128xf32>
    %cst_177 = arith.constant 1.000000e+00 : f32
    %532 = vector.broadcast %cst_177 : f32 to vector<8x128xf32>
    %533 = arith.addf %532, %531 : vector<8x128xf32>
    %534 = arith.divf %532, %533 : vector<8x128xf32>
    %535 = vector.extract_strided_slice %528 {offsets = [0, 128], sizes = [8, 128], strides = [1, 1]} : vector<8x512xf32> to vector<8x128xf32>
    %536 = arith.negf %535 : vector<8x128xf32>
    %537 = math.exp %536 : vector<8x128xf32>
    %cst_178 = arith.constant 1.000000e+00 : f32
    %538 = vector.broadcast %cst_178 : f32 to vector<8x128xf32>
    %539 = arith.addf %538, %537 : vector<8x128xf32>
    %540 = arith.divf %538, %539 : vector<8x128xf32>
    %541 = vector.extract_strided_slice %528 {offsets = [0, 256], sizes = [8, 128], strides = [1, 1]} : vector<8x512xf32> to vector<8x128xf32>
    %542 = math.tanh %541 : vector<8x128xf32>
    %543 = vector.extract_strided_slice %528 {offsets = [0, 384], sizes = [8, 128], strides = [1, 1]} : vector<8x512xf32> to vector<8x128xf32>
    %544 = arith.negf %543 : vector<8x128xf32>
    %545 = math.exp %544 : vector<8x128xf32>
    %cst_179 = arith.constant 1.000000e+00 : f32
    %546 = vector.broadcast %cst_179 : f32 to vector<8x128xf32>
    %547 = arith.addf %546, %545 : vector<8x128xf32>
    %548 = arith.divf %546, %547 : vector<8x128xf32>
    %549 = arith.mulf %540, %518 : vector<8x128xf32>
    %550 = arith.mulf %534, %542 : vector<8x128xf32>
    %551 = arith.addf %549, %550 : vector<8x128xf32>
    %552 = math.tanh %551 : vector<8x128xf32>
    %553 = arith.mulf %548, %552 : vector<8x128xf32>
    %c0_180 = arith.constant 0 : index
    %c0_181 = arith.constant 0 : index
    %c128_182 = arith.constant 128 : index
    %554 = vector.load %arg5[%c0_180, %c0_181, %c128_182] : memref<8x8x256xf32, #tpu.memory_space<vmem>>, vector<1x8x128xf32>
    %555 = vector.shape_cast %554 : vector<1x8x128xf32> to vector<8x128xf32>
    %556 = vector.shape_cast %553 : vector<8x128xf32> to vector<1x8x128xf32>
    tpu.vector_store %arg5[%c0_180, %c0_181, %c128_182], %556 {strides = array<i32>} : memref<8x8x256xf32, #tpu.memory_space<vmem>>, vector<1x8x128xf32>,
    return
  }
  func.func @transform_0(%arg0: i32) -> (i32, i32, i32) {
    %c0_i32 = arith.constant 0 : i32
    %c0_i32_0 = arith.constant 0 : i32
    %c0_i32_1 = arith.constant 0 : i32
    %c0_i32_2 = arith.constant 0 : i32
    return %c0_i32, %c0_i32_0, %c0_i32_1 : i32, i32, i32
  }
  func.func @transform_1(%arg0: i32) -> (i32, i32, i32) {
    %c0_i32 = arith.constant 0 : i32
    %c0_i32_0 = arith.constant 0 : i32
    %c0_i32_1 = arith.constant 0 : i32
    %c0_i32_2 = arith.constant 0 : i32
    return %c0_i32, %c0_i32_0, %c0_i32_1 : i32, i32, i32
  }
  func.func @transform_2(%arg0: i32) -> (i32, i32, i32) {
    %c0_i32 = arith.constant 0 : i32
    %c0_i32_0 = arith.constant 0 : i32
    %c0_i32_1 = arith.constant 0 : i32
    %c0_i32_2 = arith.constant 0 : i32
    return %c0_i32, %c0_i32_0, %c0_i32_1 : i32, i32, i32
  }
  func.func @transform_3(%arg0: i32) -> (i32, i32, i32) {
    %c0_i32 = arith.constant 0 : i32
    %c0_i32_0 = arith.constant 0 : i32
    %c0_i32_1 = arith.constant 0 : i32
    %c0_i32_2 = arith.constant 0 : i32
    return %c0_i32, %c0_i32_0, %c0_i32_1 : i32, i32, i32
  }
  func.func @transform_4(%arg0: i32) -> (i32, i32, i32) {
    %c0_i32 = arith.constant 0 : i32
    %c0_i32_0 = arith.constant 0 : i32
    %c0_i32_1 = arith.constant 0 : i32
    %c0_i32_2 = arith.constant 0 : i32
    return %c0_i32, %c0_i32_0, %c0_i32_1 : i32, i32, i32
  }
}

module attributes {stable_mosaic.version = 11 : i64} {
  func.func @_bilstm_layer_kernel(%arg0: i32, %arg1: memref<8x8x128xf32, #tpu.memory_space<vmem>>, %arg2: memref<2x128x512xbf16, #tpu.memory_space<vmem>>, %arg3: memref<2x128x512xbf16, #tpu.memory_space<vmem>>, %arg4: memref<2x1x512xf32, #tpu.memory_space<vmem>>, %arg5: memref<8x8x256xf32, #tpu.memory_space<vmem>>, %arg6: memref<8x8x512xf32, #tpu.memory_space<vmem>>, %arg7: memref<8x8x512xf32, #tpu.memory_space<vmem>>) attributes {dimension_semantics = [#tpu.dimension_semantics<arbitrary>], iteration_bounds = array<i64: 1>, scalar_prefetch = 0 : i64, scratch_operands = 2 : i64, tpu.core_type = #tpu.core_type<tc>, window_params = [{pipeline_mode = #tpu.pipeline_mode<synchronous>, transform_indices = @transform_0, window_bounds = array<i64: 8, 8, 128>}, {pipeline_mode = #tpu.pipeline_mode<synchronous>, transform_indices = @transform_1, window_bounds = array<i64: 2, 128, 512>}, {pipeline_mode = #tpu.pipeline_mode<synchronous>, transform_indices = @transform_2, window_bounds = array<i64: 2, 128, 512>}, {pipeline_mode = #tpu.pipeline_mode<synchronous>, transform_indices = @transform_3, window_bounds = array<i64: 2, 1, 512>}, {pipeline_mode = #tpu.pipeline_mode<synchronous>, transform_indices = @transform_4, window_bounds = array<i64: 8, 8, 256>}]} {
    %c0 = arith.constant 0 : index
    %c0_0 = arith.constant 0 : index
    %c0_1 = arith.constant 0 : index
    %0 = vector.load %arg1[%c0, %c0_0, %c0_1] : memref<8x8x128xf32, #tpu.memory_space<vmem>>, vector<8x8x128xf32>
    %1 = vector.shape_cast %0 : vector<8x8x128xf32> to vector<64x128xf32>
    %2 = arith.truncf %1 : vector<64x128xf32> to vector<64x128xbf16>
    %c0_2 = arith.constant 0 : index
    %c0_3 = arith.constant 0 : index
    %c0_4 = arith.constant 0 : index
    %3 = vector.load %arg2[%c0_2, %c0_3, %c0_4] : memref<2x128x512xbf16, #tpu.memory_space<vmem>>, vector<1x128x512xbf16>
    %4 = vector.shape_cast %3 : vector<1x128x512xbf16> to vector<128x512xbf16>
    %cst = arith.constant dense<0.000000e+00> : vector<64x512xf32>
    %5 = tpu.matmul %2, %4, %cst {dimension_numbers = #tpu.dot_dimension_numbers<[1], [0], [0], [1], [0, 0, 1, 1], [], []>} : vector<64x128xbf16>, vector<128x512xbf16>, vector<64x512xf32> -> vector<64x512xf32>
    %c0_5 = arith.constant 0 : index
    %c0_6 = arith.constant 0 : index
    %c0_7 = arith.constant 0 : index
    %6 = vector.load %arg4[%c0_5, %c0_6, %c0_7] : memref<2x1x512xf32, #tpu.memory_space<vmem>>, vector<1x1x512xf32>
    %7 = vector.shape_cast %6 : vector<1x1x512xf32> to vector<1x512xf32>
    %8 = vector.broadcast %7 : vector<1x512xf32> to vector<64x512xf32>
    %9 = arith.addf %5, %8 : vector<64x512xf32>
    %10 = vector.shape_cast %9 : vector<64x512xf32> to vector<8x8x512xf32>
    %c0_8 = arith.constant 0 : index
    %c0_9 = arith.constant 0 : index
    %c0_10 = arith.constant 0 : index
    %11 = vector.load %arg6[%c0_8, %c0_9, %c0_10] : memref<8x8x512xf32, #tpu.memory_space<vmem>>, vector<8x8x512xf32>
    tpu.vector_store %arg6[%c0_8, %c0_9, %c0_10], %10 {strides = array<i32>} : memref<8x8x512xf32, #tpu.memory_space<vmem>>, vector<8x8x512xf32>,
    %c1 = arith.constant 1 : index
    %c0_11 = arith.constant 0 : index
    %c0_12 = arith.constant 0 : index
    %12 = vector.load %arg2[%c1, %c0_11, %c0_12] : memref<2x128x512xbf16, #tpu.memory_space<vmem>>, vector<1x128x512xbf16>
    %13 = vector.shape_cast %12 : vector<1x128x512xbf16> to vector<128x512xbf16>
    %cst_13 = arith.constant dense<0.000000e+00> : vector<64x512xf32>
    %14 = tpu.matmul %2, %13, %cst_13 {dimension_numbers = #tpu.dot_dimension_numbers<[1], [0], [0], [1], [0, 0, 1, 1], [], []>} : vector<64x128xbf16>, vector<128x512xbf16>, vector<64x512xf32> -> vector<64x512xf32>
    %c1_14 = arith.constant 1 : index
    %c0_15 = arith.constant 0 : index
    %c0_16 = arith.constant 0 : index
    %15 = vector.load %arg4[%c1_14, %c0_15, %c0_16] : memref<2x1x512xf32, #tpu.memory_space<vmem>>, vector<1x1x512xf32>
    %16 = vector.shape_cast %15 : vector<1x1x512xf32> to vector<1x512xf32>
    %17 = vector.broadcast %16 : vector<1x512xf32> to vector<64x512xf32>
    %18 = arith.addf %14, %17 : vector<64x512xf32>
    %19 = vector.shape_cast %18 : vector<64x512xf32> to vector<8x8x512xf32>
    %c0_17 = arith.constant 0 : index
    %c0_18 = arith.constant 0 : index
    %c0_19 = arith.constant 0 : index
    %20 = vector.load %arg7[%c0_17, %c0_18, %c0_19] : memref<8x8x512xf32, #tpu.memory_space<vmem>>, vector<8x8x512xf32>
    tpu.vector_store %arg7[%c0_17, %c0_18, %c0_19], %19 {strides = array<i32>} : memref<8x8x512xf32, #tpu.memory_space<vmem>>, vector<8x8x512xf32>,
    %c0_20 = arith.constant 0 : index
    %c0_21 = arith.constant 0 : index
    %c0_22 = arith.constant 0 : index
    %21 = vector.load %arg3[%c0_20, %c0_21, %c0_22] : memref<2x128x512xbf16, #tpu.memory_space<vmem>>, vector<1x128x512xbf16>
    %22 = vector.shape_cast %21 : vector<1x128x512xbf16> to vector<128x512xbf16>
    %c1_23 = arith.constant 1 : index
    %c0_24 = arith.constant 0 : index
    %c0_25 = arith.constant 0 : index
    %23 = vector.load %arg3[%c1_23, %c0_24, %c0_25] : memref<2x128x512xbf16, #tpu.memory_space<vmem>>, vector<1x128x512xbf16>
    %24 = vector.shape_cast %23 : vector<1x128x512xbf16> to vector<128x512xbf16>
    %cst_26 = arith.constant 0.000000e+00 : f32
    %25 = vector.broadcast %cst_26 : f32 to vector<8x128xf32>
    %cst_27 = arith.constant 0.000000e+00 : f32
    %26 = vector.broadcast %cst_27 : f32 to vector<8x128xf32>
    %c0_28 = arith.constant 0 : index
    %c0_29 = arith.constant 0 : index
    %c0_30 = arith.constant 0 : index
    %27 = vector.load %arg6[%c0_28, %c0_29, %c0_30] : memref<8x8x512xf32, #tpu.memory_space<vmem>>, vector<1x8x512xf32>
    %28 = vector.shape_cast %27 : vector<1x8x512xf32> to vector<8x512xf32>
    %29 = arith.truncf %25 : vector<8x128xf32> to vector<8x128xbf16>
    %cst_31 = arith.constant dense<0.000000e+00> : vector<8x512xf32>
    %30 = tpu.matmul %29, %22, %cst_31 {dimension_numbers = #tpu.dot_dimension_numbers<[1], [0], [0], [1], [0, 0, 1, 1], [], []>} : vector<8x128xbf16>, vector<128x512xbf16>, vector<8x512xf32> -> vector<8x512xf32>
    %31 = arith.addf %28, %30 : vector<8x512xf32>
    %32 = vector.extract_strided_slice %31 {offsets = [0, 0], sizes = [8, 128], strides = [1, 1]} : vector<8x512xf32> to vector<8x128xf32>
    %33 = arith.negf %32 : vector<8x128xf32>
    %34 = math.exp %33 : vector<8x128xf32>
    %cst_32 = arith.constant 1.000000e+00 : f32
    %35 = vector.broadcast %cst_32 : f32 to vector<8x128xf32>
    %36 = arith.addf %35, %34 : vector<8x128xf32>
    %37 = arith.divf %35, %36 : vector<8x128xf32>
    %38 = vector.extract_strided_slice %31 {offsets = [0, 128], sizes = [8, 128], strides = [1, 1]} : vector<8x512xf32> to vector<8x128xf32>
    %39 = arith.negf %38 : vector<8x128xf32>
    %40 = math.exp %39 : vector<8x128xf32>
    %cst_33 = arith.constant 1.000000e+00 : f32
    %41 = vector.broadcast %cst_33 : f32 to vector<8x128xf32>
    %42 = arith.addf %41, %40 : vector<8x128xf32>
    %43 = arith.divf %41, %42 : vector<8x128xf32>
    %44 = vector.extract_strided_slice %31 {offsets = [0, 256], sizes = [8, 128], strides = [1, 1]} : vector<8x512xf32> to vector<8x128xf32>
    %45 = math.tanh %44 : vector<8x128xf32>
    %46 = vector.extract_strided_slice %31 {offsets = [0, 384], sizes = [8, 128], strides = [1, 1]} : vector<8x512xf32> to vector<8x128xf32>
    %47 = arith.negf %46 : vector<8x128xf32>
    %48 = math.exp %47 : vector<8x128xf32>
    %cst_34 = arith.constant 1.000000e+00 : f32
    %49 = vector.broadcast %cst_34 : f32 to vector<8x128xf32>
    %50 = arith.addf %49, %48 : vector<8x128xf32>
    %51 = arith.divf %49, %50 : vector<8x128xf32>
    %52 = arith.mulf %43, %26 : vector<8x128xf32>
    %53 = arith.mulf %37, %45 : vector<8x128xf32>
    %54 = arith.addf %52, %53 : vector<8x128xf32>
    %55 = math.tanh %54 : vector<8x128xf32>
    %56 = arith.mulf %51, %55 : vector<8x128xf32>
    %c0_35 = arith.constant 0 : index
    %c0_36 = arith.constant 0 : index
    %c0_37 = arith.constant 0 : index
    %57 = vector.load %arg5[%c0_35, %c0_36, %c0_37] : memref<8x8x256xf32, #tpu.memory_space<vmem>>, vector<1x8x128xf32>
    %58 = vector.shape_cast %57 : vector<1x8x128xf32> to vector<8x128xf32>
    %59 = vector.shape_cast %56 : vector<8x128xf32> to vector<1x8x128xf32>
    tpu.vector_store %arg5[%c0_35, %c0_36, %c0_37], %59 {strides = array<i32>} : memref<8x8x256xf32, #tpu.memory_space<vmem>>, vector<1x8x128xf32>,
    %c1_38 = arith.constant 1 : index
    %c0_39 = arith.constant 0 : index
    %c0_40 = arith.constant 0 : index
    %60 = vector.load %arg6[%c1_38, %c0_39, %c0_40] : memref<8x8x512xf32, #tpu.memory_space<vmem>>, vector<1x8x512xf32>
    %61 = vector.shape_cast %60 : vector<1x8x512xf32> to vector<8x512xf32>
    %62 = arith.truncf %56 : vector<8x128xf32> to vector<8x128xbf16>
    %cst_41 = arith.constant dense<0.000000e+00> : vector<8x512xf32>
    %63 = tpu.matmul %62, %22, %cst_41 {dimension_numbers = #tpu.dot_dimension_numbers<[1], [0], [0], [1], [0, 0, 1, 1], [], []>} : vector<8x128xbf16>, vector<128x512xbf16>, vector<8x512xf32> -> vector<8x512xf32>
    %64 = arith.addf %61, %63 : vector<8x512xf32>
    %65 = vector.extract_strided_slice %64 {offsets = [0, 0], sizes = [8, 128], strides = [1, 1]} : vector<8x512xf32> to vector<8x128xf32>
    %66 = arith.negf %65 : vector<8x128xf32>
    %67 = math.exp %66 : vector<8x128xf32>
    %cst_42 = arith.constant 1.000000e+00 : f32
    %68 = vector.broadcast %cst_42 : f32 to vector<8x128xf32>
    %69 = arith.addf %68, %67 : vector<8x128xf32>
    %70 = arith.divf %68, %69 : vector<8x128xf32>
    %71 = vector.extract_strided_slice %64 {offsets = [0, 128], sizes = [8, 128], strides = [1, 1]} : vector<8x512xf32> to vector<8x128xf32>
    %72 = arith.negf %71 : vector<8x128xf32>
    %73 = math.exp %72 : vector<8x128xf32>
    %cst_43 = arith.constant 1.000000e+00 : f32
    %74 = vector.broadcast %cst_43 : f32 to vector<8x128xf32>
    %75 = arith.addf %74, %73 : vector<8x128xf32>
    %76 = arith.divf %74, %75 : vector<8x128xf32>
    %77 = vector.extract_strided_slice %64 {offsets = [0, 256], sizes = [8, 128], strides = [1, 1]} : vector<8x512xf32> to vector<8x128xf32>
    %78 = math.tanh %77 : vector<8x128xf32>
    %79 = vector.extract_strided_slice %64 {offsets = [0, 384], sizes = [8, 128], strides = [1, 1]} : vector<8x512xf32> to vector<8x128xf32>
    %80 = arith.negf %79 : vector<8x128xf32>
    %81 = math.exp %80 : vector<8x128xf32>
    %cst_44 = arith.constant 1.000000e+00 : f32
    %82 = vector.broadcast %cst_44 : f32 to vector<8x128xf32>
    %83 = arith.addf %82, %81 : vector<8x128xf32>
    %84 = arith.divf %82, %83 : vector<8x128xf32>
    %85 = arith.mulf %76, %54 : vector<8x128xf32>
    %86 = arith.mulf %70, %78 : vector<8x128xf32>
    %87 = arith.addf %85, %86 : vector<8x128xf32>
    %88 = math.tanh %87 : vector<8x128xf32>
    %89 = arith.mulf %84, %88 : vector<8x128xf32>
    %c1_45 = arith.constant 1 : index
    %c0_46 = arith.constant 0 : index
    %c0_47 = arith.constant 0 : index
    %90 = vector.load %arg5[%c1_45, %c0_46, %c0_47] : memref<8x8x256xf32, #tpu.memory_space<vmem>>, vector<1x8x128xf32>
    %91 = vector.shape_cast %90 : vector<1x8x128xf32> to vector<8x128xf32>
    %92 = vector.shape_cast %89 : vector<8x128xf32> to vector<1x8x128xf32>
    tpu.vector_store %arg5[%c1_45, %c0_46, %c0_47], %92 {strides = array<i32>} : memref<8x8x256xf32, #tpu.memory_space<vmem>>, vector<1x8x128xf32>,
    %c2 = arith.constant 2 : index
    %c0_48 = arith.constant 0 : index
    %c0_49 = arith.constant 0 : index
    %93 = vector.load %arg6[%c2, %c0_48, %c0_49] : memref<8x8x512xf32, #tpu.memory_space<vmem>>, vector<1x8x512xf32>
    %94 = vector.shape_cast %93 : vector<1x8x512xf32> to vector<8x512xf32>
    %95 = arith.truncf %89 : vector<8x128xf32> to vector<8x128xbf16>
    %cst_50 = arith.constant dense<0.000000e+00> : vector<8x512xf32>
    %96 = tpu.matmul %95, %22, %cst_50 {dimension_numbers = #tpu.dot_dimension_numbers<[1], [0], [0], [1], [0, 0, 1, 1], [], []>} : vector<8x128xbf16>, vector<128x512xbf16>, vector<8x512xf32> -> vector<8x512xf32>
    %97 = arith.addf %94, %96 : vector<8x512xf32>
    %98 = vector.extract_strided_slice %97 {offsets = [0, 0], sizes = [8, 128], strides = [1, 1]} : vector<8x512xf32> to vector<8x128xf32>
    %99 = arith.negf %98 : vector<8x128xf32>
    %100 = math.exp %99 : vector<8x128xf32>
    %cst_51 = arith.constant 1.000000e+00 : f32
    %101 = vector.broadcast %cst_51 : f32 to vector<8x128xf32>
    %102 = arith.addf %101, %100 : vector<8x128xf32>
    %103 = arith.divf %101, %102 : vector<8x128xf32>
    %104 = vector.extract_strided_slice %97 {offsets = [0, 128], sizes = [8, 128], strides = [1, 1]} : vector<8x512xf32> to vector<8x128xf32>
    %105 = arith.negf %104 : vector<8x128xf32>
    %106 = math.exp %105 : vector<8x128xf32>
    %cst_52 = arith.constant 1.000000e+00 : f32
    %107 = vector.broadcast %cst_52 : f32 to vector<8x128xf32>
    %108 = arith.addf %107, %106 : vector<8x128xf32>
    %109 = arith.divf %107, %108 : vector<8x128xf32>
    %110 = vector.extract_strided_slice %97 {offsets = [0, 256], sizes = [8, 128], strides = [1, 1]} : vector<8x512xf32> to vector<8x128xf32>
    %111 = math.tanh %110 : vector<8x128xf32>
    %112 = vector.extract_strided_slice %97 {offsets = [0, 384], sizes = [8, 128], strides = [1, 1]} : vector<8x512xf32> to vector<8x128xf32>
    %113 = arith.negf %112 : vector<8x128xf32>
    %114 = math.exp %113 : vector<8x128xf32>
    %cst_53 = arith.constant 1.000000e+00 : f32
    %115 = vector.broadcast %cst_53 : f32 to vector<8x128xf32>
    %116 = arith.addf %115, %114 : vector<8x128xf32>
    %117 = arith.divf %115, %116 : vector<8x128xf32>
    %118 = arith.mulf %109, %87 : vector<8x128xf32>
    %119 = arith.mulf %103, %111 : vector<8x128xf32>
    %120 = arith.addf %118, %119 : vector<8x128xf32>
    %121 = math.tanh %120 : vector<8x128xf32>
    %122 = arith.mulf %117, %121 : vector<8x128xf32>
    %c2_54 = arith.constant 2 : index
    %c0_55 = arith.constant 0 : index
    %c0_56 = arith.constant 0 : index
    %123 = vector.load %arg5[%c2_54, %c0_55, %c0_56] : memref<8x8x256xf32, #tpu.memory_space<vmem>>, vector<1x8x128xf32>
    %124 = vector.shape_cast %123 : vector<1x8x128xf32> to vector<8x128xf32>
    %125 = vector.shape_cast %122 : vector<8x128xf32> to vector<1x8x128xf32>
    tpu.vector_store %arg5[%c2_54, %c0_55, %c0_56], %125 {strides = array<i32>} : memref<8x8x256xf32, #tpu.memory_space<vmem>>, vector<1x8x128xf32>,
    %c3 = arith.constant 3 : index
    %c0_57 = arith.constant 0 : index
    %c0_58 = arith.constant 0 : index
    %126 = vector.load %arg6[%c3, %c0_57, %c0_58] : memref<8x8x512xf32, #tpu.memory_space<vmem>>, vector<1x8x512xf32>
    %127 = vector.shape_cast %126 : vector<1x8x512xf32> to vector<8x512xf32>
    %128 = arith.truncf %122 : vector<8x128xf32> to vector<8x128xbf16>
    %cst_59 = arith.constant dense<0.000000e+00> : vector<8x512xf32>
    %129 = tpu.matmul %128, %22, %cst_59 {dimension_numbers = #tpu.dot_dimension_numbers<[1], [0], [0], [1], [0, 0, 1, 1], [], []>} : vector<8x128xbf16>, vector<128x512xbf16>, vector<8x512xf32> -> vector<8x512xf32>
    %130 = arith.addf %127, %129 : vector<8x512xf32>
    %131 = vector.extract_strided_slice %130 {offsets = [0, 0], sizes = [8, 128], strides = [1, 1]} : vector<8x512xf32> to vector<8x128xf32>
    %132 = arith.negf %131 : vector<8x128xf32>
    %133 = math.exp %132 : vector<8x128xf32>
    %cst_60 = arith.constant 1.000000e+00 : f32
    %134 = vector.broadcast %cst_60 : f32 to vector<8x128xf32>
    %135 = arith.addf %134, %133 : vector<8x128xf32>
    %136 = arith.divf %134, %135 : vector<8x128xf32>
    %137 = vector.extract_strided_slice %130 {offsets = [0, 128], sizes = [8, 128], strides = [1, 1]} : vector<8x512xf32> to vector<8x128xf32>
    %138 = arith.negf %137 : vector<8x128xf32>
    %139 = math.exp %138 : vector<8x128xf32>
    %cst_61 = arith.constant 1.000000e+00 : f32
    %140 = vector.broadcast %cst_61 : f32 to vector<8x128xf32>
    %141 = arith.addf %140, %139 : vector<8x128xf32>
    %142 = arith.divf %140, %141 : vector<8x128xf32>
    %143 = vector.extract_strided_slice %130 {offsets = [0, 256], sizes = [8, 128], strides = [1, 1]} : vector<8x512xf32> to vector<8x128xf32>
    %144 = math.tanh %143 : vector<8x128xf32>
    %145 = vector.extract_strided_slice %130 {offsets = [0, 384], sizes = [8, 128], strides = [1, 1]} : vector<8x512xf32> to vector<8x128xf32>
    %146 = arith.negf %145 : vector<8x128xf32>
    %147 = math.exp %146 : vector<8x128xf32>
    %cst_62 = arith.constant 1.000000e+00 : f32
    %148 = vector.broadcast %cst_62 : f32 to vector<8x128xf32>
    %149 = arith.addf %148, %147 : vector<8x128xf32>
    %150 = arith.divf %148, %149 : vector<8x128xf32>
    %151 = arith.mulf %142, %120 : vector<8x128xf32>
    %152 = arith.mulf %136, %144 : vector<8x128xf32>
    %153 = arith.addf %151, %152 : vector<8x128xf32>
    %154 = math.tanh %153 : vector<8x128xf32>
    %155 = arith.mulf %150, %154 : vector<8x128xf32>
    %c3_63 = arith.constant 3 : index
    %c0_64 = arith.constant 0 : index
    %c0_65 = arith.constant 0 : index
    %156 = vector.load %arg5[%c3_63, %c0_64, %c0_65] : memref<8x8x256xf32, #tpu.memory_space<vmem>>, vector<1x8x128xf32>
    %157 = vector.shape_cast %156 : vector<1x8x128xf32> to vector<8x128xf32>
    %158 = vector.shape_cast %155 : vector<8x128xf32> to vector<1x8x128xf32>
    tpu.vector_store %arg5[%c3_63, %c0_64, %c0_65], %158 {strides = array<i32>} : memref<8x8x256xf32, #tpu.memory_space<vmem>>, vector<1x8x128xf32>,
    %c4 = arith.constant 4 : index
    %c0_66 = arith.constant 0 : index
    %c0_67 = arith.constant 0 : index
    %159 = vector.load %arg6[%c4, %c0_66, %c0_67] : memref<8x8x512xf32, #tpu.memory_space<vmem>>, vector<1x8x512xf32>
    %160 = vector.shape_cast %159 : vector<1x8x512xf32> to vector<8x512xf32>
    %161 = arith.truncf %155 : vector<8x128xf32> to vector<8x128xbf16>
    %cst_68 = arith.constant dense<0.000000e+00> : vector<8x512xf32>
    %162 = tpu.matmul %161, %22, %cst_68 {dimension_numbers = #tpu.dot_dimension_numbers<[1], [0], [0], [1], [0, 0, 1, 1], [], []>} : vector<8x128xbf16>, vector<128x512xbf16>, vector<8x512xf32> -> vector<8x512xf32>
    %163 = arith.addf %160, %162 : vector<8x512xf32>
    %164 = vector.extract_strided_slice %163 {offsets = [0, 0], sizes = [8, 128], strides = [1, 1]} : vector<8x512xf32> to vector<8x128xf32>
    %165 = arith.negf %164 : vector<8x128xf32>
    %166 = math.exp %165 : vector<8x128xf32>
    %cst_69 = arith.constant 1.000000e+00 : f32
    %167 = vector.broadcast %cst_69 : f32 to vector<8x128xf32>
    %168 = arith.addf %167, %166 : vector<8x128xf32>
    %169 = arith.divf %167, %168 : vector<8x128xf32>
    %170 = vector.extract_strided_slice %163 {offsets = [0, 128], sizes = [8, 128], strides = [1, 1]} : vector<8x512xf32> to vector<8x128xf32>
    %171 = arith.negf %170 : vector<8x128xf32>
    %172 = math.exp %171 : vector<8x128xf32>
    %cst_70 = arith.constant 1.000000e+00 : f32
    %173 = vector.broadcast %cst_70 : f32 to vector<8x128xf32>
    %174 = arith.addf %173, %172 : vector<8x128xf32>
    %175 = arith.divf %173, %174 : vector<8x128xf32>
    %176 = vector.extract_strided_slice %163 {offsets = [0, 256], sizes = [8, 128], strides = [1, 1]} : vector<8x512xf32> to vector<8x128xf32>
    %177 = math.tanh %176 : vector<8x128xf32>
    %178 = vector.extract_strided_slice %163 {offsets = [0, 384], sizes = [8, 128], strides = [1, 1]} : vector<8x512xf32> to vector<8x128xf32>
    %179 = arith.negf %178 : vector<8x128xf32>
    %180 = math.exp %179 : vector<8x128xf32>
    %cst_71 = arith.constant 1.000000e+00 : f32
    %181 = vector.broadcast %cst_71 : f32 to vector<8x128xf32>
    %182 = arith.addf %181, %180 : vector<8x128xf32>
    %183 = arith.divf %181, %182 : vector<8x128xf32>
    %184 = arith.mulf %175, %153 : vector<8x128xf32>
    %185 = arith.mulf %169, %177 : vector<8x128xf32>
    %186 = arith.addf %184, %185 : vector<8x128xf32>
    %187 = math.tanh %186 : vector<8x128xf32>
    %188 = arith.mulf %183, %187 : vector<8x128xf32>
    %c4_72 = arith.constant 4 : index
    %c0_73 = arith.constant 0 : index
    %c0_74 = arith.constant 0 : index
    %189 = vector.load %arg5[%c4_72, %c0_73, %c0_74] : memref<8x8x256xf32, #tpu.memory_space<vmem>>, vector<1x8x128xf32>
    %190 = vector.shape_cast %189 : vector<1x8x128xf32> to vector<8x128xf32>
    %191 = vector.shape_cast %188 : vector<8x128xf32> to vector<1x8x128xf32>
    tpu.vector_store %arg5[%c4_72, %c0_73, %c0_74], %191 {strides = array<i32>} : memref<8x8x256xf32, #tpu.memory_space<vmem>>, vector<1x8x128xf32>,
    %c5 = arith.constant 5 : index
    %c0_75 = arith.constant 0 : index
    %c0_76 = arith.constant 0 : index
    %192 = vector.load %arg6[%c5, %c0_75, %c0_76] : memref<8x8x512xf32, #tpu.memory_space<vmem>>, vector<1x8x512xf32>
    %193 = vector.shape_cast %192 : vector<1x8x512xf32> to vector<8x512xf32>
    %194 = arith.truncf %188 : vector<8x128xf32> to vector<8x128xbf16>
    %cst_77 = arith.constant dense<0.000000e+00> : vector<8x512xf32>
    %195 = tpu.matmul %194, %22, %cst_77 {dimension_numbers = #tpu.dot_dimension_numbers<[1], [0], [0], [1], [0, 0, 1, 1], [], []>} : vector<8x128xbf16>, vector<128x512xbf16>, vector<8x512xf32> -> vector<8x512xf32>
    %196 = arith.addf %193, %195 : vector<8x512xf32>
    %197 = vector.extract_strided_slice %196 {offsets = [0, 0], sizes = [8, 128], strides = [1, 1]} : vector<8x512xf32> to vector<8x128xf32>
    %198 = arith.negf %197 : vector<8x128xf32>
    %199 = math.exp %198 : vector<8x128xf32>
    %cst_78 = arith.constant 1.000000e+00 : f32
    %200 = vector.broadcast %cst_78 : f32 to vector<8x128xf32>
    %201 = arith.addf %200, %199 : vector<8x128xf32>
    %202 = arith.divf %200, %201 : vector<8x128xf32>
    %203 = vector.extract_strided_slice %196 {offsets = [0, 128], sizes = [8, 128], strides = [1, 1]} : vector<8x512xf32> to vector<8x128xf32>
    %204 = arith.negf %203 : vector<8x128xf32>
    %205 = math.exp %204 : vector<8x128xf32>
    %cst_79 = arith.constant 1.000000e+00 : f32
    %206 = vector.broadcast %cst_79 : f32 to vector<8x128xf32>
    %207 = arith.addf %206, %205 : vector<8x128xf32>
    %208 = arith.divf %206, %207 : vector<8x128xf32>
    %209 = vector.extract_strided_slice %196 {offsets = [0, 256], sizes = [8, 128], strides = [1, 1]} : vector<8x512xf32> to vector<8x128xf32>
    %210 = math.tanh %209 : vector<8x128xf32>
    %211 = vector.extract_strided_slice %196 {offsets = [0, 384], sizes = [8, 128], strides = [1, 1]} : vector<8x512xf32> to vector<8x128xf32>
    %212 = arith.negf %211 : vector<8x128xf32>
    %213 = math.exp %212 : vector<8x128xf32>
    %cst_80 = arith.constant 1.000000e+00 : f32
    %214 = vector.broadcast %cst_80 : f32 to vector<8x128xf32>
    %215 = arith.addf %214, %213 : vector<8x128xf32>
    %216 = arith.divf %214, %215 : vector<8x128xf32>
    %217 = arith.mulf %208, %186 : vector<8x128xf32>
    %218 = arith.mulf %202, %210 : vector<8x128xf32>
    %219 = arith.addf %217, %218 : vector<8x128xf32>
    %220 = math.tanh %219 : vector<8x128xf32>
    %221 = arith.mulf %216, %220 : vector<8x128xf32>
    %c5_81 = arith.constant 5 : index
    %c0_82 = arith.constant 0 : index
    %c0_83 = arith.constant 0 : index
    %222 = vector.load %arg5[%c5_81, %c0_82, %c0_83] : memref<8x8x256xf32, #tpu.memory_space<vmem>>, vector<1x8x128xf32>
    %223 = vector.shape_cast %222 : vector<1x8x128xf32> to vector<8x128xf32>
    %224 = vector.shape_cast %221 : vector<8x128xf32> to vector<1x8x128xf32>
    tpu.vector_store %arg5[%c5_81, %c0_82, %c0_83], %224 {strides = array<i32>} : memref<8x8x256xf32, #tpu.memory_space<vmem>>, vector<1x8x128xf32>,
    %c6 = arith.constant 6 : index
    %c0_84 = arith.constant 0 : index
    %c0_85 = arith.constant 0 : index
    %225 = vector.load %arg6[%c6, %c0_84, %c0_85] : memref<8x8x512xf32, #tpu.memory_space<vmem>>, vector<1x8x512xf32>
    %226 = vector.shape_cast %225 : vector<1x8x512xf32> to vector<8x512xf32>
    %227 = arith.truncf %221 : vector<8x128xf32> to vector<8x128xbf16>
    %cst_86 = arith.constant dense<0.000000e+00> : vector<8x512xf32>
    %228 = tpu.matmul %227, %22, %cst_86 {dimension_numbers = #tpu.dot_dimension_numbers<[1], [0], [0], [1], [0, 0, 1, 1], [], []>} : vector<8x128xbf16>, vector<128x512xbf16>, vector<8x512xf32> -> vector<8x512xf32>
    %229 = arith.addf %226, %228 : vector<8x512xf32>
    %230 = vector.extract_strided_slice %229 {offsets = [0, 0], sizes = [8, 128], strides = [1, 1]} : vector<8x512xf32> to vector<8x128xf32>
    %231 = arith.negf %230 : vector<8x128xf32>
    %232 = math.exp %231 : vector<8x128xf32>
    %cst_87 = arith.constant 1.000000e+00 : f32
    %233 = vector.broadcast %cst_87 : f32 to vector<8x128xf32>
    %234 = arith.addf %233, %232 : vector<8x128xf32>
    %235 = arith.divf %233, %234 : vector<8x128xf32>
    %236 = vector.extract_strided_slice %229 {offsets = [0, 128], sizes = [8, 128], strides = [1, 1]} : vector<8x512xf32> to vector<8x128xf32>
    %237 = arith.negf %236 : vector<8x128xf32>
    %238 = math.exp %237 : vector<8x128xf32>
    %cst_88 = arith.constant 1.000000e+00 : f32
    %239 = vector.broadcast %cst_88 : f32 to vector<8x128xf32>
    %240 = arith.addf %239, %238 : vector<8x128xf32>
    %241 = arith.divf %239, %240 : vector<8x128xf32>
    %242 = vector.extract_strided_slice %229 {offsets = [0, 256], sizes = [8, 128], strides = [1, 1]} : vector<8x512xf32> to vector<8x128xf32>
    %243 = math.tanh %242 : vector<8x128xf32>
    %244 = vector.extract_strided_slice %229 {offsets = [0, 384], sizes = [8, 128], strides = [1, 1]} : vector<8x512xf32> to vector<8x128xf32>
    %245 = arith.negf %244 : vector<8x128xf32>
    %246 = math.exp %245 : vector<8x128xf32>
    %cst_89 = arith.constant 1.000000e+00 : f32
    %247 = vector.broadcast %cst_89 : f32 to vector<8x128xf32>
    %248 = arith.addf %247, %246 : vector<8x128xf32>
    %249 = arith.divf %247, %248 : vector<8x128xf32>
    %250 = arith.mulf %241, %219 : vector<8x128xf32>
    %251 = arith.mulf %235, %243 : vector<8x128xf32>
    %252 = arith.addf %250, %251 : vector<8x128xf32>
    %253 = math.tanh %252 : vector<8x128xf32>
    %254 = arith.mulf %249, %253 : vector<8x128xf32>
    %c6_90 = arith.constant 6 : index
    %c0_91 = arith.constant 0 : index
    %c0_92 = arith.constant 0 : index
    %255 = vector.load %arg5[%c6_90, %c0_91, %c0_92] : memref<8x8x256xf32, #tpu.memory_space<vmem>>, vector<1x8x128xf32>
    %256 = vector.shape_cast %255 : vector<1x8x128xf32> to vector<8x128xf32>
    %257 = vector.shape_cast %254 : vector<8x128xf32> to vector<1x8x128xf32>
    tpu.vector_store %arg5[%c6_90, %c0_91, %c0_92], %257 {strides = array<i32>} : memref<8x8x256xf32, #tpu.memory_space<vmem>>, vector<1x8x128xf32>,
    %c7 = arith.constant 7 : index
    %c0_93 = arith.constant 0 : index
    %c0_94 = arith.constant 0 : index
    %258 = vector.load %arg6[%c7, %c0_93, %c0_94] : memref<8x8x512xf32, #tpu.memory_space<vmem>>, vector<1x8x512xf32>
    %259 = vector.shape_cast %258 : vector<1x8x512xf32> to vector<8x512xf32>
    %260 = arith.truncf %254 : vector<8x128xf32> to vector<8x128xbf16>
    %cst_95 = arith.constant dense<0.000000e+00> : vector<8x512xf32>
    %261 = tpu.matmul %260, %22, %cst_95 {dimension_numbers = #tpu.dot_dimension_numbers<[1], [0], [0], [1], [0, 0, 1, 1], [], []>} : vector<8x128xbf16>, vector<128x512xbf16>, vector<8x512xf32> -> vector<8x512xf32>
    %262 = arith.addf %259, %261 : vector<8x512xf32>
    %263 = vector.extract_strided_slice %262 {offsets = [0, 0], sizes = [8, 128], strides = [1, 1]} : vector<8x512xf32> to vector<8x128xf32>
    %264 = arith.negf %263 : vector<8x128xf32>
    %265 = math.exp %264 : vector<8x128xf32>
    %cst_96 = arith.constant 1.000000e+00 : f32
    %266 = vector.broadcast %cst_96 : f32 to vector<8x128xf32>
    %267 = arith.addf %266, %265 : vector<8x128xf32>
    %268 = arith.divf %266, %267 : vector<8x128xf32>
    %269 = vector.extract_strided_slice %262 {offsets = [0, 128], sizes = [8, 128], strides = [1, 1]} : vector<8x512xf32> to vector<8x128xf32>
    %270 = arith.negf %269 : vector<8x128xf32>
    %271 = math.exp %270 : vector<8x128xf32>
    %cst_97 = arith.constant 1.000000e+00 : f32
    %272 = vector.broadcast %cst_97 : f32 to vector<8x128xf32>
    %273 = arith.addf %272, %271 : vector<8x128xf32>
    %274 = arith.divf %272, %273 : vector<8x128xf32>
    %275 = vector.extract_strided_slice %262 {offsets = [0, 256], sizes = [8, 128], strides = [1, 1]} : vector<8x512xf32> to vector<8x128xf32>
    %276 = math.tanh %275 : vector<8x128xf32>
    %277 = vector.extract_strided_slice %262 {offsets = [0, 384], sizes = [8, 128], strides = [1, 1]} : vector<8x512xf32> to vector<8x128xf32>
    %278 = arith.negf %277 : vector<8x128xf32>
    %279 = math.exp %278 : vector<8x128xf32>
    %cst_98 = arith.constant 1.000000e+00 : f32
    %280 = vector.broadcast %cst_98 : f32 to vector<8x128xf32>
    %281 = arith.addf %280, %279 : vector<8x128xf32>
    %282 = arith.divf %280, %281 : vector<8x128xf32>
    %283 = arith.mulf %274, %252 : vector<8x128xf32>
    %284 = arith.mulf %268, %276 : vector<8x128xf32>
    %285 = arith.addf %283, %284 : vector<8x128xf32>
    %286 = math.tanh %285 : vector<8x128xf32>
    %287 = arith.mulf %282, %286 : vector<8x128xf32>
    %c7_99 = arith.constant 7 : index
    %c0_100 = arith.constant 0 : index
    %c0_101 = arith.constant 0 : index
    %288 = vector.load %arg5[%c7_99, %c0_100, %c0_101] : memref<8x8x256xf32, #tpu.memory_space<vmem>>, vector<1x8x128xf32>
    %289 = vector.shape_cast %288 : vector<1x8x128xf32> to vector<8x128xf32>
    %290 = vector.shape_cast %287 : vector<8x128xf32> to vector<1x8x128xf32>
    tpu.vector_store %arg5[%c7_99, %c0_100, %c0_101], %290 {strides = array<i32>} : memref<8x8x256xf32, #tpu.memory_space<vmem>>, vector<1x8x128xf32>,
    %cst_102 = arith.constant 0.000000e+00 : f32
    %291 = vector.broadcast %cst_102 : f32 to vector<8x128xf32>
    %cst_103 = arith.constant 0.000000e+00 : f32
    %292 = vector.broadcast %cst_103 : f32 to vector<8x128xf32>
    %c7_104 = arith.constant 7 : index
    %c0_105 = arith.constant 0 : index
    %c0_106 = arith.constant 0 : index
    %293 = vector.load %arg7[%c7_104, %c0_105, %c0_106] : memref<8x8x512xf32, #tpu.memory_space<vmem>>, vector<1x8x512xf32>
    %294 = vector.shape_cast %293 : vector<1x8x512xf32> to vector<8x512xf32>
    %295 = arith.truncf %291 : vector<8x128xf32> to vector<8x128xbf16>
    %cst_107 = arith.constant dense<0.000000e+00> : vector<8x512xf32>
    %296 = tpu.matmul %295, %24, %cst_107 {dimension_numbers = #tpu.dot_dimension_numbers<[1], [0], [0], [1], [0, 0, 1, 1], [], []>} : vector<8x128xbf16>, vector<128x512xbf16>, vector<8x512xf32> -> vector<8x512xf32>
    %297 = arith.addf %294, %296 : vector<8x512xf32>
    %298 = vector.extract_strided_slice %297 {offsets = [0, 0], sizes = [8, 128], strides = [1, 1]} : vector<8x512xf32> to vector<8x128xf32>
    %299 = arith.negf %298 : vector<8x128xf32>
    %300 = math.exp %299 : vector<8x128xf32>
    %cst_108 = arith.constant 1.000000e+00 : f32
    %301 = vector.broadcast %cst_108 : f32 to vector<8x128xf32>
    %302 = arith.addf %301, %300 : vector<8x128xf32>
    %303 = arith.divf %301, %302 : vector<8x128xf32>
    %304 = vector.extract_strided_slice %297 {offsets = [0, 128], sizes = [8, 128], strides = [1, 1]} : vector<8x512xf32> to vector<8x128xf32>
    %305 = arith.negf %304 : vector<8x128xf32>
    %306 = math.exp %305 : vector<8x128xf32>
    %cst_109 = arith.constant 1.000000e+00 : f32
    %307 = vector.broadcast %cst_109 : f32 to vector<8x128xf32>
    %308 = arith.addf %307, %306 : vector<8x128xf32>
    %309 = arith.divf %307, %308 : vector<8x128xf32>
    %310 = vector.extract_strided_slice %297 {offsets = [0, 256], sizes = [8, 128], strides = [1, 1]} : vector<8x512xf32> to vector<8x128xf32>
    %311 = math.tanh %310 : vector<8x128xf32>
    %312 = vector.extract_strided_slice %297 {offsets = [0, 384], sizes = [8, 128], strides = [1, 1]} : vector<8x512xf32> to vector<8x128xf32>
    %313 = arith.negf %312 : vector<8x128xf32>
    %314 = math.exp %313 : vector<8x128xf32>
    %cst_110 = arith.constant 1.000000e+00 : f32
    %315 = vector.broadcast %cst_110 : f32 to vector<8x128xf32>
    %316 = arith.addf %315, %314 : vector<8x128xf32>
    %317 = arith.divf %315, %316 : vector<8x128xf32>
    %318 = arith.mulf %309, %292 : vector<8x128xf32>
    %319 = arith.mulf %303, %311 : vector<8x128xf32>
    %320 = arith.addf %318, %319 : vector<8x128xf32>
    %321 = math.tanh %320 : vector<8x128xf32>
    %322 = arith.mulf %317, %321 : vector<8x128xf32>
    %c7_111 = arith.constant 7 : index
    %c0_112 = arith.constant 0 : index
    %c128 = arith.constant 128 : index
    %323 = vector.load %arg5[%c7_111, %c0_112, %c128] : memref<8x8x256xf32, #tpu.memory_space<vmem>>, vector<1x8x128xf32>
    %324 = vector.shape_cast %323 : vector<1x8x128xf32> to vector<8x128xf32>
    %325 = vector.shape_cast %322 : vector<8x128xf32> to vector<1x8x128xf32>
    tpu.vector_store %arg5[%c7_111, %c0_112, %c128], %325 {strides = array<i32>} : memref<8x8x256xf32, #tpu.memory_space<vmem>>, vector<1x8x128xf32>,
    %c6_113 = arith.constant 6 : index
    %c0_114 = arith.constant 0 : index
    %c0_115 = arith.constant 0 : index
    %326 = vector.load %arg7[%c6_113, %c0_114, %c0_115] : memref<8x8x512xf32, #tpu.memory_space<vmem>>, vector<1x8x512xf32>
    %327 = vector.shape_cast %326 : vector<1x8x512xf32> to vector<8x512xf32>
    %328 = arith.truncf %322 : vector<8x128xf32> to vector<8x128xbf16>
    %cst_116 = arith.constant dense<0.000000e+00> : vector<8x512xf32>
    %329 = tpu.matmul %328, %24, %cst_116 {dimension_numbers = #tpu.dot_dimension_numbers<[1], [0], [0], [1], [0, 0, 1, 1], [], []>} : vector<8x128xbf16>, vector<128x512xbf16>, vector<8x512xf32> -> vector<8x512xf32>
    %330 = arith.addf %327, %329 : vector<8x512xf32>
    %331 = vector.extract_strided_slice %330 {offsets = [0, 0], sizes = [8, 128], strides = [1, 1]} : vector<8x512xf32> to vector<8x128xf32>
    %332 = arith.negf %331 : vector<8x128xf32>
    %333 = math.exp %332 : vector<8x128xf32>
    %cst_117 = arith.constant 1.000000e+00 : f32
    %334 = vector.broadcast %cst_117 : f32 to vector<8x128xf32>
    %335 = arith.addf %334, %333 : vector<8x128xf32>
    %336 = arith.divf %334, %335 : vector<8x128xf32>
    %337 = vector.extract_strided_slice %330 {offsets = [0, 128], sizes = [8, 128], strides = [1, 1]} : vector<8x512xf32> to vector<8x128xf32>
    %338 = arith.negf %337 : vector<8x128xf32>
    %339 = math.exp %338 : vector<8x128xf32>
    %cst_118 = arith.constant 1.000000e+00 : f32
    %340 = vector.broadcast %cst_118 : f32 to vector<8x128xf32>
    %341 = arith.addf %340, %339 : vector<8x128xf32>
    %342 = arith.divf %340, %341 : vector<8x128xf32>
    %343 = vector.extract_strided_slice %330 {offsets = [0, 256], sizes = [8, 128], strides = [1, 1]} : vector<8x512xf32> to vector<8x128xf32>
    %344 = math.tanh %343 : vector<8x128xf32>
    %345 = vector.extract_strided_slice %330 {offsets = [0, 384], sizes = [8, 128], strides = [1, 1]} : vector<8x512xf32> to vector<8x128xf32>
    %346 = arith.negf %345 : vector<8x128xf32>
    %347 = math.exp %346 : vector<8x128xf32>
    %cst_119 = arith.constant 1.000000e+00 : f32
    %348 = vector.broadcast %cst_119 : f32 to vector<8x128xf32>
    %349 = arith.addf %348, %347 : vector<8x128xf32>
    %350 = arith.divf %348, %349 : vector<8x128xf32>
    %351 = arith.mulf %342, %320 : vector<8x128xf32>
    %352 = arith.mulf %336, %344 : vector<8x128xf32>
    %353 = arith.addf %351, %352 : vector<8x128xf32>
    %354 = math.tanh %353 : vector<8x128xf32>
    %355 = arith.mulf %350, %354 : vector<8x128xf32>
    %c6_120 = arith.constant 6 : index
    %c0_121 = arith.constant 0 : index
    %c128_122 = arith.constant 128 : index
    %356 = vector.load %arg5[%c6_120, %c0_121, %c128_122] : memref<8x8x256xf32, #tpu.memory_space<vmem>>, vector<1x8x128xf32>
    %357 = vector.shape_cast %356 : vector<1x8x128xf32> to vector<8x128xf32>
    %358 = vector.shape_cast %355 : vector<8x128xf32> to vector<1x8x128xf32>
    tpu.vector_store %arg5[%c6_120, %c0_121, %c128_122], %358 {strides = array<i32>} : memref<8x8x256xf32, #tpu.memory_space<vmem>>, vector<1x8x128xf32>,
    %c5_123 = arith.constant 5 : index
    %c0_124 = arith.constant 0 : index
    %c0_125 = arith.constant 0 : index
    %359 = vector.load %arg7[%c5_123, %c0_124, %c0_125] : memref<8x8x512xf32, #tpu.memory_space<vmem>>, vector<1x8x512xf32>
    %360 = vector.shape_cast %359 : vector<1x8x512xf32> to vector<8x512xf32>
    %361 = arith.truncf %355 : vector<8x128xf32> to vector<8x128xbf16>
    %cst_126 = arith.constant dense<0.000000e+00> : vector<8x512xf32>
    %362 = tpu.matmul %361, %24, %cst_126 {dimension_numbers = #tpu.dot_dimension_numbers<[1], [0], [0], [1], [0, 0, 1, 1], [], []>} : vector<8x128xbf16>, vector<128x512xbf16>, vector<8x512xf32> -> vector<8x512xf32>
    %363 = arith.addf %360, %362 : vector<8x512xf32>
    %364 = vector.extract_strided_slice %363 {offsets = [0, 0], sizes = [8, 128], strides = [1, 1]} : vector<8x512xf32> to vector<8x128xf32>
    %365 = arith.negf %364 : vector<8x128xf32>
    %366 = math.exp %365 : vector<8x128xf32>
    %cst_127 = arith.constant 1.000000e+00 : f32
    %367 = vector.broadcast %cst_127 : f32 to vector<8x128xf32>
    %368 = arith.addf %367, %366 : vector<8x128xf32>
    %369 = arith.divf %367, %368 : vector<8x128xf32>
    %370 = vector.extract_strided_slice %363 {offsets = [0, 128], sizes = [8, 128], strides = [1, 1]} : vector<8x512xf32> to vector<8x128xf32>
    %371 = arith.negf %370 : vector<8x128xf32>
    %372 = math.exp %371 : vector<8x128xf32>
    %cst_128 = arith.constant 1.000000e+00 : f32
    %373 = vector.broadcast %cst_128 : f32 to vector<8x128xf32>
    %374 = arith.addf %373, %372 : vector<8x128xf32>
    %375 = arith.divf %373, %374 : vector<8x128xf32>
    %376 = vector.extract_strided_slice %363 {offsets = [0, 256], sizes = [8, 128], strides = [1, 1]} : vector<8x512xf32> to vector<8x128xf32>
    %377 = math.tanh %376 : vector<8x128xf32>
    %378 = vector.extract_strided_slice %363 {offsets = [0, 384], sizes = [8, 128], strides = [1, 1]} : vector<8x512xf32> to vector<8x128xf32>
    %379 = arith.negf %378 : vector<8x128xf32>
    %380 = math.exp %379 : vector<8x128xf32>
    %cst_129 = arith.constant 1.000000e+00 : f32
    %381 = vector.broadcast %cst_129 : f32 to vector<8x128xf32>
    %382 = arith.addf %381, %380 : vector<8x128xf32>
    %383 = arith.divf %381, %382 : vector<8x128xf32>
    %384 = arith.mulf %375, %353 : vector<8x128xf32>
    %385 = arith.mulf %369, %377 : vector<8x128xf32>
    %386 = arith.addf %384, %385 : vector<8x128xf32>
    %387 = math.tanh %386 : vector<8x128xf32>
    %388 = arith.mulf %383, %387 : vector<8x128xf32>
    %c5_130 = arith.constant 5 : index
    %c0_131 = arith.constant 0 : index
    %c128_132 = arith.constant 128 : index
    %389 = vector.load %arg5[%c5_130, %c0_131, %c128_132] : memref<8x8x256xf32, #tpu.memory_space<vmem>>, vector<1x8x128xf32>
    %390 = vector.shape_cast %389 : vector<1x8x128xf32> to vector<8x128xf32>
    %391 = vector.shape_cast %388 : vector<8x128xf32> to vector<1x8x128xf32>
    tpu.vector_store %arg5[%c5_130, %c0_131, %c128_132], %391 {strides = array<i32>} : memref<8x8x256xf32, #tpu.memory_space<vmem>>, vector<1x8x128xf32>,
    %c4_133 = arith.constant 4 : index
    %c0_134 = arith.constant 0 : index
    %c0_135 = arith.constant 0 : index
    %392 = vector.load %arg7[%c4_133, %c0_134, %c0_135] : memref<8x8x512xf32, #tpu.memory_space<vmem>>, vector<1x8x512xf32>
    %393 = vector.shape_cast %392 : vector<1x8x512xf32> to vector<8x512xf32>
    %394 = arith.truncf %388 : vector<8x128xf32> to vector<8x128xbf16>
    %cst_136 = arith.constant dense<0.000000e+00> : vector<8x512xf32>
    %395 = tpu.matmul %394, %24, %cst_136 {dimension_numbers = #tpu.dot_dimension_numbers<[1], [0], [0], [1], [0, 0, 1, 1], [], []>} : vector<8x128xbf16>, vector<128x512xbf16>, vector<8x512xf32> -> vector<8x512xf32>
    %396 = arith.addf %393, %395 : vector<8x512xf32>
    %397 = vector.extract_strided_slice %396 {offsets = [0, 0], sizes = [8, 128], strides = [1, 1]} : vector<8x512xf32> to vector<8x128xf32>
    %398 = arith.negf %397 : vector<8x128xf32>
    %399 = math.exp %398 : vector<8x128xf32>
    %cst_137 = arith.constant 1.000000e+00 : f32
    %400 = vector.broadcast %cst_137 : f32 to vector<8x128xf32>
    %401 = arith.addf %400, %399 : vector<8x128xf32>
    %402 = arith.divf %400, %401 : vector<8x128xf32>
    %403 = vector.extract_strided_slice %396 {offsets = [0, 128], sizes = [8, 128], strides = [1, 1]} : vector<8x512xf32> to vector<8x128xf32>
    %404 = arith.negf %403 : vector<8x128xf32>
    %405 = math.exp %404 : vector<8x128xf32>
    %cst_138 = arith.constant 1.000000e+00 : f32
    %406 = vector.broadcast %cst_138 : f32 to vector<8x128xf32>
    %407 = arith.addf %406, %405 : vector<8x128xf32>
    %408 = arith.divf %406, %407 : vector<8x128xf32>
    %409 = vector.extract_strided_slice %396 {offsets = [0, 256], sizes = [8, 128], strides = [1, 1]} : vector<8x512xf32> to vector<8x128xf32>
    %410 = math.tanh %409 : vector<8x128xf32>
    %411 = vector.extract_strided_slice %396 {offsets = [0, 384], sizes = [8, 128], strides = [1, 1]} : vector<8x512xf32> to vector<8x128xf32>
    %412 = arith.negf %411 : vector<8x128xf32>
    %413 = math.exp %412 : vector<8x128xf32>
    %cst_139 = arith.constant 1.000000e+00 : f32
    %414 = vector.broadcast %cst_139 : f32 to vector<8x128xf32>
    %415 = arith.addf %414, %413 : vector<8x128xf32>
    %416 = arith.divf %414, %415 : vector<8x128xf32>
    %417 = arith.mulf %408, %386 : vector<8x128xf32>
    %418 = arith.mulf %402, %410 : vector<8x128xf32>
    %419 = arith.addf %417, %418 : vector<8x128xf32>
    %420 = math.tanh %419 : vector<8x128xf32>
    %421 = arith.mulf %416, %420 : vector<8x128xf32>
    %c4_140 = arith.constant 4 : index
    %c0_141 = arith.constant 0 : index
    %c128_142 = arith.constant 128 : index
    %422 = vector.load %arg5[%c4_140, %c0_141, %c128_142] : memref<8x8x256xf32, #tpu.memory_space<vmem>>, vector<1x8x128xf32>
    %423 = vector.shape_cast %422 : vector<1x8x128xf32> to vector<8x128xf32>
    %424 = vector.shape_cast %421 : vector<8x128xf32> to vector<1x8x128xf32>
    tpu.vector_store %arg5[%c4_140, %c0_141, %c128_142], %424 {strides = array<i32>} : memref<8x8x256xf32, #tpu.memory_space<vmem>>, vector<1x8x128xf32>,
    %c3_143 = arith.constant 3 : index
    %c0_144 = arith.constant 0 : index
    %c0_145 = arith.constant 0 : index
    %425 = vector.load %arg7[%c3_143, %c0_144, %c0_145] : memref<8x8x512xf32, #tpu.memory_space<vmem>>, vector<1x8x512xf32>
    %426 = vector.shape_cast %425 : vector<1x8x512xf32> to vector<8x512xf32>
    %427 = arith.truncf %421 : vector<8x128xf32> to vector<8x128xbf16>
    %cst_146 = arith.constant dense<0.000000e+00> : vector<8x512xf32>
    %428 = tpu.matmul %427, %24, %cst_146 {dimension_numbers = #tpu.dot_dimension_numbers<[1], [0], [0], [1], [0, 0, 1, 1], [], []>} : vector<8x128xbf16>, vector<128x512xbf16>, vector<8x512xf32> -> vector<8x512xf32>
    %429 = arith.addf %426, %428 : vector<8x512xf32>
    %430 = vector.extract_strided_slice %429 {offsets = [0, 0], sizes = [8, 128], strides = [1, 1]} : vector<8x512xf32> to vector<8x128xf32>
    %431 = arith.negf %430 : vector<8x128xf32>
    %432 = math.exp %431 : vector<8x128xf32>
    %cst_147 = arith.constant 1.000000e+00 : f32
    %433 = vector.broadcast %cst_147 : f32 to vector<8x128xf32>
    %434 = arith.addf %433, %432 : vector<8x128xf32>
    %435 = arith.divf %433, %434 : vector<8x128xf32>
    %436 = vector.extract_strided_slice %429 {offsets = [0, 128], sizes = [8, 128], strides = [1, 1]} : vector<8x512xf32> to vector<8x128xf32>
    %437 = arith.negf %436 : vector<8x128xf32>
    %438 = math.exp %437 : vector<8x128xf32>
    %cst_148 = arith.constant 1.000000e+00 : f32
    %439 = vector.broadcast %cst_148 : f32 to vector<8x128xf32>
    %440 = arith.addf %439, %438 : vector<8x128xf32>
    %441 = arith.divf %439, %440 : vector<8x128xf32>
    %442 = vector.extract_strided_slice %429 {offsets = [0, 256], sizes = [8, 128], strides = [1, 1]} : vector<8x512xf32> to vector<8x128xf32>
    %443 = math.tanh %442 : vector<8x128xf32>
    %444 = vector.extract_strided_slice %429 {offsets = [0, 384], sizes = [8, 128], strides = [1, 1]} : vector<8x512xf32> to vector<8x128xf32>
    %445 = arith.negf %444 : vector<8x128xf32>
    %446 = math.exp %445 : vector<8x128xf32>
    %cst_149 = arith.constant 1.000000e+00 : f32
    %447 = vector.broadcast %cst_149 : f32 to vector<8x128xf32>
    %448 = arith.addf %447, %446 : vector<8x128xf32>
    %449 = arith.divf %447, %448 : vector<8x128xf32>
    %450 = arith.mulf %441, %419 : vector<8x128xf32>
    %451 = arith.mulf %435, %443 : vector<8x128xf32>
    %452 = arith.addf %450, %451 : vector<8x128xf32>
    %453 = math.tanh %452 : vector<8x128xf32>
    %454 = arith.mulf %449, %453 : vector<8x128xf32>
    %c3_150 = arith.constant 3 : index
    %c0_151 = arith.constant 0 : index
    %c128_152 = arith.constant 128 : index
    %455 = vector.load %arg5[%c3_150, %c0_151, %c128_152] : memref<8x8x256xf32, #tpu.memory_space<vmem>>, vector<1x8x128xf32>
    %456 = vector.shape_cast %455 : vector<1x8x128xf32> to vector<8x128xf32>
    %457 = vector.shape_cast %454 : vector<8x128xf32> to vector<1x8x128xf32>
    tpu.vector_store %arg5[%c3_150, %c0_151, %c128_152], %457 {strides = array<i32>} : memref<8x8x256xf32, #tpu.memory_space<vmem>>, vector<1x8x128xf32>,
    %c2_153 = arith.constant 2 : index
    %c0_154 = arith.constant 0 : index
    %c0_155 = arith.constant 0 : index
    %458 = vector.load %arg7[%c2_153, %c0_154, %c0_155] : memref<8x8x512xf32, #tpu.memory_space<vmem>>, vector<1x8x512xf32>
    %459 = vector.shape_cast %458 : vector<1x8x512xf32> to vector<8x512xf32>
    %460 = arith.truncf %454 : vector<8x128xf32> to vector<8x128xbf16>
    %cst_156 = arith.constant dense<0.000000e+00> : vector<8x512xf32>
    %461 = tpu.matmul %460, %24, %cst_156 {dimension_numbers = #tpu.dot_dimension_numbers<[1], [0], [0], [1], [0, 0, 1, 1], [], []>} : vector<8x128xbf16>, vector<128x512xbf16>, vector<8x512xf32> -> vector<8x512xf32>
    %462 = arith.addf %459, %461 : vector<8x512xf32>
    %463 = vector.extract_strided_slice %462 {offsets = [0, 0], sizes = [8, 128], strides = [1, 1]} : vector<8x512xf32> to vector<8x128xf32>
    %464 = arith.negf %463 : vector<8x128xf32>
    %465 = math.exp %464 : vector<8x128xf32>
    %cst_157 = arith.constant 1.000000e+00 : f32
    %466 = vector.broadcast %cst_157 : f32 to vector<8x128xf32>
    %467 = arith.addf %466, %465 : vector<8x128xf32>
    %468 = arith.divf %466, %467 : vector<8x128xf32>
    %469 = vector.extract_strided_slice %462 {offsets = [0, 128], sizes = [8, 128], strides = [1, 1]} : vector<8x512xf32> to vector<8x128xf32>
    %470 = arith.negf %469 : vector<8x128xf32>
    %471 = math.exp %470 : vector<8x128xf32>
    %cst_158 = arith.constant 1.000000e+00 : f32
    %472 = vector.broadcast %cst_158 : f32 to vector<8x128xf32>
    %473 = arith.addf %472, %471 : vector<8x128xf32>
    %474 = arith.divf %472, %473 : vector<8x128xf32>
    %475 = vector.extract_strided_slice %462 {offsets = [0, 256], sizes = [8, 128], strides = [1, 1]} : vector<8x512xf32> to vector<8x128xf32>
    %476 = math.tanh %475 : vector<8x128xf32>
    %477 = vector.extract_strided_slice %462 {offsets = [0, 384], sizes = [8, 128], strides = [1, 1]} : vector<8x512xf32> to vector<8x128xf32>
    %478 = arith.negf %477 : vector<8x128xf32>
    %479 = math.exp %478 : vector<8x128xf32>
    %cst_159 = arith.constant 1.000000e+00 : f32
    %480 = vector.broadcast %cst_159 : f32 to vector<8x128xf32>
    %481 = arith.addf %480, %479 : vector<8x128xf32>
    %482 = arith.divf %480, %481 : vector<8x128xf32>
    %483 = arith.mulf %474, %452 : vector<8x128xf32>
    %484 = arith.mulf %468, %476 : vector<8x128xf32>
    %485 = arith.addf %483, %484 : vector<8x128xf32>
    %486 = math.tanh %485 : vector<8x128xf32>
    %487 = arith.mulf %482, %486 : vector<8x128xf32>
    %c2_160 = arith.constant 2 : index
    %c0_161 = arith.constant 0 : index
    %c128_162 = arith.constant 128 : index
    %488 = vector.load %arg5[%c2_160, %c0_161, %c128_162] : memref<8x8x256xf32, #tpu.memory_space<vmem>>, vector<1x8x128xf32>
    %489 = vector.shape_cast %488 : vector<1x8x128xf32> to vector<8x128xf32>
    %490 = vector.shape_cast %487 : vector<8x128xf32> to vector<1x8x128xf32>
    tpu.vector_store %arg5[%c2_160, %c0_161, %c128_162], %490 {strides = array<i32>} : memref<8x8x256xf32, #tpu.memory_space<vmem>>, vector<1x8x128xf32>,
    %c1_163 = arith.constant 1 : index
    %c0_164 = arith.constant 0 : index
    %c0_165 = arith.constant 0 : index
    %491 = vector.load %arg7[%c1_163, %c0_164, %c0_165] : memref<8x8x512xf32, #tpu.memory_space<vmem>>, vector<1x8x512xf32>
    %492 = vector.shape_cast %491 : vector<1x8x512xf32> to vector<8x512xf32>
    %493 = arith.truncf %487 : vector<8x128xf32> to vector<8x128xbf16>
    %cst_166 = arith.constant dense<0.000000e+00> : vector<8x512xf32>
    %494 = tpu.matmul %493, %24, %cst_166 {dimension_numbers = #tpu.dot_dimension_numbers<[1], [0], [0], [1], [0, 0, 1, 1], [], []>} : vector<8x128xbf16>, vector<128x512xbf16>, vector<8x512xf32> -> vector<8x512xf32>
    %495 = arith.addf %492, %494 : vector<8x512xf32>
    %496 = vector.extract_strided_slice %495 {offsets = [0, 0], sizes = [8, 128], strides = [1, 1]} : vector<8x512xf32> to vector<8x128xf32>
    %497 = arith.negf %496 : vector<8x128xf32>
    %498 = math.exp %497 : vector<8x128xf32>
    %cst_167 = arith.constant 1.000000e+00 : f32
    %499 = vector.broadcast %cst_167 : f32 to vector<8x128xf32>
    %500 = arith.addf %499, %498 : vector<8x128xf32>
    %501 = arith.divf %499, %500 : vector<8x128xf32>
    %502 = vector.extract_strided_slice %495 {offsets = [0, 128], sizes = [8, 128], strides = [1, 1]} : vector<8x512xf32> to vector<8x128xf32>
    %503 = arith.negf %502 : vector<8x128xf32>
    %504 = math.exp %503 : vector<8x128xf32>
    %cst_168 = arith.constant 1.000000e+00 : f32
    %505 = vector.broadcast %cst_168 : f32 to vector<8x128xf32>
    %506 = arith.addf %505, %504 : vector<8x128xf32>
    %507 = arith.divf %505, %506 : vector<8x128xf32>
    %508 = vector.extract_strided_slice %495 {offsets = [0, 256], sizes = [8, 128], strides = [1, 1]} : vector<8x512xf32> to vector<8x128xf32>
    %509 = math.tanh %508 : vector<8x128xf32>
    %510 = vector.extract_strided_slice %495 {offsets = [0, 384], sizes = [8, 128], strides = [1, 1]} : vector<8x512xf32> to vector<8x128xf32>
    %511 = arith.negf %510 : vector<8x128xf32>
    %512 = math.exp %511 : vector<8x128xf32>
    %cst_169 = arith.constant 1.000000e+00 : f32
    %513 = vector.broadcast %cst_169 : f32 to vector<8x128xf32>
    %514 = arith.addf %513, %512 : vector<8x128xf32>
    %515 = arith.divf %513, %514 : vector<8x128xf32>
    %516 = arith.mulf %507, %485 : vector<8x128xf32>
    %517 = arith.mulf %501, %509 : vector<8x128xf32>
    %518 = arith.addf %516, %517 : vector<8x128xf32>
    %519 = math.tanh %518 : vector<8x128xf32>
    %520 = arith.mulf %515, %519 : vector<8x128xf32>
    %c1_170 = arith.constant 1 : index
    %c0_171 = arith.constant 0 : index
    %c128_172 = arith.constant 128 : index
    %521 = vector.load %arg5[%c1_170, %c0_171, %c128_172] : memref<8x8x256xf32, #tpu.memory_space<vmem>>, vector<1x8x128xf32>
    %522 = vector.shape_cast %521 : vector<1x8x128xf32> to vector<8x128xf32>
    %523 = vector.shape_cast %520 : vector<8x128xf32> to vector<1x8x128xf32>
    tpu.vector_store %arg5[%c1_170, %c0_171, %c128_172], %523 {strides = array<i32>} : memref<8x8x256xf32, #tpu.memory_space<vmem>>, vector<1x8x128xf32>,
    %c0_173 = arith.constant 0 : index
    %c0_174 = arith.constant 0 : index
    %c0_175 = arith.constant 0 : index
    %524 = vector.load %arg7[%c0_173, %c0_174, %c0_175] : memref<8x8x512xf32, #tpu.memory_space<vmem>>, vector<1x8x512xf32>
    %525 = vector.shape_cast %524 : vector<1x8x512xf32> to vector<8x512xf32>
    %526 = arith.truncf %520 : vector<8x128xf32> to vector<8x128xbf16>
    %cst_176 = arith.constant dense<0.000000e+00> : vector<8x512xf32>
    %527 = tpu.matmul %526, %24, %cst_176 {dimension_numbers = #tpu.dot_dimension_numbers<[1], [0], [0], [1], [0, 0, 1, 1], [], []>} : vector<8x128xbf16>, vector<128x512xbf16>, vector<8x512xf32> -> vector<8x512xf32>
    %528 = arith.addf %525, %527 : vector<8x512xf32>
    %529 = vector.extract_strided_slice %528 {offsets = [0, 0], sizes = [8, 128], strides = [1, 1]} : vector<8x512xf32> to vector<8x128xf32>
    %530 = arith.negf %529 : vector<8x128xf32>
    %531 = math.exp %530 : vector<8x128xf32>
    %cst_177 = arith.constant 1.000000e+00 : f32
    %532 = vector.broadcast %cst_177 : f32 to vector<8x128xf32>
    %533 = arith.addf %532, %531 : vector<8x128xf32>
    %534 = arith.divf %532, %533 : vector<8x128xf32>
    %535 = vector.extract_strided_slice %528 {offsets = [0, 128], sizes = [8, 128], strides = [1, 1]} : vector<8x512xf32> to vector<8x128xf32>
    %536 = arith.negf %535 : vector<8x128xf32>
    %537 = math.exp %536 : vector<8x128xf32>
    %cst_178 = arith.constant 1.000000e+00 : f32
    %538 = vector.broadcast %cst_178 : f32 to vector<8x128xf32>
    %539 = arith.addf %538, %537 : vector<8x128xf32>
    %540 = arith.divf %538, %539 : vector<8x128xf32>
    %541 = vector.extract_strided_slice %528 {offsets = [0, 256], sizes = [8, 128], strides = [1, 1]} : vector<8x512xf32> to vector<8x128xf32>
    %542 = math.tanh %541 : vector<8x128xf32>
    %543 = vector.extract_strided_slice %528 {offsets = [0, 384], sizes = [8, 128], strides = [1, 1]} : vector<8x512xf32> to vector<8x128xf32>
    %544 = arith.negf %543 : vector<8x128xf32>
    %545 = math.exp %544 : vector<8x128xf32>
    %cst_179 = arith.constant 1.000000e+00 : f32
    %546 = vector.broadcast %cst_179 : f32 to vector<8x128xf32>
    %547 = arith.addf %546, %545 : vector<8x128xf32>
    %548 = arith.divf %546, %547 : vector<8x128xf32>
    %549 = arith.mulf %540, %518 : vector<8x128xf32>
    %550 = arith.mulf %534, %542 : vector<8x128xf32>
    %551 = arith.addf %549, %550 : vector<8x128xf32>
    %552 = math.tanh %551 : vector<8x128xf32>
    %553 = arith.mulf %548, %552 : vector<8x128xf32>
    %c0_180 = arith.constant 0 : index
    %c0_181 = arith.constant 0 : index
    %c128_182 = arith.constant 128 : index
    %554 = vector.load %arg5[%c0_180, %c0_181, %c128_182] : memref<8x8x256xf32, #tpu.memory_space<vmem>>, vector<1x8x128xf32>
    %555 = vector.shape_cast %554 : vector<1x8x128xf32> to vector<8x128xf32>
    %556 = vector.shape_cast %553 : vector<8x128xf32> to vector<1x8x128xf32>
    tpu.vector_store %arg5[%c0_180, %c0_181, %c128_182], %556 {strides = array<i32>} : memref<8x8x256xf32, #tpu.memory_space<vmem>>, vector<1x8x128xf32>,
    return
  }
  func.func @transform_0(%arg0: i32) -> (i32, i32, i32) {
    %c0_i32 = arith.constant 0 : i32
    %c0_i32_0 = arith.constant 0 : i32
    %c0_i32_1 = arith.constant 0 : i32
    %c0_i32_2 = arith.constant 0 : i32
    return %c0_i32, %c0_i32_0, %c0_i32_1 : i32, i32, i32
  }
  func.func @transform_1(%arg0: i32) -> (i32, i32, i32) {
    %c0_i32 = arith.constant 0 : i32
    %c0_i32_0 = arith.constant 0 : i32
    %c0_i32_1 = arith.constant 0 : i32
    %c0_i32_2 = arith.constant 0 : i32
    return %c0_i32, %c0_i32_0, %c0_i32_1 : i32, i32, i32
  }
  func.func @transform_2(%arg0: i32) -> (i32, i32, i32) {
    %c0_i32 = arith.constant 0 : i32
    %c0_i32_0 = arith.constant 0 : i32
    %c0_i32_1 = arith.constant 0 : i32
    %c0_i32_2 = arith.constant 0 : i32
    return %c0_i32, %c0_i32_0, %c0_i32_1 : i32, i32, i32
  }
  func.func @transform_3(%arg0: i32) -> (i32, i32, i32) {
    %c0_i32 = arith.constant 0 : i32
    %c0_i32_0 = arith.constant 0 : i32
    %c0_i32_1 = arith.constant 0 : i32
    %c0_i32_2 = arith.constant 0 : i32
    return %c0_i32, %c0_i32_0, %c0_i32_1 : i32, i32, i32
  }
  func.func @transform_4(%arg0: i32) -> (i32, i32, i32) {
    %c0_i32 = arith.constant 0 : i32
    %c0_i32_0 = arith.constant 0 : i32
    %c0_i32_1 = arith.constant 0 : i32
    %c0_i32_2 = arith.constant 0 : i32
    return %c0_i32, %c0_i32_0, %c0_i32_1 : i32, i32, i32
  }
}

</mosaic_0001>

<bundles_post_ra>
// kernel: rnn_model_forward.2
= control target key start
LH: loop header
LB: loop body
LE: loop exit
PB: predicated region body
PF: predicated region fallthrough
CT: control target
= control target key end

     0   :  { %9 = vsyncpa [#allocation5], 0  ;;  %s5135_s0 = inlined_call_operand.vmem [shape: f32[8,8,128], index: 0, kind: input, shape index: {}]   ;;  %s5136_s1 = inlined_call_operand.hbm [shape: bf16[2,128,512], index: 1, kind: input, shape index: {}]   ;;  %s5137_s2 = inlined_call_operand.hbm [shape: bf16[2,128,512], index: 2, kind: input, shape index: {}]   ;;  %s5138_s3 = inlined_call_operand.hbm [shape: f32[2,1,512], index: 3, kind: input, shape index: {}]   ;;  %s5139_s4 = inlined_call_operand.vmem [shape: f32[8,8,256], index: 4, kind: output, shape index: {}]  }
   0x1   :  { %10 = vsyncpa [#allocation7], 0  ;;  %s3903_s15 = smov [#allocation6]   ;;  %s3904_s17 = smov [#allocation4]  }
   0x2   :  { %s30_s16 = sshll.u32 %s3903_s15, 4  ;;  %s18_s18 = sshll.u32 %s3904_s17, 4  ;;  %s31_s16 = int_to_ptr.vmem [resolvable:$true] %s30_s16  ;;  %s3936_s18 = int_to_ptr.vmem [resolvable:$true] %s18_s18 }
   0x3   :  { %s3833_s21 = scalar_lea.hbm %s5137_s2, 8192 }
   0x4   :  { %p3834_p0 = scmp.ne.s32.totalorder %s5137_s2, %s3833_s21  ;;  %p3837_p1 = scmp.lt.u32.totalorder %s3833_s21, %s5137_s2 }
   0x6   :  { %p3839_p2 = pnand %p3837_p1, %p3834_p0 }
   0x8   :  { %3842 = shalt.err (!%p3839_p2)
}
   0x9   :  { %s3843_s26 = scalar_lea.vmem %s31_s16, 8192  ;;  %p3848_p4 = scmp.lt.s32.totalorder %s31_s16, %s31_s16 }
   0xa   :  { %p3844_p3 = scmp.ne.s32.totalorder %s31_s16, %s3843_s26  ;;  %p3849_p5 = scmp.lt.s32.totalorder %s3843_s26, %s3843_s26 }
   0xc   :  { %p3850_p6 = por %p3849_p5, %p3848_p4 }
   0xe   :  { %p3851_p7 = pnand %p3850_p6, %p3844_p3 }
  0x10   :  { %3854 = shalt.err (!%p3851_p7)
}
  0x11   :  { %s3905_s27 = smov 256   ;;  %s3906_s28 = smov 16  }
  0x12   :  { %36 = dma.hbm_to_vmem [thread:$0]  %s5137_s2, 8192, %s31_s16, [#allocation7], %s3905_s27, %s3905_s27, %s3906_s28  }
  0x13   :  { %s3855_s7 = scalar_lea.hbm %s5136_s1, 8192 }
  0x14   :  { %p3856_p8 = scmp.ne.s32.totalorder %s5136_s1, %s3855_s7  ;;  %p3859_p9 = scmp.lt.u32.totalorder %s3855_s7, %s5136_s1 }
  0x16   :  { %p3861_p10 = pnand %p3859_p9, %p3856_p8 }
  0x18   :  { %3864 = shalt.err (!%p3861_p10)
}
  0x19   :  { %s3865_s12 = scalar_lea.vmem %s3936_s18, 8192  ;;  %p3870_p12 = scmp.lt.s32.totalorder %s3936_s18, %s3936_s18 }
  0x1a   :  { %p3866_p11 = scmp.ne.s32.totalorder %s3936_s18, %s3865_s12  ;;  %p3871_p13 = scmp.lt.s32.totalorder %s3865_s12, %s3865_s12 }
  0x1c   :  { %p3872_p0 = por %p3871_p13, %p3870_p12 }
  0x1e   :  { %p3873_p1 = pnand %p3872_p0, %p3866_p11 }
  0x20   :  { %3876 = shalt.err (!%p3873_p1)
}
  0x21   :  { %24 = dma.hbm_to_vmem [thread:$0]  %s5136_s1, 8192, %s3936_s18, [#allocation5], %s3905_s27, %s3905_s27, %s3906_s28  }
  0x22   :  { %s3907_s14 = smov [#allocation8]   ;;  %s3877_s19 = scalar_lea.hbm %s5138_s3, 128 }
  0x23   :  { %s42_s15 = sshll.u32 %s3907_s14, 4  ;;  %p3878_p2 = scmp.ne.s32.totalorder %s5138_s3, %s3877_s19  ;;  %s43_s15 = int_to_ptr.vmem [resolvable:$true] %s42_s15 }
  0x24   :  { %p3881_p3 = scmp.lt.u32.totalorder %s3877_s19, %s5138_s3 }
  0x26   :  { %p3883_p4 = pnand %p3881_p3, %p3878_p2 }
  0x28   :  { %3886 = shalt.err (!%p3883_p4)
}
  0x29   :  { %s3887_s24 = scalar_lea.vmem %s43_s15, 128  ;;  %p3892_p6 = scmp.lt.s32.totalorder %s43_s15, %s43_s15 }
  0x2a   :  { %p3888_p5 = scmp.ne.s32.totalorder %s43_s15, %s3887_s24  ;;  %p3893_p7 = scmp.lt.s32.totalorder %s3887_s24, %s3887_s24 }
  0x2c   :  { %p3894_p8 = por %p3893_p7, %p3892_p6 }
  0x2e   :  { %p3895_p9 = pnand %p3894_p8, %p3888_p5 }
  0x30   :  { %3898 = shalt.err (!%p3895_p9)
}
  0x31   :  { %s3908_s1 = smov 64   ;;  %s3909_s18 = smov 4  }
  0x32   :  { %48 = dma.hbm_to_vmem [thread:$0]  %s5138_s3, 128, %s43_s15, [#allocation7], %s3908_s1, %s3908_s1, %s3909_s18  }
  0x33   :  { %3899 = dma.done.wait [#allocation5], 8192  }
  0x34   :  { %3900 = vsyncadd [#allocation5], 4294959104 }
  0x35   :  { %3901 = dma.done.wait [#allocation7], 8320  }
  0x36   :  { %3902 = vsyncadd [#allocation7], 4294958976  ;;  %v5140_v0 = vmov 0   ;;  %v3321_v1 = vld [vmem:[#allocation4 + $0x4] ss:$16 sps:$4 sm:$0xff]   ;;  %v60_v34 = vld [vmem:[%s5135_s0 + $0x8] sm:$0xff] }
  0x37   :  { %317 = vmatprep.mubr.bf16.mxu0 %v5140_v0  ;;  %390 = vmatprep.mubr.bf16.mxu1 %v5140_v0  ;;  %v3323_v2 = vld [vmem:[#allocation4 + $0xc] ss:$16 sps:$4 sm:$0xff]   ;;  %v3325_v3 = vld [vmem:[#allocation4] ss:$16 sps:$4 sm:$0xff]   ;;  %v3326_v4 = vld [vmem:[#allocation4 + $0x8] ss:$16 sps:$4 sm:$0xff]  }
  0x38   :  { %285 = vmatprep.subr.bf16.mxu0 %v3321_v1  ;;  %358 = vmatprep.subr.bf16.mxu1 %v3323_v2  ;;  %v3327_v5 = vld [vmem:[#allocation4 + $0x24] ss:$16 sps:$4 sm:$0xff]   ;;  %v3329_v6 = vld [vmem:[#allocation4 + $0x2c] ss:$16 sps:$4 sm:$0xff]   ;;  %v3331_v7 = vld [vmem:[#allocation4 + $0x20] ss:$16 sps:$4 sm:$0xff]  }
  0x39   :  { %286 = vmatpush1.bf16.msra.mxu0 %v3325_v3  ;;  %359 = vmatpush1.bf16.msra.mxu1 %v3326_v4  ;;  %v3332_v8 = vld [vmem:[#allocation4 + $0x28] ss:$16 sps:$4 sm:$0xff]   ;;  %v3333_v9 = vld [vmem:[#allocation4 + $0x44] ss:$16 sps:$4 sm:$0xff]   ;;  %v3335_v10 = vld [vmem:[#allocation4 + $0x4c] ss:$16 sps:$4 sm:$0xff]  }
  0x3a   :  { %287 = vmatprep.subr.bf16.mxu0 %v3327_v5  ;;  %360 = vmatprep.subr.bf16.mxu1 %v3329_v6  ;;  %v3337_v11 = vld [vmem:[#allocation4 + $0x40] ss:$16 sps:$4 sm:$0xff]   ;;  %v3338_v12 = vld [vmem:[#allocation4 + $0x48] ss:$16 sps:$4 sm:$0xff]   ;;  %v3339_v13 = vld [vmem:[#allocation4 + $0x64] ss:$16 sps:$4 sm:$0xff]  }
  0x3b   :  { %v3341_v14 = vld [vmem:[#allocation4 + $0x6c] ss:$16 sps:$4 sm:$0xff]   ;;  %v3343_v15 = vld [vmem:[#allocation4 + $0x60] ss:$16 sps:$4 sm:$0xff]   ;;  %v3344_v16 = vld [vmem:[#allocation4 + $0x68] ss:$16 sps:$4 sm:$0xff]  }
  0x3c   :  { %v3345_v17 = vld [vmem:[#allocation4 + $0x84] ss:$16 sps:$4 sm:$0xff]   ;;  %v3347_v18 = vld [vmem:[#allocation4 + $0x8c] ss:$16 sps:$4 sm:$0xff]   ;;  %v3349_v19 = vld [vmem:[#allocation4 + $0x80] ss:$16 sps:$4 sm:$0xff]  }
  0x3d   :  { %288 = vmatpush1.bf16.msra.mxu0 %v3331_v7  ;;  %361 = vmatpush1.bf16.msra.mxu1 %v3332_v8  ;;  %v3350_v20 = vld [vmem:[#allocation4 + $0x88] ss:$16 sps:$4 sm:$0xff]   ;;  %v3351_v21 = vld [vmem:[#allocation4 + $0xa4] ss:$16 sps:$4 sm:$0xff]   ;;  %v3353_v22 = vld [vmem:[#allocation4 + $0xac] ss:$16 sps:$4 sm:$0xff]  }
  0x3e   :  { %289 = vmatprep.subr.bf16.mxu0 %v3333_v9  ;;  %362 = vmatprep.subr.bf16.mxu1 %v3335_v10  ;;  %v3355_v23 = vld [vmem:[#allocation4 + $0xa0] ss:$16 sps:$4 sm:$0xff]   ;;  %v3356_v24 = vld [vmem:[#allocation4 + $0xa8] ss:$16 sps:$4 sm:$0xff]   ;;  %v3357_v25 = vld [vmem:[#allocation4 + $0xc4] ss:$16 sps:$4 sm:$0xff]  }
  0x3f   :  { %v3359_v26 = vld [vmem:[#allocation4 + $0xcc] ss:$16 sps:$4 sm:$0xff]   ;;  %v3361_v27 = vld [vmem:[#allocation4 + $0xc0] ss:$16 sps:$4 sm:$0xff]   ;;  %v3362_v28 = vld [vmem:[#allocation4 + $0xc8] ss:$16 sps:$4 sm:$0xff]  }
  0x40   :  { %v3363_v29 = vld [vmem:[#allocation4 + $0xe4] ss:$16 sps:$4 sm:$0xff]   ;;  %v3365_v30 = vld [vmem:[#allocation4 + $0xec] ss:$16 sps:$4 sm:$0xff]   ;;  %v3367_v31 = vld [vmem:[#allocation4 + $0xe0] ss:$16 sps:$4 sm:$0xff]  }
  0x41   :  { %290 = vmatpush1.bf16.msra.mxu0 %v3337_v11  ;;  %363 = vmatpush1.bf16.msra.mxu1 %v3338_v12  ;;  %v3368_v32 = vld [vmem:[#allocation4 + $0xe8] ss:$16 sps:$4 sm:$0xff]   ;;  %v59_v33 = vld [vmem:[%s5135_s0] sm:$0xff]  ;;  %v3374_v36 = vld [vmem:[#allocation4 + $0x10c] ss:$16 sps:$4 sm:$0xff]  }
  0x42   :  { %291 = vmatprep.subr.bf16.mxu0 %v3339_v13  ;;  %364 = vmatprep.subr.bf16.mxu1 %v3341_v14  ;;  %v3371_v35 = vld [vmem:[#allocation4 + $0x104] ss:$16 sps:$4 sm:$0xff]   ;;  %v3987_v37 = vpack.c.bf16 %v60_v34, %v59_v33  ;;  %v3369_v38 = vld [vmem:[#allocation4 + $0x100] ss:$16 sps:$4 sm:$0xff]   ;;  %v3372_v39 = vld [vmem:[#allocation4 + $0x108] ss:$16 sps:$4 sm:$0xff]  }
  0x43   :  { %v3377_v40 = vld [vmem:[#allocation4 + $0x124] ss:$16 sps:$4 sm:$0xff]   ;;  %v3380_v41 = vld [vmem:[#allocation4 + $0x12c] ss:$16 sps:$4 sm:$0xff]   ;;  %v3375_v42 = vld [vmem:[#allocation4 + $0x120] ss:$16 sps:$4 sm:$0xff]  }
  0x44   :  { %v3378_v43 = vld [vmem:[#allocation4 + $0x128] ss:$16 sps:$4 sm:$0xff]   ;;  %v61_v44 = vld [vmem:[%s5135_s0 + $0x10] sm:$0xff]  ;;  %v3386_v47 = vld [vmem:[#allocation4 + $0x14c] ss:$16 sps:$4 sm:$0xff]  }
  0x45   :  { %292 = vmatpush1.bf16.msra.mxu0 %v3343_v15  ;;  %365 = vmatpush1.bf16.msra.mxu1 %v3344_v16  ;;  %v62_v45 = vld [vmem:[%s5135_s0 + $0x18] sm:$0xff]  ;;  %v3383_v46 = vld [vmem:[#allocation4 + $0x144] ss:$16 sps:$4 sm:$0xff]   ;;  %v3381_v49 = vld [vmem:[#allocation4 + $0x140] ss:$16 sps:$4 sm:$0xff]  }
  0x46   :  { %293 = vmatprep.subr.bf16.mxu0 %v3345_v17  ;;  %366 = vmatprep.subr.bf16.mxu1 %v3347_v18  ;;  %v3999_v48 = vpack.c.bf16 %v62_v45, %v61_v44  ;;  %v3384_v50 = vld [vmem:[#allocation4 + $0x148] ss:$16 sps:$4 sm:$0xff]   ;;  %v3389_v51 = vld [vmem:[#allocation4 + $0x164] ss:$16 sps:$4 sm:$0xff]   ;;  %v3392_v52 = vld [vmem:[#allocation4 + $0x16c] ss:$16 sps:$4 sm:$0xff]  }
  0x47   :  { %v3387_v53 = vld [vmem:[#allocation4 + $0x160] ss:$16 sps:$4 sm:$0xff]   ;;  %v3390_v54 = vld [vmem:[#allocation4 + $0x168] ss:$16 sps:$4 sm:$0xff]   ;;  %v3395_v57 = vld [vmem:[#allocation4 + $0x184] ss:$16 sps:$4 sm:$0xff]  }
  0x48   :  { %v63_v55 = vld [vmem:[%s5135_s0 + $0x20] sm:$0xff]  ;;  %v64_v56 = vld [vmem:[%s5135_s0 + $0x28] sm:$0xff]  ;;  %v65_v3 = vld [vmem:[%s5135_s0 + $0x30] sm:$0xff] }
  0x49   :  { %294 = vmatpush1.bf16.msra.mxu0 %v3349_v19  ;;  %367 = vmatpush1.bf16.msra.mxu1 %v3350_v20  ;;  %v3398_v58 = vld [vmem:[#allocation4 + $0x18c] ss:$16 sps:$4 sm:$0xff]   ;;  %v4011_v59 = vpack.c.bf16 %v64_v56, %v63_v55  ;;  %v3393_v60 = vld [vmem:[#allocation4 + $0x180] ss:$16 sps:$4 sm:$0xff]   ;;  %v3396_v61 = vld [vmem:[#allocation4 + $0x188] ss:$16 sps:$4 sm:$0xff]  }
  0x4a   :  { %295 = vmatprep.subr.bf16.mxu0 %v3351_v21  ;;  %368 = vmatprep.subr.bf16.mxu1 %v3353_v22  ;;  %v3401_v62 = vld [vmem:[#allocation4 + $0x1a4] ss:$16 sps:$4 sm:$0xff]   ;;  %v3404_v63 = vld [vmem:[#allocation4 + $0x1ac] ss:$16 sps:$4 sm:$0xff]   ;;  %v3399_v1 = vld [vmem:[#allocation4 + $0x1a0] ss:$16 sps:$4 sm:$0xff]  }
  0x4b   :  { %v3402_v2 = vld [vmem:[#allocation4 + $0x1a8] ss:$16 sps:$4 sm:$0xff]   ;;  %v3407_v5 = vld [vmem:[#allocation4 + $0x1c4] ss:$16 sps:$4 sm:$0xff]   ;;  %v3410_v6 = vld [vmem:[#allocation4 + $0x1cc] ss:$16 sps:$4 sm:$0xff]  }
  0x4c   :  { %v66_v4 = vld [vmem:[%s5135_s0 + $0x38] sm:$0xff]  ;;  %v3405_v8 = vld [vmem:[#allocation4 + $0x1c0] ss:$16 sps:$4 sm:$0xff]   ;;  %v3413_v10 = vld [vmem:[#allocation4 + $0x1e4] ss:$16 sps:$4 sm:$0xff]  }
  0x4d   :  { %296 = vmatpush1.bf16.msra.mxu0 %v3355_v23  ;;  %369 = vmatpush1.bf16.msra.mxu1 %v3356_v24  ;;  %v4023_v7 = vpack.c.bf16 %v66_v4, %v65_v3  ;;  %v3408_v9 = vld [vmem:[#allocation4 + $0x1c8] ss:$16 sps:$4 sm:$0xff]   ;;  %v3416_v11 = vld [vmem:[#allocation4 + $0x1ec] ss:$16 sps:$4 sm:$0xff]   ;;  %v3411_v12 = vld [vmem:[#allocation4 + $0x1e0] ss:$16 sps:$4 sm:$0xff]  }
  0x4e   :  { %297 = vmatprep.subr.bf16.mxu0 %v3357_v25  ;;  %370 = vmatprep.subr.bf16.mxu1 %v3359_v26  ;;  %v3414_v13 = vld [vmem:[#allocation4 + $0x1e8] ss:$16 sps:$4 sm:$0xff]   ;;  %v4027_v14 = vld [vmem:[#allocation6 + $0x4] ss:$16 sps:$4 sm:$0xff]   ;;  %v4029_v15 = vld [vmem:[#allocation6 + $0xc] ss:$16 sps:$4 sm:$0xff]  }
  0x4f   :  { %v4033_v16 = vld [vmem:[#allocation6] ss:$16 sps:$4 sm:$0xff]   ;;  %v4035_v17 = vld [vmem:[#allocation6 + $0x8] ss:$16 sps:$4 sm:$0xff]   ;;  %v4037_v18 = vld [vmem:[#allocation6 + $0x24] ss:$16 sps:$4 sm:$0xff]  }
  0x50   :  { %v4041_v19 = vld [vmem:[#allocation6 + $0x2c] ss:$16 sps:$4 sm:$0xff]   ;;  %v4043_v20 = vld [vmem:[#allocation6 + $0x20] ss:$16 sps:$4 sm:$0xff]   ;;  %v4045_v21 = vld [vmem:[#allocation6 + $0x28] ss:$16 sps:$4 sm:$0xff]  }
  0x51   :  { %298 = vmatpush1.bf16.msra.mxu0 %v3361_v27  ;;  %371 = vmatpush1.bf16.msra.mxu1 %v3362_v28  ;;  %v4049_v22 = vld [vmem:[#allocation6 + $0x44] ss:$16 sps:$4 sm:$0xff]   ;;  %v4051_v23 = vld [vmem:[#allocation6 + $0x4c] ss:$16 sps:$4 sm:$0xff]   ;;  %v4059_v24 = vld [vmem:[#allocation6 + $0x40] ss:$16 sps:$4 sm:$0xff]  }
  0x52   :  { %299 = vmatprep.subr.bf16.mxu0 %v3363_v29  ;;  %372 = vmatprep.subr.bf16.mxu1 %v3365_v30  ;;  %v4061_v25 = vld [vmem:[#allocation6 + $0x48] ss:$16 sps:$4 sm:$0xff]   ;;  %v4063_v26 = vld [vmem:[#allocation6 + $0x64] ss:$16 sps:$4 sm:$0xff]   ;;  %v4065_v27 = vld [vmem:[#allocation6 + $0x6c] ss:$16 sps:$4 sm:$0xff]  }
  0x53   :  { %v4071_v28 = vld [vmem:[#allocation6 + $0x60] ss:$16 sps:$4 sm:$0xff]   ;;  %v4073_v29 = vld [vmem:[#allocation6 + $0x68] ss:$16 sps:$4 sm:$0xff]   ;;  %v4077_v30 = vld [vmem:[#allocation6 + $0x84] ss:$16 sps:$4 sm:$0xff]  }
  0x54   :  { %v4091_v33 = vld [vmem:[#allocation6 + $0x88] ss:$16 sps:$4 sm:$0xff]   ;;  %v4095_v34 = vld [vmem:[#allocation6 + $0xa4] ss:$16 sps:$4 sm:$0xff]   ;;  %v4131_v44 = vld [vmem:[#allocation6 + $0xe0] ss:$16 sps:$4 sm:$0xff]  }
  0x55   :  { %300 = vmatpush1.bf16.msra.mxu0 %v3367_v31  ;;  %373 = vmatpush1.bf16.msra.mxu1 %v3368_v32  ;;  %v4083_v31 = vld [vmem:[#allocation6 + $0x8c] ss:$16 sps:$4 sm:$0xff]   ;;  %v4089_v32 = vld [vmem:[#allocation6 + $0x80] ss:$16 sps:$4 sm:$0xff]   ;;  %v4133_v45 = vld [vmem:[#allocation6 + $0xe8] ss:$16 sps:$4 sm:$0xff]  }
  0x56   :  { %679 = vmatprep.subr.bf16.mxu0 %v3371_v35  ;;  %752 = vmatprep.subr.bf16.mxu1 %v3374_v36  ;;  %v4097_v35 = vld [vmem:[#allocation6 + $0xac] ss:$16 sps:$4 sm:$0xff]   ;;  %v4103_v36 = vld [vmem:[#allocation6 + $0xa0] ss:$16 sps:$4 sm:$0xff]  }
  0x58   :  { %318 = vmatmul.mubr.bf16.vlgmr.msra.gmra.mrb[0].mxu0 %v3987_v37  ;;  %391 = vmatmul.mubr.bf16.vlgmr.msra.gmra.mrb[0].mxu1 %v3987_v37 }
  0x59   :  { %680 = vmatpush1.bf16.msra.mxu0 %v3369_v38  ;;  %753 = vmatpush1.bf16.msra.mxu1 %v3372_v39  ;;  %v4109_v38 = vld [vmem:[#allocation6 + $0xc4] ss:$16 sps:$4 sm:$0xff]   ;;  %v4111_v39 = vld [vmem:[#allocation6 + $0xcc] ss:$16 sps:$4 sm:$0xff]  }
  0x5a   :  { %681 = vmatprep.subr.bf16.mxu0 %v3377_v40  ;;  %754 = vmatprep.subr.bf16.mxu1 %v3380_v41  ;;  %v4117_v40 = vld [vmem:[#allocation6 + $0xc0] ss:$16 sps:$4 sm:$0xff]   ;;  %v4119_v41 = vld [vmem:[#allocation6 + $0xc8] ss:$16 sps:$4 sm:$0xff]  }
  0x5b   :  { %327 = vmatprep.mubr.bf16.mxu0 %v5140_v0  ;;  %400 = vmatprep.mubr.bf16.mxu1 %v5140_v0 }
  0x5d   :  { %682 = vmatpush1.bf16.msra.mxu0 %v3375_v42  ;;  %755 = vmatpush1.bf16.msra.mxu1 %v3378_v43  ;;  %v4123_v42 = vld [vmem:[#allocation6 + $0xe4] ss:$16 sps:$4 sm:$0xff]   ;;  %v4125_v43 = vld [vmem:[#allocation6 + $0xec] ss:$16 sps:$4 sm:$0xff]  }
  0x5e   :  { %683 = vmatprep.subr.bf16.mxu0 %v3383_v46  ;;  %756 = vmatprep.subr.bf16.mxu1 %v3386_v47  ;;  %v105_v46 = vlaneseq }
  0x60   :  { %328 = vmatmul.mubr.bf16.gmra.mrb[4].mxu0 %v3999_v48  ;;  %401 = vmatmul.mubr.bf16.gmra.mrb[4].mxu1 %v3999_v48  ;;  %v4179_v47 = vshrl.u32 %v105_v46, 7 }
  0x61   :  { %684 = vmatpush1.bf16.msra.mxu0 %v3381_v49  ;;  %757 = vmatpush1.bf16.msra.mxu1 %v3384_v50 }
  0x62   :  { %685 = vmatprep.subr.bf16.mxu0 %v3389_v51  ;;  %758 = vmatprep.subr.bf16.mxu1 %v3392_v52  ;;  %v5142_v49 = vsub.s32 3, %v4179_v47  ;;  %v5145_v50 = vsub.s32 0, %v4179_v47  ;;  %v103_v51 = vld [vmem:[#allocation8] sm:$0xf]  ;;  %v5143_v52 = vsub.s32 1, %v4179_v47 }
  0x63   :  { %337 = vmatprep.mubr.bf16.mxu0 %v5140_v0  ;;  %410 = vmatprep.mubr.bf16.mxu1 %v5140_v0 }
  0x64   :  { %v4195_v56 = vrot.slane %v103_v51, %v5142_v49 }
  0x65   :  { %686 = vmatpush1.bf16.msra.mxu0 %v3387_v53  ;;  %759 = vmatpush1.bf16.msra.mxu1 %v3390_v54 }
  0x66   :  { %687 = vmatprep.subr.bf16.mxu0 %v3395_v57  ;;  %760 = vmatprep.subr.bf16.mxu1 %v3398_v58  ;;  %v4199_v57 = vrot.slane %v103_v51, %v5145_v50 }
  0x68   :  { %338 = vmatmul.mubr.bf16.gmra.mrb[8].mxu0 %v4011_v59  ;;  %411 = vmatmul.mubr.bf16.gmra.mrb[8].mxu1 %v4011_v59 }
  0x69   :  { %688 = vmatpush1.bf16.msra.mxu0 %v3393_v60  ;;  %761 = vmatpush1.bf16.msra.mxu1 %v3396_v61  ;;  %v4207_v60 = vrot.slane %v103_v51, %v5143_v52 }
  0x6a   :  { %689 = vmatprep.subr.bf16.mxu0 %v3401_v62  ;;  %762 = vmatprep.subr.bf16.mxu1 %v3404_v63 }
  0x6b   :  { %347 = vmatprep.mubr.bf16.mxu0 %v5140_v0  ;;  %420 = vmatprep.mubr.bf16.mxu1 %v5140_v0 }
  0x6d   :  { %690 = vmatpush1.bf16.msra.mxu0 %v3399_v1  ;;  %763 = vmatpush1.bf16.msra.mxu1 %v3402_v2 }
  0x6e   :  { %691 = vmatprep.subr.bf16.mxu0 %v3407_v5  ;;  %764 = vmatprep.subr.bf16.mxu1 %v3410_v6 }
  0x70   :  { %348 = vmatmul.mubr.bf16.gmra.mrb[12].mxu0 %v4023_v7  ;;  %421 = vmatmul.mubr.bf16.gmra.mrb[12].mxu1 %v4023_v7 }
  0x71   :  { %692 = vmatpush1.bf16.msra.mxu0 %v3405_v8  ;;  %765 = vmatpush1.bf16.msra.mxu1 %v3408_v9 }
  0x72   :  { %693 = vmatprep.subr.bf16.mxu0 %v3413_v10  ;;  %766 = vmatprep.subr.bf16.mxu1 %v3416_v11 }
  0x73   :  { %711 = vmatprep.mubr.bf16.mxu0 %v5140_v0  ;;  %784 = vmatprep.mubr.bf16.mxu1 %v5140_v0 }
  0x75   :  { %694 = vmatpush1.bf16.msra.mxu0 %v3411_v12  ;;  %767 = vmatpush1.bf16.msra.mxu1 %v3414_v13 }
  0x76   :  { %1086 = vmatprep.subr.bf16.mxu0 %v4027_v14  ;;  %1127 = vmatprep.subr.bf16.mxu1 %v4029_v15 }
  0x78   :  { %712 = vmatmul.mubr.bf16.vlgmr.msra.gmra.mrb[16].mxu0 %v3987_v37  ;;  %785 = vmatmul.mubr.bf16.vlgmr.msra.gmra.mrb[16].mxu1 %v3987_v37  ;;  %v4105_v37 = vld [vmem:[#allocation6 + $0xa8] ss:$16 sps:$4 sm:$0xff]  }
  0x79   :  { %1087 = vmatpush1.bf16.msra.mxu0 %v4033_v16  ;;  %1128 = vmatpush1.bf16.msra.mxu1 %v4035_v17 }
  0x7a   :  { %1088 = vmatprep.subr.bf16.mxu0 %v4037_v18  ;;  %1129 = vmatprep.subr.bf16.mxu1 %v4041_v19 }
  0x7b   :  { %721 = vmatprep.mubr.bf16.mxu0 %v5140_v0  ;;  %794 = vmatprep.mubr.bf16.mxu1 %v5140_v0 }
  0x7d   :  { %1089 = vmatpush1.bf16.msra.mxu0 %v4043_v20  ;;  %1130 = vmatpush1.bf16.msra.mxu1 %v4045_v21 }
  0x7e   :  { %1090 = vmatprep.subr.bf16.mxu0 %v4049_v22  ;;  %1131 = vmatprep.subr.bf16.mxu1 %v4051_v23 }
  0x80   :  { %722 = vmatmul.mubr.bf16.gmra.mrb[20].mxu0 %v3999_v48  ;;  %795 = vmatmul.mubr.bf16.gmra.mrb[20].mxu1 %v3999_v48  ;;  %v5144_v48 = vsub.s32 2, %v4179_v47 }
  0x81   :  { %1091 = vmatpush1.bf16.msra.mxu0 %v4059_v24  ;;  %1132 = vmatpush1.bf16.msra.mxu1 %v4061_v25 }
  0x82   :  { %1092 = vmatprep.subr.bf16.mxu0 %v4063_v26  ;;  %1133 = vmatprep.subr.bf16.mxu1 %v4065_v27  ;;  %v4187_v53 = vrot.slane %v103_v51, %v5144_v48 }
  0x83   :  { %731 = vmatprep.mubr.bf16.mxu0 %v5140_v0  ;;  %804 = vmatprep.mubr.bf16.mxu1 %v5140_v0 }
  0x85   :  { %1093 = vmatpush1.bf16.msra.mxu0 %v4071_v28  ;;  %1134 = vmatpush1.bf16.msra.mxu1 %v4073_v29 }
  0x86   :  { %1094 = vmatprep.subr.bf16.mxu0 %v4077_v30  ;;  %1135 = vmatprep.subr.bf16.mxu1 %v4083_v31 }
  0x88   :  { %732 = vmatmul.mubr.bf16.gmra.mrb[24].mxu0 %v4011_v59  ;;  %805 = vmatmul.mubr.bf16.gmra.mrb[24].mxu1 %v4011_v59 }
  0x89   :  { %1095 = vmatpush1.bf16.msra.mxu0 %v4089_v32  ;;  %1136 = vmatpush1.bf16.msra.mxu1 %v4091_v33 }
  0x8a   :  { %1096 = vmatprep.subr.bf16.mxu0 %v4095_v34  ;;  %1137 = vmatprep.subr.bf16.mxu1 %v4097_v35 }
  0x8b   :  { %741 = vmatprep.mubr.bf16.mxu0 %v5140_v0  ;;  %814 = vmatprep.mubr.bf16.mxu1 %v5140_v0 }
  0x8d   :  { %1097 = vmatpush1.bf16.msra.mxu0 %v4103_v36  ;;  %1138 = vmatpush1.bf16.msra.mxu1 %v4105_v37 }
  0x8e   :  { %1098 = vmatprep.subr.bf16.mxu0 %v4109_v38  ;;  %1139 = vmatprep.subr.bf16.mxu1 %v4111_v39 }
  0x90   :  { %742 = vmatmul.mubr.bf16.gmra.mrb[28].mxu0 %v4023_v7  ;;  %815 = vmatmul.mubr.bf16.gmra.mrb[28].mxu1 %v4023_v7 }
  0x91   :  { %1099 = vmatpush1.bf16.msra.mxu0 %v4117_v40  ;;  %1140 = vmatpush1.bf16.msra.mxu1 %v4119_v41 }
  0x92   :  { %1100 = vmatprep.subr.bf16.mxu0 %v4123_v42  ;;  %1141 = vmatprep.subr.bf16.mxu1 %v4125_v43 }
  0x93   :  { %1118 = vmatprep.mubr.bf16.mxu0 %v5140_v0  ;;  %1159 = vmatprep.mubr.bf16.mxu1 %v5140_v0 }
  0x95   :  { %1101 = vmatpush1.bf16.msra.mxu0 %v4131_v44  ;;  %1142 = vmatpush1.bf16.msra.mxu1 %v4133_v45 }
  0x96   :  { %1203 = vmatprep.subr.bf16.mxu0 %v4027_v14  ;;  %1244 = vmatprep.subr.bf16.mxu1 %v4029_v15 }
  0x98   :  { %1119 = vmatmul.mubr.bf16.vlgmr.msra.gmra.mrb[32].mxu0 %v5140_v0  ;;  %1160 = vmatmul.mubr.bf16.vlgmr.msra.gmra.mrb[32].mxu1 %v5140_v0 }
  0x99   :  { %1204 = vmatpush1.bf16.msra.mxu0 %v4033_v16  ;;  %1245 = vmatpush1.bf16.msra.mxu1 %v4035_v17 }
  0x9a   :  { %1205 = vmatprep.subr.bf16.mxu0 %v4037_v18  ;;  %1246 = vmatprep.subr.bf16.mxu1 %v4041_v19 }
  0x9b   :  { %1235 = vmatprep.mubr.bf16.mxu0 %v5140_v0  ;;  %1276 = vmatprep.mubr.bf16.mxu1 %v5140_v0 }
  0x9d   :  { %1206 = vmatpush1.bf16.msra.mxu0 %v4043_v20  ;;  %1247 = vmatpush1.bf16.msra.mxu1 %v4045_v21 }
  0x9e   :  { %1207 = vmatprep.subr.bf16.mxu0 %v4049_v22  ;;  %1248 = vmatprep.subr.bf16.mxu1 %v4051_v23 }
  0xa1   :  { %1208 = vmatpush1.bf16.msra.mxu0 %v4059_v24  ;;  %1249 = vmatpush1.bf16.msra.mxu1 %v4061_v25 }
  0xa2   :  { %1209 = vmatprep.subr.bf16.mxu0 %v4063_v26  ;;  %1250 = vmatprep.subr.bf16.mxu1 %v4065_v27 }
  0xa5   :  { %1210 = vmatpush1.bf16.msra.mxu0 %v4071_v28  ;;  %1251 = vmatpush1.bf16.msra.mxu1 %v4073_v29 }
  0xa6   :  { %1211 = vmatprep.subr.bf16.mxu0 %v4077_v30  ;;  %1252 = vmatprep.subr.bf16.mxu1 %v4083_v31 }
  0xa9   :  { %1212 = vmatpush1.bf16.msra.mxu0 %v4089_v32  ;;  %1253 = vmatpush1.bf16.msra.mxu1 %v4091_v33 }
  0xaa   :  { %1213 = vmatprep.subr.bf16.mxu0 %v4095_v34  ;;  %1254 = vmatprep.subr.bf16.mxu1 %v4097_v35 }
  0xad   :  { %1214 = vmatpush1.bf16.msra.mxu0 %v4103_v36  ;;  %1255 = vmatpush1.bf16.msra.mxu1 %v4105_v37 }
  0xae   :  { %1215 = vmatprep.subr.bf16.mxu0 %v4109_v38  ;;  %1256 = vmatprep.subr.bf16.mxu1 %v4111_v39 }
  0xb1   :  { %1216 = vmatpush1.bf16.msra.mxu0 %v4117_v40  ;;  %1257 = vmatpush1.bf16.msra.mxu1 %v4119_v41 }
  0xb2   :  { %1217 = vmatprep.subr.bf16.mxu0 %v4123_v42  ;;  %1258 = vmatprep.subr.bf16.mxu1 %v4125_v43 }
  0xb5   :  { %1218 = vmatpush1.bf16.msra.mxu0 %v4131_v44  ;;  %1259 = vmatpush1.bf16.msra.mxu1 %v4133_v45 }
  0xb6   :  { %1321 = vmatprep.subr.bf16.mxu0 %v4027_v14  ;;  %1362 = vmatprep.subr.bf16.mxu1 %v4029_v15 }
 0x12b   :  { %v4189_v54 = vpop.f32.mrb[0].mxu0  ;;  %v4191_v55 = vpop.f32.mrb[0].mxu1 }
 0x12c   :  { %v4201_v58 = vpop.f32.mrb[1].mxu0  ;;  %v4203_v59 = vpop.f32.mrb[1].mxu1 }
 0x12d   :  { %v323_v61 = vpop.f32.mrb[2].mxu0  ;;  %v396_v62 = vpop.f32.mrb[2].mxu1 }
 0x12e   :  { %v4210_v63 = vadd.f32 %v323_v61, %v4199_v57  ;;  %v325_v1 = vpop.f32.mrb[3].mxu0  ;;  %v4213_v2 = vadd.f32 %v396_v62, %v4187_v53  ;;  %v398_v3 = vpop.f32.mrb[3].mxu1 }
 0x12f   :  { %v4216_v4 = vadd.f32 %v325_v1, %v4207_v60  ;;  %v4219_v5 = vadd.f32 %v398_v3, %v4195_v56 }
 0x133   :  { %v329_v6 = vpop.f32.mrb[4].mxu0  ;;  %v402_v7 = vpop.f32.mrb[4].mxu1 }
 0x134   :  { %v4222_v8 = vadd.f32 %v329_v6, %v4199_v57  ;;  %v331_v9 = vpop.f32.mrb[5].mxu0  ;;  %v4225_v10 = vadd.f32 %v402_v7, %v4187_v53  ;;  %v404_v11 = vpop.f32.mrb[5].mxu1 }
 0x135   :  { %v4228_v12 = vadd.f32 %v331_v9, %v4207_v60  ;;  %v333_v13 = vpop.f32.mrb[6].mxu0  ;;  %v4231_v46 = vadd.f32 %v404_v11, %v4195_v56  ;;  %v406_v51 = vpop.f32.mrb[6].mxu1 }
 0x136   :  { %v4234_v61 = vadd.f32 %v333_v13, %v4199_v57  ;;  %v335_v62 = vpop.f32.mrb[7].mxu0  ;;  %v4237_v1 = vadd.f32 %v406_v51, %v4187_v53  ;;  %v408_v3 = vpop.f32.mrb[7].mxu1 }
 0x137   :  { %5146 = vst [vmem:[#allocation11_spill] sm:$0xff] %v4231_v46  ;;  %v4240_v6 = vadd.f32 %v335_v62, %v4207_v60  ;;  %v4243_v7 = vadd.f32 %v408_v3, %v4195_v56 }
 0x138   :  { %5147 = vst [vmem:[#allocation12_spill] sm:$0xff] %v4234_v61  ;;  %5148 = vst [vmem:[#allocation13_spill] sm:$0xff] %v4237_v1 }
 0x139   :  { %5149 = vst [vmem:[#allocation14_spill] sm:$0xff] %v4240_v6  ;;  %5150 = vst [vmem:[#allocation15_spill] sm:$0xff] %v4243_v7  ;;  %v497_v6 = vld [vmem:[#allocation8 + $0x4] sm:$0xf] }
 0x13b   :  { %v339_v9 = vpop.f32.mrb[8].mxu0  ;;  %v412_v0 = vpop.f32.mrb[8].mxu1 }
 0x13c   :  { %v4246_v11 = vadd.f32 %v339_v9, %v4199_v57  ;;  %v341_v49 = vpop.f32.mrb[9].mxu0  ;;  %v4249_v13 = vadd.f32 %v412_v0, %v4187_v53  ;;  %v414_v52 = vpop.f32.mrb[9].mxu1 }
 0x13d   :  { %v4252_v51 = vadd.f32 %v341_v49, %v4207_v60  ;;  %v343_v48 = vpop.f32.mrb[10].mxu0  ;;  %v4255_v62 = vadd.f32 %v414_v52, %v4195_v56  ;;  %v416_v50 = vpop.f32.mrb[10].mxu1 }
 0x13e   :  { %5151 = vst [vmem:[#allocation16_spill] sm:$0xff] %v4246_v11  ;;  %5152 = vst [vmem:[#allocation17_spill] sm:$0xff] %v4249_v13  ;;  %v4258_v3 = vadd.f32 %v343_v48, %v4199_v57  ;;  %v345_v7 = vpop.f32.mrb[11].mxu0  ;;  %v4261_v9 = vadd.f32 %v416_v50, %v4187_v53  ;;  %v418_v11 = vpop.f32.mrb[11].mxu1 }
 0x13f   :  { %5153 = vst [vmem:[#allocation18_spill] sm:$0xff] %v4252_v51  ;;  %5154 = vst [vmem:[#allocation19_spill] sm:$0xff] %v4255_v62  ;;  %v4264_v0 = vadd.f32 %v345_v7, %v4207_v60  ;;  %v4267_v13 = vadd.f32 %v418_v11, %v4195_v56 }
 0x140   :  { %5155 = vst [vmem:[#allocation20_spill] sm:$0xff] %v4258_v3  ;;  %5156 = vst [vmem:[#allocation21_spill] sm:$0xff] %v4261_v9 }
 0x141   :  { %5157 = vst [vmem:[#allocation22_spill] sm:$0xff] %v4264_v0  ;;  %5158 = vst [vmem:[#allocation23_spill] sm:$0xff] %v4267_v13 }
 0x143   :  { %v349_v49 = vpop.f32.mrb[12].mxu0  ;;  %v422_v51 = vpop.f32.mrb[12].mxu1 }
 0x144   :  { %v4270_v52 = vadd.f32 %v349_v49, %v4199_v57  ;;  %v351_v62 = vpop.f32.mrb[13].mxu0  ;;  %v4273_v48 = vadd.f32 %v422_v51, %v4187_v53  ;;  %v424_v3 = vpop.f32.mrb[13].mxu1 }
 0x145   :  { %v4276_v50 = vadd.f32 %v351_v62, %v4207_v60  ;;  %v353_v9 = vpop.f32.mrb[14].mxu0  ;;  %v4279_v7 = vadd.f32 %v424_v3, %v4195_v56  ;;  %v426_v11 = vpop.f32.mrb[14].mxu1  ;;  %v5168_v3 = vsub.s32 2, %v4179_v47 }
 0x146   :  { %5159 = vst [vmem:[#allocation24_spill] sm:$0xff] %v4270_v52  ;;  %5160 = vst [vmem:[#allocation25_spill] sm:$0xff] %v4273_v48  ;;  %v4282_v13 = vadd.f32 %v353_v9, %v4199_v57  ;;  %v355_v0 = vpop.f32.mrb[15].mxu0  ;;  %v4285_v49 = vadd.f32 %v426_v11, %v4187_v53  ;;  %v428_v52 = vpop.f32.mrb[15].mxu1  ;;  %v5169_v9 = vsub.s32 1, %v4179_v47  ;;  %v5170_v11 = vsub.s32 3, %v4179_v47 }
 0x147   :  { %5161 = vst [vmem:[#allocation26_spill] sm:$0xff] %v4276_v50  ;;  %5162 = vst [vmem:[#allocation27_spill] sm:$0xff] %v4279_v7  ;;  %v4288_v51 = vadd.f32 %v355_v0, %v4207_v60  ;;  %v4291_v62 = vadd.f32 %v428_v52, %v4195_v56  ;;  %v5167_v50 = vsub.s32 0, %v4179_v47  ;;  %v510_v7 = vrot.slane %v497_v6, %v5168_v3 }
 0x148   :  { %5163 = vst [vmem:[#allocation28_spill] sm:$0xff] %v4282_v13  ;;  %5164 = vst [vmem:[#allocation29_spill] sm:$0xff] %v4285_v49  ;;  %v4301_v13 = vrot.slane %v497_v6, %v5169_v9  ;;  %v4305_v49 = vrot.slane %v497_v6, %v5170_v11 }
 0x149   :  { %5165 = vst [vmem:[#allocation30_spill] sm:$0xff] %v4288_v51  ;;  %5166 = vst [vmem:[#allocation31_spill] sm:$0xff] %v4291_v62  ;;  %v4295_v48 = vrot.slane %v497_v6, %v5167_v50 }
 0x14b   :  { %v713_v0 = vpop.f32.mrb[16].mxu0  ;;  %v786_v51 = vpop.f32.mrb[16].mxu1 }
 0x14c   :  { %v4308_v52 = vadd.f32 %v713_v0, %v4295_v48  ;;  %v715_v62 = vpop.f32.mrb[17].mxu0  ;;  %v4310_v1 = vadd.f32 %v786_v51, %v510_v7  ;;  %v788_v50 = vpop.f32.mrb[17].mxu1 }
 0x14d   :  { %v4313_v61 = vadd.f32 %v715_v62, %v4301_v13  ;;  %v717_v3 = vpop.f32.mrb[18].mxu0  ;;  %v4316_v9 = vadd.f32 %v788_v50, %v4305_v49  ;;  %v790_v46 = vpop.f32.mrb[18].mxu1 }
 0x14e   :  { %5171 = vst [vmem:[#allocation32_spill] sm:$0xff] %v4308_v52  ;;  %5172 = vst [vmem:[#allocation33_spill] sm:$0xff] %v4310_v1  ;;  %v4319_v47 = vadd.f32 %v717_v3, %v4295_v48  ;;  %v719_v6 = vpop.f32.mrb[19].mxu0  ;;  %v4321_v11 = vadd.f32 %v790_v46, %v510_v7  ;;  %v792_v0 = vpop.f32.mrb[19].mxu1 }
 0x14f   :  { %5173 = vst [vmem:[#allocation34_spill] sm:$0xff] %v4313_v61  ;;  %5174 = vst [vmem:[#allocation35_spill] sm:$0xff] %v4316_v9  ;;  %v4324_v52 = vadd.f32 %v719_v6, %v4301_v13  ;;  %v4327_v51 = vadd.f32 %v792_v0, %v4305_v49 }
 0x150   :  { %5175 = vst [vmem:[#allocation36_spill] sm:$0xff] %v4319_v47  ;;  %5176 = vst [vmem:[#allocation37_spill] sm:$0xff] %v4321_v11 }
 0x151   :  { %5177 = vst [vmem:[#allocation38_spill] sm:$0xff] %v4324_v52  ;;  %5178 = vst [vmem:[#allocation39_spill] sm:$0xff] %v4327_v51 }
 0x153   :  { %v723_v62 = vpop.f32.mrb[20].mxu0  ;;  %v796_v61 = vpop.f32.mrb[20].mxu1 }
 0x154   :  { %v4330_v1 = vadd.f32 %v723_v62, %v4295_v48  ;;  %v725_v50 = vpop.f32.mrb[21].mxu0  ;;  %v4332_v9 = vadd.f32 %v796_v61, %v510_v7  ;;  %v798_v3 = vpop.f32.mrb[21].mxu1 }
 0x155   :  { %v4335_v47 = vadd.f32 %v725_v50, %v4301_v13  ;;  %v727_v46 = vpop.f32.mrb[22].mxu0  ;;  %v4338_v11 = vadd.f32 %v798_v3, %v4305_v49  ;;  %v800_v6 = vpop.f32.mrb[22].mxu1 }
 0x156   :  { %5179 = vst [vmem:[#allocation40_spill] sm:$0xff] %v4330_v1  ;;  %5180 = vst [vmem:[#allocation41_spill] sm:$0xff] %v4332_v9  ;;  %v4341_v0 = vadd.f32 %v727_v46, %v4295_v48  ;;  %v729_v51 = vpop.f32.mrb[23].mxu0  ;;  %v4343_v52 = vadd.f32 %v800_v6, %v510_v7  ;;  %v802_v62 = vpop.f32.mrb[23].mxu1 }
 0x157   :  { %5181 = vst [vmem:[#allocation42_spill] sm:$0xff] %v4335_v47  ;;  %5182 = vst [vmem:[#allocation43_spill] sm:$0xff] %v4338_v11  ;;  %v4346_v1 = vadd.f32 %v729_v51, %v4301_v13  ;;  %v4349_v61 = vadd.f32 %v802_v62, %v4305_v49 }
 0x158   :  { %5183 = vst [vmem:[#allocation44_spill] sm:$0xff] %v4341_v0  ;;  %5184 = vst [vmem:[#allocation45_spill] sm:$0xff] %v4343_v52 }
 0x159   :  { %5185 = vst [vmem:[#allocation46_spill] sm:$0xff] %v4346_v1  ;;  %5186 = vst [vmem:[#allocation47_spill] sm:$0xff] %v4349_v61 }
 0x15b   :  { %v733_v50 = vpop.f32.mrb[24].mxu0  ;;  %v806_v47 = vpop.f32.mrb[24].mxu1 }
 0x15c   :  { %v4352_v9 = vadd.f32 %v733_v50, %v4295_v48  ;;  %v735_v3 = vpop.f32.mrb[25].mxu0  ;;  %v4354_v11 = vadd.f32 %v806_v47, %v510_v7  ;;  %v808_v46 = vpop.f32.mrb[25].mxu1 }
 0x15d   :  { %v4357_v0 = vadd.f32 %v735_v3, %v4301_v13  ;;  %v737_v6 = vpop.f32.mrb[26].mxu0  ;;  %v4360_v52 = vadd.f32 %v808_v46, %v4305_v49  ;;  %v810_v51 = vpop.f32.mrb[26].mxu1 }
 0x15e   :  { %5187 = vst [vmem:[#allocation48_spill] sm:$0xff] %v4352_v9  ;;  %5188 = vst [vmem:[#allocation49_spill] sm:$0xff] %v4354_v11  ;;  %v4363_v62 = vadd.f32 %v737_v6, %v4295_v48  ;;  %v739_v61 = vpop.f32.mrb[27].mxu0  ;;  %v4365_v1 = vadd.f32 %v810_v51, %v510_v7  ;;  %v812_v50 = vpop.f32.mrb[27].mxu1 }
 0x15f   :  { %5189 = vst [vmem:[#allocation50_spill] sm:$0xff] %v4357_v0  ;;  %5190 = vst [vmem:[#allocation51_spill] sm:$0xff] %v4360_v52  ;;  %v4368_v9 = vadd.f32 %v739_v61, %v4301_v13  ;;  %v4371_v47 = vadd.f32 %v812_v50, %v4305_v49 }
 0x160   :  { %5191 = vst [vmem:[#allocation52_spill] sm:$0xff] %v4363_v62  ;;  %5192 = vst [vmem:[#allocation53_spill] sm:$0xff] %v4365_v1 }
 0x161   :  { %5193 = vst [vmem:[#allocation54_spill] sm:$0xff] %v4368_v9  ;;  %5194 = vst [vmem:[#allocation55_spill] sm:$0xff] %v4371_v47 }
 0x163   :  { %v743_v3 = vpop.f32.mrb[28].mxu0  ;;  %v816_v0 = vpop.f32.mrb[28].mxu1 }
 0x164   :  { %v4374_v11 = vadd.f32 %v743_v3, %v4295_v48  ;;  %v745_v46 = vpop.f32.mrb[29].mxu0  ;;  %v4376_v52 = vadd.f32 %v816_v0, %v510_v7  ;;  %v818_v6 = vpop.f32.mrb[29].mxu1 }
 0x165   :  { %v4379_v62 = vadd.f32 %v745_v46, %v4301_v13  ;;  %v4381_v51 = vpop.f32.mrb[30].mxu0  ;;  %v4384_v61 = vadd.f32 %v818_v6, %v4305_v49  ;;  %v820_v9 = vpop.f32.mrb[30].mxu1  ;;  %v320_v46 = vadd.f32 %v4189_v54, %v4199_v57  ;;  %v322_v6 = vadd.f32 %v4201_v58, %v4207_v60 }
 0x166   :  { %5195 = vst [vmem:[#allocation56_spill] sm:$0xff] %v4374_v11  ;;  %5196 = vst [vmem:[#allocation57_spill] sm:$0xff] %v4376_v52  ;;  %v749_v50 = vpop.f32.mrb[31].mxu0  ;;  %v4386_v47 = vadd.f32 %v820_v9, %v510_v7  ;;  %v822_v1 = vpop.f32.mrb[31].mxu1  ;;  %v395_v7 = vadd.f32 %v4203_v59, %v4195_v56 }
 0x167   :  { %5197 = vst [vmem:[#allocation58_spill] sm:$0xff] %v4379_v62  ;;  %5198 = vst [vmem:[#allocation59_spill] sm:$0xff] %v4384_v61  ;;  %v4389_v3 = vadd.f32 %v749_v50, %v4301_v13  ;;  %v4392_v0 = vadd.f32 %v822_v1, %v4305_v49  ;;  %v393_v62 = vadd.f32 %v4191_v55, %v4187_v53 }
 0x168   :  { %5199 = vst [vmem:[#allocation60_spill] sm:$0xff] %v4386_v47 }
 0x169   :  { %5200 = vst [vmem:[#allocation61_spill] sm:$0xff] %v4389_v3  ;;  %5201 = vst [vmem:[#allocation62_spill] sm:$0xff] %v4392_v0 }
 0x16b   :  { %v1120_v9 = vpop.f32.mrb[32].mxu0  ;;  %v1161_v61 = vpop.f32.mrb[32].mxu1 }
 0x16c   :  { %v1168_v52 = vadd.f32 %v1120_v9, %v320_v46  ;;  %v1170_v13 = vadd.f32 %v1161_v61, %v393_v62  ;;  %v1122_v50 = vpop.f32.mrb[33].mxu0  ;;  %v1163_v11 = vpop.f32.mrb[33].mxu1 }
 0x16d   :  { %v1169_v1 = vadd.f32 %v1122_v50, %v322_v6  ;;  %v1171_v49 = vadd.f32 %v1163_v11, %v395_v7  ;;  %v1124_v0 = vpop.f32.mrb[34].mxu0  ;;  %v1165_v3 = vpop.f32.mrb[34].mxu1  ;;  %v5202_v50 = vmov 0  }
 0x16e   :  { %v3219_v54 = vmul.f32 -1.442695, %v1168_v52  ;;  %v1125_v57 = vpop.f32.mrb[35].mxu0  ;;  %v1166_v47 = vpop.f32.mrb[35].mxu1 }
 0x16f   :  { %v3220_v53 = vmul.f32 -1.442695, %v1169_v1  ;;  %v3221_v55 = vmul.f32 -1.442695, %v1171_v49 }
 0x170   :  { %3513 = vpow2.f32 %v3219_v54 }
 0x171   :  { %3515 = vpow2.f32 %v3220_v53 }
 0x172   :  { %3517 = vpow2.f32 %v3221_v55 }
 0x173   :  { %3519 = vtanh.f32 %v1170_v13 }
 0x17a   :  { %v3514_v58 = vpop.eup %3513 }
 0x17b   :  { %v3516_v60 = vpop.eup %3515  ;;  %v1175_v56 = vadd.f32 1.0, %v3514_v58 }
 0x17c   :  { %v1181_v59 = vadd.f32 1.0, %v3516_v60  ;;  %v3518_v62 = vpop.eup %3517 }
 0x17d   :  { %3521 = vrcp.f32 %v1175_v56  ;;  %v3520_v61 = vpop.eup %3519  ;;  %v1188_v52 = vadd.f32 1.0, %v3518_v62 }
 0x17e   :  { %3523 = vrcp.f32 %v1181_v59 }
 0x17f   :  { %3525 = vrcp.f32 %v1188_v52 }
 0x187   :  { %v3522_v11 = vpop.eup %3521 }
 0x188   :  { %v3524_v0 = vpop.eup %3523  ;;  %v1192_v3 = vmul.f32 %v3522_v11, %v3520_v61 }
 0x189   :  { %v1191_v46 = vmul.f32 0.0, %v3524_v0  ;;  %v3526_v6 = vpop.eup %3525 }
 0x18b   :  { %v4402_v47 = vadd.f32 %v1192_v3, %v1191_v46 }
 0x18d   :  { %3527 = vtanh.f32 %v4402_v47 }
 0x197   :  { %v3528_v7 = vpop.eup %3527 }
 0x198   :  { %v1195_v9 = vmul.f32 %v3528_v7, %v3526_v6 }
 0x19a   :  { %1196 = vst [vmem:[%s5139_s4] sm:$0xff] %v1195_v9  ;;  %v1202_v13 = vpack.c.bf16 %v1195_v9, %v1195_v9 }
 0x19c   :  { %1236 = vmatmul.mubr.bf16.vlgmr.msra.gmra.mrb[36].mxu0 %v1202_v13  ;;  %1277 = vmatmul.mubr.bf16.vlgmr.msra.gmra.mrb[36].mxu1 %v1202_v13 }
 0x19d   :  { %1322 = vmatpush1.bf16.msra.mxu0 %v4033_v16  ;;  %1363 = vmatpush1.bf16.msra.mxu1 %v4035_v17 }
 0x19e   :  { %1323 = vmatprep.subr.bf16.mxu0 %v4037_v18  ;;  %1364 = vmatprep.subr.bf16.mxu1 %v4041_v19 }
 0x19f   :  { %1353 = vmatprep.mubr.bf16.mxu0 %v5202_v50  ;;  %1394 = vmatprep.mubr.bf16.mxu1 %v5202_v50 }
 0x1a1   :  { %1324 = vmatpush1.bf16.msra.mxu0 %v4043_v20  ;;  %1365 = vmatpush1.bf16.msra.mxu1 %v4045_v21 }
 0x1a2   :  { %1325 = vmatprep.subr.bf16.mxu0 %v4049_v22  ;;  %1366 = vmatprep.subr.bf16.mxu1 %v4051_v23 }
 0x1a5   :  { %1326 = vmatpush1.bf16.msra.mxu0 %v4059_v24  ;;  %1367 = vmatpush1.bf16.msra.mxu1 %v4061_v25 }
 0x1a6   :  { %1327 = vmatprep.subr.bf16.mxu0 %v4063_v26  ;;  %1368 = vmatprep.subr.bf16.mxu1 %v4065_v27 }
 0x1a9   :  { %1328 = vmatpush1.bf16.msra.mxu0 %v4071_v28  ;;  %1369 = vmatpush1.bf16.msra.mxu1 %v4073_v29 }
 0x1aa   :  { %1329 = vmatprep.subr.bf16.mxu0 %v4077_v30  ;;  %1370 = vmatprep.subr.bf16.mxu1 %v4083_v31 }
 0x1ad   :  { %1330 = vmatpush1.bf16.msra.mxu0 %v4089_v32  ;;  %1371 = vmatpush1.bf16.msra.mxu1 %v4091_v33 }
 0x1ae   :  { %1331 = vmatprep.subr.bf16.mxu0 %v4095_v34  ;;  %1372 = vmatprep.subr.bf16.mxu1 %v4097_v35 }
 0x1b1   :  { %1332 = vmatpush1.bf16.msra.mxu0 %v4103_v36  ;;  %1373 = vmatpush1.bf16.msra.mxu1 %v4105_v37 }
 0x1b2   :  { %1333 = vmatprep.subr.bf16.mxu0 %v4109_v38  ;;  %1374 = vmatprep.subr.bf16.mxu1 %v4111_v39 }
 0x1b5   :  { %1334 = vmatpush1.bf16.msra.mxu0 %v4117_v40  ;;  %1375 = vmatpush1.bf16.msra.mxu1 %v4119_v41 }
 0x1b6   :  { %1335 = vmatprep.subr.bf16.mxu0 %v4123_v42  ;;  %1376 = vmatprep.subr.bf16.mxu1 %v4125_v43 }
 0x1b9   :  { %1336 = vmatpush1.bf16.msra.mxu0 %v4131_v44  ;;  %1377 = vmatpush1.bf16.msra.mxu1 %v4133_v45 }
 0x1ba   :  { %1439 = vmatprep.subr.bf16.mxu0 %v4027_v14  ;;  %1480 = vmatprep.subr.bf16.mxu1 %v4029_v15 }
 0x26f   :  { %v1237_v1 = vpop.f32.mrb[36].mxu0  ;;  %v1278_v49 = vpop.f32.mrb[36].mxu1 }
 0x270   :  { %v1285_v54 = vadd.f32 %v1237_v1, %v4210_v63  ;;  %v1287_v57 = vadd.f32 %v1278_v49, %v4213_v2  ;;  %v1239_v53 = vpop.f32.mrb[37].mxu0  ;;  %v1280_v55 = vpop.f32.mrb[37].mxu1 }
 0x271   :  { %v1286_v58 = vadd.f32 %v1239_v53, %v4216_v4  ;;  %v1288_v60 = vadd.f32 %v1280_v55, %v4219_v5  ;;  %v1241_v56 = vpop.f32.mrb[38].mxu0  ;;  %v1282_v59 = vpop.f32.mrb[38].mxu1 }
 0x272   :  { %v3222_v62 = vmul.f32 -1.442695, %v1285_v54  ;;  %v1242_v61 = vpop.f32.mrb[39].mxu0  ;;  %v1283_v11 = vpop.f32.mrb[39].mxu1 }
 0x273   :  { %v3223_v0 = vmul.f32 -1.442695, %v1286_v58  ;;  %v3224_v3 = vmul.f32 -1.442695, %v1288_v60  ;;  %v5203_v11 = vld [vmem:[#allocation11_spill] sm:$0xff] }
 0x274   :  { %3529 = vpow2.f32 %v3222_v62 }
 0x275   :  { %3531 = vpow2.f32 %v3223_v0 }
 0x276   :  { %3533 = vpow2.f32 %v3224_v3 }
 0x277   :  { %3535 = vtanh.f32 %v1287_v57 }
 0x27e   :  { %v3530_v52 = vpop.eup %3529 }
 0x27f   :  { %v3532_v46 = vpop.eup %3531  ;;  %v1292_v63 = vadd.f32 1.0, %v3530_v52 }
 0x280   :  { %v1298_v2 = vadd.f32 1.0, %v3532_v46  ;;  %v3534_v4 = vpop.eup %3533 }
 0x281   :  { %3537 = vrcp.f32 %v1292_v63  ;;  %v3536_v6 = vpop.eup %3535  ;;  %v1305_v13 = vadd.f32 1.0, %v3534_v4 }
 0x282   :  { %3539 = vrcp.f32 %v1298_v2 }
 0x283   :  { %3541 = vrcp.f32 %v1305_v13 }
 0x28b   :  { %v3538_v5 = vpop.eup %3537 }
 0x28c   :  { %v3540_v7 = vpop.eup %3539  ;;  %v1309_v9 = vmul.f32 %v3538_v5, %v3536_v6 }
 0x28d   :  { %v1308_v1 = vmul.f32 %v3540_v7, %v4402_v47  ;;  %v3542_v54 = vpop.eup %3541 }
 0x28f   :  { %v4447_v49 = vadd.f32 %v1309_v9, %v1308_v1 }
 0x291   :  { %3543 = vtanh.f32 %v4447_v49 }
 0x29b   :  { %v3544_v53 = vpop.eup %3543 }
 0x29c   :  { %v1312_v55 = vmul.f32 %v3544_v53, %v3542_v54 }
 0x29e   :  { %3225 = vst [vmem:[%s5139_s4 + $0x10] sm:$0xff] %v1312_v55  ;;  %v1320_v57 = vpack.c.bf16 %v1312_v55, %v1312_v55 }
 0x2a0   :  { %1354 = vmatmul.mubr.bf16.vlgmr.msra.gmra.mrb[40].mxu0 %v1320_v57  ;;  %1395 = vmatmul.mubr.bf16.vlgmr.msra.gmra.mrb[40].mxu1 %v1320_v57 }
 0x2a1   :  { %1440 = vmatpush1.bf16.msra.mxu0 %v4033_v16  ;;  %1481 = vmatpush1.bf16.msra.mxu1 %v4035_v17 }
 0x2a2   :  { %1441 = vmatprep.subr.bf16.mxu0 %v4037_v18  ;;  %1482 = vmatprep.subr.bf16.mxu1 %v4041_v19 }
 0x2a3   :  { %1471 = vmatprep.mubr.bf16.mxu0 %v5202_v50  ;;  %1512 = vmatprep.mubr.bf16.mxu1 %v5202_v50 }
 0x2a5   :  { %1442 = vmatpush1.bf16.msra.mxu0 %v4043_v20  ;;  %1483 = vmatpush1.bf16.msra.mxu1 %v4045_v21 }
 0x2a6   :  { %1443 = vmatprep.subr.bf16.mxu0 %v4049_v22  ;;  %1484 = vmatprep.subr.bf16.mxu1 %v4051_v23 }
 0x2a9   :  { %1444 = vmatpush1.bf16.msra.mxu0 %v4059_v24  ;;  %1485 = vmatpush1.bf16.msra.mxu1 %v4061_v25 }
 0x2aa   :  { %1445 = vmatprep.subr.bf16.mxu0 %v4063_v26  ;;  %1486 = vmatprep.subr.bf16.mxu1 %v4065_v27 }
 0x2ad   :  { %1446 = vmatpush1.bf16.msra.mxu0 %v4071_v28  ;;  %1487 = vmatpush1.bf16.msra.mxu1 %v4073_v29 }
 0x2ae   :  { %1447 = vmatprep.subr.bf16.mxu0 %v4077_v30  ;;  %1488 = vmatprep.subr.bf16.mxu1 %v4083_v31 }
 0x2b1   :  { %1448 = vmatpush1.bf16.msra.mxu0 %v4089_v32  ;;  %1489 = vmatpush1.bf16.msra.mxu1 %v4091_v33 }
 0x2b2   :  { %1449 = vmatprep.subr.bf16.mxu0 %v4095_v34  ;;  %1490 = vmatprep.subr.bf16.mxu1 %v4097_v35 }
 0x2b5   :  { %1450 = vmatpush1.bf16.msra.mxu0 %v4103_v36  ;;  %1491 = vmatpush1.bf16.msra.mxu1 %v4105_v37 }
 0x2b6   :  { %1451 = vmatprep.subr.bf16.mxu0 %v4109_v38  ;;  %1492 = vmatprep.subr.bf16.mxu1 %v4111_v39 }
 0x2b9   :  { %1452 = vmatpush1.bf16.msra.mxu0 %v4117_v40  ;;  %1493 = vmatpush1.bf16.msra.mxu1 %v4119_v41 }
 0x2ba   :  { %1453 = vmatprep.subr.bf16.mxu0 %v4123_v42  ;;  %1494 = vmatprep.subr.bf16.mxu1 %v4125_v43 }
 0x2bd   :  { %1454 = vmatpush1.bf16.msra.mxu0 %v4131_v44  ;;  %1495 = vmatpush1.bf16.msra.mxu1 %v4133_v45 }
 0x2be   :  { %1557 = vmatprep.subr.bf16.mxu0 %v4027_v14  ;;  %1598 = vmatprep.subr.bf16.mxu1 %v4029_v15 }
 0x373   :  { %v1355_v47 = vpop.f32.mrb[40].mxu0  ;;  %v1396_v58 = vpop.f32.mrb[40].mxu1 }
 0x374   :  { %v1403_v60 = vadd.f32 %v1355_v47, %v4222_v8  ;;  %v1405_v56 = vadd.f32 %v1396_v58, %v4225_v10  ;;  %v1357_v59 = vpop.f32.mrb[41].mxu0  ;;  %v1398_v62 = vpop.f32.mrb[41].mxu1 }
 0x375   :  { %v1404_v61 = vadd.f32 %v1357_v59, %v4228_v12  ;;  %v1406_v0 = vadd.f32 %v1398_v62, %v5203_v11  ;;  %v1359_v3 = vpop.f32.mrb[42].mxu0  ;;  %v1400_v52 = vpop.f32.mrb[42].mxu1 }
 0x376   :  { %v3226_v46 = vmul.f32 -1.442695, %v1403_v60  ;;  %v1360_v63 = vpop.f32.mrb[43].mxu0  ;;  %v1401_v2 = vpop.f32.mrb[43].mxu1 }
 0x377   :  { %v3227_v14 = vmul.f32 -1.442695, %v1404_v61  ;;  %v3228_v15 = vmul.f32 -1.442695, %v1406_v0 }
 0x378   :  { %3545 = vpow2.f32 %v3226_v46 }
 0x379   :  { %3547 = vpow2.f32 %v3227_v14 }
 0x37a   :  { %3549 = vpow2.f32 %v3228_v15 }
 0x37b   :  { %3551 = vtanh.f32 %v1405_v56 }
 0x382   :  { %v3546_v4 = vpop.eup %3545 }
 0x383   :  { %v3548_v6 = vpop.eup %3547  ;;  %v1410_v8 = vadd.f32 1.0, %v3546_v4 }
 0x384   :  { %v1416_v10 = vadd.f32 1.0, %v3548_v6  ;;  %v3550_v12 = vpop.eup %3549 }
 0x385   :  { %3553 = vrcp.f32 %v1410_v8  ;;  %v3552_v5 = vpop.eup %3551  ;;  %v1423_v1 = vadd.f32 1.0, %v3550_v12 }
 0x386   :  { %3555 = vrcp.f32 %v1416_v10 }
 0x387   :  { %3557 = vrcp.f32 %v1423_v1  ;;  %v4556_v1 = vld [vmem:[#allocation6 + $0x2c] ss:$16 sps:$4 sm:$0xff]  }
 0x38f   :  { %v3554_v7 = vpop.eup %3553 }
 0x390   :  { %v3556_v9 = vpop.eup %3555  ;;  %v1427_v13 = vmul.f32 %v3554_v7, %v3552_v5  ;;  %v4547_v7 = vld [vmem:[#allocation6] ss:$16 sps:$4 sm:$0xff]  }
 0x391   :  { %v1426_v54 = vmul.f32 %v3556_v9, %v4447_v49  ;;  %v3558_v55 = vpop.eup %3557  ;;  %v4550_v9 = vld [vmem:[#allocation6 + $0x8] ss:$16 sps:$4 sm:$0xff]  }
 0x393   :  { %v4492_v53 = vadd.f32 %v1427_v13, %v1426_v54  ;;  %v4553_v13 = vld [vmem:[#allocation6 + $0x24] ss:$16 sps:$4 sm:$0xff]   ;;  %v4561_v54 = vld [vmem:[#allocation6 + $0x20] ss:$16 sps:$4 sm:$0xff]  }
 0x395   :  { %3559 = vtanh.f32 %v4492_v53 }
 0x39f   :  { %v3560_v57 = vpop.eup %3559 }
 0x3a0   :  { %v1430_v47 = vmul.f32 %v3560_v57, %v3558_v55  ;;  %v4567_v55 = vld [vmem:[#allocation6 + $0x44] ss:$16 sps:$4 sm:$0xff]   ;;  %v4570_v57 = vld [vmem:[#allocation6 + $0x4c] ss:$16 sps:$4 sm:$0xff]  }
 0x3a2   :  { %3229 = vst [vmem:[%s5139_s4 + $0x20] sm:$0xff] %v1430_v47  ;;  %v1438_v58 = vpack.c.bf16 %v1430_v47, %v1430_v47  ;;  %v4573_v47 = vld [vmem:[#allocation6 + $0x40] ss:$16 sps:$4 sm:$0xff]  }
 0x3a4   :  { %1472 = vmatmul.mubr.bf16.vlgmr.msra.gmra.mrb[44].mxu0 %v1438_v58  ;;  %1513 = vmatmul.mubr.bf16.vlgmr.msra.gmra.mrb[44].mxu1 %v1438_v58  ;;  %v4576_v58 = vld [vmem:[#allocation6 + $0x48] ss:$16 sps:$4 sm:$0xff]  }
 0x3a5   :  { %1558 = vmatpush1.bf16.msra.mxu0 %v4033_v16  ;;  %1599 = vmatpush1.bf16.msra.mxu1 %v4035_v17  ;;  %v4530_v16 = vld [vmem:[#allocation6 + $0x4] ss:$16 sps:$4 sm:$0xff]   ;;  %v4533_v17 = vld [vmem:[#allocation6 + $0xc] ss:$16 sps:$4 sm:$0xff]  }
 0x3a6   :  { %1559 = vmatprep.subr.bf16.mxu0 %v4037_v18  ;;  %1600 = vmatprep.subr.bf16.mxu1 %v4041_v19 }
 0x3a7   :  { %1589 = vmatprep.mubr.bf16.mxu0 %v5202_v50  ;;  %1630 = vmatprep.mubr.bf16.mxu1 %v5202_v50 }
 0x3a9   :  { %1560 = vmatpush1.bf16.msra.mxu0 %v4043_v20  ;;  %1601 = vmatpush1.bf16.msra.mxu1 %v4045_v21  ;;  %v5204_v20 = vld [vmem:[#allocation12_spill] sm:$0xff] }
 0x3aa   :  { %1561 = vmatprep.subr.bf16.mxu0 %v4049_v22  ;;  %1602 = vmatprep.subr.bf16.mxu1 %v4051_v23  ;;  %v5205_v22 = vld [vmem:[#allocation13_spill] sm:$0xff] }
 0x3ad   :  { %1562 = vmatpush1.bf16.msra.mxu0 %v4059_v24  ;;  %1603 = vmatpush1.bf16.msra.mxu1 %v4061_v25 }
 0x3ae   :  { %1563 = vmatprep.subr.bf16.mxu0 %v4063_v26  ;;  %1604 = vmatprep.subr.bf16.mxu1 %v4065_v27  ;;  %v5206_v26 = vld [vmem:[#allocation14_spill] sm:$0xff] }
 0x3b1   :  { %1564 = vmatpush1.bf16.msra.mxu0 %v4071_v28  ;;  %1605 = vmatpush1.bf16.msra.mxu1 %v4073_v29  ;;  %v5207_v28 = vld [vmem:[#allocation15_spill] sm:$0xff] }
 0x3b2   :  { %1565 = vmatprep.subr.bf16.mxu0 %v4077_v30  ;;  %1606 = vmatprep.subr.bf16.mxu1 %v4083_v31 }
 0x3b5   :  { %1566 = vmatpush1.bf16.msra.mxu0 %v4089_v32  ;;  %1607 = vmatpush1.bf16.msra.mxu1 %v4091_v33 }
 0x3b6   :  { %1567 = vmatprep.subr.bf16.mxu0 %v4095_v34  ;;  %1608 = vmatprep.subr.bf16.mxu1 %v4097_v35 }
 0x3b9   :  { %1568 = vmatpush1.bf16.msra.mxu0 %v4103_v36  ;;  %1609 = vmatpush1.bf16.msra.mxu1 %v4105_v37 }
 0x3ba   :  { %1569 = vmatprep.subr.bf16.mxu0 %v4109_v38  ;;  %1610 = vmatprep.subr.bf16.mxu1 %v4111_v39 }
 0x3bd   :  { %1570 = vmatpush1.bf16.msra.mxu0 %v4117_v40  ;;  %1611 = vmatpush1.bf16.msra.mxu1 %v4119_v41 }
 0x3be   :  { %1571 = vmatprep.subr.bf16.mxu0 %v4123_v42  ;;  %1612 = vmatprep.subr.bf16.mxu1 %v4125_v43 }
 0x3c1   :  { %1572 = vmatpush1.bf16.msra.mxu0 %v4131_v44  ;;  %1613 = vmatpush1.bf16.msra.mxu1 %v4133_v45 }
 0x3c2   :  { %1675 = vmatprep.subr.bf16.mxu0 %v4530_v16  ;;  %1716 = vmatprep.subr.bf16.mxu1 %v4533_v17 }
 0x477   :  { %v1473_v18 = vpop.f32.mrb[44].mxu0  ;;  %v1514_v19 = vpop.f32.mrb[44].mxu1 }
 0x478   :  { %v1521_v21 = vadd.f32 %v1473_v18, %v5204_v20  ;;  %v1523_v23 = vadd.f32 %v1514_v19, %v5205_v22  ;;  %v1475_v24 = vpop.f32.mrb[45].mxu0  ;;  %v1516_v25 = vpop.f32.mrb[45].mxu1  ;;  %v4579_v18 = vld [vmem:[#allocation6 + $0x64] ss:$16 sps:$4 sm:$0xff]   ;;  %v4582_v19 = vld [vmem:[#allocation6 + $0x6c] ss:$16 sps:$4 sm:$0xff]  }
 0x479   :  { %v1522_v27 = vadd.f32 %v1475_v24, %v5206_v26  ;;  %v1524_v29 = vadd.f32 %v1516_v25, %v5207_v28  ;;  %v1477_v30 = vpop.f32.mrb[46].mxu0  ;;  %v1518_v31 = vpop.f32.mrb[46].mxu1  ;;  %v4585_v20 = vld [vmem:[#allocation6 + $0x60] ss:$16 sps:$4 sm:$0xff]   ;;  %v4591_v22 = vld [vmem:[#allocation6 + $0x84] ss:$16 sps:$4 sm:$0xff]  }
 0x47a   :  { %v3230_v49 = vmul.f32 -1.442695, %v1521_v21  ;;  %v1478_v60 = vpop.f32.mrb[47].mxu0  ;;  %v1519_v56 = vpop.f32.mrb[47].mxu1  ;;  %v4588_v21 = vld [vmem:[#allocation6 + $0x68] ss:$16 sps:$4 sm:$0xff]  }
 0x47b   :  { %v3231_v59 = vmul.f32 -1.442695, %v1522_v27  ;;  %v3232_v62 = vmul.f32 -1.442695, %v1524_v29 }
 0x47c   :  { %3561 = vpow2.f32 %v3230_v49 }
 0x47d   :  { %3563 = vpow2.f32 %v3231_v59 }
 0x47e   :  { %3565 = vpow2.f32 %v3232_v62 }
 0x47f   :  { %3567 = vtanh.f32 %v1523_v23  ;;  %v4594_v23 = vld [vmem:[#allocation6 + $0x8c] ss:$16 sps:$4 sm:$0xff]  }
 0x486   :  { %v3562_v61 = vpop.eup %3561 }
 0x487   :  { %v3564_v11 = vpop.eup %3563  ;;  %v1528_v0 = vadd.f32 1.0, %v3562_v61 }
 0x488   :  { %v1534_v3 = vadd.f32 1.0, %v3564_v11  ;;  %v3566_v52 = vpop.eup %3565 }
 0x489   :  { %3569 = vrcp.f32 %v1528_v0  ;;  %v3568_v46 = vpop.eup %3567  ;;  %v1541_v15 = vadd.f32 1.0, %v3566_v52 }
 0x48a   :  { %3571 = vrcp.f32 %v1534_v3 }
 0x48b   :  { %3573 = vrcp.f32 %v1541_v15  ;;  %v4645_v15 = vld [vmem:[#allocation6 + $0x88] ss:$16 sps:$4 sm:$0xff]  }
 0x493   :  { %v3570_v63 = vpop.eup %3569 }
 0x494   :  { %v3572_v2 = vpop.eup %3571  ;;  %v1545_v14 = vmul.f32 %v3570_v63, %v3568_v46 }
 0x495   :  { %v1544_v4 = vmul.f32 %v3572_v2, %v4492_v53  ;;  %v3574_v8 = vpop.eup %3573  ;;  %v4564_v53 = vld [vmem:[#allocation6 + $0x28] ss:$16 sps:$4 sm:$0xff]  }
 0x497   :  { %v4541_v6 = vadd.f32 %v1545_v14, %v1544_v4  ;;  %v4642_v14 = vld [vmem:[#allocation6 + $0x80] ss:$16 sps:$4 sm:$0xff]   ;;  %v4648_v4 = vld [vmem:[#allocation6 + $0xa4] ss:$16 sps:$4 sm:$0xff]  }
 0x499   :  { %3575 = vtanh.f32 %v4541_v6 }
 0x4a3   :  { %v3576_v10 = vpop.eup %3575 }
 0x4a4   :  { %v1548_v12 = vmul.f32 %v3576_v10, %v3574_v8  ;;  %v4654_v8 = vld [vmem:[#allocation6 + $0xa0] ss:$16 sps:$4 sm:$0xff]   ;;  %v4657_v10 = vld [vmem:[#allocation6 + $0xa8] ss:$16 sps:$4 sm:$0xff]  }
 0x4a6   :  { %3233 = vst [vmem:[%s5139_s4 + $0x30] sm:$0xff] %v1548_v12  ;;  %v1556_v5 = vpack.c.bf16 %v1548_v12, %v1548_v12  ;;  %v4660_v12 = vld [vmem:[#allocation6 + $0xc4] ss:$16 sps:$4 sm:$0xff]  }
 0x4a8   :  { %1590 = vmatmul.mubr.bf16.vlgmr.msra.gmra.mrb[48].mxu0 %v1556_v5  ;;  %1631 = vmatmul.mubr.bf16.vlgmr.msra.gmra.mrb[48].mxu1 %v1556_v5  ;;  %v4663_v5 = vld [vmem:[#allocation6 + $0xcc] ss:$16 sps:$4 sm:$0xff]  }
 0x4a9   :  { %1676 = vmatpush1.bf16.msra.mxu0 %v4547_v7  ;;  %1717 = vmatpush1.bf16.msra.mxu1 %v4550_v9 }
 0x4aa   :  { %1677 = vmatprep.subr.bf16.mxu0 %v4553_v13  ;;  %1718 = vmatprep.subr.bf16.mxu1 %v4556_v1 }
 0x4ab   :  { %1707 = vmatprep.mubr.bf16.mxu0 %v5202_v50  ;;  %1748 = vmatprep.mubr.bf16.mxu1 %v5202_v50 }
 0x4ad   :  { %1678 = vmatpush1.bf16.msra.mxu0 %v4561_v54  ;;  %1719 = vmatpush1.bf16.msra.mxu1 %v4564_v53 }
 0x4ae   :  { %1679 = vmatprep.subr.bf16.mxu0 %v4567_v55  ;;  %1720 = vmatprep.subr.bf16.mxu1 %v4570_v57 }
 0x4b1   :  { %1680 = vmatpush1.bf16.msra.mxu0 %v4573_v47  ;;  %1721 = vmatpush1.bf16.msra.mxu1 %v4576_v58 }
 0x4b2   :  { %1681 = vmatprep.subr.bf16.mxu0 %v4579_v18  ;;  %1722 = vmatprep.subr.bf16.mxu1 %v4582_v19 }
 0x4b5   :  { %1682 = vmatpush1.bf16.msra.mxu0 %v4585_v20  ;;  %1723 = vmatpush1.bf16.msra.mxu1 %v4588_v21 }
 0x4b6   :  { %1683 = vmatprep.subr.bf16.mxu0 %v4591_v22  ;;  %1724 = vmatprep.subr.bf16.mxu1 %v4594_v23 }
 0x4b9   :  { %1684 = vmatpush1.bf16.msra.mxu0 %v4089_v32  ;;  %1725 = vmatpush1.bf16.msra.mxu1 %v4091_v33 }
 0x4ba   :  { %1685 = vmatprep.subr.bf16.mxu0 %v4095_v34  ;;  %1726 = vmatprep.subr.bf16.mxu1 %v4097_v35  ;;  %v5208_v34 = vld [vmem:[#allocation16_spill] sm:$0xff] }
 0x4bd   :  { %1686 = vmatpush1.bf16.msra.mxu0 %v4103_v36  ;;  %1727 = vmatpush1.bf16.msra.mxu1 %v4105_v37  ;;  %v5209_v36 = vld [vmem:[#allocation17_spill] sm:$0xff] }
 0x4be   :  { %1687 = vmatprep.subr.bf16.mxu0 %v4109_v38  ;;  %1728 = vmatprep.subr.bf16.mxu1 %v4111_v39 }
 0x4c1   :  { %1688 = vmatpush1.bf16.msra.mxu0 %v4117_v40  ;;  %1729 = vmatpush1.bf16.msra.mxu1 %v4119_v41  ;;  %v5210_v40 = vld [vmem:[#allocation18_spill] sm:$0xff] }
 0x4c2   :  { %1689 = vmatprep.subr.bf16.mxu0 %v4123_v42  ;;  %1730 = vmatprep.subr.bf16.mxu1 %v4125_v43  ;;  %v5211_v42 = vld [vmem:[#allocation19_spill] sm:$0xff] }
 0x4c5   :  { %1690 = vmatpush1.bf16.msra.mxu0 %v4131_v44  ;;  %1731 = vmatpush1.bf16.msra.mxu1 %v4133_v45 }
 0x4c6   :  { %1793 = vmatprep.subr.bf16.mxu0 %v4530_v16  ;;  %1834 = vmatprep.subr.bf16.mxu1 %v4533_v17 }
 0x57b   :  { %v1591_v32 = vpop.f32.mrb[48].mxu0  ;;  %v1632_v33 = vpop.f32.mrb[48].mxu1 }
 0x57c   :  { %v1639_v35 = vadd.f32 %v1591_v32, %v5208_v34  ;;  %v1641_v37 = vadd.f32 %v1632_v33, %v5209_v36  ;;  %v1593_v38 = vpop.f32.mrb[49].mxu0  ;;  %v1634_v39 = vpop.f32.mrb[49].mxu1  ;;  %v4666_v32 = vld [vmem:[#allocation6 + $0xc0] ss:$16 sps:$4 sm:$0xff]   ;;  %v4669_v33 = vld [vmem:[#allocation6 + $0xc8] ss:$16 sps:$4 sm:$0xff]  }
 0x57d   :  { %v1640_v41 = vadd.f32 %v1593_v38, %v5210_v40  ;;  %v1642_v43 = vadd.f32 %v1634_v39, %v5211_v42  ;;  %v1595_v24 = vpop.f32.mrb[50].mxu0  ;;  %v1636_v44 = vpop.f32.mrb[50].mxu1  ;;  %v4672_v34 = vld [vmem:[#allocation6 + $0xe4] ss:$16 sps:$4 sm:$0xff]   ;;  %v4678_v36 = vld [vmem:[#allocation6 + $0xe0] ss:$16 sps:$4 sm:$0xff]  }
 0x57e   :  { %v3234_v25 = vmul.f32 -1.442695, %v1639_v35  ;;  %v1596_v45 = vpop.f32.mrb[51].mxu0  ;;  %v1637_v26 = vpop.f32.mrb[51].mxu1  ;;  %v4675_v35 = vld [vmem:[#allocation6 + $0xec] ss:$16 sps:$4 sm:$0xff]  }
 0x57f   :  { %v3235_v27 = vmul.f32 -1.442695, %v1640_v41  ;;  %v3236_v28 = vmul.f32 -1.442695, %v1642_v43  ;;  %v5212_v40 = vld [vmem:[#allocation20_spill] sm:$0xff]  ;;  %v5213_v42 = vld [vmem:[#allocation21_spill] sm:$0xff] }
 0x580   :  { %3577 = vpow2.f32 %v3234_v25  ;;  %v5214_v25 = vld [vmem:[#allocation22_spill] sm:$0xff]  ;;  %v5215_v26 = vld [vmem:[#allocation23_spill] sm:$0xff] }
 0x581   :  { %3579 = vpow2.f32 %v3235_v27 }
 0x582   :  { %3581 = vpow2.f32 %v3236_v28 }
 0x583   :  { %3583 = vtanh.f32 %v1641_v37  ;;  %v4681_v37 = vld [vmem:[#allocation6 + $0xe8] ss:$16 sps:$4 sm:$0xff]  }
 0x58a   :  { %v3578_v29 = vpop.eup %3577 }
 0x58b   :  { %v3580_v30 = vpop.eup %3579  ;;  %v1646_v31 = vadd.f32 1.0, %v3578_v29 }
 0x58c   :  { %v1652_v49 = vadd.f32 1.0, %v3580_v30  ;;  %v3582_v60 = vpop.eup %3581 }
 0x58d   :  { %3585 = vrcp.f32 %v1646_v31  ;;  %v3584_v56 = vpop.eup %3583  ;;  %v1659_v11 = vadd.f32 1.0, %v3582_v60 }
 0x58e   :  { %3587 = vrcp.f32 %v1652_v49 }
 0x58f   :  { %3589 = vrcp.f32 %v1659_v11 }
 0x597   :  { %v3586_v59 = vpop.eup %3585 }
 0x598   :  { %v3588_v62 = vpop.eup %3587  ;;  %v1663_v61 = vmul.f32 %v3586_v59, %v3584_v56 }
 0x599   :  { %v1662_v0 = vmul.f32 %v3588_v62, %v4541_v6  ;;  %v3590_v52 = vpop.eup %3589  ;;  %v4651_v6 = vld [vmem:[#allocation6 + $0xac] ss:$16 sps:$4 sm:$0xff]  }
 0x59b   :  { %v4618_v3 = vadd.f32 %v1663_v61, %v1662_v0 }
 0x59d   :  { %3591 = vtanh.f32 %v4618_v3 }
 0x5a7   :  { %v3592_v46 = vpop.eup %3591 }
 0x5a8   :  { %v1666_v63 = vmul.f32 %v3592_v46, %v3590_v52 }
 0x5aa   :  { %3237 = vst [vmem:[%s5139_s4 + $0x40] sm:$0xff] %v1666_v63  ;;  %v1674_v2 = vpack.c.bf16 %v1666_v63, %v1666_v63 }
 0x5ac   :  { %1708 = vmatmul.mubr.bf16.vlgmr.msra.gmra.mrb[52].mxu0 %v1674_v2  ;;  %1749 = vmatmul.mubr.bf16.vlgmr.msra.gmra.mrb[52].mxu1 %v1674_v2 }
 0x5ad   :  { %1794 = vmatpush1.bf16.msra.mxu0 %v4547_v7  ;;  %1835 = vmatpush1.bf16.msra.mxu1 %v4550_v9 }
 0x5ae   :  { %1795 = vmatprep.subr.bf16.mxu0 %v4553_v13  ;;  %1836 = vmatprep.subr.bf16.mxu1 %v4556_v1 }
 0x5af   :  { %1825 = vmatprep.mubr.bf16.mxu0 %v5202_v50  ;;  %1866 = vmatprep.mubr.bf16.mxu1 %v5202_v50 }
 0x5b1   :  { %1796 = vmatpush1.bf16.msra.mxu0 %v4561_v54  ;;  %1837 = vmatpush1.bf16.msra.mxu1 %v4564_v53 }
 0x5b2   :  { %1797 = vmatprep.subr.bf16.mxu0 %v4567_v55  ;;  %1838 = vmatprep.subr.bf16.mxu1 %v4570_v57 }
 0x5b5   :  { %1798 = vmatpush1.bf16.msra.mxu0 %v4573_v47  ;;  %1839 = vmatpush1.bf16.msra.mxu1 %v4576_v58 }
 0x5b6   :  { %1799 = vmatprep.subr.bf16.mxu0 %v4579_v18  ;;  %1840 = vmatprep.subr.bf16.mxu1 %v4582_v19 }
 0x5b9   :  { %1800 = vmatpush1.bf16.msra.mxu0 %v4585_v20  ;;  %1841 = vmatpush1.bf16.msra.mxu1 %v4588_v21 }
 0x5ba   :  { %1801 = vmatprep.subr.bf16.mxu0 %v4591_v22  ;;  %1842 = vmatprep.subr.bf16.mxu1 %v4594_v23 }
 0x5bd   :  { %1802 = vmatpush1.bf16.msra.mxu0 %v4642_v14  ;;  %1843 = vmatpush1.bf16.msra.mxu1 %v4645_v15 }
 0x5be   :  { %1803 = vmatprep.subr.bf16.mxu0 %v4648_v4  ;;  %1844 = vmatprep.subr.bf16.mxu1 %v4651_v6 }
 0x5c1   :  { %1804 = vmatpush1.bf16.msra.mxu0 %v4654_v8  ;;  %1845 = vmatpush1.bf16.msra.mxu1 %v4657_v10 }
 0x5c2   :  { %1805 = vmatprep.subr.bf16.mxu0 %v4660_v12  ;;  %1846 = vmatprep.subr.bf16.mxu1 %v4663_v5 }
 0x5c5   :  { %1806 = vmatpush1.bf16.msra.mxu0 %v4666_v32  ;;  %1847 = vmatpush1.bf16.msra.mxu1 %v4669_v33 }
 0x5c6   :  { %1807 = vmatprep.subr.bf16.mxu0 %v4672_v34  ;;  %1848 = vmatprep.subr.bf16.mxu1 %v4675_v35 }
 0x5c9   :  { %1808 = vmatpush1.bf16.msra.mxu0 %v4678_v36  ;;  %1849 = vmatpush1.bf16.msra.mxu1 %v4681_v37 }
 0x5ca   :  { %1911 = vmatprep.subr.bf16.mxu0 %v4530_v16  ;;  %1952 = vmatprep.subr.bf16.mxu1 %v4533_v17 }
 0x67f   :  { %v1709_v38 = vpop.f32.mrb[52].mxu0  ;;  %v1750_v39 = vpop.f32.mrb[52].mxu1 }
 0x680   :  { %v1757_v41 = vadd.f32 %v1709_v38, %v5212_v40  ;;  %v1759_v43 = vadd.f32 %v1750_v39, %v5213_v42  ;;  %v1711_v24 = vpop.f32.mrb[53].mxu0  ;;  %v1752_v44 = vpop.f32.mrb[53].mxu1 }
 0x681   :  { %v1758_v45 = vadd.f32 %v1711_v24, %v5214_v25  ;;  %v1760_v27 = vadd.f32 %v1752_v44, %v5215_v26  ;;  %v1713_v28 = vpop.f32.mrb[54].mxu0  ;;  %v1754_v29 = vpop.f32.mrb[54].mxu1  ;;  %v4743_v26 = vld [vmem:[#allocation6 + $0x100] ss:$16 sps:$4 sm:$0xff]  }
 0x682   :  { %v3238_v30 = vmul.f32 -1.442695, %v1757_v41  ;;  %v1714_v31 = vpop.f32.mrb[55].mxu0  ;;  %v1755_v49 = vpop.f32.mrb[55].mxu1  ;;  %v4750_v29 = vld [vmem:[#allocation6 + $0x124] ss:$16 sps:$4 sm:$0xff]  }
 0x683   :  { %v3239_v16 = vmul.f32 -1.442695, %v1758_v45  ;;  %v3240_v17 = vmul.f32 -1.442695, %v1760_v27  ;;  %v4745_v27 = vld [vmem:[#allocation6 + $0x108] ss:$16 sps:$4 sm:$0xff]  }
 0x684   :  { %3593 = vpow2.f32 %v3238_v30  ;;  %v4752_v30 = vld [vmem:[#allocation6 + $0x12c] ss:$16 sps:$4 sm:$0xff]   ;;  %v4756_v31 = vld [vmem:[#allocation6 + $0x120] ss:$16 sps:$4 sm:$0xff]   ;;  %v4758_v49 = vld [vmem:[#allocation6 + $0x128] ss:$16 sps:$4 sm:$0xff]  }
 0x685   :  { %3595 = vpow2.f32 %v3239_v16  ;;  %v4762_v16 = vld [vmem:[#allocation6 + $0x144] ss:$16 sps:$4 sm:$0xff]  }
 0x686   :  { %3597 = vpow2.f32 %v3240_v17  ;;  %v4764_v17 = vld [vmem:[#allocation6 + $0x14c] ss:$16 sps:$4 sm:$0xff]  }
 0x687   :  { %3599 = vtanh.f32 %v1759_v43 }
 0x68e   :  { %v3594_v60 = vpop.eup %3593 }
 0x68f   :  { %v3596_v56 = vpop.eup %3595  ;;  %v1764_v59 = vadd.f32 1.0, %v3594_v60  ;;  %v4770_v60 = vld [vmem:[#allocation6 + $0x140] ss:$16 sps:$4 sm:$0xff]  }
 0x690   :  { %v1770_v62 = vadd.f32 1.0, %v3596_v56  ;;  %v3598_v61 = vpop.eup %3597  ;;  %v4772_v56 = vld [vmem:[#allocation6 + $0x148] ss:$16 sps:$4 sm:$0xff]  }
 0x691   :  { %3601 = vrcp.f32 %v1764_v59  ;;  %v3600_v11 = vpop.eup %3599  ;;  %v1777_v63 = vadd.f32 1.0, %v3598_v61  ;;  %v4776_v59 = vld [vmem:[#allocation6 + $0x164] ss:$16 sps:$4 sm:$0xff]   ;;  %v4782_v61 = vld [vmem:[#allocation6 + $0x160] ss:$16 sps:$4 sm:$0xff]  }
 0x692   :  { %3603 = vrcp.f32 %v1770_v62  ;;  %v4778_v62 = vld [vmem:[#allocation6 + $0x16c] ss:$16 sps:$4 sm:$0xff]  }
 0x693   :  { %3605 = vrcp.f32 %v1777_v63  ;;  %v4796_v63 = vld [vmem:[#allocation6 + $0x188] ss:$16 sps:$4 sm:$0xff]  }
 0x69b   :  { %v3602_v0 = vpop.eup %3601 }
 0x69c   :  { %v3604_v52 = vpop.eup %3603  ;;  %v1781_v46 = vmul.f32 %v3602_v0, %v3600_v11  ;;  %v4784_v11 = vld [vmem:[#allocation6 + $0x168] ss:$16 sps:$4 sm:$0xff]   ;;  %v4788_v0 = vld [vmem:[#allocation6 + $0x184] ss:$16 sps:$4 sm:$0xff]  }
 0x69d   :  { %v1780_v2 = vmul.f32 %v3604_v52, %v4618_v3  ;;  %v3606_v39 = vpop.eup %3605  ;;  %v4790_v52 = vld [vmem:[#allocation6 + $0x18c] ss:$16 sps:$4 sm:$0xff]  }
 0x69f   :  { %v4691_v38 = vadd.f32 %v1781_v46, %v1780_v2  ;;  %v4794_v46 = vld [vmem:[#allocation6 + $0x180] ss:$16 sps:$4 sm:$0xff]   ;;  %v4800_v2 = vld [vmem:[#allocation6 + $0x1a4] ss:$16 sps:$4 sm:$0xff]  }
 0x6a1   :  { %3607 = vtanh.f32 %v4691_v38 }
 0x6ab   :  { %v3608_v40 = vpop.eup %3607 }
 0x6ac   :  { %v1784_v41 = vmul.f32 %v3608_v40, %v3606_v39  ;;  %v4806_v39 = vld [vmem:[#allocation6 + $0x1a0] ss:$16 sps:$4 sm:$0xff]   ;;  %v4808_v40 = vld [vmem:[#allocation6 + $0x1a8] ss:$16 sps:$4 sm:$0xff]  }
 0x6ae   :  { %3241 = vst [vmem:[%s5139_s4 + $0x50] sm:$0xff] %v1784_v41  ;;  %v1792_v42 = vpack.c.bf16 %v1784_v41, %v1784_v41  ;;  %v4812_v41 = vld [vmem:[#allocation6 + $0x1c4] ss:$16 sps:$4 sm:$0xff]  }
 0x6b0   :  { %1826 = vmatmul.mubr.bf16.vlgmr.msra.gmra.mrb[56].mxu0 %v1792_v42  ;;  %1867 = vmatmul.mubr.bf16.vlgmr.msra.gmra.mrb[56].mxu1 %v1792_v42  ;;  %v4814_v42 = vld [vmem:[#allocation6 + $0x1cc] ss:$16 sps:$4 sm:$0xff]  }
 0x6b1   :  { %1912 = vmatpush1.bf16.msra.mxu0 %v4547_v7  ;;  %1953 = vmatpush1.bf16.msra.mxu1 %v4550_v9  ;;  %v4729_v7 = vld [vmem:[#allocation6 + $0x104] ss:$16 sps:$4 sm:$0xff]   ;;  %v4731_v9 = vld [vmem:[#allocation6 + $0x10c] ss:$16 sps:$4 sm:$0xff]  }
 0x6b2   :  { %1913 = vmatprep.subr.bf16.mxu0 %v4553_v13  ;;  %1954 = vmatprep.subr.bf16.mxu1 %v4556_v1 }
 0x6b3   :  { %1943 = vmatprep.mubr.bf16.mxu0 %v5202_v50  ;;  %1984 = vmatprep.mubr.bf16.mxu1 %v5202_v50 }
 0x6b5   :  { %1914 = vmatpush1.bf16.msra.mxu0 %v4561_v54  ;;  %1955 = vmatpush1.bf16.msra.mxu1 %v4564_v53  ;;  %v5216_v54 = vld [vmem:[#allocation24_spill] sm:$0xff] }
 0x6b6   :  { %1915 = vmatprep.subr.bf16.mxu0 %v4567_v55  ;;  %1956 = vmatprep.subr.bf16.mxu1 %v4570_v57  ;;  %v5217_v55 = vld [vmem:[#allocation25_spill] sm:$0xff] }
 0x6b9   :  { %1916 = vmatpush1.bf16.msra.mxu0 %v4573_v47  ;;  %1957 = vmatpush1.bf16.msra.mxu1 %v4576_v58 }
 0x6ba   :  { %1917 = vmatprep.subr.bf16.mxu0 %v4579_v18  ;;  %1958 = vmatprep.subr.bf16.mxu1 %v4582_v19  ;;  %v5218_v18 = vld [vmem:[#allocation26_spill] sm:$0xff] }
 0x6bd   :  { %1918 = vmatpush1.bf16.msra.mxu0 %v4585_v20  ;;  %1959 = vmatpush1.bf16.msra.mxu1 %v4588_v21  ;;  %v5219_v20 = vld [vmem:[#allocation27_spill] sm:$0xff] }
 0x6be   :  { %1919 = vmatprep.subr.bf16.mxu0 %v4591_v22  ;;  %1960 = vmatprep.subr.bf16.mxu1 %v4594_v23 }
 0x6c1   :  { %1920 = vmatpush1.bf16.msra.mxu0 %v4642_v14  ;;  %1961 = vmatpush1.bf16.msra.mxu1 %v4645_v15 }
 0x6c2   :  { %1921 = vmatprep.subr.bf16.mxu0 %v4648_v4  ;;  %1962 = vmatprep.subr.bf16.mxu1 %v4651_v6 }
 0x6c5   :  { %1922 = vmatpush1.bf16.msra.mxu0 %v4654_v8  ;;  %1963 = vmatpush1.bf16.msra.mxu1 %v4657_v10 }
 0x6c6   :  { %1923 = vmatprep.subr.bf16.mxu0 %v4660_v12  ;;  %1964 = vmatprep.subr.bf16.mxu1 %v4663_v5 }
 0x6c9   :  { %1924 = vmatpush1.bf16.msra.mxu0 %v4666_v32  ;;  %1965 = vmatpush1.bf16.msra.mxu1 %v4669_v33 }
 0x6ca   :  { %1925 = vmatprep.subr.bf16.mxu0 %v4672_v34  ;;  %1966 = vmatprep.subr.bf16.mxu1 %v4675_v35 }
 0x6cd   :  { %1926 = vmatpush1.bf16.msra.mxu0 %v4678_v36  ;;  %1967 = vmatpush1.bf16.msra.mxu1 %v4681_v37 }
 0x6ce   :  { %2188 = vmatprep.subr.bf16.mxu0 %v4729_v7  ;;  %2229 = vmatprep.subr.bf16.mxu1 %v4731_v9 }
 0x783   :  { %v1827_v13 = vpop.f32.mrb[56].mxu0  ;;  %v1868_v1 = vpop.f32.mrb[56].mxu1 }
 0x784   :  { %v1875_v53 = vadd.f32 %v1827_v13, %v5216_v54  ;;  %v1877_v57 = vadd.f32 %v1868_v1, %v5217_v55  ;;  %v1829_v47 = vpop.f32.mrb[57].mxu0  ;;  %v1870_v58 = vpop.f32.mrb[57].mxu1  ;;  %v4818_v13 = vld [vmem:[#allocation6 + $0x1c0] ss:$16 sps:$4 sm:$0xff]   ;;  %v4820_v1 = vld [vmem:[#allocation6 + $0x1c8] ss:$16 sps:$4 sm:$0xff]  }
 0x785   :  { %v1876_v19 = vadd.f32 %v1829_v47, %v5218_v18  ;;  %v1878_v21 = vadd.f32 %v1870_v58, %v5219_v20  ;;  %v1831_v22 = vpop.f32.mrb[58].mxu0  ;;  %v1872_v23 = vpop.f32.mrb[58].mxu1  ;;  %v4824_v54 = vld [vmem:[#allocation6 + $0x1e4] ss:$16 sps:$4 sm:$0xff]   ;;  %v4830_v55 = vld [vmem:[#allocation6 + $0x1e0] ss:$16 sps:$4 sm:$0xff]  }
 0x786   :  { %v3242_v3 = vmul.f32 -1.442695, %v1875_v53  ;;  %v1832_v14 = vpop.f32.mrb[59].mxu0  ;;  %v1873_v15 = vpop.f32.mrb[59].mxu1  ;;  %v4826_v53 = vld [vmem:[#allocation6 + $0x1ec] ss:$16 sps:$4 sm:$0xff]  }
 0x787   :  { %v3243_v4 = vmul.f32 -1.442695, %v1876_v19  ;;  %v3244_v6 = vmul.f32 -1.442695, %v1878_v21  ;;  %v5220_v18 = vld [vmem:[#allocation28_spill] sm:$0xff]  ;;  %v5221_v20 = vld [vmem:[#allocation29_spill] sm:$0xff] }
 0x788   :  { %3609 = vpow2.f32 %v3242_v3  ;;  %v5222_v3 = vld [vmem:[#allocation30_spill] sm:$0xff]  ;;  %v5223_v15 = vld [vmem:[#allocation31_spill] sm:$0xff] }
 0x789   :  { %3611 = vpow2.f32 %v3243_v4 }
 0x78a   :  { %3613 = vpow2.f32 %v3244_v6 }
 0x78b   :  { %3615 = vtanh.f32 %v1877_v57  ;;  %v4832_v57 = vld [vmem:[#allocation6 + $0x1e8] ss:$16 sps:$4 sm:$0xff]  }
 0x792   :  { %v3610_v8 = vpop.eup %3609 }
 0x793   :  { %v3612_v10 = vpop.eup %3611  ;;  %v1882_v12 = vadd.f32 1.0, %v3610_v8 }
 0x794   :  { %v1888_v5 = vadd.f32 1.0, %v3612_v10  ;;  %v3614_v32 = vpop.eup %3613 }
 0x795   :  { %3617 = vrcp.f32 %v1882_v12  ;;  %v3616_v33 = vpop.eup %3615  ;;  %v1895_v37 = vadd.f32 1.0, %v3614_v32 }
 0x796   :  { %3619 = vrcp.f32 %v1888_v5 }
 0x797   :  { %3621 = vrcp.f32 %v1895_v37 }
 0x79f   :  { %v3618_v34 = vpop.eup %3617 }
 0x7a0   :  { %v3620_v35 = vpop.eup %3619  ;;  %v1899_v36 = vmul.f32 %v3618_v34, %v3616_v33 }
 0x7a1   :  { %v1898_v43 = vmul.f32 %v3620_v35, %v4691_v38  ;;  %v3622_v44 = vpop.eup %3621  ;;  %v4802_v38 = vld [vmem:[#allocation6 + $0x1ac] ss:$16 sps:$4 sm:$0xff]  }
 0x7a3   :  { %v4740_v24 = vadd.f32 %v1899_v36, %v1898_v43 }
 0x7a5   :  { %3623 = vtanh.f32 %v4740_v24 }
 0x7af   :  { %v3624_v25 = vpop.eup %3623 }
 0x7b0   :  { %v1902_v45 = vmul.f32 %v3624_v25, %v3622_v44 }
 0x7b2   :  { %3245 = vst [vmem:[%s5139_s4 + $0x60] sm:$0xff] %v1902_v45  ;;  %v1910_v28 = vpack.c.bf16 %v1902_v45, %v1902_v45 }
 0x7b4   :  { %1944 = vmatmul.mubr.bf16.vlgmr.msra.gmra.mrb[60].mxu0 %v1910_v28  ;;  %1985 = vmatmul.mubr.bf16.vlgmr.msra.gmra.mrb[60].mxu1 %v1910_v28 }
 0x7b5   :  { %2189 = vmatpush1.bf16.msra.mxu0 %v4743_v26  ;;  %2230 = vmatpush1.bf16.msra.mxu1 %v4745_v27 }
 0x7b6   :  { %2190 = vmatprep.subr.bf16.mxu0 %v4750_v29  ;;  %2231 = vmatprep.subr.bf16.mxu1 %v4752_v30 }
 0x7b7   :  { %2220 = vmatprep.mubr.bf16.mxu0 %v5202_v50  ;;  %2261 = vmatprep.mubr.bf16.mxu1 %v5202_v50 }
 0x7b9   :  { %2191 = vmatpush1.bf16.msra.mxu0 %v4756_v31  ;;  %2232 = vmatpush1.bf16.msra.mxu1 %v4758_v49 }
 0x7ba   :  { %2192 = vmatprep.subr.bf16.mxu0 %v4762_v16  ;;  %2233 = vmatprep.subr.bf16.mxu1 %v4764_v17 }
 0x7bd   :  { %2193 = vmatpush1.bf16.msra.mxu0 %v4770_v60  ;;  %2234 = vmatpush1.bf16.msra.mxu1 %v4772_v56 }
 0x7be   :  { %2194 = vmatprep.subr.bf16.mxu0 %v4776_v59  ;;  %2235 = vmatprep.subr.bf16.mxu1 %v4778_v62 }
 0x7c1   :  { %2195 = vmatpush1.bf16.msra.mxu0 %v4782_v61  ;;  %2236 = vmatpush1.bf16.msra.mxu1 %v4784_v11 }
 0x7c2   :  { %2196 = vmatprep.subr.bf16.mxu0 %v4788_v0  ;;  %2237 = vmatprep.subr.bf16.mxu1 %v4790_v52 }
 0x7c5   :  { %2197 = vmatpush1.bf16.msra.mxu0 %v4794_v46  ;;  %2238 = vmatpush1.bf16.msra.mxu1 %v4796_v63 }
 0x7c6   :  { %2198 = vmatprep.subr.bf16.mxu0 %v4800_v2  ;;  %2239 = vmatprep.subr.bf16.mxu1 %v4802_v38 }
 0x7c9   :  { %2199 = vmatpush1.bf16.msra.mxu0 %v4806_v39  ;;  %2240 = vmatpush1.bf16.msra.mxu1 %v4808_v40 }
 0x7ca   :  { %2200 = vmatprep.subr.bf16.mxu0 %v4812_v41  ;;  %2241 = vmatprep.subr.bf16.mxu1 %v4814_v42 }
 0x7cd   :  { %2201 = vmatpush1.bf16.msra.mxu0 %v4818_v13  ;;  %2242 = vmatpush1.bf16.msra.mxu1 %v4820_v1 }
 0x7ce   :  { %2202 = vmatprep.subr.bf16.mxu0 %v4824_v54  ;;  %2243 = vmatprep.subr.bf16.mxu1 %v4826_v53 }
 0x7d1   :  { %2203 = vmatpush1.bf16.msra.mxu0 %v4830_v55  ;;  %2244 = vmatpush1.bf16.msra.mxu1 %v4832_v57 }
 0x7d2   :  { %2305 = vmatprep.subr.bf16.mxu0 %v4729_v7  ;;  %2346 = vmatprep.subr.bf16.mxu1 %v4731_v9 }
 0x7d4   :  { %2221 = vmatmul.mubr.bf16.vlgmr.msra.gmra.mrb[64].mxu0 %v5202_v50  ;;  %2262 = vmatmul.mubr.bf16.vlgmr.msra.gmra.mrb[64].mxu1 %v5202_v50 }
 0x7d5   :  { %2306 = vmatpush1.bf16.msra.mxu0 %v4743_v26  ;;  %2347 = vmatpush1.bf16.msra.mxu1 %v4745_v27 }
 0x7d6   :  { %2307 = vmatprep.subr.bf16.mxu0 %v4750_v29  ;;  %2348 = vmatprep.subr.bf16.mxu1 %v4752_v30 }
 0x7d7   :  { %2337 = vmatprep.mubr.bf16.mxu0 %v5202_v50  ;;  %2378 = vmatprep.mubr.bf16.mxu1 %v5202_v50 }
 0x7d9   :  { %2308 = vmatpush1.bf16.msra.mxu0 %v4756_v31  ;;  %2349 = vmatpush1.bf16.msra.mxu1 %v4758_v49 }
 0x7da   :  { %2309 = vmatprep.subr.bf16.mxu0 %v4762_v16  ;;  %2350 = vmatprep.subr.bf16.mxu1 %v4764_v17 }
 0x7dd   :  { %2310 = vmatpush1.bf16.msra.mxu0 %v4770_v60  ;;  %2351 = vmatpush1.bf16.msra.mxu1 %v4772_v56 }
 0x7de   :  { %2311 = vmatprep.subr.bf16.mxu0 %v4776_v59  ;;  %2352 = vmatprep.subr.bf16.mxu1 %v4778_v62 }
 0x7e1   :  { %2312 = vmatpush1.bf16.msra.mxu0 %v4782_v61  ;;  %2353 = vmatpush1.bf16.msra.mxu1 %v4784_v11 }
 0x7e2   :  { %2313 = vmatprep.subr.bf16.mxu0 %v4788_v0  ;;  %2354 = vmatprep.subr.bf16.mxu1 %v4790_v52 }
 0x7e5   :  { %2314 = vmatpush1.bf16.msra.mxu0 %v4794_v46  ;;  %2355 = vmatpush1.bf16.msra.mxu1 %v4796_v63 }
 0x7e6   :  { %2315 = vmatprep.subr.bf16.mxu0 %v4800_v2  ;;  %2356 = vmatprep.subr.bf16.mxu1 %v4802_v38 }
 0x7e9   :  { %2316 = vmatpush1.bf16.msra.mxu0 %v4806_v39  ;;  %2357 = vmatpush1.bf16.msra.mxu1 %v4808_v40 }
 0x7ea   :  { %2317 = vmatprep.subr.bf16.mxu0 %v4812_v41  ;;  %2358 = vmatprep.subr.bf16.mxu1 %v4814_v42 }
 0x7ed   :  { %2318 = vmatpush1.bf16.msra.mxu0 %v4818_v13  ;;  %2359 = vmatpush1.bf16.msra.mxu1 %v4820_v1 }
 0x7ee   :  { %2319 = vmatprep.subr.bf16.mxu0 %v4824_v54  ;;  %2360 = vmatprep.subr.bf16.mxu1 %v4826_v53 }
 0x7f1   :  { %2320 = vmatpush1.bf16.msra.mxu0 %v4830_v55  ;;  %2361 = vmatpush1.bf16.msra.mxu1 %v4832_v57 }
 0x7f2   :  { %2422 = vmatprep.subr.bf16.mxu0 %v4729_v7  ;;  %2463 = vmatprep.subr.bf16.mxu1 %v4731_v9 }
 0x887   :  { %v1945_v47 = vpop.f32.mrb[60].mxu0  ;;  %v1986_v58 = vpop.f32.mrb[60].mxu1 }
 0x888   :  { %v1993_v19 = vadd.f32 %v1945_v47, %v5220_v18  ;;  %v1995_v21 = vadd.f32 %v1986_v58, %v5221_v20  ;;  %v1947_v22 = vpop.f32.mrb[61].mxu0  ;;  %v1988_v23 = vpop.f32.mrb[61].mxu1  ;;  %v748_v18 = vadd.f32 %v4381_v51, %v4295_v48 }
 0x889   :  { %v1994_v14 = vadd.f32 %v1947_v22, %v5222_v3  ;;  %v1996_v4 = vadd.f32 %v1988_v23, %v5223_v15  ;;  %v1949_v6 = vpop.f32.mrb[62].mxu0  ;;  %v1990_v8 = vpop.f32.mrb[62].mxu1 }
 0x88a   :  { %v3246_v10 = vmul.f32 -1.442695, %v1993_v19  ;;  %v1950_v12 = vpop.f32.mrb[63].mxu0  ;;  %v1991_v5 = vpop.f32.mrb[63].mxu1  ;;  %v5226_v8 = vld [vmem:[#allocation62_spill] sm:$0xff] }
 0x88b   :  { %v3247_v32 = vmul.f32 -1.442695, %v1994_v14  ;;  %v3248_v33 = vmul.f32 -1.442695, %v1996_v4  ;;  %v5225_v4 = vld [vmem:[#allocation61_spill] sm:$0xff] }
 0x88c   :  { %3625 = vpow2.f32 %v3246_v10 }
 0x88d   :  { %3627 = vpow2.f32 %v3247_v32 }
 0x88e   :  { %3629 = vpow2.f32 %v3248_v33 }
 0x88f   :  { %3631 = vtanh.f32 %v1995_v21  ;;  %v5224_v21 = vld [vmem:[#allocation60_spill] sm:$0xff] }
 0x896   :  { %v3626_v34 = vpop.eup %3625 }
 0x897   :  { %v3628_v35 = vpop.eup %3627  ;;  %v2000_v36 = vadd.f32 1.0, %v3626_v34 }
 0x898   :  { %v2006_v37 = vadd.f32 1.0, %v3628_v35  ;;  %v3630_v43 = vpop.eup %3629 }
 0x899   :  { %3633 = vrcp.f32 %v2000_v36  ;;  %v3632_v44 = vpop.eup %3631  ;;  %v2013_v47 = vadd.f32 1.0, %v3630_v43 }
 0x89a   :  { %3635 = vrcp.f32 %v2006_v37 }
 0x89b   :  { %3637 = vrcp.f32 %v2013_v47 }
 0x8a3   :  { %v3634_v25 = vpop.eup %3633 }
 0x8a4   :  { %v3636_v45 = vpop.eup %3635  ;;  %v2017_v28 = vmul.f32 %v3634_v25, %v3632_v44 }
 0x8a5   :  { %v2016_v58 = vmul.f32 %v3636_v45, %v4740_v24  ;;  %v3638_v51 = vpop.eup %3637 }
 0x8a7   :  { %v2018_v19 = vadd.f32 %v2017_v28, %v2016_v58  ;;  %v2222_v20 = vpop.f32.mrb[64].mxu0  ;;  %v2263_v22 = vpop.f32.mrb[64].mxu1 }
 0x8a8   :  { %v2270_v23 = vadd.f32 %v2222_v20, %v748_v18  ;;  %v2272_v3 = vadd.f32 %v2263_v22, %v5224_v21  ;;  %v2224_v14 = vpop.f32.mrb[65].mxu0  ;;  %v2265_v15 = vpop.f32.mrb[65].mxu1 }
 0x8a9   :  { %3639 = vtanh.f32 %v2018_v19  ;;  %v2271_v6 = vadd.f32 %v2224_v14, %v5225_v4  ;;  %v2273_v10 = vadd.f32 %v2265_v15, %v5226_v8  ;;  %v2226_v12 = vpop.f32.mrb[66].mxu0  ;;  %v2267_v5 = vpop.f32.mrb[66].mxu1 }
 0x8aa   :  { %v3282_v24 = vmul.f32 -1.442695, %v2270_v23  ;;  %v2227_v32 = vpop.f32.mrb[67].mxu0  ;;  %v2268_v33 = vpop.f32.mrb[67].mxu1 }
 0x8ab   :  { %v3283_v48 = vmul.f32 -1.442695, %v2271_v6  ;;  %v3284_v35 = vmul.f32 -1.442695, %v2273_v10  ;;  %v5227_v6 = vld [vmem:[#allocation56_spill] sm:$0xff]  ;;  %v5228_v10 = vld [vmem:[#allocation57_spill] sm:$0xff] }
 0x8ac   :  { %3641 = vpow2.f32 %v3282_v24  ;;  %v5229_v32 = vld [vmem:[#allocation58_spill] sm:$0xff] }
 0x8ad   :  { %3643 = vpow2.f32 %v3283_v48  ;;  %v5230_v48 = vld [vmem:[#allocation59_spill] sm:$0xff] }
 0x8ae   :  { %3645 = vpow2.f32 %v3284_v35 }
 0x8af   :  { %3647 = vtanh.f32 %v2272_v3 }
 0x8b3   :  { %v3640_v34 = vpop.eup %3639 }
 0x8b4   :  { %v2020_v36 = vmul.f32 %v3640_v34, %v3638_v51 }
 0x8b6   :  { %v3642_v37 = vpop.eup %3641  ;;  %3249 = vst [vmem:[%s5139_s4 + $0x70] sm:$0xff] %v2020_v36 }
 0x8b7   :  { %v3644_v43 = vpop.eup %3643  ;;  %v2277_v44 = vadd.f32 1.0, %v3642_v37 }
 0x8b8   :  { %v2283_v25 = vadd.f32 1.0, %v3644_v43  ;;  %v3646_v45 = vpop.eup %3645 }
 0x8b9   :  { %3649 = vrcp.f32 %v2277_v44  ;;  %v3648_v28 = vpop.eup %3647  ;;  %v2290_v19 = vadd.f32 1.0, %v3646_v45 }
 0x8ba   :  { %3651 = vrcp.f32 %v2283_v25 }
 0x8bb   :  { %3653 = vrcp.f32 %v2290_v19 }
 0x8c3   :  { %v3650_v47 = vpop.eup %3649 }
 0x8c4   :  { %v3652_v58 = vpop.eup %3651  ;;  %v2294_v18 = vmul.f32 %v3650_v47, %v3648_v28 }
 0x8c5   :  { %v2293_v20 = vmul.f32 0.0, %v3652_v58  ;;  %v3654_v23 = vpop.eup %3653 }
 0x8c7   :  { %v4889_v22 = vadd.f32 %v2294_v18, %v2293_v20 }
 0x8c9   :  { %3655 = vtanh.f32 %v4889_v22 }
 0x8d3   :  { %v3656_v21 = vpop.eup %3655 }
 0x8d4   :  { %v2297_v14 = vmul.f32 %v3656_v21, %v3654_v23 }
 0x8d6   :  { %3285 = vst [vmem:[%s5139_s4 + $0x78] sm:$0xff] %v2297_v14  ;;  %v2304_v3 = vpack.c.bf16 %v2297_v14, %v2297_v14 }
 0x8d8   :  { %2338 = vmatmul.mubr.bf16.vlgmr.msra.gmra.mrb[68].mxu0 %v2304_v3  ;;  %2379 = vmatmul.mubr.bf16.vlgmr.msra.gmra.mrb[68].mxu1 %v2304_v3 }
 0x8d9   :  { %2423 = vmatpush1.bf16.msra.mxu0 %v4743_v26  ;;  %2464 = vmatpush1.bf16.msra.mxu1 %v4745_v27 }
 0x8da   :  { %2424 = vmatprep.subr.bf16.mxu0 %v4750_v29  ;;  %2465 = vmatprep.subr.bf16.mxu1 %v4752_v30 }
 0x8db   :  { %2454 = vmatprep.mubr.bf16.mxu0 %v5202_v50  ;;  %2495 = vmatprep.mubr.bf16.mxu1 %v5202_v50 }
 0x8dd   :  { %2425 = vmatpush1.bf16.msra.mxu0 %v4756_v31  ;;  %2466 = vmatpush1.bf16.msra.mxu1 %v4758_v49 }
 0x8de   :  { %2426 = vmatprep.subr.bf16.mxu0 %v4762_v16  ;;  %2467 = vmatprep.subr.bf16.mxu1 %v4764_v17 }
 0x8e1   :  { %2427 = vmatpush1.bf16.msra.mxu0 %v4770_v60  ;;  %2468 = vmatpush1.bf16.msra.mxu1 %v4772_v56 }
 0x8e2   :  { %2428 = vmatprep.subr.bf16.mxu0 %v4776_v59  ;;  %2469 = vmatprep.subr.bf16.mxu1 %v4778_v62 }
 0x8e5   :  { %2429 = vmatpush1.bf16.msra.mxu0 %v4782_v61  ;;  %2470 = vmatpush1.bf16.msra.mxu1 %v4784_v11 }
 0x8e6   :  { %2430 = vmatprep.subr.bf16.mxu0 %v4788_v0  ;;  %2471 = vmatprep.subr.bf16.mxu1 %v4790_v52 }
 0x8e9   :  { %2431 = vmatpush1.bf16.msra.mxu0 %v4794_v46  ;;  %2472 = vmatpush1.bf16.msra.mxu1 %v4796_v63 }
 0x8ea   :  { %2432 = vmatprep.subr.bf16.mxu0 %v4800_v2  ;;  %2473 = vmatprep.subr.bf16.mxu1 %v4802_v38 }
 0x8ed   :  { %2433 = vmatpush1.bf16.msra.mxu0 %v4806_v39  ;;  %2474 = vmatpush1.bf16.msra.mxu1 %v4808_v40 }
 0x8ee   :  { %2434 = vmatprep.subr.bf16.mxu0 %v4812_v41  ;;  %2475 = vmatprep.subr.bf16.mxu1 %v4814_v42 }
 0x8f1   :  { %2435 = vmatpush1.bf16.msra.mxu0 %v4818_v13  ;;  %2476 = vmatpush1.bf16.msra.mxu1 %v4820_v1 }
 0x8f2   :  { %2436 = vmatprep.subr.bf16.mxu0 %v4824_v54  ;;  %2477 = vmatprep.subr.bf16.mxu1 %v4826_v53 }
 0x8f5   :  { %2437 = vmatpush1.bf16.msra.mxu0 %v4830_v55  ;;  %2478 = vmatpush1.bf16.msra.mxu1 %v4832_v57 }
 0x8f6   :  { %2539 = vmatprep.subr.bf16.mxu0 %v4729_v7  ;;  %2580 = vmatprep.subr.bf16.mxu1 %v4731_v9 }
 0x9ab   :  { %v2339_v15 = vpop.f32.mrb[68].mxu0  ;;  %v2380_v4 = vpop.f32.mrb[68].mxu1 }
 0x9ac   :  { %v2387_v8 = vadd.f32 %v2339_v15, %v5227_v6  ;;  %v2389_v12 = vadd.f32 %v2380_v4, %v5228_v10  ;;  %v2341_v5 = vpop.f32.mrb[69].mxu0  ;;  %v2382_v24 = vpop.f32.mrb[69].mxu1 }
 0x9ad   :  { %v2388_v33 = vadd.f32 %v2341_v5, %v5229_v32  ;;  %v2390_v51 = vadd.f32 %v2382_v24, %v5230_v48  ;;  %v2343_v34 = vpop.f32.mrb[70].mxu0  ;;  %v2384_v35 = vpop.f32.mrb[70].mxu1  ;;  %v5231_v5 = vld [vmem:[#allocation52_spill] sm:$0xff]  ;;  %v5232_v32 = vld [vmem:[#allocation53_spill] sm:$0xff] }
 0x9ae   :  { %v3286_v36 = vmul.f32 -1.442695, %v2387_v8  ;;  %v2344_v37 = vpop.f32.mrb[71].mxu0  ;;  %v2385_v43 = vpop.f32.mrb[71].mxu1  ;;  %v5233_v34 = vld [vmem:[#allocation54_spill] sm:$0xff] }
 0x9af   :  { %v3287_v44 = vmul.f32 -1.442695, %v2388_v33  ;;  %v3288_v25 = vmul.f32 -1.442695, %v2390_v51 }
 0x9b0   :  { %3657 = vpow2.f32 %v3286_v36  ;;  %v5234_v36 = vld [vmem:[#allocation55_spill] sm:$0xff] }
 0x9b1   :  { %3659 = vpow2.f32 %v3287_v44 }
 0x9b2   :  { %3661 = vpow2.f32 %v3288_v25 }
 0x9b3   :  { %3663 = vtanh.f32 %v2389_v12 }
 0x9ba   :  { %v3658_v45 = vpop.eup %3657 }
 0x9bb   :  { %v3660_v28 = vpop.eup %3659  ;;  %v2394_v47 = vadd.f32 1.0, %v3658_v45 }
 0x9bc   :  { %v2400_v58 = vadd.f32 1.0, %v3660_v28  ;;  %v3662_v18 = vpop.eup %3661 }
 0x9bd   :  { %3665 = vrcp.f32 %v2394_v47  ;;  %v3664_v19 = vpop.eup %3663  ;;  %v2407_v14 = vadd.f32 1.0, %v3662_v18 }
 0x9be   :  { %3667 = vrcp.f32 %v2400_v58 }
 0x9bf   :  { %3669 = vrcp.f32 %v2407_v14 }
 0x9c7   :  { %v3666_v20 = vpop.eup %3665 }
 0x9c8   :  { %v3668_v23 = vpop.eup %3667  ;;  %v2411_v21 = vmul.f32 %v3666_v20, %v3664_v19 }
 0x9c9   :  { %v2410_v3 = vmul.f32 %v3668_v23, %v4889_v22  ;;  %v3670_v4 = vpop.eup %3669 }
 0x9cb   :  { %v4934_v15 = vadd.f32 %v2411_v21, %v2410_v3 }
 0x9cd   :  { %3671 = vtanh.f32 %v4934_v15 }
 0x9d7   :  { %v3672_v6 = vpop.eup %3671 }
 0x9d8   :  { %v2414_v8 = vmul.f32 %v3672_v6, %v3670_v4 }
 0x9da   :  { %3289 = vst [vmem:[%s5139_s4 + $0x68] sm:$0xff] %v2414_v8  ;;  %v2421_v10 = vpack.c.bf16 %v2414_v8, %v2414_v8 }
 0x9dc   :  { %2455 = vmatmul.mubr.bf16.vlgmr.msra.gmra.mrb[72].mxu0 %v2421_v10  ;;  %2496 = vmatmul.mubr.bf16.vlgmr.msra.gmra.mrb[72].mxu1 %v2421_v10 }
 0x9dd   :  { %2540 = vmatpush1.bf16.msra.mxu0 %v4743_v26  ;;  %2581 = vmatpush1.bf16.msra.mxu1 %v4745_v27 }
 0x9de   :  { %2541 = vmatprep.subr.bf16.mxu0 %v4750_v29  ;;  %2582 = vmatprep.subr.bf16.mxu1 %v4752_v30 }
 0x9df   :  { %2571 = vmatprep.mubr.bf16.mxu0 %v5202_v50  ;;  %2612 = vmatprep.mubr.bf16.mxu1 %v5202_v50 }
 0x9e1   :  { %2542 = vmatpush1.bf16.msra.mxu0 %v4756_v31  ;;  %2583 = vmatpush1.bf16.msra.mxu1 %v4758_v49 }
 0x9e2   :  { %2543 = vmatprep.subr.bf16.mxu0 %v4762_v16  ;;  %2584 = vmatprep.subr.bf16.mxu1 %v4764_v17 }
 0x9e5   :  { %2544 = vmatpush1.bf16.msra.mxu0 %v4770_v60  ;;  %2585 = vmatpush1.bf16.msra.mxu1 %v4772_v56 }
 0x9e6   :  { %2545 = vmatprep.subr.bf16.mxu0 %v4776_v59  ;;  %2586 = vmatprep.subr.bf16.mxu1 %v4778_v62 }
 0x9e9   :  { %2546 = vmatpush1.bf16.msra.mxu0 %v4782_v61  ;;  %2587 = vmatpush1.bf16.msra.mxu1 %v4784_v11 }
 0x9ea   :  { %2547 = vmatprep.subr.bf16.mxu0 %v4788_v0  ;;  %2588 = vmatprep.subr.bf16.mxu1 %v4790_v52 }
 0x9ed   :  { %2548 = vmatpush1.bf16.msra.mxu0 %v4794_v46  ;;  %2589 = vmatpush1.bf16.msra.mxu1 %v4796_v63 }
 0x9ee   :  { %2549 = vmatprep.subr.bf16.mxu0 %v4800_v2  ;;  %2590 = vmatprep.subr.bf16.mxu1 %v4802_v38 }
 0x9f1   :  { %2550 = vmatpush1.bf16.msra.mxu0 %v4806_v39  ;;  %2591 = vmatpush1.bf16.msra.mxu1 %v4808_v40 }
 0x9f2   :  { %2551 = vmatprep.subr.bf16.mxu0 %v4812_v41  ;;  %2592 = vmatprep.subr.bf16.mxu1 %v4814_v42 }
 0x9f5   :  { %2552 = vmatpush1.bf16.msra.mxu0 %v4818_v13  ;;  %2593 = vmatpush1.bf16.msra.mxu1 %v4820_v1 }
 0x9f6   :  { %2553 = vmatprep.subr.bf16.mxu0 %v4824_v54  ;;  %2594 = vmatprep.subr.bf16.mxu1 %v4826_v53 }
 0x9f9   :  { %2554 = vmatpush1.bf16.msra.mxu0 %v4830_v55  ;;  %2595 = vmatpush1.bf16.msra.mxu1 %v4832_v57 }
 0x9fa   :  { %2656 = vmatprep.subr.bf16.mxu0 %v4729_v7  ;;  %2697 = vmatprep.subr.bf16.mxu1 %v4731_v9 }
 0xaaf   :  { %v2456_v22 = vpop.f32.mrb[72].mxu0  ;;  %v2497_v12 = vpop.f32.mrb[72].mxu1 }
 0xab0   :  { %v2504_v24 = vadd.f32 %v2456_v22, %v5231_v5  ;;  %v2506_v33 = vadd.f32 %v2497_v12, %v5232_v32  ;;  %v2458_v48 = vpop.f32.mrb[73].mxu0  ;;  %v2499_v51 = vpop.f32.mrb[73].mxu1 }
 0xab1   :  { %v2505_v35 = vadd.f32 %v2458_v48, %v5233_v34  ;;  %v2507_v37 = vadd.f32 %v2499_v51, %v5234_v36  ;;  %v2460_v43 = vpop.f32.mrb[74].mxu0  ;;  %v2501_v44 = vpop.f32.mrb[74].mxu1  ;;  %v5235_v48 = vld [vmem:[#allocation48_spill] sm:$0xff]  ;;  %v5236_v34 = vld [vmem:[#allocation49_spill] sm:$0xff] }
 0xab2   :  { %v3290_v25 = vmul.f32 -1.442695, %v2504_v24  ;;  %v2461_v45 = vpop.f32.mrb[75].mxu0  ;;  %v2502_v28 = vpop.f32.mrb[75].mxu1  ;;  %v5237_v43 = vld [vmem:[#allocation50_spill] sm:$0xff] }
 0xab3   :  { %v3291_v47 = vmul.f32 -1.442695, %v2505_v35  ;;  %v3292_v58 = vmul.f32 -1.442695, %v2507_v37 }
 0xab4   :  { %3673 = vpow2.f32 %v3290_v25  ;;  %v5238_v25 = vld [vmem:[#allocation51_spill] sm:$0xff] }
 0xab5   :  { %3675 = vpow2.f32 %v3291_v47 }
 0xab6   :  { %3677 = vpow2.f32 %v3292_v58 }
 0xab7   :  { %3679 = vtanh.f32 %v2506_v33 }
 0xabe   :  { %v3674_v18 = vpop.eup %3673 }
 0xabf   :  { %v3676_v19 = vpop.eup %3675  ;;  %v2511_v20 = vadd.f32 1.0, %v3674_v18 }
 0xac0   :  { %v2517_v23 = vadd.f32 1.0, %v3676_v19  ;;  %v3678_v21 = vpop.eup %3677 }
 0xac1   :  { %3681 = vrcp.f32 %v2511_v20  ;;  %v3680_v14 = vpop.eup %3679  ;;  %v2524_v8 = vadd.f32 1.0, %v3678_v21 }
 0xac2   :  { %3683 = vrcp.f32 %v2517_v23 }
 0xac3   :  { %3685 = vrcp.f32 %v2524_v8 }
 0xacb   :  { %v3682_v3 = vpop.eup %3681 }
 0xacc   :  { %v3684_v4 = vpop.eup %3683  ;;  %v2528_v6 = vmul.f32 %v3682_v3, %v3680_v14 }
 0xacd   :  { %v2527_v10 = vmul.f32 %v3684_v4, %v4934_v15  ;;  %v3686_v12 = vpop.eup %3685 }
 0xacf   :  { %v4979_v22 = vadd.f32 %v2528_v6, %v2527_v10 }
 0xad1   :  { %3687 = vtanh.f32 %v4979_v22 }
 0xadb   :  { %v3688_v5 = vpop.eup %3687 }
 0xadc   :  { %v2531_v24 = vmul.f32 %v3688_v5, %v3686_v12 }
 0xade   :  { %3293 = vst [vmem:[%s5139_s4 + $0x58] sm:$0xff] %v2531_v24  ;;  %v2538_v32 = vpack.c.bf16 %v2531_v24, %v2531_v24 }
 0xae0   :  { %2572 = vmatmul.mubr.bf16.vlgmr.msra.gmra.mrb[76].mxu0 %v2538_v32  ;;  %2613 = vmatmul.mubr.bf16.vlgmr.msra.gmra.mrb[76].mxu1 %v2538_v32 }
 0xae1   :  { %2657 = vmatpush1.bf16.msra.mxu0 %v4743_v26  ;;  %2698 = vmatpush1.bf16.msra.mxu1 %v4745_v27 }
 0xae2   :  { %2658 = vmatprep.subr.bf16.mxu0 %v4750_v29  ;;  %2699 = vmatprep.subr.bf16.mxu1 %v4752_v30 }
 0xae3   :  { %2688 = vmatprep.mubr.bf16.mxu0 %v5202_v50  ;;  %2729 = vmatprep.mubr.bf16.mxu1 %v5202_v50 }
 0xae5   :  { %2659 = vmatpush1.bf16.msra.mxu0 %v4756_v31  ;;  %2700 = vmatpush1.bf16.msra.mxu1 %v4758_v49 }
 0xae6   :  { %2660 = vmatprep.subr.bf16.mxu0 %v4762_v16  ;;  %2701 = vmatprep.subr.bf16.mxu1 %v4764_v17 }
 0xae9   :  { %2661 = vmatpush1.bf16.msra.mxu0 %v4770_v60  ;;  %2702 = vmatpush1.bf16.msra.mxu1 %v4772_v56 }
 0xaea   :  { %2662 = vmatprep.subr.bf16.mxu0 %v4776_v59  ;;  %2703 = vmatprep.subr.bf16.mxu1 %v4778_v62 }
 0xaed   :  { %2663 = vmatpush1.bf16.msra.mxu0 %v4782_v61  ;;  %2704 = vmatpush1.bf16.msra.mxu1 %v4784_v11 }
 0xaee   :  { %2664 = vmatprep.subr.bf16.mxu0 %v4788_v0  ;;  %2705 = vmatprep.subr.bf16.mxu1 %v4790_v52 }
 0xaf1   :  { %2665 = vmatpush1.bf16.msra.mxu0 %v4794_v46  ;;  %2706 = vmatpush1.bf16.msra.mxu1 %v4796_v63 }
 0xaf2   :  { %2666 = vmatprep.subr.bf16.mxu0 %v4800_v2  ;;  %2707 = vmatprep.subr.bf16.mxu1 %v4802_v38 }
 0xaf5   :  { %2667 = vmatpush1.bf16.msra.mxu0 %v4806_v39  ;;  %2708 = vmatpush1.bf16.msra.mxu1 %v4808_v40 }
 0xaf6   :  { %2668 = vmatprep.subr.bf16.mxu0 %v4812_v41  ;;  %2709 = vmatprep.subr.bf16.mxu1 %v4814_v42 }
 0xaf9   :  { %2669 = vmatpush1.bf16.msra.mxu0 %v4818_v13  ;;  %2710 = vmatpush1.bf16.msra.mxu1 %v4820_v1 }
 0xafa   :  { %2670 = vmatprep.subr.bf16.mxu0 %v4824_v54  ;;  %2711 = vmatprep.subr.bf16.mxu1 %v4826_v53 }
 0xafd   :  { %2671 = vmatpush1.bf16.msra.mxu0 %v4830_v55  ;;  %2712 = vmatpush1.bf16.msra.mxu1 %v4832_v57 }
 0xafe   :  { %2773 = vmatprep.subr.bf16.mxu0 %v4729_v7  ;;  %2814 = vmatprep.subr.bf16.mxu1 %v4731_v9 }
 0xbb3   :  { %v2573_v15 = vpop.f32.mrb[76].mxu0  ;;  %v2614_v33 = vpop.f32.mrb[76].mxu1 }
 0xbb4   :  { %v2621_v51 = vadd.f32 %v2573_v15, %v5235_v48  ;;  %v2623_v35 = vadd.f32 %v2614_v33, %v5236_v34  ;;  %v2575_v36 = vpop.f32.mrb[77].mxu0  ;;  %v2616_v37 = vpop.f32.mrb[77].mxu1 }
 0xbb5   :  { %v2622_v44 = vadd.f32 %v2575_v36, %v5237_v43  ;;  %v2624_v45 = vadd.f32 %v2616_v37, %v5238_v25  ;;  %v2577_v28 = vpop.f32.mrb[78].mxu0  ;;  %v2618_v47 = vpop.f32.mrb[78].mxu1  ;;  %v5239_v36 = vld [vmem:[#allocation44_spill] sm:$0xff]  ;;  %v5240_v43 = vld [vmem:[#allocation45_spill] sm:$0xff] }
 0xbb6   :  { %v3294_v58 = vmul.f32 -1.442695, %v2621_v51  ;;  %v2578_v18 = vpop.f32.mrb[79].mxu0  ;;  %v2619_v19 = vpop.f32.mrb[79].mxu1  ;;  %v5241_v28 = vld [vmem:[#allocation46_spill] sm:$0xff] }
 0xbb7   :  { %v3295_v20 = vmul.f32 -1.442695, %v2622_v44  ;;  %v3296_v23 = vmul.f32 -1.442695, %v2624_v45 }
 0xbb8   :  { %3689 = vpow2.f32 %v3294_v58  ;;  %v5242_v58 = vld [vmem:[#allocation47_spill] sm:$0xff] }
 0xbb9   :  { %3691 = vpow2.f32 %v3295_v20 }
 0xbba   :  { %3693 = vpow2.f32 %v3296_v23 }
 0xbbb   :  { %3695 = vtanh.f32 %v2623_v35 }
 0xbc2   :  { %v3690_v21 = vpop.eup %3689 }
 0xbc3   :  { %v3692_v14 = vpop.eup %3691  ;;  %v2628_v3 = vadd.f32 1.0, %v3690_v21 }
 0xbc4   :  { %v2634_v4 = vadd.f32 1.0, %v3692_v14  ;;  %v3694_v6 = vpop.eup %3693 }
 0xbc5   :  { %3697 = vrcp.f32 %v2628_v3  ;;  %v3696_v8 = vpop.eup %3695  ;;  %v2641_v24 = vadd.f32 1.0, %v3694_v6 }
 0xbc6   :  { %3699 = vrcp.f32 %v2634_v4 }
 0xbc7   :  { %3701 = vrcp.f32 %v2641_v24 }
 0xbcf   :  { %v3698_v10 = vpop.eup %3697 }
 0xbd0   :  { %v3700_v12 = vpop.eup %3699  ;;  %v2645_v5 = vmul.f32 %v3698_v10, %v3696_v8 }
 0xbd1   :  { %v2644_v32 = vmul.f32 %v3700_v12, %v4979_v22  ;;  %v3702_v33 = vpop.eup %3701 }
 0xbd3   :  { %v5024_v15 = vadd.f32 %v2645_v5, %v2644_v32 }
 0xbd5   :  { %3703 = vtanh.f32 %v5024_v15 }
 0xbdf   :  { %v3704_v48 = vpop.eup %3703 }
 0xbe0   :  { %v2648_v51 = vmul.f32 %v3704_v48, %v3702_v33 }
 0xbe2   :  { %3297 = vst [vmem:[%s5139_s4 + $0x48] sm:$0xff] %v2648_v51  ;;  %v2655_v34 = vpack.c.bf16 %v2648_v51, %v2648_v51 }
 0xbe4   :  { %2689 = vmatmul.mubr.bf16.vlgmr.msra.gmra.mrb[80].mxu0 %v2655_v34  ;;  %2730 = vmatmul.mubr.bf16.vlgmr.msra.gmra.mrb[80].mxu1 %v2655_v34 }
 0xbe5   :  { %2774 = vmatpush1.bf16.msra.mxu0 %v4743_v26  ;;  %2815 = vmatpush1.bf16.msra.mxu1 %v4745_v27 }
 0xbe6   :  { %2775 = vmatprep.subr.bf16.mxu0 %v4750_v29  ;;  %2816 = vmatprep.subr.bf16.mxu1 %v4752_v30 }
 0xbe7   :  { %2805 = vmatprep.mubr.bf16.mxu0 %v5202_v50  ;;  %2846 = vmatprep.mubr.bf16.mxu1 %v5202_v50 }
 0xbe9   :  { %2776 = vmatpush1.bf16.msra.mxu0 %v4756_v31  ;;  %2817 = vmatpush1.bf16.msra.mxu1 %v4758_v49 }
 0xbea   :  { %2777 = vmatprep.subr.bf16.mxu0 %v4762_v16  ;;  %2818 = vmatprep.subr.bf16.mxu1 %v4764_v17 }
 0xbed   :  { %2778 = vmatpush1.bf16.msra.mxu0 %v4770_v60  ;;  %2819 = vmatpush1.bf16.msra.mxu1 %v4772_v56 }
 0xbee   :  { %2779 = vmatprep.subr.bf16.mxu0 %v4776_v59  ;;  %2820 = vmatprep.subr.bf16.mxu1 %v4778_v62 }
 0xbf1   :  { %2780 = vmatpush1.bf16.msra.mxu0 %v4782_v61  ;;  %2821 = vmatpush1.bf16.msra.mxu1 %v4784_v11 }
 0xbf2   :  { %2781 = vmatprep.subr.bf16.mxu0 %v4788_v0  ;;  %2822 = vmatprep.subr.bf16.mxu1 %v4790_v52 }
 0xbf5   :  { %2782 = vmatpush1.bf16.msra.mxu0 %v4794_v46  ;;  %2823 = vmatpush1.bf16.msra.mxu1 %v4796_v63 }
 0xbf6   :  { %2783 = vmatprep.subr.bf16.mxu0 %v4800_v2  ;;  %2824 = vmatprep.subr.bf16.mxu1 %v4802_v38 }
 0xbf9   :  { %2784 = vmatpush1.bf16.msra.mxu0 %v4806_v39  ;;  %2825 = vmatpush1.bf16.msra.mxu1 %v4808_v40 }
 0xbfa   :  { %2785 = vmatprep.subr.bf16.mxu0 %v4812_v41  ;;  %2826 = vmatprep.subr.bf16.mxu1 %v4814_v42 }
 0xbfd   :  { %2786 = vmatpush1.bf16.msra.mxu0 %v4818_v13  ;;  %2827 = vmatpush1.bf16.msra.mxu1 %v4820_v1 }
 0xbfe   :  { %2787 = vmatprep.subr.bf16.mxu0 %v4824_v54  ;;  %2828 = vmatprep.subr.bf16.mxu1 %v4826_v53 }
 0xc01   :  { %2788 = vmatpush1.bf16.msra.mxu0 %v4830_v55  ;;  %2829 = vmatpush1.bf16.msra.mxu1 %v4832_v57 }
 0xc02   :  { %2890 = vmatprep.subr.bf16.mxu0 %v4729_v7  ;;  %2931 = vmatprep.subr.bf16.mxu1 %v4731_v9 }
 0xcb7   :  { %v2690_v22 = vpop.f32.mrb[80].mxu0  ;;  %v2731_v35 = vpop.f32.mrb[80].mxu1 }
 0xcb8   :  { %v2738_v37 = vadd.f32 %v2690_v22, %v5239_v36  ;;  %v2740_v44 = vadd.f32 %v2731_v35, %v5240_v43  ;;  %v2692_v25 = vpop.f32.mrb[81].mxu0  ;;  %v2733_v45 = vpop.f32.mrb[81].mxu1 }
 0xcb9   :  { %v2739_v47 = vadd.f32 %v2692_v25, %v5241_v28  ;;  %v2741_v18 = vadd.f32 %v2733_v45, %v5242_v58  ;;  %v2694_v19 = vpop.f32.mrb[82].mxu0  ;;  %v2735_v20 = vpop.f32.mrb[82].mxu1  ;;  %v3804_v58 = vld [vmem:[#allocation6 + $0x108] ss:$16 sps:$4 sm:$0xff]  }
 0xcba   :  { %v3298_v23 = vmul.f32 -1.442695, %v2738_v37  ;;  %v2695_v21 = vpop.f32.mrb[83].mxu0  ;;  %v2736_v14 = vpop.f32.mrb[83].mxu1  ;;  %v3806_v19 = vld [vmem:[#allocation6 + $0x12c] ss:$16 sps:$4 sm:$0xff]  }
 0xcbb   :  { %v3299_v7 = vmul.f32 -1.442695, %v2739_v47  ;;  %v3300_v9 = vmul.f32 -1.442695, %v2741_v18  ;;  %v3803_v47 = vld [vmem:[#allocation6 + $0x100] ss:$16 sps:$4 sm:$0xff]  }
 0xcbc   :  { %3705 = vpow2.f32 %v3298_v23  ;;  %v3805_v18 = vld [vmem:[#allocation6 + $0x124] ss:$16 sps:$4 sm:$0xff]   ;;  %v3807_v20 = vld [vmem:[#allocation6 + $0x120] ss:$16 sps:$4 sm:$0xff]   ;;  %v3808_v23 = vld [vmem:[#allocation6 + $0x128] ss:$16 sps:$4 sm:$0xff]  }
 0xcbd   :  { %3707 = vpow2.f32 %v3299_v7  ;;  %v3809_v21 = vld [vmem:[#allocation6 + $0x144] ss:$16 sps:$4 sm:$0xff]   ;;  %v3810_v14 = vld [vmem:[#allocation6 + $0x14c] ss:$16 sps:$4 sm:$0xff]   ;;  %v3811_v7 = vld [vmem:[#allocation6 + $0x140] ss:$16 sps:$4 sm:$0xff]  }
 0xcbe   :  { %3709 = vpow2.f32 %v3300_v9  ;;  %v3812_v9 = vld [vmem:[#allocation6 + $0x148] ss:$16 sps:$4 sm:$0xff]  }
 0xcbf   :  { %3711 = vtanh.f32 %v2740_v44 }
 0xcc6   :  { %v3706_v3 = vpop.eup %3705 }
 0xcc7   :  { %v3708_v4 = vpop.eup %3707  ;;  %v2745_v6 = vadd.f32 1.0, %v3706_v3  ;;  %v3813_v3 = vld [vmem:[#allocation6 + $0x164] ss:$16 sps:$4 sm:$0xff]  }
 0xcc8   :  { %v2751_v8 = vadd.f32 1.0, %v3708_v4  ;;  %v3710_v10 = vpop.eup %3709  ;;  %v3814_v4 = vld [vmem:[#allocation6 + $0x16c] ss:$16 sps:$4 sm:$0xff]  }
 0xcc9   :  { %3713 = vrcp.f32 %v2745_v6  ;;  %v3712_v12 = vpop.eup %3711  ;;  %v2758_v33 = vadd.f32 1.0, %v3710_v10  ;;  %v3815_v6 = vld [vmem:[#allocation6 + $0x160] ss:$16 sps:$4 sm:$0xff]   ;;  %v3818_v10 = vld [vmem:[#allocation6 + $0x18c] ss:$16 sps:$4 sm:$0xff]  }
 0xcca   :  { %3715 = vrcp.f32 %v2751_v8  ;;  %v3816_v8 = vld [vmem:[#allocation6 + $0x168] ss:$16 sps:$4 sm:$0xff]  }
 0xccb   :  { %3717 = vrcp.f32 %v2758_v33  ;;  %v3823_v33 = vld [vmem:[#allocation6 + $0x1a0] ss:$16 sps:$4 sm:$0xff]  }
 0xcd3   :  { %v3714_v5 = vpop.eup %3713 }
 0xcd4   :  { %v3716_v24 = vpop.eup %3715  ;;  %v2762_v32 = vmul.f32 %v3714_v5, %v3712_v12  ;;  %v3819_v12 = vld [vmem:[#allocation6 + $0x180] ss:$16 sps:$4 sm:$0xff]   ;;  %v3820_v5 = vld [vmem:[#allocation6 + $0x188] ss:$16 sps:$4 sm:$0xff]  }
 0xcd5   :  { %v2761_v48 = vmul.f32 %v3716_v24, %v5024_v15  ;;  %v3718_v34 = vpop.eup %3717  ;;  %v3821_v24 = vld [vmem:[#allocation6 + $0x1a4] ss:$16 sps:$4 sm:$0xff]  }
 0xcd7   :  { %v5069_v51 = vadd.f32 %v2762_v32, %v2761_v48  ;;  %v3822_v32 = vld [vmem:[#allocation6 + $0x1ac] ss:$16 sps:$4 sm:$0xff]   ;;  %v3824_v48 = vld [vmem:[#allocation6 + $0x1a8] ss:$16 sps:$4 sm:$0xff]  }
 0xcd9   :  { %3719 = vtanh.f32 %v5069_v51 }
 0xce3   :  { %v3720_v22 = vpop.eup %3719 }
 0xce4   :  { %v2765_v35 = vmul.f32 %v3720_v22, %v3718_v34  ;;  %v3826_v34 = vld [vmem:[#allocation6 + $0x1cc] ss:$16 sps:$4 sm:$0xff]   ;;  %v3827_v22 = vld [vmem:[#allocation6 + $0x1c0] ss:$16 sps:$4 sm:$0xff]  }
 0xce6   :  { %3301 = vst [vmem:[%s5139_s4 + $0x38] sm:$0xff] %v2765_v35  ;;  %v2772_v36 = vpack.c.bf16 %v2765_v35, %v2765_v35  ;;  %v3828_v35 = vld [vmem:[#allocation6 + $0x1c8] ss:$16 sps:$4 sm:$0xff]  }
 0xce8   :  { %2806 = vmatmul.mubr.bf16.vlgmr.msra.gmra.mrb[84].mxu0 %v2772_v36  ;;  %2847 = vmatmul.mubr.bf16.vlgmr.msra.gmra.mrb[84].mxu1 %v2772_v36  ;;  %v3829_v36 = vld [vmem:[#allocation6 + $0x1e4] ss:$16 sps:$4 sm:$0xff]  }
 0xce9   :  { %2891 = vmatpush1.bf16.msra.mxu0 %v4743_v26  ;;  %2932 = vmatpush1.bf16.msra.mxu1 %v4745_v27  ;;  %v3801_v26 = vld [vmem:[#allocation6 + $0x104] ss:$16 sps:$4 sm:$0xff]   ;;  %v3802_v27 = vld [vmem:[#allocation6 + $0x10c] ss:$16 sps:$4 sm:$0xff]  }
 0xcea   :  { %2892 = vmatprep.subr.bf16.mxu0 %v4750_v29  ;;  %2933 = vmatprep.subr.bf16.mxu1 %v4752_v30 }
 0xceb   :  { %2922 = vmatprep.mubr.bf16.mxu0 %v5202_v50  ;;  %2963 = vmatprep.mubr.bf16.mxu1 %v5202_v50 }
 0xced   :  { %2893 = vmatpush1.bf16.msra.mxu0 %v4756_v31  ;;  %2934 = vmatpush1.bf16.msra.mxu1 %v4758_v49  ;;  %v5243_v31 = vld [vmem:[#allocation40_spill] sm:$0xff] }
 0xcee   :  { %2894 = vmatprep.subr.bf16.mxu0 %v4762_v16  ;;  %2935 = vmatprep.subr.bf16.mxu1 %v4764_v17  ;;  %v5244_v16 = vld [vmem:[#allocation41_spill] sm:$0xff] }
 0xcf1   :  { %2895 = vmatpush1.bf16.msra.mxu0 %v4770_v60  ;;  %2936 = vmatpush1.bf16.msra.mxu1 %v4772_v56 }
 0xcf2   :  { %2896 = vmatprep.subr.bf16.mxu0 %v4776_v59  ;;  %2937 = vmatprep.subr.bf16.mxu1 %v4778_v62  ;;  %v5245_v59 = vld [vmem:[#allocation42_spill] sm:$0xff] }
 0xcf5   :  { %2897 = vmatpush1.bf16.msra.mxu0 %v4782_v61  ;;  %2938 = vmatpush1.bf16.msra.mxu1 %v4784_v11  ;;  %v5246_v61 = vld [vmem:[#allocation43_spill] sm:$0xff] }
 0xcf6   :  { %2898 = vmatprep.subr.bf16.mxu0 %v4788_v0  ;;  %2939 = vmatprep.subr.bf16.mxu1 %v4790_v52 }
 0xcf9   :  { %2899 = vmatpush1.bf16.msra.mxu0 %v4794_v46  ;;  %2940 = vmatpush1.bf16.msra.mxu1 %v4796_v63 }
 0xcfa   :  { %2900 = vmatprep.subr.bf16.mxu0 %v4800_v2  ;;  %2941 = vmatprep.subr.bf16.mxu1 %v4802_v38 }
 0xcfd   :  { %2901 = vmatpush1.bf16.msra.mxu0 %v4806_v39  ;;  %2942 = vmatpush1.bf16.msra.mxu1 %v4808_v40 }
 0xcfe   :  { %2902 = vmatprep.subr.bf16.mxu0 %v4812_v41  ;;  %2943 = vmatprep.subr.bf16.mxu1 %v4814_v42 }
 0xd01   :  { %2903 = vmatpush1.bf16.msra.mxu0 %v4818_v13  ;;  %2944 = vmatpush1.bf16.msra.mxu1 %v4820_v1 }
 0xd02   :  { %2904 = vmatprep.subr.bf16.mxu0 %v4824_v54  ;;  %2945 = vmatprep.subr.bf16.mxu1 %v4826_v53 }
 0xd05   :  { %2905 = vmatpush1.bf16.msra.mxu0 %v4830_v55  ;;  %2946 = vmatpush1.bf16.msra.mxu1 %v4832_v57 }
 0xd06   :  { %3006 = vmatprep.subr.bf16.mxu0 %v3801_v26  ;;  %3047 = vmatprep.subr.bf16.mxu1 %v3802_v27  ;;  %v3830_v26 = vld [vmem:[#allocation6 + $0x1ec] ss:$16 sps:$4 sm:$0xff]   ;;  %v3831_v27 = vld [vmem:[#allocation6 + $0x1e0] ss:$16 sps:$4 sm:$0xff]  }
 0xdbb   :  { %v2807_v29 = vpop.f32.mrb[84].mxu0  ;;  %v2848_v30 = vpop.f32.mrb[84].mxu1 }
 0xdbc   :  { %v2855_v49 = vadd.f32 %v2807_v29, %v5243_v31  ;;  %v2857_v17 = vadd.f32 %v2848_v30, %v5244_v16  ;;  %v2809_v60 = vpop.f32.mrb[85].mxu0  ;;  %v2850_v56 = vpop.f32.mrb[85].mxu1  ;;  %v3832_v29 = vld [vmem:[#allocation6 + $0x1e8] ss:$16 sps:$4 sm:$0xff]  }
 0xdbd   :  { %v2856_v62 = vadd.f32 %v2809_v60, %v5245_v59  ;;  %v2858_v11 = vadd.f32 %v2850_v56, %v5246_v61  ;;  %v2811_v0 = vpop.f32.mrb[86].mxu0  ;;  %v2852_v52 = vpop.f32.mrb[86].mxu1 }
 0xdbe   :  { %v3302_v46 = vmul.f32 -1.442695, %v2855_v49  ;;  %v2812_v63 = vpop.f32.mrb[87].mxu0  ;;  %v2853_v2 = vpop.f32.mrb[87].mxu1  ;;  %v5247_v49 = vld [vmem:[#allocation36_spill] sm:$0xff] }
 0xdbf   :  { %v3303_v38 = vmul.f32 -1.442695, %v2856_v62  ;;  %v3304_v39 = vmul.f32 -1.442695, %v2858_v11  ;;  %v5249_v62 = vld [vmem:[#allocation38_spill] sm:$0xff]  ;;  %v5250_v11 = vld [vmem:[#allocation39_spill] sm:$0xff] }
 0xdc0   :  { %3721 = vpow2.f32 %v3302_v46 }
 0xdc1   :  { %3723 = vpow2.f32 %v3303_v38 }
 0xdc2   :  { %3725 = vpow2.f32 %v3304_v39 }
 0xdc3   :  { %3727 = vtanh.f32 %v2857_v17  ;;  %v5248_v17 = vld [vmem:[#allocation37_spill] sm:$0xff] }
 0xdca   :  { %v3722_v40 = vpop.eup %3721 }
 0xdcb   :  { %v3724_v41 = vpop.eup %3723  ;;  %v2862_v42 = vadd.f32 1.0, %v3722_v40 }
 0xdcc   :  { %v2868_v13 = vadd.f32 1.0, %v3724_v41  ;;  %v3726_v1 = vpop.eup %3725 }
 0xdcd   :  { %3729 = vrcp.f32 %v2862_v42  ;;  %v3728_v54 = vpop.eup %3727  ;;  %v2875_v15 = vadd.f32 1.0, %v3726_v1 }
 0xdce   :  { %3731 = vrcp.f32 %v2868_v13 }
 0xdcf   :  { %3733 = vrcp.f32 %v2875_v15 }
 0xdd7   :  { %v3730_v53 = vpop.eup %3729 }
 0xdd8   :  { %v3732_v55 = vpop.eup %3731  ;;  %v2879_v57 = vmul.f32 %v3730_v53, %v3728_v54 }
 0xdd9   :  { %v2878_v37 = vmul.f32 %v3732_v55, %v5069_v51  ;;  %v3734_v44 = vpop.eup %3733  ;;  %v3825_v51 = vld [vmem:[#allocation6 + $0x1c4] ss:$16 sps:$4 sm:$0xff]  }
 0xddb   :  { %v5112_v43 = vadd.f32 %v2879_v57, %v2878_v37 }
 0xddd   :  { %3735 = vtanh.f32 %v5112_v43 }
 0xde7   :  { %v3736_v25 = vpop.eup %3735 }
 0xde8   :  { %v2882_v45 = vmul.f32 %v3736_v25, %v3734_v44 }
 0xdea   :  { %3305 = vst [vmem:[%s5139_s4 + $0x28] sm:$0xff] %v2882_v45  ;;  %v2889_v28 = vpack.c.bf16 %v2882_v45, %v2882_v45 }
 0xdec   :  { %2923 = vmatmul.mubr.bf16.vlgmr.msra.gmra.mrb[88].mxu0 %v2889_v28  ;;  %2964 = vmatmul.mubr.bf16.vlgmr.msra.gmra.mrb[88].mxu1 %v2889_v28 }
 0xded   :  { %3007 = vmatpush1.bf16.msra.mxu0 %v3803_v47  ;;  %3048 = vmatpush1.bf16.msra.mxu1 %v3804_v58 }
 0xdee   :  { %3008 = vmatprep.subr.bf16.mxu0 %v3805_v18  ;;  %3049 = vmatprep.subr.bf16.mxu1 %v3806_v19 }
 0xdef   :  { %3038 = vmatprep.mubr.bf16.mxu0 %v5202_v50  ;;  %3079 = vmatprep.mubr.bf16.mxu1 %v5202_v50  ;;  %v3817_v50 = vld [vmem:[#allocation6 + $0x184] ss:$16 sps:$4 sm:$0xff]  }
 0xdf1   :  { %3009 = vmatpush1.bf16.msra.mxu0 %v3807_v20  ;;  %3050 = vmatpush1.bf16.msra.mxu1 %v3808_v23  ;;  %v5251_v20 = vld [vmem:[#allocation32_spill] sm:$0xff] }
 0xdf2   :  { %3010 = vmatprep.subr.bf16.mxu0 %v3809_v21  ;;  %3051 = vmatprep.subr.bf16.mxu1 %v3810_v14  ;;  %v5252_v21 = vld [vmem:[#allocation33_spill] sm:$0xff] }
 0xdf5   :  { %3011 = vmatpush1.bf16.msra.mxu0 %v3811_v7  ;;  %3052 = vmatpush1.bf16.msra.mxu1 %v3812_v9  ;;  %v5253_v9 = vld [vmem:[#allocation34_spill] sm:$0xff] }
 0xdf6   :  { %3012 = vmatprep.subr.bf16.mxu0 %v3813_v3  ;;  %3053 = vmatprep.subr.bf16.mxu1 %v3814_v4  ;;  %v5254_v4 = vld [vmem:[#allocation35_spill] sm:$0xff] }
 0xdf9   :  { %3013 = vmatpush1.bf16.msra.mxu0 %v3815_v6  ;;  %3054 = vmatpush1.bf16.msra.mxu1 %v3816_v8 }
 0xdfa   :  { %3014 = vmatprep.subr.bf16.mxu0 %v3817_v50  ;;  %3055 = vmatprep.subr.bf16.mxu1 %v3818_v10 }
 0xdfd   :  { %3015 = vmatpush1.bf16.msra.mxu0 %v3819_v12  ;;  %3056 = vmatpush1.bf16.msra.mxu1 %v3820_v5 }
 0xdfe   :  { %3016 = vmatprep.subr.bf16.mxu0 %v3821_v24  ;;  %3057 = vmatprep.subr.bf16.mxu1 %v3822_v32 }
 0xe01   :  { %3017 = vmatpush1.bf16.msra.mxu0 %v3823_v33  ;;  %3058 = vmatpush1.bf16.msra.mxu1 %v3824_v48 }
 0xe02   :  { %3018 = vmatprep.subr.bf16.mxu0 %v3825_v51  ;;  %3059 = vmatprep.subr.bf16.mxu1 %v3826_v34 }
 0xe05   :  { %3019 = vmatpush1.bf16.msra.mxu0 %v3827_v22  ;;  %3060 = vmatpush1.bf16.msra.mxu1 %v3828_v35 }
 0xe06   :  { %3020 = vmatprep.subr.bf16.mxu0 %v3829_v36  ;;  %3061 = vmatprep.subr.bf16.mxu1 %v3830_v26 }
 0xe09   :  { %3021 = vmatpush1.bf16.msra.mxu0 %v3831_v27  ;;  %3062 = vmatpush1.bf16.msra.mxu1 %v3832_v29 }
 0xebf   :  { %v2924_v30 = vpop.f32.mrb[88].mxu0  ;;  %v2965_v31 = vpop.f32.mrb[88].mxu1 }
 0xec0   :  { %v2972_v16 = vadd.f32 %v2924_v30, %v5247_v49  ;;  %v2974_v60 = vadd.f32 %v2965_v31, %v5248_v17  ;;  %v2926_v56 = vpop.f32.mrb[89].mxu0  ;;  %v2967_v59 = vpop.f32.mrb[89].mxu1 }
 0xec1   :  { %v2973_v61 = vadd.f32 %v2926_v56, %v5249_v62  ;;  %v2975_v0 = vadd.f32 %v2967_v59, %v5250_v11  ;;  %v2928_v52 = vpop.f32.mrb[90].mxu0  ;;  %v2969_v46 = vpop.f32.mrb[90].mxu1 }
 0xec2   :  { %v3306_v63 = vmul.f32 -1.442695, %v2972_v16  ;;  %v2929_v2 = vpop.f32.mrb[91].mxu0  ;;  %v2970_v38 = vpop.f32.mrb[91].mxu1 }
 0xec3   :  { %v3307_v39 = vmul.f32 -1.442695, %v2973_v61  ;;  %v3308_v40 = vmul.f32 -1.442695, %v2975_v0 }
 0xec4   :  { %3737 = vpow2.f32 %v3306_v63 }
 0xec5   :  { %3739 = vpow2.f32 %v3307_v39 }
 0xec6   :  { %3741 = vpow2.f32 %v3308_v40 }
 0xec7   :  { %3743 = vtanh.f32 %v2974_v60 }
 0xece   :  { %v3738_v41 = vpop.eup %3737 }
 0xecf   :  { %v3740_v42 = vpop.eup %3739  ;;  %v2979_v13 = vadd.f32 1.0, %v3738_v41 }
 0xed0   :  { %v2985_v1 = vadd.f32 1.0, %v3740_v42  ;;  %v3742_v54 = vpop.eup %3741 }
 0xed1   :  { %3745 = vrcp.f32 %v2979_v13  ;;  %v3744_v53 = vpop.eup %3743  ;;  %v2992_v37 = vadd.f32 1.0, %v3742_v54 }
 0xed2   :  { %3747 = vrcp.f32 %v2985_v1 }
 0xed3   :  { %3749 = vrcp.f32 %v2992_v37 }
 0xedb   :  { %v3746_v55 = vpop.eup %3745 }
 0xedc   :  { %v3748_v57 = vpop.eup %3747  ;;  %v2996_v15 = vmul.f32 %v3746_v55, %v3744_v53 }
 0xedd   :  { %v2995_v44 = vmul.f32 %v3748_v57, %v5112_v43  ;;  %v3750_v45 = vpop.eup %3749 }
 0xedf   :  { %v2997_v25 = vadd.f32 %v2996_v15, %v2995_v44 }
 0xee1   :  { %3751 = vtanh.f32 %v2997_v25 }
 0xeeb   :  { %v3752_v28 = vpop.eup %3751 }
 0xeec   :  { %v2999_v47 = vmul.f32 %v3752_v28, %v3750_v45 }
 0xeee   :  { %3309 = vst [vmem:[%s5139_s4 + $0x18] sm:$0xff] %v2999_v47  ;;  %v3005_v58 = vpack.c.bf16 %v2999_v47, %v2999_v47 }
 0xef0   :  { %3039 = vmatmul.mubr.bf16.vlgmr.msra.gmra.mrb[92].mxu0 %v3005_v58  ;;  %3080 = vmatmul.mubr.bf16.vlgmr.msra.gmra.mrb[92].mxu1 %v3005_v58 }
 0xfc3   :  { %v3040_v18 = vpop.f32.mrb[92].mxu0  ;;  %v3081_v19 = vpop.f32.mrb[92].mxu1 }
 0xfc4   :  { %v3088_v23 = vadd.f32 %v3040_v18, %v5251_v20  ;;  %v3090_v14 = vadd.f32 %v3081_v19, %v5252_v21  ;;  %v3042_v43 = vpop.f32.mrb[93].mxu0  ;;  %v3083_v7 = vpop.f32.mrb[93].mxu1 }
 0xfc5   :  { %v3089_v3 = vadd.f32 %v3042_v43, %v5253_v9  ;;  %v3091_v6 = vadd.f32 %v3083_v7, %v5254_v4  ;;  %v3044_v8 = vpop.f32.mrb[94].mxu0  ;;  %v3085_v50 = vpop.f32.mrb[94].mxu1 }
 0xfc6   :  { %v3310_v10 = vmul.f32 -1.442695, %v3088_v23  ;;  %v3045_v12 = vpop.f32.mrb[95].mxu0  ;;  %v3086_v5 = vpop.f32.mrb[95].mxu1 }
 0xfc7   :  { %v3311_v24 = vmul.f32 -1.442695, %v3089_v3  ;;  %v3312_v32 = vmul.f32 -1.442695, %v3091_v6 }
 0xfc8   :  { %3753 = vpow2.f32 %v3310_v10 }
 0xfc9   :  { %3755 = vpow2.f32 %v3311_v24 }
 0xfca   :  { %3757 = vpow2.f32 %v3312_v32 }
 0xfcb   :  { %3759 = vtanh.f32 %v3090_v14 }
 0xfd2   :  { %v3754_v33 = vpop.eup %3753 }
 0xfd3   :  { %v3756_v48 = vpop.eup %3755  ;;  %v3095_v51 = vadd.f32 1.0, %v3754_v33 }
 0xfd4   :  { %v3101_v34 = vadd.f32 1.0, %v3756_v48  ;;  %v3758_v22 = vpop.eup %3757 }
 0xfd5   :  { %3761 = vrcp.f32 %v3095_v51  ;;  %v3760_v35 = vpop.eup %3759  ;;  %v3108_v29 = vadd.f32 1.0, %v3758_v22 }
 0xfd6   :  { %3763 = vrcp.f32 %v3101_v34 }
 0xfd7   :  { %3765 = vrcp.f32 %v3108_v29 }
 0xfdf   :  { %v3762_v36 = vpop.eup %3761 }
 0xfe0   :  { %v3764_v26 = vpop.eup %3763  ;;  %v3112_v27 = vmul.f32 %v3762_v36, %v3760_v35 }
 0xfe1   :  { %v3111_v30 = vmul.f32 %v3764_v26, %v2997_v25  ;;  %v3766_v49 = vpop.eup %3765 }
 0xfe3   :  { %v3113_v31 = vadd.f32 %v3112_v27, %v3111_v30 }
 0xfe5   :  { %3767 = vtanh.f32 %v3113_v31 }
 0xfef   :  { %v3768_v16 = vpop.eup %3767 }
 0xff0   :  { %v3115_v17 = vmul.f32 %v3768_v16, %v3766_v49 }
 0xff2   :  { %3116 = vst [vmem:[%s5139_s4 + $0x8] sm:$0xff] %v3115_v17 }
 0xff3   :  { %3121 = vsyncpa [#allocation5], 1 }
 0xff4   :  { %3122 = vsyncpa [#allocation7], 1 }

// kernel: rnn_model_forward.3
= control target key start
LH: loop header
LB: loop body
LE: loop exit
PB: predicated region body
PF: predicated region fallthrough
CT: control target
= control target key end

     0   :  { %9 = vsyncpa [#allocation5], 0  ;;  %s4446_s15 = smov [#allocation4]   ;;  %s6065_s0 = inlined_call_operand.vmem [shape: f32[8,8,256], index: 0, kind: input, shape index: {}]   ;;  %s6066_s1 = inlined_call_operand.vmem [shape: bf16[2,256,512], index: 1, kind: input, shape index: {}]   ;;  %s6067_s2 = inlined_call_operand.hbm [shape: bf16[2,128,512], index: 2, kind: input, shape index: {}]   ;;  %s6068_s3 = inlined_call_operand.vmem [shape: f32[2,1,512], index: 3, kind: input, shape index: {}]   ;;  %s6069_s4 = inlined_call_operand.vmem [shape: f32[8,8,256], index: 4, kind: output, shape index: {}]  }
   0x1   :  { %s19_s16 = sshll.u32 %s4446_s15, 4  ;;  %s4422_s19 = scalar_lea.hbm %s6067_s2, 8192  ;;  %s20_s16 = int_to_ptr.vmem [resolvable:$true] %s19_s16 }
   0x2   :  { %p4423_p0 = scmp.ne.s32.totalorder %s6067_s2, %s4422_s19  ;;  %p4426_p1 = scmp.lt.u32.totalorder %s4422_s19, %s6067_s2 }
   0x4   :  { %p4428_p2 = pnand %p4426_p1, %p4423_p0 }
   0x6   :  { %4431 = shalt.err (!%p4428_p2)
}
   0x7   :  { %s4432_s24 = scalar_lea.vmem %s20_s16, 8192  ;;  %p4437_p4 = scmp.lt.s32.totalorder %s20_s16, %s20_s16 }
   0x8   :  { %p4433_p3 = scmp.ne.s32.totalorder %s20_s16, %s4432_s24  ;;  %p4438_p5 = scmp.lt.s32.totalorder %s4432_s24, %s4432_s24 }
   0xa   :  { %p4439_p6 = por %p4438_p5, %p4437_p4 }
   0xc   :  { %p4440_p7 = pnand %p4439_p6, %p4433_p3 }
   0xe   :  { %4443 = shalt.err (!%p4440_p7)
}
   0xf   :  { %s4447_s25 = smov 256   ;;  %s4448_s26 = smov 16  }
  0x10   :  { %25 = dma.hbm_to_vmem [thread:$0]  %s6067_s2, 8192, %s20_s16, [#allocation5], %s4447_s25, %s4447_s25, %s4448_s26  }
  0x11   :  { %4444 = dma.done.wait [#allocation5], 8192  }
  0x12   :  { %4445 = vsyncadd [#allocation5], 4294959104  ;;  %v3814_v0 = vld [vmem:[%s6066_s1 + $0x4] ss:$16 sps:$4 sm:$0xff]   ;;  %v3816_v1 = vld [vmem:[%s6066_s1 + $0xc] ss:$16 sps:$4 sm:$0xff]  }
  0x13   :  { %462 = vmatprep.subr.bf16.mxu0 %v3814_v0  ;;  %v3818_v2 = vld [vmem:[%s6066_s1] ss:$16 sps:$4 sm:$0xff]   ;;  %v3819_v3 = vld [vmem:[%s6066_s1 + $0x8] ss:$16 sps:$4 sm:$0xff]   ;;  %535 = vmatprep.subr.bf16.mxu1 %v3816_v1  ;;  %v3820_v4 = vld [vmem:[%s6066_s1 + $0x24] ss:$16 sps:$4 sm:$0xff]  }
  0x14   :  { %463 = vmatpush1.bf16.msra.mxu0 %v3818_v2  ;;  %536 = vmatpush1.bf16.msra.mxu1 %v3819_v3  ;;  %v3822_v5 = vld [vmem:[%s6066_s1 + $0x2c] ss:$16 sps:$4 sm:$0xff]   ;;  %v3824_v6 = vld [vmem:[%s6066_s1 + $0x20] ss:$16 sps:$4 sm:$0xff]   ;;  %v3825_v7 = vld [vmem:[%s6066_s1 + $0x28] ss:$16 sps:$4 sm:$0xff]  }
  0x15   :  { %464 = vmatprep.subr.bf16.mxu0 %v3820_v4  ;;  %537 = vmatprep.subr.bf16.mxu1 %v3822_v5  ;;  %v3826_v8 = vld [vmem:[%s6066_s1 + $0x44] ss:$16 sps:$4 sm:$0xff]   ;;  %v3828_v9 = vld [vmem:[%s6066_s1 + $0x4c] ss:$16 sps:$4 sm:$0xff]   ;;  %v3830_v10 = vld [vmem:[%s6066_s1 + $0x40] ss:$16 sps:$4 sm:$0xff]  }
  0x16   :  { %v3831_v11 = vld [vmem:[%s6066_s1 + $0x48] ss:$16 sps:$4 sm:$0xff]   ;;  %v3832_v12 = vld [vmem:[%s6066_s1 + $0x64] ss:$16 sps:$4 sm:$0xff]   ;;  %v3834_v13 = vld [vmem:[%s6066_s1 + $0x6c] ss:$16 sps:$4 sm:$0xff]  }
  0x17   :  { %v3836_v14 = vld [vmem:[%s6066_s1 + $0x60] ss:$16 sps:$4 sm:$0xff]   ;;  %v3837_v15 = vld [vmem:[%s6066_s1 + $0x68] ss:$16 sps:$4 sm:$0xff]   ;;  %v3838_v16 = vld [vmem:[%s6066_s1 + $0x84] ss:$16 sps:$4 sm:$0xff]  }
  0x18   :  { %465 = vmatpush1.bf16.msra.mxu0 %v3824_v6  ;;  %538 = vmatpush1.bf16.msra.mxu1 %v3825_v7  ;;  %v3840_v17 = vld [vmem:[%s6066_s1 + $0x8c] ss:$16 sps:$4 sm:$0xff]   ;;  %v3842_v18 = vld [vmem:[%s6066_s1 + $0x80] ss:$16 sps:$4 sm:$0xff]   ;;  %v3843_v19 = vld [vmem:[%s6066_s1 + $0x88] ss:$16 sps:$4 sm:$0xff]  }
  0x19   :  { %466 = vmatprep.subr.bf16.mxu0 %v3826_v8  ;;  %539 = vmatprep.subr.bf16.mxu1 %v3828_v9  ;;  %v3844_v20 = vld [vmem:[%s6066_s1 + $0xa4] ss:$16 sps:$4 sm:$0xff]   ;;  %v3846_v21 = vld [vmem:[%s6066_s1 + $0xac] ss:$16 sps:$4 sm:$0xff]   ;;  %v3848_v22 = vld [vmem:[%s6066_s1 + $0xa0] ss:$16 sps:$4 sm:$0xff]  }
  0x1a   :  { %v3849_v23 = vld [vmem:[%s6066_s1 + $0xa8] ss:$16 sps:$4 sm:$0xff]   ;;  %v3850_v24 = vld [vmem:[%s6066_s1 + $0xc4] ss:$16 sps:$4 sm:$0xff]   ;;  %v3852_v25 = vld [vmem:[%s6066_s1 + $0xcc] ss:$16 sps:$4 sm:$0xff]  }
  0x1b   :  { %v3854_v26 = vld [vmem:[%s6066_s1 + $0xc0] ss:$16 sps:$4 sm:$0xff]   ;;  %v3855_v27 = vld [vmem:[%s6066_s1 + $0xc8] ss:$16 sps:$4 sm:$0xff]   ;;  %v3856_v28 = vld [vmem:[%s6066_s1 + $0xe4] ss:$16 sps:$4 sm:$0xff]  }
  0x1c   :  { %467 = vmatpush1.bf16.msra.mxu0 %v3830_v10  ;;  %540 = vmatpush1.bf16.msra.mxu1 %v3831_v11  ;;  %v3858_v29 = vld [vmem:[%s6066_s1 + $0xec] ss:$16 sps:$4 sm:$0xff]   ;;  %v3860_v30 = vld [vmem:[%s6066_s1 + $0xe0] ss:$16 sps:$4 sm:$0xff]   ;;  %v3861_v31 = vld [vmem:[%s6066_s1 + $0xe8] ss:$16 sps:$4 sm:$0xff]  }
  0x1d   :  { %468 = vmatprep.subr.bf16.mxu0 %v3832_v12  ;;  %541 = vmatprep.subr.bf16.mxu1 %v3834_v13  ;;  %v3862_v32 = vld [vmem:[%s6066_s1 + $0x104] ss:$16 sps:$4 sm:$0xff]   ;;  %v3864_v33 = vld [vmem:[%s6066_s1 + $0x10c] ss:$16 sps:$4 sm:$0xff]   ;;  %v3866_v34 = vld [vmem:[%s6066_s1 + $0x100] ss:$16 sps:$4 sm:$0xff]  }
  0x1e   :  { %v3867_v35 = vld [vmem:[%s6066_s1 + $0x108] ss:$16 sps:$4 sm:$0xff]   ;;  %v3868_v36 = vld [vmem:[%s6066_s1 + $0x124] ss:$16 sps:$4 sm:$0xff]   ;;  %v3870_v37 = vld [vmem:[%s6066_s1 + $0x12c] ss:$16 sps:$4 sm:$0xff]  }
  0x1f   :  { %v3872_v38 = vld [vmem:[%s6066_s1 + $0x120] ss:$16 sps:$4 sm:$0xff]   ;;  %v3873_v39 = vld [vmem:[%s6066_s1 + $0x128] ss:$16 sps:$4 sm:$0xff]   ;;  %v3874_v40 = vld [vmem:[%s6066_s1 + $0x144] ss:$16 sps:$4 sm:$0xff]  }
  0x20   :  { %469 = vmatpush1.bf16.msra.mxu0 %v3836_v14  ;;  %542 = vmatpush1.bf16.msra.mxu1 %v3837_v15  ;;  %v3876_v41 = vld [vmem:[%s6066_s1 + $0x14c] ss:$16 sps:$4 sm:$0xff]   ;;  %v3878_v42 = vld [vmem:[%s6066_s1 + $0x140] ss:$16 sps:$4 sm:$0xff]   ;;  %v3879_v43 = vld [vmem:[%s6066_s1 + $0x148] ss:$16 sps:$4 sm:$0xff]  }
  0x21   :  { %470 = vmatprep.subr.bf16.mxu0 %v3838_v16  ;;  %543 = vmatprep.subr.bf16.mxu1 %v3840_v17  ;;  %v3880_v44 = vld [vmem:[%s6066_s1 + $0x164] ss:$16 sps:$4 sm:$0xff]   ;;  %v3882_v45 = vld [vmem:[%s6066_s1 + $0x16c] ss:$16 sps:$4 sm:$0xff]   ;;  %v3884_v47 = vld [vmem:[%s6066_s1 + $0x160] ss:$16 sps:$4 sm:$0xff]  }
  0x22   :  { %v33_v46 = vld [vmem:[%s6065_s0 + $0x8] sm:$0xff]  ;;  %v35_v49 = vld [vmem:[%s6065_s0 + $0x18] sm:$0xff]  ;;  %v3886_v50 = vld [vmem:[%s6066_s1 + $0x184] ss:$16 sps:$4 sm:$0xff]  }
  0x23   :  { %v3885_v48 = vld [vmem:[%s6066_s1 + $0x168] ss:$16 sps:$4 sm:$0xff]   ;;  %v4640_v51 = vpack.c.bf16 %v35_v49, %v33_v46  ;;  %v3888_v52 = vld [vmem:[%s6066_s1 + $0x18c] ss:$16 sps:$4 sm:$0xff]   ;;  %v3890_v53 = vld [vmem:[%s6066_s1 + $0x180] ss:$16 sps:$4 sm:$0xff]  }
  0x24   :  { %471 = vmatpush1.bf16.msra.mxu0 %v3842_v18  ;;  %544 = vmatpush1.bf16.msra.mxu1 %v3843_v19  ;;  %v3891_v54 = vld [vmem:[%s6066_s1 + $0x188] ss:$16 sps:$4 sm:$0xff]   ;;  %v3892_v55 = vld [vmem:[%s6066_s1 + $0x1a4] ss:$16 sps:$4 sm:$0xff]   ;;  %v3894_v56 = vld [vmem:[%s6066_s1 + $0x1ac] ss:$16 sps:$4 sm:$0xff]  }
  0x25   :  { %472 = vmatprep.subr.bf16.mxu0 %v3844_v20  ;;  %545 = vmatprep.subr.bf16.mxu1 %v3846_v21  ;;  %v3896_v57 = vld [vmem:[%s6066_s1 + $0x1a0] ss:$16 sps:$4 sm:$0xff]   ;;  %v3897_v58 = vld [vmem:[%s6066_s1 + $0x1a8] ss:$16 sps:$4 sm:$0xff]   ;;  %v3898_v59 = vld [vmem:[%s6066_s1 + $0x1c4] ss:$16 sps:$4 sm:$0xff]  }
  0x26   :  { %494 = vmatprep.mubr.bf16.mxu0 %v4640_v51  ;;  %567 = vmatprep.mubr.bf16.mxu1 %v4640_v51  ;;  %v3900_v60 = vld [vmem:[%s6066_s1 + $0x1cc] ss:$16 sps:$4 sm:$0xff]   ;;  %v3902_v61 = vld [vmem:[%s6066_s1 + $0x1c0] ss:$16 sps:$4 sm:$0xff]   ;;  %v3903_v62 = vld [vmem:[%s6066_s1 + $0x1c8] ss:$16 sps:$4 sm:$0xff]  }
  0x27   :  { %v3904_v63 = vld [vmem:[%s6066_s1 + $0x1e4] ss:$16 sps:$4 sm:$0xff]   ;;  %v3906_v0 = vld [vmem:[%s6066_s1 + $0x1ec] ss:$16 sps:$4 sm:$0xff]   ;;  %v3908_v1 = vld [vmem:[%s6066_s1 + $0x1e0] ss:$16 sps:$4 sm:$0xff]  }
  0x28   :  { %473 = vmatpush1.bf16.msra.mxu0 %v3848_v22  ;;  %546 = vmatpush1.bf16.msra.mxu1 %v3849_v23  ;;  %v3909_v2 = vld [vmem:[%s6066_s1 + $0x1e8] ss:$16 sps:$4 sm:$0xff]   ;;  %v32_v3 = vld [vmem:[%s6065_s0] sm:$0xff]  ;;  %v34_v4 = vld [vmem:[%s6065_s0 + $0x10] sm:$0xff] }
  0x29   :  { %474 = vmatprep.subr.bf16.mxu0 %v3850_v24  ;;  %547 = vmatprep.subr.bf16.mxu1 %v3852_v25  ;;  %v3912_v5 = vld [vmem:[%s6066_s1 + $0x204] ss:$16 sps:$4 sm:$0xff]   ;;  %v3915_v6 = vld [vmem:[%s6066_s1 + $0x20c] ss:$16 sps:$4 sm:$0xff]   ;;  %v4701_v7 = vpack.c.bf16 %v34_v4, %v32_v3  ;;  %v3910_v8 = vld [vmem:[%s6066_s1 + $0x200] ss:$16 sps:$4 sm:$0xff]  }
  0x2a   :  { %v3913_v9 = vld [vmem:[%s6066_s1 + $0x208] ss:$16 sps:$4 sm:$0xff]   ;;  %v3918_v10 = vld [vmem:[%s6066_s1 + $0x224] ss:$16 sps:$4 sm:$0xff]   ;;  %v3921_v11 = vld [vmem:[%s6066_s1 + $0x22c] ss:$16 sps:$4 sm:$0xff]  }
  0x2b   :  { %v3916_v12 = vld [vmem:[%s6066_s1 + $0x220] ss:$16 sps:$4 sm:$0xff]   ;;  %v3919_v13 = vld [vmem:[%s6066_s1 + $0x228] ss:$16 sps:$4 sm:$0xff]   ;;  %v3924_v14 = vld [vmem:[%s6066_s1 + $0x244] ss:$16 sps:$4 sm:$0xff]  }
  0x2c   :  { %475 = vmatpush1.bf16.msra.mxu0 %v3854_v26  ;;  %548 = vmatpush1.bf16.msra.mxu1 %v3855_v27  ;;  %v3927_v15 = vld [vmem:[%s6066_s1 + $0x24c] ss:$16 sps:$4 sm:$0xff]   ;;  %v3922_v16 = vld [vmem:[%s6066_s1 + $0x240] ss:$16 sps:$4 sm:$0xff]   ;;  %v3925_v17 = vld [vmem:[%s6066_s1 + $0x248] ss:$16 sps:$4 sm:$0xff]  }
  0x2d   :  { %476 = vmatprep.subr.bf16.mxu0 %v3856_v28  ;;  %549 = vmatprep.subr.bf16.mxu1 %v3858_v29  ;;  %v37_v18 = vld [vmem:[%s6065_s0 + $0x28] sm:$0xff]  ;;  %v39_v19 = vld [vmem:[%s6065_s0 + $0x38] sm:$0xff]  ;;  %v36_v20 = vld [vmem:[%s6065_s0 + $0x20] sm:$0xff] }
  0x2e   :  { %v38_v21 = vld [vmem:[%s6065_s0 + $0x30] sm:$0xff]  ;;  %v4750_v23 = vpack.c.bf16 %v39_v19, %v37_v18  ;;  %v3933_v25 = vld [vmem:[%s6066_s1 + $0x26c] ss:$16 sps:$4 sm:$0xff]   ;;  %v3931_v27 = vld [vmem:[%s6066_s1 + $0x268] ss:$16 sps:$4 sm:$0xff]  }
  0x2f   :  { %v3930_v22 = vld [vmem:[%s6066_s1 + $0x264] ss:$16 sps:$4 sm:$0xff]   ;;  %v4752_v24 = vpack.c.bf16 %v38_v21, %v36_v20  ;;  %v3928_v26 = vld [vmem:[%s6066_s1 + $0x260] ss:$16 sps:$4 sm:$0xff]   ;;  %v3939_v29 = vld [vmem:[%s6066_s1 + $0x28c] ss:$16 sps:$4 sm:$0xff]  }
  0x30   :  { %477 = vmatpush1.bf16.msra.mxu0 %v3860_v30  ;;  %550 = vmatpush1.bf16.msra.mxu1 %v3861_v31  ;;  %v3936_v28 = vld [vmem:[%s6066_s1 + $0x284] ss:$16 sps:$4 sm:$0xff]   ;;  %v41_v30 = vld [vmem:[%s6065_s0 + $0x48] sm:$0xff]  ;;  %v43_v31 = vld [vmem:[%s6065_s0 + $0x58] sm:$0xff] }
  0x31   :  { %478 = vmatprep.subr.bf16.mxu0 %v3862_v32  ;;  %551 = vmatprep.subr.bf16.mxu1 %v3864_v33  ;;  %v4779_v32 = vpack.c.bf16 %v43_v31, %v41_v30  ;;  %v40_v33 = vld [vmem:[%s6065_s0 + $0x40] sm:$0xff]  ;;  %v3973_v3 = vld [vmem:[%s6066_s1 + $0x348] ss:$16 sps:$4 sm:$0xff]   ;;  %v3999_v18 = vld [vmem:[%s6066_s1 + $0x3cc] ss:$16 sps:$4 sm:$0xff]  }
  0x32   :  { %v44_v46 = vld [vmem:[%s6065_s0 + $0x60] sm:$0xff]  ;;  %v3997_v20 = vld [vmem:[%s6066_s1 + $0x3c8] ss:$16 sps:$4 sm:$0xff]  }
  0x33   :  { %v3946_v49 = vld [vmem:[%s6066_s1 + $0x2c0] ss:$16 sps:$4 sm:$0xff]   ;;  %v3978_v4 = vld [vmem:[%s6066_s1 + $0x364] ss:$16 sps:$4 sm:$0xff]   ;;  %v4959_v30 = vld [vmem:[#allocation4 + $0x8] ss:$16 sps:$4 sm:$0xff]  }
  0x34   :  { %479 = vmatpush1.bf16.msra.mxu0 %v3866_v34  ;;  %552 = vmatpush1.bf16.msra.mxu1 %v3867_v35  ;;  %v42_v34 = vld [vmem:[%s6065_s0 + $0x50] sm:$0xff] }
  0x35   :  { %480 = vmatprep.subr.bf16.mxu0 %v3868_v36  ;;  %553 = vmatprep.subr.bf16.mxu1 %v3870_v37  ;;  %v3934_v35 = vld [vmem:[%s6066_s1 + $0x280] ss:$16 sps:$4 sm:$0xff]   ;;  %v3937_v36 = vld [vmem:[%s6066_s1 + $0x288] ss:$16 sps:$4 sm:$0xff]   ;;  %v4793_v37 = vpack.c.bf16 %v42_v34, %v40_v33  ;;  %v4002_v21 = vld [vmem:[%s6066_s1 + $0x3e4] ss:$16 sps:$4 sm:$0xff]  }
  0x36   :  { %v3994_v19 = vld [vmem:[%s6066_s1 + $0x3c0] ss:$16 sps:$4 sm:$0xff]   ;;  %v4963_v31 = vld [vmem:[#allocation4 + $0x24] ss:$16 sps:$4 sm:$0xff]   ;;  %v4965_v33 = vld [vmem:[#allocation4 + $0x2c] ss:$16 sps:$4 sm:$0xff]  }
  0x37   :  { %v4971_v34 = vld [vmem:[#allocation4 + $0x20] ss:$16 sps:$4 sm:$0xff]  }
  0x38   :  { %481 = vmatpush1.bf16.msra.mxu0 %v3872_v38  ;;  %554 = vmatpush1.bf16.msra.mxu1 %v3873_v39  ;;  %v3942_v38 = vld [vmem:[%s6066_s1 + $0x2a4] ss:$16 sps:$4 sm:$0xff]   ;;  %v3945_v39 = vld [vmem:[%s6066_s1 + $0x2ac] ss:$16 sps:$4 sm:$0xff]  }
  0x39   :  { %482 = vmatprep.subr.bf16.mxu0 %v3874_v40  ;;  %555 = vmatprep.subr.bf16.mxu1 %v3876_v41  ;;  %v3940_v40 = vld [vmem:[%s6066_s1 + $0x2a0] ss:$16 sps:$4 sm:$0xff]   ;;  %v3943_v41 = vld [vmem:[%s6066_s1 + $0x2a8] ss:$16 sps:$4 sm:$0xff]  }
  0x3c   :  { %483 = vmatpush1.bf16.msra.mxu0 %v3878_v42  ;;  %556 = vmatpush1.bf16.msra.mxu1 %v3879_v43  ;;  %v3948_v42 = vld [vmem:[%s6066_s1 + $0x2c4] ss:$16 sps:$4 sm:$0xff]   ;;  %v3951_v43 = vld [vmem:[%s6066_s1 + $0x2cc] ss:$16 sps:$4 sm:$0xff]  }
  0x3d   :  { %484 = vmatprep.subr.bf16.mxu0 %v3880_v44  ;;  %557 = vmatprep.subr.bf16.mxu1 %v3882_v45  ;;  %v45_v44 = vld [vmem:[%s6065_s0 + $0x68] sm:$0xff]  ;;  %v47_v45 = vld [vmem:[%s6065_s0 + $0x78] sm:$0xff] }
  0x40   :  { %485 = vmatpush1.bf16.msra.mxu0 %v3884_v47  ;;  %558 = vmatpush1.bf16.msra.mxu1 %v3885_v48  ;;  %v4826_v47 = vpack.c.bf16 %v47_v45, %v45_v44  ;;  %v46_v48 = vld [vmem:[%s6065_s0 + $0x70] sm:$0xff]  ;;  %v5007_v44 = vld [vmem:[#allocation4 + $0x8c] ss:$16 sps:$4 sm:$0xff]   ;;  %v5015_v45 = vld [vmem:[#allocation4 + $0x88] ss:$16 sps:$4 sm:$0xff]  }
  0x41   :  { %486 = vmatprep.subr.bf16.mxu0 %v3886_v50  ;;  %559 = vmatprep.subr.bf16.mxu1 %v3888_v52  ;;  %v3949_v50 = vld [vmem:[%s6066_s1 + $0x2c8] ss:$16 sps:$4 sm:$0xff]   ;;  %v4838_v52 = vpack.c.bf16 %v46_v48, %v44_v46  ;;  %v5019_v46 = vld [vmem:[#allocation4 + $0xa4] ss:$16 sps:$4 sm:$0xff]   ;;  %v5021_v48 = vld [vmem:[#allocation4 + $0xac] ss:$16 sps:$4 sm:$0xff]  }
  0x44   :  { %487 = vmatpush1.bf16.msra.mxu0 %v3890_v53  ;;  %560 = vmatpush1.bf16.msra.mxu1 %v3891_v54  ;;  %v3954_v53 = vld [vmem:[%s6066_s1 + $0x2e4] ss:$16 sps:$4 sm:$0xff]   ;;  %v3957_v54 = vld [vmem:[%s6066_s1 + $0x2ec] ss:$16 sps:$4 sm:$0xff]  }
  0x45   :  { %488 = vmatprep.subr.bf16.mxu0 %v3892_v55  ;;  %561 = vmatprep.subr.bf16.mxu1 %v3894_v56  ;;  %v3952_v55 = vld [vmem:[%s6066_s1 + $0x2e0] ss:$16 sps:$4 sm:$0xff]   ;;  %v3955_v56 = vld [vmem:[%s6066_s1 + $0x2e8] ss:$16 sps:$4 sm:$0xff]  }
  0x48   :  { %489 = vmatpush1.bf16.msra.mxu0 %v3896_v57  ;;  %562 = vmatpush1.bf16.msra.mxu1 %v3897_v58  ;;  %v3960_v57 = vld [vmem:[%s6066_s1 + $0x304] ss:$16 sps:$4 sm:$0xff]   ;;  %v3963_v58 = vld [vmem:[%s6066_s1 + $0x30c] ss:$16 sps:$4 sm:$0xff]  }
  0x49   :  { %490 = vmatprep.subr.bf16.mxu0 %v3898_v59  ;;  %563 = vmatprep.subr.bf16.mxu1 %v3900_v60  ;;  %v3958_v59 = vld [vmem:[%s6066_s1 + $0x300] ss:$16 sps:$4 sm:$0xff]   ;;  %v3961_v60 = vld [vmem:[%s6066_s1 + $0x308] ss:$16 sps:$4 sm:$0xff]  }
  0x4c   :  { %491 = vmatpush1.bf16.msra.mxu0 %v3902_v61  ;;  %564 = vmatpush1.bf16.msra.mxu1 %v3903_v62  ;;  %v3966_v61 = vld [vmem:[%s6066_s1 + $0x324] ss:$16 sps:$4 sm:$0xff]   ;;  %v3964_v62 = vld [vmem:[%s6066_s1 + $0x320] ss:$16 sps:$4 sm:$0xff]  }
  0x4d   :  { %492 = vmatprep.subr.bf16.mxu0 %v3904_v63  ;;  %565 = vmatprep.subr.bf16.mxu1 %v3906_v0  ;;  %v3967_v63 = vld [vmem:[%s6066_s1 + $0x328] ss:$16 sps:$4 sm:$0xff]   ;;  %v3972_v0 = vld [vmem:[%s6066_s1 + $0x344] ss:$16 sps:$4 sm:$0xff]  }
  0x50   :  { %493 = vmatpush1.bf16.msra.mxu0 %v3908_v1  ;;  %566 = vmatpush1.bf16.msra.mxu1 %v3909_v2  ;;  %v3975_v1 = vld [vmem:[%s6066_s1 + $0x34c] ss:$16 sps:$4 sm:$0xff]   ;;  %v3970_v2 = vld [vmem:[%s6066_s1 + $0x340] ss:$16 sps:$4 sm:$0xff]  }
  0x51   :  { %1048 = vmatprep.subr.bf16.mxu0 %v3912_v5  ;;  %1121 = vmatprep.subr.bf16.mxu1 %v3915_v6  ;;  %v3981_v5 = vld [vmem:[%s6066_s1 + $0x36c] ss:$16 sps:$4 sm:$0xff]   ;;  %v3976_v6 = vld [vmem:[%s6066_s1 + $0x360] ss:$16 sps:$4 sm:$0xff]  }
  0x53   :  { %495 = vmatmul.mubr.bf16.vlgmr.msra.gmra.mrb[0].mxu0 %v4701_v7  ;;  %568 = vmatmul.mubr.bf16.vlgmr.msra.gmra.mrb[0].mxu1 %v4701_v7 }
  0x54   :  { %1049 = vmatpush1.bf16.msra.mxu0 %v3910_v8  ;;  %1122 = vmatpush1.bf16.msra.mxu1 %v3913_v9  ;;  %v3979_v8 = vld [vmem:[%s6066_s1 + $0x368] ss:$16 sps:$4 sm:$0xff]   ;;  %v3984_v9 = vld [vmem:[%s6066_s1 + $0x384] ss:$16 sps:$4 sm:$0xff]  }
  0x55   :  { %1050 = vmatprep.subr.bf16.mxu0 %v3918_v10  ;;  %1123 = vmatprep.subr.bf16.mxu1 %v3921_v11  ;;  %v3987_v10 = vld [vmem:[%s6066_s1 + $0x38c] ss:$16 sps:$4 sm:$0xff]   ;;  %v3982_v11 = vld [vmem:[%s6066_s1 + $0x380] ss:$16 sps:$4 sm:$0xff]  }
  0x56   :  { %504 = vmatprep.mubr.bf16.mxu0 %v4750_v23  ;;  %577 = vmatprep.mubr.bf16.mxu1 %v4750_v23 }
  0x58   :  { %1051 = vmatpush1.bf16.msra.mxu0 %v3916_v12  ;;  %1124 = vmatpush1.bf16.msra.mxu1 %v3919_v13  ;;  %v3985_v12 = vld [vmem:[%s6066_s1 + $0x388] ss:$16 sps:$4 sm:$0xff]   ;;  %v3990_v13 = vld [vmem:[%s6066_s1 + $0x3a4] ss:$16 sps:$4 sm:$0xff]  }
  0x59   :  { %1052 = vmatprep.subr.bf16.mxu0 %v3924_v14  ;;  %1125 = vmatprep.subr.bf16.mxu1 %v3927_v15  ;;  %v3993_v14 = vld [vmem:[%s6066_s1 + $0x3ac] ss:$16 sps:$4 sm:$0xff]   ;;  %v3988_v15 = vld [vmem:[%s6066_s1 + $0x3a0] ss:$16 sps:$4 sm:$0xff]  }
  0x5b   :  { %505 = vmatmul.mubr.bf16.gmra.mrb[4].mxu0 %v4752_v24  ;;  %578 = vmatmul.mubr.bf16.gmra.mrb[4].mxu1 %v4752_v24 }
  0x5c   :  { %1053 = vmatpush1.bf16.msra.mxu0 %v3922_v16  ;;  %1126 = vmatpush1.bf16.msra.mxu1 %v3925_v17  ;;  %v3991_v16 = vld [vmem:[%s6066_s1 + $0x3a8] ss:$16 sps:$4 sm:$0xff]   ;;  %v3996_v17 = vld [vmem:[%s6066_s1 + $0x3c4] ss:$16 sps:$4 sm:$0xff]  }
  0x5d   :  { %1054 = vmatprep.subr.bf16.mxu0 %v3930_v22  ;;  %1127 = vmatprep.subr.bf16.mxu1 %v3933_v25  ;;  %v4005_v22 = vld [vmem:[%s6066_s1 + $0x3ec] ss:$16 sps:$4 sm:$0xff]   ;;  %v4000_v25 = vld [vmem:[%s6066_s1 + $0x3e0] ss:$16 sps:$4 sm:$0xff]  }
  0x5e   :  { %514 = vmatprep.mubr.bf16.mxu0 %v4779_v32  ;;  %587 = vmatprep.mubr.bf16.mxu1 %v4779_v32 }
  0x60   :  { %1055 = vmatpush1.bf16.msra.mxu0 %v3928_v26  ;;  %1128 = vmatpush1.bf16.msra.mxu1 %v3931_v27  ;;  %v4003_v26 = vld [vmem:[%s6066_s1 + $0x3e8] ss:$16 sps:$4 sm:$0xff]   ;;  %v4953_v27 = vld [vmem:[#allocation4 + $0x4] ss:$16 sps:$4 sm:$0xff]  }
  0x61   :  { %1056 = vmatprep.subr.bf16.mxu0 %v3936_v28  ;;  %1129 = vmatprep.subr.bf16.mxu1 %v3939_v29  ;;  %v4955_v28 = vld [vmem:[#allocation4 + $0xc] ss:$16 sps:$4 sm:$0xff]   ;;  %v4957_v29 = vld [vmem:[#allocation4] ss:$16 sps:$4 sm:$0xff]  }
  0x63   :  { %515 = vmatmul.mubr.bf16.gmra.mrb[8].mxu0 %v4793_v37  ;;  %588 = vmatmul.mubr.bf16.gmra.mrb[8].mxu1 %v4793_v37 }
  0x64   :  { %1057 = vmatpush1.bf16.msra.mxu0 %v3934_v35  ;;  %1130 = vmatpush1.bf16.msra.mxu1 %v3937_v36  ;;  %v4973_v35 = vld [vmem:[#allocation4 + $0x28] ss:$16 sps:$4 sm:$0xff]   ;;  %v4977_v36 = vld [vmem:[#allocation4 + $0x44] ss:$16 sps:$4 sm:$0xff]  }
  0x65   :  { %1058 = vmatprep.subr.bf16.mxu0 %v3942_v38  ;;  %1131 = vmatprep.subr.bf16.mxu1 %v3945_v39  ;;  %v4979_v38 = vld [vmem:[#allocation4 + $0x4c] ss:$16 sps:$4 sm:$0xff]   ;;  %v4987_v39 = vld [vmem:[#allocation4 + $0x48] ss:$16 sps:$4 sm:$0xff]  }
  0x66   :  { %524 = vmatprep.mubr.bf16.mxu0 %v4826_v47  ;;  %597 = vmatprep.mubr.bf16.mxu1 %v4826_v47 }
  0x68   :  { %1059 = vmatpush1.bf16.msra.mxu0 %v3940_v40  ;;  %1132 = vmatpush1.bf16.msra.mxu1 %v3943_v41  ;;  %v4991_v40 = vld [vmem:[#allocation4 + $0x64] ss:$16 sps:$4 sm:$0xff]   ;;  %v4993_v41 = vld [vmem:[#allocation4 + $0x6c] ss:$16 sps:$4 sm:$0xff]  }
  0x69   :  { %1060 = vmatprep.subr.bf16.mxu0 %v3948_v42  ;;  %1133 = vmatprep.subr.bf16.mxu1 %v3951_v43  ;;  %v5001_v42 = vld [vmem:[#allocation4 + $0x68] ss:$16 sps:$4 sm:$0xff]   ;;  %v5005_v43 = vld [vmem:[#allocation4 + $0x84] ss:$16 sps:$4 sm:$0xff]  }
  0x6b   :  { %525 = vmatmul.mubr.bf16.gmra.mrb[12].mxu0 %v4838_v52  ;;  %598 = vmatmul.mubr.bf16.gmra.mrb[12].mxu1 %v4838_v52 }
  0x6c   :  { %1061 = vmatpush1.bf16.msra.mxu0 %v3946_v49  ;;  %1134 = vmatpush1.bf16.msra.mxu1 %v3949_v50  ;;  %v5029_v49 = vld [vmem:[#allocation4 + $0xa8] ss:$16 sps:$4 sm:$0xff]   ;;  %v5033_v50 = vld [vmem:[#allocation4 + $0xc4] ss:$16 sps:$4 sm:$0xff]  }
  0x6d   :  { %1062 = vmatprep.subr.bf16.mxu0 %v3954_v53  ;;  %1135 = vmatprep.subr.bf16.mxu1 %v3957_v54  ;;  %v5035_v53 = vld [vmem:[#allocation4 + $0xcc] ss:$16 sps:$4 sm:$0xff]   ;;  %v5043_v54 = vld [vmem:[#allocation4 + $0xc8] ss:$16 sps:$4 sm:$0xff]  }
  0x6e   :  { %1080 = vmatprep.mubr.bf16.mxu0 %v4640_v51  ;;  %1153 = vmatprep.mubr.bf16.mxu1 %v4640_v51  ;;  %v3969_v51 = vld [vmem:[%s6066_s1 + $0x32c] ss:$16 sps:$4 sm:$0xff]  }
  0x70   :  { %1063 = vmatpush1.bf16.msra.mxu0 %v3952_v55  ;;  %1136 = vmatpush1.bf16.msra.mxu1 %v3955_v56  ;;  %v5047_v55 = vld [vmem:[#allocation4 + $0xe4] ss:$16 sps:$4 sm:$0xff]   ;;  %v5049_v56 = vld [vmem:[#allocation4 + $0xec] ss:$16 sps:$4 sm:$0xff]  }
  0x71   :  { %1064 = vmatprep.subr.bf16.mxu0 %v3960_v57  ;;  %1137 = vmatprep.subr.bf16.mxu1 %v3963_v58  ;;  %v5057_v57 = vld [vmem:[#allocation4 + $0xe8] ss:$16 sps:$4 sm:$0xff]   ;;  %v6070_v58 = vmov 0  }
  0x74   :  { %1065 = vmatpush1.bf16.msra.mxu0 %v3958_v59  ;;  %1138 = vmatpush1.bf16.msra.mxu1 %v3961_v60 }
  0x75   :  { %1066 = vmatprep.subr.bf16.mxu0 %v3966_v61  ;;  %1139 = vmatprep.subr.bf16.mxu1 %v3969_v51  ;;  %v120_v51 = vld [vmem:[%s6068_s3] sm:$0xf] }
  0x78   :  { %1067 = vmatpush1.bf16.msra.mxu0 %v3964_v62  ;;  %1140 = vmatpush1.bf16.msra.mxu1 %v3967_v63 }
  0x79   :  { %1068 = vmatprep.subr.bf16.mxu0 %v3972_v0  ;;  %1141 = vmatprep.subr.bf16.mxu1 %v3975_v1 }
  0x7c   :  { %1069 = vmatpush1.bf16.msra.mxu0 %v3970_v2  ;;  %1142 = vmatpush1.bf16.msra.mxu1 %v3973_v3 }
  0x7d   :  { %1070 = vmatprep.subr.bf16.mxu0 %v3978_v4  ;;  %1143 = vmatprep.subr.bf16.mxu1 %v3981_v5 }
  0x80   :  { %1071 = vmatpush1.bf16.msra.mxu0 %v3976_v6  ;;  %1144 = vmatpush1.bf16.msra.mxu1 %v3979_v8 }
  0x81   :  { %1072 = vmatprep.subr.bf16.mxu0 %v3984_v9  ;;  %1145 = vmatprep.subr.bf16.mxu1 %v3987_v10 }
  0x84   :  { %1073 = vmatpush1.bf16.msra.mxu0 %v3982_v11  ;;  %1146 = vmatpush1.bf16.msra.mxu1 %v3985_v12 }
  0x85   :  { %1074 = vmatprep.subr.bf16.mxu0 %v3990_v13  ;;  %1147 = vmatprep.subr.bf16.mxu1 %v3993_v14 }
  0x88   :  { %1075 = vmatpush1.bf16.msra.mxu0 %v3988_v15  ;;  %1148 = vmatpush1.bf16.msra.mxu1 %v3991_v16 }
  0x89   :  { %1076 = vmatprep.subr.bf16.mxu0 %v3996_v17  ;;  %1149 = vmatprep.subr.bf16.mxu1 %v3999_v18 }
  0x8c   :  { %1077 = vmatpush1.bf16.msra.mxu0 %v3994_v19  ;;  %1150 = vmatpush1.bf16.msra.mxu1 %v3997_v20 }
  0x8d   :  { %1078 = vmatprep.subr.bf16.mxu0 %v4002_v21  ;;  %1151 = vmatprep.subr.bf16.mxu1 %v4005_v22 }
  0x90   :  { %1079 = vmatpush1.bf16.msra.mxu0 %v4000_v25  ;;  %1152 = vmatpush1.bf16.msra.mxu1 %v4003_v26 }
  0x91   :  { %1455 = vmatprep.subr.bf16.mxu0 %v4953_v27  ;;  %1496 = vmatprep.subr.bf16.mxu1 %v4955_v28 }
  0x93   :  { %1081 = vmatmul.mubr.bf16.vlgmr.msra.gmra.mrb[16].mxu0 %v4701_v7  ;;  %1154 = vmatmul.mubr.bf16.vlgmr.msra.gmra.mrb[16].mxu1 %v4701_v7  ;;  %v4985_v7 = vld [vmem:[#allocation4 + $0x40] ss:$16 sps:$4 sm:$0xff]  }
  0x94   :  { %1456 = vmatpush1.bf16.msra.mxu0 %v4957_v29  ;;  %1497 = vmatpush1.bf16.msra.mxu1 %v4959_v30 }
  0x95   :  { %1457 = vmatprep.subr.bf16.mxu0 %v4963_v31  ;;  %1498 = vmatprep.subr.bf16.mxu1 %v4965_v33 }
  0x96   :  { %1090 = vmatprep.mubr.bf16.mxu0 %v4750_v23  ;;  %1163 = vmatprep.mubr.bf16.mxu1 %v4750_v23  ;;  %v4999_v23 = vld [vmem:[#allocation4 + $0x60] ss:$16 sps:$4 sm:$0xff]  }
  0x98   :  { %1458 = vmatpush1.bf16.msra.mxu0 %v4971_v34  ;;  %1499 = vmatpush1.bf16.msra.mxu1 %v4973_v35 }
  0x99   :  { %1459 = vmatprep.subr.bf16.mxu0 %v4977_v36  ;;  %1500 = vmatprep.subr.bf16.mxu1 %v4979_v38 }
  0x9b   :  { %1091 = vmatmul.mubr.bf16.gmra.mrb[20].mxu0 %v4752_v24  ;;  %1164 = vmatmul.mubr.bf16.gmra.mrb[20].mxu1 %v4752_v24  ;;  %v5013_v24 = vld [vmem:[#allocation4 + $0x80] ss:$16 sps:$4 sm:$0xff]  }
  0x9c   :  { %1460 = vmatpush1.bf16.msra.mxu0 %v4985_v7  ;;  %1501 = vmatpush1.bf16.msra.mxu1 %v4987_v39 }
  0x9d   :  { %1461 = vmatprep.subr.bf16.mxu0 %v4991_v40  ;;  %1502 = vmatprep.subr.bf16.mxu1 %v4993_v41 }
  0x9e   :  { %1100 = vmatprep.mubr.bf16.mxu0 %v4779_v32  ;;  %1173 = vmatprep.mubr.bf16.mxu1 %v4779_v32  ;;  %v5027_v32 = vld [vmem:[#allocation4 + $0xa0] ss:$16 sps:$4 sm:$0xff]  }
  0xa0   :  { %1462 = vmatpush1.bf16.msra.mxu0 %v4999_v23  ;;  %1503 = vmatpush1.bf16.msra.mxu1 %v5001_v42 }
  0xa1   :  { %1463 = vmatprep.subr.bf16.mxu0 %v5005_v43  ;;  %1504 = vmatprep.subr.bf16.mxu1 %v5007_v44 }
  0xa3   :  { %1101 = vmatmul.mubr.bf16.gmra.mrb[24].mxu0 %v4793_v37  ;;  %1174 = vmatmul.mubr.bf16.gmra.mrb[24].mxu1 %v4793_v37  ;;  %v5041_v37 = vld [vmem:[#allocation4 + $0xc0] ss:$16 sps:$4 sm:$0xff]  }
  0xa4   :  { %1464 = vmatpush1.bf16.msra.mxu0 %v5013_v24  ;;  %1505 = vmatpush1.bf16.msra.mxu1 %v5015_v45 }
  0xa5   :  { %1465 = vmatprep.subr.bf16.mxu0 %v5019_v46  ;;  %1506 = vmatprep.subr.bf16.mxu1 %v5021_v48 }
  0xa6   :  { %1110 = vmatprep.mubr.bf16.mxu0 %v4826_v47  ;;  %1183 = vmatprep.mubr.bf16.mxu1 %v4826_v47  ;;  %v5055_v47 = vld [vmem:[#allocation4 + $0xe0] ss:$16 sps:$4 sm:$0xff]  }
  0xa8   :  { %1466 = vmatpush1.bf16.msra.mxu0 %v5027_v32  ;;  %1507 = vmatpush1.bf16.msra.mxu1 %v5029_v49 }
  0xa9   :  { %1467 = vmatprep.subr.bf16.mxu0 %v5033_v50  ;;  %1508 = vmatprep.subr.bf16.mxu1 %v5035_v53 }
  0xab   :  { %1111 = vmatmul.mubr.bf16.gmra.mrb[28].mxu0 %v4838_v52  ;;  %1184 = vmatmul.mubr.bf16.gmra.mrb[28].mxu1 %v4838_v52  ;;  %v122_v52 = vlaneseq }
  0xac   :  { %1468 = vmatpush1.bf16.msra.mxu0 %v5041_v37  ;;  %1509 = vmatpush1.bf16.msra.mxu1 %v5043_v54 }
  0xad   :  { %1469 = vmatprep.subr.bf16.mxu0 %v5047_v55  ;;  %1510 = vmatprep.subr.bf16.mxu1 %v5049_v56  ;;  %v5103_v59 = vshrl.u32 %v122_v52, 7 }
  0xae   :  { %1487 = vmatprep.mubr.bf16.mxu0 %v6070_v58  ;;  %1528 = vmatprep.mubr.bf16.mxu1 %v6070_v58 }
  0xaf   :  { %v6075_v60 = vsub.s32 0, %v5103_v59  ;;  %v6074_v61 = vsub.s32 2, %v5103_v59  ;;  %v6072_v62 = vsub.s32 3, %v5103_v59  ;;  %v6073_v63 = vsub.s32 1, %v5103_v59 }
  0xb0   :  { %1470 = vmatpush1.bf16.msra.mxu0 %v5055_v47  ;;  %1511 = vmatpush1.bf16.msra.mxu1 %v5057_v57 }
  0xb1   :  { %1572 = vmatprep.subr.bf16.mxu0 %v4953_v27  ;;  %1613 = vmatprep.subr.bf16.mxu1 %v4955_v28  ;;  %v5114_v0 = vrot.slane %v120_v51, %v6075_v60  ;;  %v5118_v1 = vrot.slane %v120_v51, %v6074_v61  ;;  %v5126_v4 = vrot.slane %v120_v51, %v6072_v62 }
  0xb2   :  { %v5134_v8 = vrot.slane %v120_v51, %v6073_v63 }
  0xb3   :  { %1488 = vmatmul.mubr.bf16.vlgmr.msra.gmra.mrb[32].mxu0 %v6070_v58  ;;  %1529 = vmatmul.mubr.bf16.vlgmr.msra.gmra.mrb[32].mxu1 %v6070_v58 }
  0xb4   :  { %1573 = vmatpush1.bf16.msra.mxu0 %v4957_v29  ;;  %1614 = vmatpush1.bf16.msra.mxu1 %v4959_v30 }
  0xb5   :  { %1574 = vmatprep.subr.bf16.mxu0 %v4963_v31  ;;  %1615 = vmatprep.subr.bf16.mxu1 %v4965_v33 }
  0xb6   :  { %1604 = vmatprep.mubr.bf16.mxu0 %v6070_v58  ;;  %1645 = vmatprep.mubr.bf16.mxu1 %v6070_v58 }
  0xb8   :  { %1575 = vmatpush1.bf16.msra.mxu0 %v4971_v34  ;;  %1616 = vmatpush1.bf16.msra.mxu1 %v4973_v35 }
  0xb9   :  { %1576 = vmatprep.subr.bf16.mxu0 %v4977_v36  ;;  %1617 = vmatprep.subr.bf16.mxu1 %v4979_v38 }
  0xbc   :  { %1577 = vmatpush1.bf16.msra.mxu0 %v4985_v7  ;;  %1618 = vmatpush1.bf16.msra.mxu1 %v4987_v39 }
  0xbd   :  { %1578 = vmatprep.subr.bf16.mxu0 %v4991_v40  ;;  %1619 = vmatprep.subr.bf16.mxu1 %v4993_v41 }
  0xc0   :  { %1579 = vmatpush1.bf16.msra.mxu0 %v4999_v23  ;;  %1620 = vmatpush1.bf16.msra.mxu1 %v5001_v42 }
  0xc1   :  { %1580 = vmatprep.subr.bf16.mxu0 %v5005_v43  ;;  %1621 = vmatprep.subr.bf16.mxu1 %v5007_v44 }
  0xc4   :  { %1581 = vmatpush1.bf16.msra.mxu0 %v5013_v24  ;;  %1622 = vmatpush1.bf16.msra.mxu1 %v5015_v45 }
  0xc5   :  { %1582 = vmatprep.subr.bf16.mxu0 %v5019_v46  ;;  %1623 = vmatprep.subr.bf16.mxu1 %v5021_v48 }
  0xc8   :  { %1583 = vmatpush1.bf16.msra.mxu0 %v5027_v32  ;;  %1624 = vmatpush1.bf16.msra.mxu1 %v5029_v49 }
  0xc9   :  { %1584 = vmatprep.subr.bf16.mxu0 %v5033_v50  ;;  %1625 = vmatprep.subr.bf16.mxu1 %v5035_v53 }
  0xcc   :  { %1585 = vmatpush1.bf16.msra.mxu0 %v5041_v37  ;;  %1626 = vmatpush1.bf16.msra.mxu1 %v5043_v54 }
  0xcd   :  { %1586 = vmatprep.subr.bf16.mxu0 %v5047_v55  ;;  %1627 = vmatprep.subr.bf16.mxu1 %v5049_v56 }
  0xd0   :  { %1587 = vmatpush1.bf16.msra.mxu0 %v5055_v47  ;;  %1628 = vmatpush1.bf16.msra.mxu1 %v5057_v57 }
  0xd1   :  { %1690 = vmatprep.subr.bf16.mxu0 %v4953_v27  ;;  %1731 = vmatprep.subr.bf16.mxu1 %v4955_v28 }
 0x126   :  { %v5120_v2 = vpop.f32.mrb[0].mxu0  ;;  %v5122_v3 = vpop.f32.mrb[0].mxu1 }
 0x127   :  { %v5128_v5 = vpop.f32.mrb[1].mxu0  ;;  %v5130_v6 = vpop.f32.mrb[1].mxu1 }
 0x128   :  { %v500_v9 = vpop.f32.mrb[2].mxu0  ;;  %v573_v10 = vpop.f32.mrb[2].mxu1 }
 0x129   :  { %v5137_v11 = vadd.f32 %v500_v9, %v5114_v0  ;;  %v502_v12 = vpop.f32.mrb[3].mxu0  ;;  %v5140_v13 = vadd.f32 %v573_v10, %v5118_v1  ;;  %v575_v14 = vpop.f32.mrb[3].mxu1 }
 0x12a   :  { %v5143_v15 = vadd.f32 %v502_v12, %v5134_v8  ;;  %v5146_v16 = vadd.f32 %v575_v14, %v5126_v4 }
 0x12e   :  { %v506_v17 = vpop.f32.mrb[4].mxu0  ;;  %v579_v18 = vpop.f32.mrb[4].mxu1 }
 0x12f   :  { %v5149_v19 = vadd.f32 %v506_v17, %v5114_v0  ;;  %v508_v20 = vpop.f32.mrb[5].mxu0  ;;  %v5152_v21 = vadd.f32 %v579_v18, %v5118_v1  ;;  %v581_v22 = vpop.f32.mrb[5].mxu1 }
 0x130   :  { %v5155_v25 = vadd.f32 %v508_v20, %v5134_v8  ;;  %v510_v26 = vpop.f32.mrb[6].mxu0  ;;  %v5158_v52 = vadd.f32 %v581_v22, %v5126_v4  ;;  %v583_v51 = vpop.f32.mrb[6].mxu1 }
 0x131   :  { %v5161_v9 = vadd.f32 %v510_v26, %v5114_v0  ;;  %v512_v10 = vpop.f32.mrb[7].mxu0  ;;  %v5164_v12 = vadd.f32 %v583_v51, %v5118_v1  ;;  %v585_v14 = vpop.f32.mrb[7].mxu1 }
 0x132   :  { %6078 = vst [vmem:[#allocation7_spill] sm:$0xff] %v5158_v52  ;;  %v5167_v17 = vadd.f32 %v512_v10, %v5134_v8  ;;  %v5170_v18 = vadd.f32 %v585_v14, %v5126_v4 }
 0x133   :  { %6079 = vst [vmem:[#allocation8_spill] sm:$0xff] %v5161_v9  ;;  %6080 = vst [vmem:[#allocation9_spill] sm:$0xff] %v5164_v12 }
 0x134   :  { %6081 = vst [vmem:[#allocation10_spill] sm:$0xff] %v5167_v17  ;;  %6082 = vst [vmem:[#allocation11_spill] sm:$0xff] %v5170_v18 }
 0x136   :  { %v516_v20 = vpop.f32.mrb[8].mxu0  ;;  %v589_v58 = vpop.f32.mrb[8].mxu1 }
 0x137   :  { %v5173_v22 = vadd.f32 %v516_v20, %v5114_v0  ;;  %v518_v62 = vpop.f32.mrb[9].mxu0  ;;  %v5176_v26 = vadd.f32 %v589_v58, %v5118_v1  ;;  %v591_v63 = vpop.f32.mrb[9].mxu1 }
 0x138   :  { %v5179_v51 = vadd.f32 %v518_v62, %v5134_v8  ;;  %v520_v61 = vpop.f32.mrb[10].mxu0  ;;  %v5182_v10 = vadd.f32 %v591_v63, %v5126_v4  ;;  %v593_v60 = vpop.f32.mrb[10].mxu1 }
 0x139   :  { %6083 = vst [vmem:[#allocation12_spill] sm:$0xff] %v5173_v22  ;;  %6084 = vst [vmem:[#allocation13_spill] sm:$0xff] %v5176_v26  ;;  %v5185_v14 = vadd.f32 %v520_v61, %v5114_v0  ;;  %v522_v18 = vpop.f32.mrb[11].mxu0  ;;  %v5188_v20 = vadd.f32 %v593_v60, %v5118_v1  ;;  %v595_v22 = vpop.f32.mrb[11].mxu1 }
 0x13a   :  { %6085 = vst [vmem:[#allocation14_spill] sm:$0xff] %v5179_v51  ;;  %6086 = vst [vmem:[#allocation15_spill] sm:$0xff] %v5182_v10  ;;  %v5191_v58 = vadd.f32 %v522_v18, %v5134_v8  ;;  %v5194_v26 = vadd.f32 %v595_v22, %v5126_v4 }
 0x13b   :  { %6087 = vst [vmem:[#allocation16_spill] sm:$0xff] %v5185_v14  ;;  %6088 = vst [vmem:[#allocation17_spill] sm:$0xff] %v5188_v20 }
 0x13c   :  { %6089 = vst [vmem:[#allocation18_spill] sm:$0xff] %v5191_v58  ;;  %6090 = vst [vmem:[#allocation19_spill] sm:$0xff] %v5194_v26 }
 0x13e   :  { %v526_v62 = vpop.f32.mrb[12].mxu0  ;;  %v599_v51 = vpop.f32.mrb[12].mxu1 }
 0x13f   :  { %v5197_v63 = vadd.f32 %v526_v62, %v5114_v0  ;;  %v528_v10 = vpop.f32.mrb[13].mxu0  ;;  %v5200_v61 = vadd.f32 %v599_v51, %v5118_v1  ;;  %v601_v14 = vpop.f32.mrb[13].mxu1 }
 0x140   :  { %v5203_v60 = vadd.f32 %v528_v10, %v5134_v8  ;;  %v530_v20 = vpop.f32.mrb[14].mxu0  ;;  %v5206_v18 = vadd.f32 %v601_v14, %v5126_v4  ;;  %v603_v58 = vpop.f32.mrb[14].mxu1  ;;  %v3619_v10 = vld [vmem:[%s6068_s3 + $0x4] sm:$0xf]  ;;  %v6099_v14 = vsub.s32 0, %v5103_v59 }
 0x141   :  { %6091 = vst [vmem:[#allocation20_spill] sm:$0xff] %v5197_v63  ;;  %6092 = vst [vmem:[#allocation21_spill] sm:$0xff] %v5200_v61  ;;  %v5209_v22 = vadd.f32 %v530_v20, %v5114_v0  ;;  %v532_v26 = vpop.f32.mrb[15].mxu0  ;;  %v5212_v62 = vadd.f32 %v603_v58, %v5118_v1  ;;  %v605_v63 = vpop.f32.mrb[15].mxu1  ;;  %v6100_v20 = vsub.s32 2, %v5103_v59  ;;  %v6102_v58 = vsub.s32 1, %v5103_v59 }
 0x142   :  { %6093 = vst [vmem:[#allocation22_spill] sm:$0xff] %v5203_v60  ;;  %6094 = vst [vmem:[#allocation23_spill] sm:$0xff] %v5206_v18  ;;  %v5215_v51 = vadd.f32 %v532_v26, %v5134_v8  ;;  %v5218_v61 = vadd.f32 %v605_v63, %v5126_v4  ;;  %v5225_v18 = vrot.slane %v3619_v10, %v6099_v14  ;;  %v6103_v26 = vsub.s32 3, %v5103_v59 }
 0x143   :  { %6095 = vst [vmem:[#allocation24_spill] sm:$0xff] %v5209_v22  ;;  %6096 = vst [vmem:[#allocation25_spill] sm:$0xff] %v5212_v62  ;;  %v5229_v22 = vrot.slane %v3619_v10, %v6100_v20  ;;  %v715_v62 = vrot.slane %v3619_v10, %v6102_v58 }
 0x144   :  { %6097 = vst [vmem:[#allocation26_spill] sm:$0xff] %v5215_v51  ;;  %6098 = vst [vmem:[#allocation27_spill] sm:$0xff] %v5218_v61  ;;  %v5235_v51 = vrot.slane %v3619_v10, %v6103_v26 }
 0x145   :  { %6101 = vst [vmem:[#allocation28_spill] sm:$0xff] %v5229_v22 }
 0x146   :  { %6104 = vst [vmem:[#allocation29_spill] sm:$0xff] %v5235_v51 }
 0x166   :  { %v1082_v63 = vpop.f32.mrb[16].mxu0  ;;  %v1155_v61 = vpop.f32.mrb[16].mxu1 }
 0x167   :  { %v5238_v60 = vadd.f32 %v1082_v63, %v5225_v18  ;;  %v1084_v17 = vpop.f32.mrb[17].mxu0  ;;  %v5241_v14 = vadd.f32 %v1155_v61, %v5229_v22  ;;  %v1157_v12 = vpop.f32.mrb[17].mxu1 }
 0x168   :  { %v5243_v9 = vadd.f32 %v1084_v17, %v715_v62  ;;  %v1086_v20 = vpop.f32.mrb[18].mxu0  ;;  %v5246_v52 = vadd.f32 %v1157_v12, %v5235_v51  ;;  %v1159_v58 = vpop.f32.mrb[18].mxu1 }
 0x169   :  { %6105 = vst [vmem:[#allocation30_spill] sm:$0xff] %v5238_v60  ;;  %6106 = vst [vmem:[#allocation31_spill] sm:$0xff] %v5241_v14  ;;  %v5249_v59 = vadd.f32 %v1086_v20, %v5225_v18  ;;  %v1088_v10 = vpop.f32.mrb[19].mxu0  ;;  %v5252_v26 = vadd.f32 %v1159_v58, %v5229_v22  ;;  %v1161_v63 = vpop.f32.mrb[19].mxu1 }
 0x16a   :  { %6107 = vst [vmem:[#allocation32_spill] sm:$0xff] %v5243_v9  ;;  %6108 = vst [vmem:[#allocation33_spill] sm:$0xff] %v5246_v52  ;;  %v5254_v60 = vadd.f32 %v1088_v10, %v715_v62  ;;  %v5257_v61 = vadd.f32 %v1161_v63, %v5235_v51 }
 0x16b   :  { %6109 = vst [vmem:[#allocation34_spill] sm:$0xff] %v5249_v59  ;;  %6110 = vst [vmem:[#allocation35_spill] sm:$0xff] %v5252_v26 }
 0x16c   :  { %6111 = vst [vmem:[#allocation36_spill] sm:$0xff] %v5254_v60  ;;  %6112 = vst [vmem:[#allocation37_spill] sm:$0xff] %v5257_v61 }
 0x16e   :  { %v1092_v17 = vpop.f32.mrb[20].mxu0  ;;  %v1165_v9 = vpop.f32.mrb[20].mxu1 }
 0x16f   :  { %v5260_v14 = vadd.f32 %v1092_v17, %v5225_v18  ;;  %v1094_v12 = vpop.f32.mrb[21].mxu0  ;;  %v5263_v52 = vadd.f32 %v1165_v9, %v5229_v22  ;;  %v1167_v20 = vpop.f32.mrb[21].mxu1 }
 0x170   :  { %v5265_v59 = vadd.f32 %v1094_v12, %v715_v62  ;;  %v1096_v58 = vpop.f32.mrb[22].mxu0  ;;  %v5268_v26 = vadd.f32 %v1167_v20, %v5235_v51  ;;  %v1169_v10 = vpop.f32.mrb[22].mxu1 }
 0x171   :  { %6113 = vst [vmem:[#allocation38_spill] sm:$0xff] %v5260_v14  ;;  %6114 = vst [vmem:[#allocation39_spill] sm:$0xff] %v5263_v52  ;;  %v5271_v63 = vadd.f32 %v1096_v58, %v5225_v18  ;;  %v1098_v61 = vpop.f32.mrb[23].mxu0  ;;  %v5274_v60 = vadd.f32 %v1169_v10, %v5229_v22  ;;  %v1171_v17 = vpop.f32.mrb[23].mxu1 }
 0x172   :  { %6115 = vst [vmem:[#allocation40_spill] sm:$0xff] %v5265_v59  ;;  %6116 = vst [vmem:[#allocation41_spill] sm:$0xff] %v5268_v26  ;;  %v5276_v14 = vadd.f32 %v1098_v61, %v715_v62  ;;  %v5279_v9 = vadd.f32 %v1171_v17, %v5235_v51 }
 0x173   :  { %6117 = vst [vmem:[#allocation42_spill] sm:$0xff] %v5271_v63  ;;  %6118 = vst [vmem:[#allocation43_spill] sm:$0xff] %v5274_v60 }
 0x174   :  { %6119 = vst [vmem:[#allocation44_spill] sm:$0xff] %v5276_v14  ;;  %6120 = vst [vmem:[#allocation45_spill] sm:$0xff] %v5279_v9 }
 0x176   :  { %v1102_v12 = vpop.f32.mrb[24].mxu0  ;;  %v1175_v59 = vpop.f32.mrb[24].mxu1 }
 0x177   :  { %v5282_v52 = vadd.f32 %v1102_v12, %v5225_v18  ;;  %v1104_v20 = vpop.f32.mrb[25].mxu0  ;;  %v5285_v26 = vadd.f32 %v1175_v59, %v5229_v22  ;;  %v1177_v58 = vpop.f32.mrb[25].mxu1 }
 0x178   :  { %v5287_v63 = vadd.f32 %v1104_v20, %v715_v62  ;;  %v1106_v10 = vpop.f32.mrb[26].mxu0  ;;  %v5290_v60 = vadd.f32 %v1177_v58, %v5235_v51  ;;  %v1179_v61 = vpop.f32.mrb[26].mxu1 }
 0x179   :  { %6121 = vst [vmem:[#allocation46_spill] sm:$0xff] %v5282_v52  ;;  %6122 = vst [vmem:[#allocation47_spill] sm:$0xff] %v5285_v26  ;;  %v5293_v17 = vadd.f32 %v1106_v10, %v5225_v18  ;;  %v1108_v9 = vpop.f32.mrb[27].mxu0  ;;  %v5296_v14 = vadd.f32 %v1179_v61, %v5229_v22  ;;  %v1181_v12 = vpop.f32.mrb[27].mxu1 }
 0x17a   :  { %6123 = vst [vmem:[#allocation48_spill] sm:$0xff] %v5287_v63  ;;  %6124 = vst [vmem:[#allocation49_spill] sm:$0xff] %v5290_v60  ;;  %v5298_v52 = vadd.f32 %v1108_v9, %v715_v62  ;;  %v5301_v59 = vadd.f32 %v1181_v12, %v5235_v51 }
 0x17b   :  { %6125 = vst [vmem:[#allocation50_spill] sm:$0xff] %v5293_v17  ;;  %6126 = vst [vmem:[#allocation51_spill] sm:$0xff] %v5296_v14 }
 0x17c   :  { %6127 = vst [vmem:[#allocation52_spill] sm:$0xff] %v5298_v52  ;;  %6128 = vst [vmem:[#allocation53_spill] sm:$0xff] %v5301_v59 }
 0x17e   :  { %v1112_v20 = vpop.f32.mrb[28].mxu0  ;;  %v1185_v63 = vpop.f32.mrb[28].mxu1 }
 0x17f   :  { %v5304_v26 = vadd.f32 %v1112_v20, %v5225_v18  ;;  %v1114_v58 = vpop.f32.mrb[29].mxu0  ;;  %v5307_v60 = vadd.f32 %v1185_v63, %v5229_v22  ;;  %v1187_v10 = vpop.f32.mrb[29].mxu1  ;;  %v497_v20 = vadd.f32 %v5120_v2, %v5114_v0  ;;  %v570_v63 = vadd.f32 %v5122_v3, %v5118_v1 }
 0x180   :  { %v5309_v17 = vadd.f32 %v1114_v58, %v715_v62  ;;  %v5311_v61 = vpop.f32.mrb[30].mxu0  ;;  %v5314_v9 = vadd.f32 %v1187_v10, %v5235_v51  ;;  %v5316_v52 = vpop.f32.mrb[30].mxu1  ;;  %v499_v58 = vadd.f32 %v5128_v5, %v5134_v8  ;;  %v572_v10 = vadd.f32 %v5130_v6, %v5126_v4 }
 0x181   :  { %6129 = vst [vmem:[#allocation54_spill] sm:$0xff] %v5304_v26  ;;  %6130 = vst [vmem:[#allocation55_spill] sm:$0xff] %v5307_v60  ;;  %v1118_v12 = vpop.f32.mrb[31].mxu0  ;;  %v5318_v59 = vpop.f32.mrb[31].mxu1 }
 0x182   :  { %6131 = vst [vmem:[#allocation56_spill] sm:$0xff] %v5309_v17  ;;  %6132 = vst [vmem:[#allocation57_spill] sm:$0xff] %v5314_v9  ;;  %v5320_v14 = vadd.f32 %v1118_v12, %v715_v62 }
 0x183   :  { %6133 = vst [vmem:[#allocation58_spill] sm:$0xff] %v5316_v52  ;;  %6134 = vst [vmem:[#allocation59_spill] sm:$0xff] %v5318_v59 }
 0x184   :  { %6135 = vst [vmem:[#allocation60_spill] sm:$0xff] %v5320_v14 }
 0x186   :  { %v1489_v9 = vpop.f32.mrb[32].mxu0  ;;  %v1530_v17 = vpop.f32.mrb[32].mxu1 }
 0x187   :  { %v1537_v60 = vadd.f32 %v1489_v9, %v497_v20  ;;  %v1539_v26 = vadd.f32 %v1530_v17, %v570_v63  ;;  %v1491_v51 = vpop.f32.mrb[33].mxu0  ;;  %v1532_v59 = vpop.f32.mrb[33].mxu1 }
 0x188   :  { %v1538_v62 = vadd.f32 %v1491_v51, %v499_v58  ;;  %v1540_v12 = vadd.f32 %v1532_v59, %v572_v10  ;;  %v1493_v14 = vpop.f32.mrb[34].mxu0  ;;  %v1534_v52 = vpop.f32.mrb[34].mxu1  ;;  %v6136_v10 = vmov 0  }
 0x189   :  { %v3716_v0 = vmul.f32 -1.442695, %v1537_v60  ;;  %v1494_v2 = vpop.f32.mrb[35].mxu0  ;;  %v1535_v22 = vpop.f32.mrb[35].mxu1 }
 0x18a   :  { %v3717_v1 = vmul.f32 -1.442695, %v1538_v62  ;;  %v3718_v3 = vmul.f32 -1.442695, %v1540_v12 }
 0x18b   :  { %4102 = vpow2.f32 %v3716_v0 }
 0x18c   :  { %4104 = vpow2.f32 %v3717_v1 }
 0x18d   :  { %4106 = vpow2.f32 %v3718_v3 }
 0x18e   :  { %4108 = vtanh.f32 %v1539_v26 }
 0x195   :  { %v4103_v5 = vpop.eup %4102 }
 0x196   :  { %v4105_v8 = vpop.eup %4104  ;;  %v1544_v4 = vadd.f32 1.0, %v4103_v5 }
 0x197   :  { %v1550_v6 = vadd.f32 1.0, %v4105_v8  ;;  %v4107_v17 = vpop.eup %4106 }
 0x198   :  { %4110 = vrcp.f32 %v1544_v4  ;;  %v4109_v51 = vpop.eup %4108  ;;  %v1557_v60 = vadd.f32 1.0, %v4107_v17 }
 0x199   :  { %4112 = vrcp.f32 %v1550_v6 }
 0x19a   :  { %4114 = vrcp.f32 %v1557_v60 }
 0x1a2   :  { %v4111_v59 = vpop.eup %4110 }
 0x1a3   :  { %v4113_v14 = vpop.eup %4112  ;;  %v1561_v52 = vmul.f32 %v4111_v59, %v4109_v51 }
 0x1a4   :  { %v1560_v9 = vmul.f32 0.0, %v4113_v14  ;;  %v4115_v20 = vpop.eup %4114 }
 0x1a6   :  { %v5330_v22 = vadd.f32 %v1561_v52, %v1560_v9 }
 0x1a8   :  { %4116 = vtanh.f32 %v5330_v22 }
 0x1b2   :  { %v4117_v63 = vpop.eup %4116 }
 0x1b3   :  { %v1564_v58 = vmul.f32 %v4117_v63, %v4115_v20 }
 0x1b5   :  { %1565 = vst [vmem:[%s6069_s4] sm:$0xff] %v1564_v58  ;;  %v1571_v26 = vpack.c.bf16 %v1564_v58, %v1564_v58 }
 0x1b7   :  { %1605 = vmatmul.mubr.bf16.vlgmr.msra.gmra.mrb[36].mxu0 %v1571_v26  ;;  %1646 = vmatmul.mubr.bf16.vlgmr.msra.gmra.mrb[36].mxu1 %v1571_v26 }
 0x1b8   :  { %1691 = vmatpush1.bf16.msra.mxu0 %v4957_v29  ;;  %1732 = vmatpush1.bf16.msra.mxu1 %v4959_v30 }
 0x1b9   :  { %1692 = vmatprep.subr.bf16.mxu0 %v4963_v31  ;;  %1733 = vmatprep.subr.bf16.mxu1 %v4965_v33 }
 0x1ba   :  { %1722 = vmatprep.mubr.bf16.mxu0 %v6136_v10  ;;  %1763 = vmatprep.mubr.bf16.mxu1 %v6136_v10 }
 0x1bc   :  { %1693 = vmatpush1.bf16.msra.mxu0 %v4971_v34  ;;  %1734 = vmatpush1.bf16.msra.mxu1 %v4973_v35 }
 0x1bd   :  { %1694 = vmatprep.subr.bf16.mxu0 %v4977_v36  ;;  %1735 = vmatprep.subr.bf16.mxu1 %v4979_v38 }
 0x1c0   :  { %1695 = vmatpush1.bf16.msra.mxu0 %v4985_v7  ;;  %1736 = vmatpush1.bf16.msra.mxu1 %v4987_v39 }
 0x1c1   :  { %1696 = vmatprep.subr.bf16.mxu0 %v4991_v40  ;;  %1737 = vmatprep.subr.bf16.mxu1 %v4993_v41 }
 0x1c4   :  { %1697 = vmatpush1.bf16.msra.mxu0 %v4999_v23  ;;  %1738 = vmatpush1.bf16.msra.mxu1 %v5001_v42 }
 0x1c5   :  { %1698 = vmatprep.subr.bf16.mxu0 %v5005_v43  ;;  %1739 = vmatprep.subr.bf16.mxu1 %v5007_v44 }
 0x1c8   :  { %1699 = vmatpush1.bf16.msra.mxu0 %v5013_v24  ;;  %1740 = vmatpush1.bf16.msra.mxu1 %v5015_v45 }
 0x1c9   :  { %1700 = vmatprep.subr.bf16.mxu0 %v5019_v46  ;;  %1741 = vmatprep.subr.bf16.mxu1 %v5021_v48 }
 0x1cc   :  { %1701 = vmatpush1.bf16.msra.mxu0 %v5027_v32  ;;  %1742 = vmatpush1.bf16.msra.mxu1 %v5029_v49 }
 0x1cd   :  { %1702 = vmatprep.subr.bf16.mxu0 %v5033_v50  ;;  %1743 = vmatprep.subr.bf16.mxu1 %v5035_v53 }
 0x1d0   :  { %1703 = vmatpush1.bf16.msra.mxu0 %v5041_v37  ;;  %1744 = vmatpush1.bf16.msra.mxu1 %v5043_v54 }
 0x1d1   :  { %1704 = vmatprep.subr.bf16.mxu0 %v5047_v55  ;;  %1745 = vmatprep.subr.bf16.mxu1 %v5049_v56 }
 0x1d4   :  { %1705 = vmatpush1.bf16.msra.mxu0 %v5055_v47  ;;  %1746 = vmatpush1.bf16.msra.mxu1 %v5057_v57 }
 0x1d5   :  { %1808 = vmatprep.subr.bf16.mxu0 %v4953_v27  ;;  %1849 = vmatprep.subr.bf16.mxu1 %v4955_v28 }
 0x28a   :  { %v1606_v62 = vpop.f32.mrb[36].mxu0  ;;  %v1647_v12 = vpop.f32.mrb[36].mxu1 }
 0x28b   :  { %v1654_v0 = vadd.f32 %v1606_v62, %v5137_v11  ;;  %v1656_v2 = vadd.f32 %v1647_v12, %v5140_v13  ;;  %v1608_v1 = vpop.f32.mrb[37].mxu0  ;;  %v1649_v3 = vpop.f32.mrb[37].mxu1 }
 0x28c   :  { %v1655_v5 = vadd.f32 %v1608_v1, %v5143_v15  ;;  %v1657_v8 = vadd.f32 %v1649_v3, %v5146_v16  ;;  %v1610_v4 = vpop.f32.mrb[38].mxu0  ;;  %v1651_v6 = vpop.f32.mrb[38].mxu1 }
 0x28d   :  { %v3719_v17 = vmul.f32 -1.442695, %v1654_v0  ;;  %v1611_v51 = vpop.f32.mrb[39].mxu0  ;;  %v1652_v59 = vpop.f32.mrb[39].mxu1 }
 0x28e   :  { %v3720_v14 = vmul.f32 -1.442695, %v1655_v5  ;;  %v3721_v52 = vmul.f32 -1.442695, %v1657_v8  ;;  %v6137_v59 = vld [vmem:[#allocation7_spill] sm:$0xff] }
 0x28f   :  { %4118 = vpow2.f32 %v3719_v17 }
 0x290   :  { %4120 = vpow2.f32 %v3720_v14 }
 0x291   :  { %4122 = vpow2.f32 %v3721_v52 }
 0x292   :  { %4124 = vtanh.f32 %v1656_v2 }
 0x299   :  { %v4119_v60 = vpop.eup %4118 }
 0x29a   :  { %v4121_v9 = vpop.eup %4120  ;;  %v1661_v11 = vadd.f32 1.0, %v4119_v60 }
 0x29b   :  { %v1667_v13 = vadd.f32 1.0, %v4121_v9  ;;  %v4123_v15 = vpop.eup %4122 }
 0x29c   :  { %4126 = vrcp.f32 %v1661_v11  ;;  %v4125_v20 = vpop.eup %4124  ;;  %v1674_v26 = vadd.f32 1.0, %v4123_v15 }
 0x29d   :  { %4128 = vrcp.f32 %v1667_v13 }
 0x29e   :  { %4130 = vrcp.f32 %v1674_v26 }
 0x2a6   :  { %v4127_v16 = vpop.eup %4126 }
 0x2a7   :  { %v4129_v63 = vpop.eup %4128  ;;  %v1678_v58 = vmul.f32 %v4127_v16, %v4125_v20 }
 0x2a8   :  { %v1677_v62 = vmul.f32 %v4129_v63, %v5330_v22  ;;  %v4131_v0 = vpop.eup %4130 }
 0x2aa   :  { %v5375_v12 = vadd.f32 %v1678_v58, %v1677_v62 }
 0x2ac   :  { %4132 = vtanh.f32 %v5375_v12 }
 0x2b6   :  { %v4133_v1 = vpop.eup %4132 }
 0x2b7   :  { %v1681_v3 = vmul.f32 %v4133_v1, %v4131_v0 }
 0x2b9   :  { %3722 = vst [vmem:[%s6069_s4 + $0x10] sm:$0xff] %v1681_v3  ;;  %v1689_v2 = vpack.c.bf16 %v1681_v3, %v1681_v3 }
 0x2bb   :  { %1723 = vmatmul.mubr.bf16.vlgmr.msra.gmra.mrb[40].mxu0 %v1689_v2  ;;  %1764 = vmatmul.mubr.bf16.vlgmr.msra.gmra.mrb[40].mxu1 %v1689_v2 }
 0x2bc   :  { %1809 = vmatpush1.bf16.msra.mxu0 %v4957_v29  ;;  %1850 = vmatpush1.bf16.msra.mxu1 %v4959_v30 }
 0x2bd   :  { %1810 = vmatprep.subr.bf16.mxu0 %v4963_v31  ;;  %1851 = vmatprep.subr.bf16.mxu1 %v4965_v33 }
 0x2be   :  { %1840 = vmatprep.mubr.bf16.mxu0 %v6136_v10  ;;  %1881 = vmatprep.mubr.bf16.mxu1 %v6136_v10 }
 0x2c0   :  { %1811 = vmatpush1.bf16.msra.mxu0 %v4971_v34  ;;  %1852 = vmatpush1.bf16.msra.mxu1 %v4973_v35 }
 0x2c1   :  { %1812 = vmatprep.subr.bf16.mxu0 %v4977_v36  ;;  %1853 = vmatprep.subr.bf16.mxu1 %v4979_v38 }
 0x2c4   :  { %1813 = vmatpush1.bf16.msra.mxu0 %v4985_v7  ;;  %1854 = vmatpush1.bf16.msra.mxu1 %v4987_v39 }
 0x2c5   :  { %1814 = vmatprep.subr.bf16.mxu0 %v4991_v40  ;;  %1855 = vmatprep.subr.bf16.mxu1 %v4993_v41 }
 0x2c8   :  { %1815 = vmatpush1.bf16.msra.mxu0 %v4999_v23  ;;  %1856 = vmatpush1.bf16.msra.mxu1 %v5001_v42 }
 0x2c9   :  { %1816 = vmatprep.subr.bf16.mxu0 %v5005_v43  ;;  %1857 = vmatprep.subr.bf16.mxu1 %v5007_v44 }
 0x2cc   :  { %1817 = vmatpush1.bf16.msra.mxu0 %v5013_v24  ;;  %1858 = vmatpush1.bf16.msra.mxu1 %v5015_v45 }
 0x2cd   :  { %1818 = vmatprep.subr.bf16.mxu0 %v5019_v46  ;;  %1859 = vmatprep.subr.bf16.mxu1 %v5021_v48 }
 0x2d0   :  { %1819 = vmatpush1.bf16.msra.mxu0 %v5027_v32  ;;  %1860 = vmatpush1.bf16.msra.mxu1 %v5029_v49 }
 0x2d1   :  { %1820 = vmatprep.subr.bf16.mxu0 %v5033_v50  ;;  %1861 = vmatprep.subr.bf16.mxu1 %v5035_v53 }
 0x2d4   :  { %1821 = vmatpush1.bf16.msra.mxu0 %v5041_v37  ;;  %1862 = vmatpush1.bf16.msra.mxu1 %v5043_v54 }
 0x2d5   :  { %1822 = vmatprep.subr.bf16.mxu0 %v5047_v55  ;;  %1863 = vmatprep.subr.bf16.mxu1 %v5049_v56 }
 0x2d8   :  { %1823 = vmatpush1.bf16.msra.mxu0 %v5055_v47  ;;  %1864 = vmatpush1.bf16.msra.mxu1 %v5057_v57 }
 0x2d9   :  { %1926 = vmatprep.subr.bf16.mxu0 %v4953_v27  ;;  %1967 = vmatprep.subr.bf16.mxu1 %v4955_v28 }
 0x38e   :  { %v1724_v22 = vpop.f32.mrb[40].mxu0  ;;  %v1765_v5 = vpop.f32.mrb[40].mxu1 }
 0x38f   :  { %v1772_v8 = vadd.f32 %v1724_v22, %v5149_v19  ;;  %v1774_v4 = vadd.f32 %v1765_v5, %v5152_v21  ;;  %v1726_v6 = vpop.f32.mrb[41].mxu0  ;;  %v1767_v17 = vpop.f32.mrb[41].mxu1 }
 0x390   :  { %v1773_v51 = vadd.f32 %v1726_v6, %v5155_v25  ;;  %v1775_v14 = vadd.f32 %v1767_v17, %v6137_v59  ;;  %v1728_v52 = vpop.f32.mrb[42].mxu0  ;;  %v1769_v60 = vpop.f32.mrb[42].mxu1 }
 0x391   :  { %v3723_v9 = vmul.f32 -1.442695, %v1772_v8  ;;  %v1729_v11 = vpop.f32.mrb[43].mxu0  ;;  %v1770_v13 = vpop.f32.mrb[43].mxu1 }
 0x392   :  { %v3724_v15 = vmul.f32 -1.442695, %v1773_v51  ;;  %v3725_v20 = vmul.f32 -1.442695, %v1775_v14 }
 0x393   :  { %4134 = vpow2.f32 %v3723_v9 }
 0x394   :  { %4136 = vpow2.f32 %v3724_v15 }
 0x395   :  { %4138 = vpow2.f32 %v3725_v20 }
 0x396   :  { %4140 = vtanh.f32 %v1774_v4 }
 0x39d   :  { %v4135_v16 = vpop.eup %4134 }
 0x39e   :  { %v4137_v63 = vpop.eup %4136  ;;  %v1779_v19 = vadd.f32 1.0, %v4135_v16 }
 0x39f   :  { %v1785_v21 = vadd.f32 1.0, %v4137_v63  ;;  %v4139_v25 = vpop.eup %4138 }
 0x3a0   :  { %4142 = vrcp.f32 %v1779_v19  ;;  %v4141_v58 = vpop.eup %4140  ;;  %v1792_v1 = vadd.f32 1.0, %v4139_v25 }
 0x3a1   :  { %4144 = vrcp.f32 %v1785_v21 }
 0x3a2   :  { %4146 = vrcp.f32 %v1792_v1  ;;  %v5480_v1 = vld [vmem:[#allocation4 + $0x2c] ss:$16 sps:$4 sm:$0xff]  }
 0x3aa   :  { %v4143_v26 = vpop.eup %4142 }
 0x3ab   :  { %v4145_v62 = vpop.eup %4144  ;;  %v1796_v0 = vmul.f32 %v4143_v26, %v4141_v58  ;;  %v5471_v26 = vld [vmem:[#allocation4] ss:$16 sps:$4 sm:$0xff]  }
 0x3ac   :  { %v1795_v3 = vmul.f32 %v4145_v62, %v5375_v12  ;;  %v4147_v22 = vpop.eup %4146  ;;  %v5474_v62 = vld [vmem:[#allocation4 + $0x8] ss:$16 sps:$4 sm:$0xff]  }
 0x3ae   :  { %v5420_v2 = vadd.f32 %v1796_v0, %v1795_v3  ;;  %v5477_v0 = vld [vmem:[#allocation4 + $0x24] ss:$16 sps:$4 sm:$0xff]   ;;  %v5485_v3 = vld [vmem:[#allocation4 + $0x20] ss:$16 sps:$4 sm:$0xff]  }
 0x3b0   :  { %4148 = vtanh.f32 %v5420_v2 }
 0x3ba   :  { %v4149_v5 = vpop.eup %4148 }
 0x3bb   :  { %v1799_v8 = vmul.f32 %v4149_v5, %v4147_v22  ;;  %v5491_v22 = vld [vmem:[#allocation4 + $0x44] ss:$16 sps:$4 sm:$0xff]   ;;  %v5494_v5 = vld [vmem:[#allocation4 + $0x4c] ss:$16 sps:$4 sm:$0xff]  }
 0x3bd   :  { %3726 = vst [vmem:[%s6069_s4 + $0x20] sm:$0xff] %v1799_v8  ;;  %v1807_v4 = vpack.c.bf16 %v1799_v8, %v1799_v8  ;;  %v5497_v8 = vld [vmem:[#allocation4 + $0x40] ss:$16 sps:$4 sm:$0xff]  }
 0x3bf   :  { %1841 = vmatmul.mubr.bf16.vlgmr.msra.gmra.mrb[44].mxu0 %v1807_v4  ;;  %1882 = vmatmul.mubr.bf16.vlgmr.msra.gmra.mrb[44].mxu1 %v1807_v4  ;;  %v5500_v4 = vld [vmem:[#allocation4 + $0x48] ss:$16 sps:$4 sm:$0xff]  }
 0x3c0   :  { %1927 = vmatpush1.bf16.msra.mxu0 %v4957_v29  ;;  %1968 = vmatpush1.bf16.msra.mxu1 %v4959_v30 }
 0x3c1   :  { %1928 = vmatprep.subr.bf16.mxu0 %v4963_v31  ;;  %1969 = vmatprep.subr.bf16.mxu1 %v4965_v33  ;;  %v6138_v31 = vld [vmem:[#allocation8_spill] sm:$0xff] }
 0x3c2   :  { %1958 = vmatprep.mubr.bf16.mxu0 %v6136_v10  ;;  %1999 = vmatprep.mubr.bf16.mxu1 %v6136_v10 }
 0x3c4   :  { %1929 = vmatpush1.bf16.msra.mxu0 %v4971_v34  ;;  %1970 = vmatpush1.bf16.msra.mxu1 %v4973_v35  ;;  %v6139_v34 = vld [vmem:[#allocation9_spill] sm:$0xff] }
 0x3c5   :  { %1930 = vmatprep.subr.bf16.mxu0 %v4977_v36  ;;  %1971 = vmatprep.subr.bf16.mxu1 %v4979_v38 }
 0x3c8   :  { %1931 = vmatpush1.bf16.msra.mxu0 %v4985_v7  ;;  %1972 = vmatpush1.bf16.msra.mxu1 %v4987_v39  ;;  %v6140_v7 = vld [vmem:[#allocation10_spill] sm:$0xff] }
 0x3c9   :  { %1932 = vmatprep.subr.bf16.mxu0 %v4991_v40  ;;  %1973 = vmatprep.subr.bf16.mxu1 %v4993_v41  ;;  %v6141_v40 = vld [vmem:[#allocation11_spill] sm:$0xff] }
 0x3cc   :  { %1933 = vmatpush1.bf16.msra.mxu0 %v4999_v23  ;;  %1974 = vmatpush1.bf16.msra.mxu1 %v5001_v42 }
 0x3cd   :  { %1934 = vmatprep.subr.bf16.mxu0 %v5005_v43  ;;  %1975 = vmatprep.subr.bf16.mxu1 %v5007_v44 }
 0x3d0   :  { %1935 = vmatpush1.bf16.msra.mxu0 %v5013_v24  ;;  %1976 = vmatpush1.bf16.msra.mxu1 %v5015_v45 }
 0x3d1   :  { %1936 = vmatprep.subr.bf16.mxu0 %v5019_v46  ;;  %1977 = vmatprep.subr.bf16.mxu1 %v5021_v48 }
 0x3d4   :  { %1937 = vmatpush1.bf16.msra.mxu0 %v5027_v32  ;;  %1978 = vmatpush1.bf16.msra.mxu1 %v5029_v49 }
 0x3d5   :  { %1938 = vmatprep.subr.bf16.mxu0 %v5033_v50  ;;  %1979 = vmatprep.subr.bf16.mxu1 %v5035_v53 }
 0x3d8   :  { %1939 = vmatpush1.bf16.msra.mxu0 %v5041_v37  ;;  %1980 = vmatpush1.bf16.msra.mxu1 %v5043_v54 }
 0x3d9   :  { %1940 = vmatprep.subr.bf16.mxu0 %v5047_v55  ;;  %1981 = vmatprep.subr.bf16.mxu1 %v5049_v56 }
 0x3dc   :  { %1941 = vmatpush1.bf16.msra.mxu0 %v5055_v47  ;;  %1982 = vmatpush1.bf16.msra.mxu1 %v5057_v57 }
 0x3dd   :  { %2044 = vmatprep.subr.bf16.mxu0 %v4953_v27  ;;  %2085 = vmatprep.subr.bf16.mxu1 %v4955_v28 }
 0x492   :  { %v1842_v29 = vpop.f32.mrb[44].mxu0  ;;  %v1883_v30 = vpop.f32.mrb[44].mxu1 }
 0x493   :  { %v1890_v33 = vadd.f32 %v1842_v29, %v6138_v31  ;;  %v1892_v35 = vadd.f32 %v1883_v30, %v6139_v34  ;;  %v1844_v36 = vpop.f32.mrb[45].mxu0  ;;  %v1885_v38 = vpop.f32.mrb[45].mxu1  ;;  %v5503_v29 = vld [vmem:[#allocation4 + $0x64] ss:$16 sps:$4 sm:$0xff]   ;;  %v5506_v30 = vld [vmem:[#allocation4 + $0x6c] ss:$16 sps:$4 sm:$0xff]  }
 0x494   :  { %v1891_v39 = vadd.f32 %v1844_v36, %v6140_v7  ;;  %v1893_v41 = vadd.f32 %v1885_v38, %v6141_v40  ;;  %v1846_v23 = vpop.f32.mrb[46].mxu0  ;;  %v1887_v42 = vpop.f32.mrb[46].mxu1  ;;  %v5509_v31 = vld [vmem:[#allocation4 + $0x60] ss:$16 sps:$4 sm:$0xff]  }
 0x495   :  { %v3727_v12 = vmul.f32 -1.442695, %v1890_v33  ;;  %v1847_v6 = vpop.f32.mrb[47].mxu0  ;;  %v1888_v17 = vpop.f32.mrb[47].mxu1  ;;  %v5512_v33 = vld [vmem:[#allocation4 + $0x68] ss:$16 sps:$4 sm:$0xff]  }
 0x496   :  { %v3728_v27 = vmul.f32 -1.442695, %v1891_v39  ;;  %v3729_v28 = vmul.f32 -1.442695, %v1893_v41 }
 0x497   :  { %4150 = vpow2.f32 %v3727_v12 }
 0x498   :  { %4152 = vpow2.f32 %v3728_v27 }
 0x499   :  { %4154 = vpow2.f32 %v3729_v28 }
 0x49a   :  { %4156 = vtanh.f32 %v1892_v35 }
 0x4a1   :  { %v4151_v51 = vpop.eup %4150 }
 0x4a2   :  { %v4153_v59 = vpop.eup %4152  ;;  %v1897_v14 = vadd.f32 1.0, %v4151_v51 }
 0x4a3   :  { %v1903_v52 = vadd.f32 1.0, %v4153_v59  ;;  %v4155_v60 = vpop.eup %4154 }
 0x4a4   :  { %4158 = vrcp.f32 %v1897_v14  ;;  %v4157_v9 = vpop.eup %4156  ;;  %v1910_v20 = vadd.f32 1.0, %v4155_v60 }
 0x4a5   :  { %4160 = vrcp.f32 %v1903_v52 }
 0x4a6   :  { %4162 = vrcp.f32 %v1910_v20  ;;  %v5573_v20 = vld [vmem:[#allocation4 + $0x88] ss:$16 sps:$4 sm:$0xff]  }
 0x4ae   :  { %v4159_v11 = vpop.eup %4158 }
 0x4af   :  { %v4161_v13 = vpop.eup %4160  ;;  %v1914_v15 = vmul.f32 %v4159_v11, %v4157_v9  ;;  %v5564_v11 = vld [vmem:[#allocation4 + $0x84] ss:$16 sps:$4 sm:$0xff]  }
 0x4b0   :  { %v1913_v16 = vmul.f32 %v4161_v13, %v5420_v2  ;;  %v4163_v19 = vpop.eup %4162  ;;  %v5488_v2 = vld [vmem:[#allocation4 + $0x28] ss:$16 sps:$4 sm:$0xff]   ;;  %v5567_v13 = vld [vmem:[#allocation4 + $0x8c] ss:$16 sps:$4 sm:$0xff]  }
 0x4b2   :  { %v5465_v63 = vadd.f32 %v1914_v15, %v1913_v16  ;;  %v5570_v15 = vld [vmem:[#allocation4 + $0x80] ss:$16 sps:$4 sm:$0xff]   ;;  %v5576_v16 = vld [vmem:[#allocation4 + $0xa4] ss:$16 sps:$4 sm:$0xff]  }
 0x4b4   :  { %4164 = vtanh.f32 %v5465_v63 }
 0x4be   :  { %v4165_v21 = vpop.eup %4164 }
 0x4bf   :  { %v1917_v25 = vmul.f32 %v4165_v21, %v4163_v19  ;;  %v5582_v19 = vld [vmem:[#allocation4 + $0xa0] ss:$16 sps:$4 sm:$0xff]   ;;  %v5585_v21 = vld [vmem:[#allocation4 + $0xa8] ss:$16 sps:$4 sm:$0xff]  }
 0x4c1   :  { %3730 = vst [vmem:[%s6069_s4 + $0x30] sm:$0xff] %v1917_v25  ;;  %v1925_v58 = vpack.c.bf16 %v1917_v25, %v1917_v25  ;;  %v5588_v25 = vld [vmem:[#allocation4 + $0xc4] ss:$16 sps:$4 sm:$0xff]  }
 0x4c3   :  { %1959 = vmatmul.mubr.bf16.vlgmr.msra.gmra.mrb[48].mxu0 %v1925_v58  ;;  %2000 = vmatmul.mubr.bf16.vlgmr.msra.gmra.mrb[48].mxu1 %v1925_v58  ;;  %v5591_v58 = vld [vmem:[#allocation4 + $0xcc] ss:$16 sps:$4 sm:$0xff]  }
 0x4c4   :  { %2045 = vmatpush1.bf16.msra.mxu0 %v5471_v26  ;;  %2086 = vmatpush1.bf16.msra.mxu1 %v5474_v62 }
 0x4c5   :  { %2046 = vmatprep.subr.bf16.mxu0 %v5477_v0  ;;  %2087 = vmatprep.subr.bf16.mxu1 %v5480_v1 }
 0x4c6   :  { %2076 = vmatprep.mubr.bf16.mxu0 %v6136_v10  ;;  %2117 = vmatprep.mubr.bf16.mxu1 %v6136_v10 }
 0x4c8   :  { %2047 = vmatpush1.bf16.msra.mxu0 %v5485_v3  ;;  %2088 = vmatpush1.bf16.msra.mxu1 %v5488_v2 }
 0x4c9   :  { %2048 = vmatprep.subr.bf16.mxu0 %v5491_v22  ;;  %2089 = vmatprep.subr.bf16.mxu1 %v5494_v5 }
 0x4cc   :  { %2049 = vmatpush1.bf16.msra.mxu0 %v5497_v8  ;;  %2090 = vmatpush1.bf16.msra.mxu1 %v5500_v4 }
 0x4cd   :  { %2050 = vmatprep.subr.bf16.mxu0 %v5503_v29  ;;  %2091 = vmatprep.subr.bf16.mxu1 %v5506_v30 }
 0x4d0   :  { %2051 = vmatpush1.bf16.msra.mxu0 %v5509_v31  ;;  %2092 = vmatpush1.bf16.msra.mxu1 %v5512_v33 }
 0x4d1   :  { %2052 = vmatprep.subr.bf16.mxu0 %v5005_v43  ;;  %2093 = vmatprep.subr.bf16.mxu1 %v5007_v44  ;;  %v5531_v43 = vld [vmem:[#allocation4 + $0x4] ss:$16 sps:$4 sm:$0xff]   ;;  %v5534_v44 = vld [vmem:[#allocation4 + $0xc] ss:$16 sps:$4 sm:$0xff]  }
 0x4d4   :  { %2053 = vmatpush1.bf16.msra.mxu0 %v5013_v24  ;;  %2094 = vmatpush1.bf16.msra.mxu1 %v5015_v45 }
 0x4d5   :  { %2054 = vmatprep.subr.bf16.mxu0 %v5019_v46  ;;  %2095 = vmatprep.subr.bf16.mxu1 %v5021_v48  ;;  %v6142_v46 = vld [vmem:[#allocation12_spill] sm:$0xff] }
 0x4d8   :  { %2055 = vmatpush1.bf16.msra.mxu0 %v5027_v32  ;;  %2096 = vmatpush1.bf16.msra.mxu1 %v5029_v49  ;;  %v6143_v32 = vld [vmem:[#allocation13_spill] sm:$0xff] }
 0x4d9   :  { %2056 = vmatprep.subr.bf16.mxu0 %v5033_v50  ;;  %2097 = vmatprep.subr.bf16.mxu1 %v5035_v53 }
 0x4dc   :  { %2057 = vmatpush1.bf16.msra.mxu0 %v5041_v37  ;;  %2098 = vmatpush1.bf16.msra.mxu1 %v5043_v54  ;;  %v6144_v37 = vld [vmem:[#allocation14_spill] sm:$0xff] }
 0x4dd   :  { %2058 = vmatprep.subr.bf16.mxu0 %v5047_v55  ;;  %2099 = vmatprep.subr.bf16.mxu1 %v5049_v56  ;;  %v6145_v55 = vld [vmem:[#allocation15_spill] sm:$0xff] }
 0x4e0   :  { %2059 = vmatpush1.bf16.msra.mxu0 %v5055_v47  ;;  %2100 = vmatpush1.bf16.msra.mxu1 %v5057_v57 }
 0x4e1   :  { %2162 = vmatprep.subr.bf16.mxu0 %v5531_v43  ;;  %2203 = vmatprep.subr.bf16.mxu1 %v5534_v44 }
 0x596   :  { %v1960_v24 = vpop.f32.mrb[48].mxu0  ;;  %v2001_v45 = vpop.f32.mrb[48].mxu1 }
 0x597   :  { %v2008_v48 = vadd.f32 %v1960_v24, %v6142_v46  ;;  %v2010_v49 = vadd.f32 %v2001_v45, %v6143_v32  ;;  %v1962_v50 = vpop.f32.mrb[49].mxu0  ;;  %v2003_v53 = vpop.f32.mrb[49].mxu1  ;;  %v5594_v24 = vld [vmem:[#allocation4 + $0xc0] ss:$16 sps:$4 sm:$0xff]   ;;  %v5597_v45 = vld [vmem:[#allocation4 + $0xc8] ss:$16 sps:$4 sm:$0xff]  }
 0x598   :  { %v2009_v54 = vadd.f32 %v1962_v50, %v6144_v37  ;;  %v2011_v56 = vadd.f32 %v2003_v53, %v6145_v55  ;;  %v1964_v47 = vpop.f32.mrb[50].mxu0  ;;  %v2005_v57 = vpop.f32.mrb[50].mxu1  ;;  %v5600_v46 = vld [vmem:[#allocation4 + $0xe4] ss:$16 sps:$4 sm:$0xff]   ;;  %v5606_v32 = vld [vmem:[#allocation4 + $0xe0] ss:$16 sps:$4 sm:$0xff]  }
 0x599   :  { %v3731_v34 = vmul.f32 -1.442695, %v2008_v48  ;;  %v1965_v35 = vpop.f32.mrb[51].mxu0  ;;  %v2006_v36 = vpop.f32.mrb[51].mxu1  ;;  %v5603_v48 = vld [vmem:[#allocation4 + $0xec] ss:$16 sps:$4 sm:$0xff]  }
 0x59a   :  { %v3732_v38 = vmul.f32 -1.442695, %v2009_v54  ;;  %v3733_v7 = vmul.f32 -1.442695, %v2011_v56  ;;  %v6146_v37 = vld [vmem:[#allocation16_spill] sm:$0xff]  ;;  %v6147_v55 = vld [vmem:[#allocation17_spill] sm:$0xff] }
 0x59b   :  { %4166 = vpow2.f32 %v3731_v34  ;;  %v6148_v34 = vld [vmem:[#allocation18_spill] sm:$0xff]  ;;  %v6149_v36 = vld [vmem:[#allocation19_spill] sm:$0xff] }
 0x59c   :  { %4168 = vpow2.f32 %v3732_v38 }
 0x59d   :  { %4170 = vpow2.f32 %v3733_v7 }
 0x59e   :  { %4172 = vtanh.f32 %v2010_v49  ;;  %v5609_v49 = vld [vmem:[#allocation4 + $0xe8] ss:$16 sps:$4 sm:$0xff]  }
 0x5a5   :  { %v4167_v39 = vpop.eup %4166 }
 0x5a6   :  { %v4169_v40 = vpop.eup %4168  ;;  %v2015_v41 = vadd.f32 1.0, %v4167_v39 }
 0x5a7   :  { %v2021_v23 = vadd.f32 1.0, %v4169_v40  ;;  %v4171_v42 = vpop.eup %4170 }
 0x5a8   :  { %4174 = vrcp.f32 %v2015_v41  ;;  %v4173_v12 = vpop.eup %4172  ;;  %v2028_v28 = vadd.f32 1.0, %v4171_v42 }
 0x5a9   :  { %4176 = vrcp.f32 %v2021_v23 }
 0x5aa   :  { %4178 = vrcp.f32 %v2028_v28 }
 0x5b2   :  { %v4175_v6 = vpop.eup %4174 }
 0x5b3   :  { %v4177_v17 = vpop.eup %4176  ;;  %v2032_v27 = vmul.f32 %v4175_v6, %v4173_v12 }
 0x5b4   :  { %v2031_v51 = vmul.f32 %v4177_v17, %v5465_v63  ;;  %v4179_v14 = vpop.eup %4178  ;;  %v5579_v63 = vld [vmem:[#allocation4 + $0xac] ss:$16 sps:$4 sm:$0xff]  }
 0x5b6   :  { %v5542_v59 = vadd.f32 %v2032_v27, %v2031_v51 }
 0x5b8   :  { %4180 = vtanh.f32 %v5542_v59 }
 0x5c2   :  { %v4181_v52 = vpop.eup %4180 }
 0x5c3   :  { %v2035_v60 = vmul.f32 %v4181_v52, %v4179_v14 }
 0x5c5   :  { %3734 = vst [vmem:[%s6069_s4 + $0x40] sm:$0xff] %v2035_v60  ;;  %v2043_v9 = vpack.c.bf16 %v2035_v60, %v2035_v60 }
 0x5c7   :  { %2077 = vmatmul.mubr.bf16.vlgmr.msra.gmra.mrb[52].mxu0 %v2043_v9  ;;  %2118 = vmatmul.mubr.bf16.vlgmr.msra.gmra.mrb[52].mxu1 %v2043_v9 }
 0x5c8   :  { %2163 = vmatpush1.bf16.msra.mxu0 %v5471_v26  ;;  %2204 = vmatpush1.bf16.msra.mxu1 %v5474_v62 }
 0x5c9   :  { %2164 = vmatprep.subr.bf16.mxu0 %v5477_v0  ;;  %2205 = vmatprep.subr.bf16.mxu1 %v5480_v1 }
 0x5ca   :  { %2194 = vmatprep.mubr.bf16.mxu0 %v6136_v10  ;;  %2235 = vmatprep.mubr.bf16.mxu1 %v6136_v10 }
 0x5cc   :  { %2165 = vmatpush1.bf16.msra.mxu0 %v5485_v3  ;;  %2206 = vmatpush1.bf16.msra.mxu1 %v5488_v2 }
 0x5cd   :  { %2166 = vmatprep.subr.bf16.mxu0 %v5491_v22  ;;  %2207 = vmatprep.subr.bf16.mxu1 %v5494_v5 }
 0x5d0   :  { %2167 = vmatpush1.bf16.msra.mxu0 %v5497_v8  ;;  %2208 = vmatpush1.bf16.msra.mxu1 %v5500_v4 }
 0x5d1   :  { %2168 = vmatprep.subr.bf16.mxu0 %v5503_v29  ;;  %2209 = vmatprep.subr.bf16.mxu1 %v5506_v30 }
 0x5d4   :  { %2169 = vmatpush1.bf16.msra.mxu0 %v5509_v31  ;;  %2210 = vmatpush1.bf16.msra.mxu1 %v5512_v33 }
 0x5d5   :  { %2170 = vmatprep.subr.bf16.mxu0 %v5564_v11  ;;  %2211 = vmatprep.subr.bf16.mxu1 %v5567_v13 }
 0x5d8   :  { %2171 = vmatpush1.bf16.msra.mxu0 %v5570_v15  ;;  %2212 = vmatpush1.bf16.msra.mxu1 %v5573_v20 }
 0x5d9   :  { %2172 = vmatprep.subr.bf16.mxu0 %v5576_v16  ;;  %2213 = vmatprep.subr.bf16.mxu1 %v5579_v63 }
 0x5dc   :  { %2173 = vmatpush1.bf16.msra.mxu0 %v5582_v19  ;;  %2214 = vmatpush1.bf16.msra.mxu1 %v5585_v21 }
 0x5dd   :  { %2174 = vmatprep.subr.bf16.mxu0 %v5588_v25  ;;  %2215 = vmatprep.subr.bf16.mxu1 %v5591_v58 }
 0x5e0   :  { %2175 = vmatpush1.bf16.msra.mxu0 %v5594_v24  ;;  %2216 = vmatpush1.bf16.msra.mxu1 %v5597_v45 }
 0x5e1   :  { %2176 = vmatprep.subr.bf16.mxu0 %v5600_v46  ;;  %2217 = vmatprep.subr.bf16.mxu1 %v5603_v48 }
 0x5e4   :  { %2177 = vmatpush1.bf16.msra.mxu0 %v5606_v32  ;;  %2218 = vmatpush1.bf16.msra.mxu1 %v5609_v49 }
 0x5e5   :  { %2280 = vmatprep.subr.bf16.mxu0 %v5531_v43  ;;  %2321 = vmatprep.subr.bf16.mxu1 %v5534_v44 }
 0x69a   :  { %v2078_v50 = vpop.f32.mrb[52].mxu0  ;;  %v2119_v53 = vpop.f32.mrb[52].mxu1 }
 0x69b   :  { %v2126_v54 = vadd.f32 %v2078_v50, %v6146_v37  ;;  %v2128_v56 = vadd.f32 %v2119_v53, %v6147_v55  ;;  %v2080_v47 = vpop.f32.mrb[53].mxu0  ;;  %v2121_v57 = vpop.f32.mrb[53].mxu1 }
 0x69c   :  { %v2127_v35 = vadd.f32 %v2080_v47, %v6148_v34  ;;  %v2129_v38 = vadd.f32 %v2121_v57, %v6149_v36  ;;  %v2082_v7 = vpop.f32.mrb[54].mxu0  ;;  %v2123_v39 = vpop.f32.mrb[54].mxu1  ;;  %v5671_v36 = vld [vmem:[#allocation4 + $0x100] ss:$16 sps:$4 sm:$0xff]  }
 0x69d   :  { %v3735_v40 = vmul.f32 -1.442695, %v2126_v54  ;;  %v2083_v41 = vpop.f32.mrb[55].mxu0  ;;  %v2124_v23 = vpop.f32.mrb[55].mxu1  ;;  %v5678_v39 = vld [vmem:[#allocation4 + $0x124] ss:$16 sps:$4 sm:$0xff]  }
 0x69e   :  { %v3736_v43 = vmul.f32 -1.442695, %v2127_v35  ;;  %v3737_v44 = vmul.f32 -1.442695, %v2129_v38  ;;  %v5673_v38 = vld [vmem:[#allocation4 + $0x108] ss:$16 sps:$4 sm:$0xff]  }
 0x69f   :  { %4182 = vpow2.f32 %v3735_v40  ;;  %v5680_v40 = vld [vmem:[#allocation4 + $0x12c] ss:$16 sps:$4 sm:$0xff]   ;;  %v5684_v41 = vld [vmem:[#allocation4 + $0x120] ss:$16 sps:$4 sm:$0xff]   ;;  %v5686_v23 = vld [vmem:[#allocation4 + $0x128] ss:$16 sps:$4 sm:$0xff]  }
 0x6a0   :  { %4184 = vpow2.f32 %v3736_v43  ;;  %v5690_v43 = vld [vmem:[#allocation4 + $0x144] ss:$16 sps:$4 sm:$0xff]  }
 0x6a1   :  { %4186 = vpow2.f32 %v3737_v44  ;;  %v5692_v44 = vld [vmem:[#allocation4 + $0x14c] ss:$16 sps:$4 sm:$0xff]  }
 0x6a2   :  { %4188 = vtanh.f32 %v2128_v56 }
 0x6a9   :  { %v4183_v42 = vpop.eup %4182 }
 0x6aa   :  { %v4185_v12 = vpop.eup %4184  ;;  %v2133_v6 = vadd.f32 1.0, %v4183_v42  ;;  %v5698_v42 = vld [vmem:[#allocation4 + $0x140] ss:$16 sps:$4 sm:$0xff]  }
 0x6ab   :  { %v2139_v17 = vadd.f32 1.0, %v4185_v12  ;;  %v4187_v27 = vpop.eup %4186  ;;  %v5700_v12 = vld [vmem:[#allocation4 + $0x148] ss:$16 sps:$4 sm:$0xff]  }
 0x6ac   :  { %4190 = vrcp.f32 %v2133_v6  ;;  %v4189_v28 = vpop.eup %4188  ;;  %v2146_v60 = vadd.f32 1.0, %v4187_v27  ;;  %v5704_v6 = vld [vmem:[#allocation4 + $0x164] ss:$16 sps:$4 sm:$0xff]   ;;  %v5710_v27 = vld [vmem:[#allocation4 + $0x160] ss:$16 sps:$4 sm:$0xff]  }
 0x6ad   :  { %4192 = vrcp.f32 %v2139_v17  ;;  %v5706_v17 = vld [vmem:[#allocation4 + $0x16c] ss:$16 sps:$4 sm:$0xff]  }
 0x6ae   :  { %4194 = vrcp.f32 %v2146_v60  ;;  %v5724_v60 = vld [vmem:[#allocation4 + $0x188] ss:$16 sps:$4 sm:$0xff]  }
 0x6b6   :  { %v4191_v51 = vpop.eup %4190 }
 0x6b7   :  { %v4193_v14 = vpop.eup %4192  ;;  %v2150_v52 = vmul.f32 %v4191_v51, %v4189_v28  ;;  %v5712_v28 = vld [vmem:[#allocation4 + $0x168] ss:$16 sps:$4 sm:$0xff]   ;;  %v5716_v51 = vld [vmem:[#allocation4 + $0x184] ss:$16 sps:$4 sm:$0xff]  }
 0x6b8   :  { %v2149_v9 = vmul.f32 %v4193_v14, %v5542_v59  ;;  %v4195_v53 = vpop.eup %4194  ;;  %v5718_v14 = vld [vmem:[#allocation4 + $0x18c] ss:$16 sps:$4 sm:$0xff]  }
 0x6ba   :  { %v5619_v50 = vadd.f32 %v2150_v52, %v2149_v9  ;;  %v5722_v52 = vld [vmem:[#allocation4 + $0x180] ss:$16 sps:$4 sm:$0xff]   ;;  %v5728_v9 = vld [vmem:[#allocation4 + $0x1a4] ss:$16 sps:$4 sm:$0xff]  }
 0x6bc   :  { %4196 = vtanh.f32 %v5619_v50 }
 0x6c6   :  { %v4197_v37 = vpop.eup %4196 }
 0x6c7   :  { %v2153_v54 = vmul.f32 %v4197_v37, %v4195_v53  ;;  %v5734_v53 = vld [vmem:[#allocation4 + $0x1a0] ss:$16 sps:$4 sm:$0xff]   ;;  %v5736_v37 = vld [vmem:[#allocation4 + $0x1a8] ss:$16 sps:$4 sm:$0xff]  }
 0x6c9   :  { %3738 = vst [vmem:[%s6069_s4 + $0x50] sm:$0xff] %v2153_v54  ;;  %v2161_v55 = vpack.c.bf16 %v2153_v54, %v2153_v54  ;;  %v5740_v54 = vld [vmem:[#allocation4 + $0x1c4] ss:$16 sps:$4 sm:$0xff]  }
 0x6cb   :  { %2195 = vmatmul.mubr.bf16.vlgmr.msra.gmra.mrb[56].mxu0 %v2161_v55  ;;  %2236 = vmatmul.mubr.bf16.vlgmr.msra.gmra.mrb[56].mxu1 %v2161_v55  ;;  %v5742_v55 = vld [vmem:[#allocation4 + $0x1cc] ss:$16 sps:$4 sm:$0xff]  }
 0x6cc   :  { %2281 = vmatpush1.bf16.msra.mxu0 %v5471_v26  ;;  %2322 = vmatpush1.bf16.msra.mxu1 %v5474_v62  ;;  %v5657_v26 = vld [vmem:[#allocation4 + $0x104] ss:$16 sps:$4 sm:$0xff]   ;;  %v5659_v62 = vld [vmem:[#allocation4 + $0x10c] ss:$16 sps:$4 sm:$0xff]  }
 0x6cd   :  { %2282 = vmatprep.subr.bf16.mxu0 %v5477_v0  ;;  %2323 = vmatprep.subr.bf16.mxu1 %v5480_v1 }
 0x6ce   :  { %2312 = vmatprep.mubr.bf16.mxu0 %v6136_v10  ;;  %2353 = vmatprep.mubr.bf16.mxu1 %v6136_v10 }
 0x6d0   :  { %2283 = vmatpush1.bf16.msra.mxu0 %v5485_v3  ;;  %2324 = vmatpush1.bf16.msra.mxu1 %v5488_v2  ;;  %v6150_v3 = vld [vmem:[#allocation20_spill] sm:$0xff] }
 0x6d1   :  { %2284 = vmatprep.subr.bf16.mxu0 %v5491_v22  ;;  %2325 = vmatprep.subr.bf16.mxu1 %v5494_v5  ;;  %v6151_v22 = vld [vmem:[#allocation21_spill] sm:$0xff] }
 0x6d4   :  { %2285 = vmatpush1.bf16.msra.mxu0 %v5497_v8  ;;  %2326 = vmatpush1.bf16.msra.mxu1 %v5500_v4 }
 0x6d5   :  { %2286 = vmatprep.subr.bf16.mxu0 %v5503_v29  ;;  %2327 = vmatprep.subr.bf16.mxu1 %v5506_v30  ;;  %v6152_v29 = vld [vmem:[#allocation22_spill] sm:$0xff] }
 0x6d8   :  { %2287 = vmatpush1.bf16.msra.mxu0 %v5509_v31  ;;  %2328 = vmatpush1.bf16.msra.mxu1 %v5512_v33  ;;  %v6153_v31 = vld [vmem:[#allocation23_spill] sm:$0xff] }
 0x6d9   :  { %2288 = vmatprep.subr.bf16.mxu0 %v5564_v11  ;;  %2329 = vmatprep.subr.bf16.mxu1 %v5567_v13 }
 0x6dc   :  { %2289 = vmatpush1.bf16.msra.mxu0 %v5570_v15  ;;  %2330 = vmatpush1.bf16.msra.mxu1 %v5573_v20 }
 0x6dd   :  { %2290 = vmatprep.subr.bf16.mxu0 %v5576_v16  ;;  %2331 = vmatprep.subr.bf16.mxu1 %v5579_v63 }
 0x6e0   :  { %2291 = vmatpush1.bf16.msra.mxu0 %v5582_v19  ;;  %2332 = vmatpush1.bf16.msra.mxu1 %v5585_v21 }
 0x6e1   :  { %2292 = vmatprep.subr.bf16.mxu0 %v5588_v25  ;;  %2333 = vmatprep.subr.bf16.mxu1 %v5591_v58 }
 0x6e4   :  { %2293 = vmatpush1.bf16.msra.mxu0 %v5594_v24  ;;  %2334 = vmatpush1.bf16.msra.mxu1 %v5597_v45 }
 0x6e5   :  { %2294 = vmatprep.subr.bf16.mxu0 %v5600_v46  ;;  %2335 = vmatprep.subr.bf16.mxu1 %v5603_v48 }
 0x6e8   :  { %2295 = vmatpush1.bf16.msra.mxu0 %v5606_v32  ;;  %2336 = vmatpush1.bf16.msra.mxu1 %v5609_v49 }
 0x6e9   :  { %2557 = vmatprep.subr.bf16.mxu0 %v5657_v26  ;;  %2598 = vmatprep.subr.bf16.mxu1 %v5659_v62 }
 0x79e   :  { %v2196_v0 = vpop.f32.mrb[56].mxu0  ;;  %v2237_v1 = vpop.f32.mrb[56].mxu1 }
 0x79f   :  { %v2244_v2 = vadd.f32 %v2196_v0, %v6150_v3  ;;  %v2246_v5 = vadd.f32 %v2237_v1, %v6151_v22  ;;  %v2198_v8 = vpop.f32.mrb[57].mxu0  ;;  %v2239_v4 = vpop.f32.mrb[57].mxu1  ;;  %v5746_v0 = vld [vmem:[#allocation4 + $0x1c0] ss:$16 sps:$4 sm:$0xff]   ;;  %v5748_v1 = vld [vmem:[#allocation4 + $0x1c8] ss:$16 sps:$4 sm:$0xff]  }
 0x7a0   :  { %v2245_v30 = vadd.f32 %v2198_v8, %v6152_v29  ;;  %v2247_v33 = vadd.f32 %v2239_v4, %v6153_v31  ;;  %v2200_v59 = vpop.f32.mrb[58].mxu0  ;;  %v2241_v11 = vpop.f32.mrb[58].mxu1  ;;  %v5752_v3 = vld [vmem:[#allocation4 + $0x1e4] ss:$16 sps:$4 sm:$0xff]   ;;  %v5758_v22 = vld [vmem:[#allocation4 + $0x1e0] ss:$16 sps:$4 sm:$0xff]  }
 0x7a1   :  { %v3739_v13 = vmul.f32 -1.442695, %v2244_v2  ;;  %v2201_v15 = vpop.f32.mrb[59].mxu0  ;;  %v2242_v20 = vpop.f32.mrb[59].mxu1  ;;  %v5754_v2 = vld [vmem:[#allocation4 + $0x1ec] ss:$16 sps:$4 sm:$0xff]  }
 0x7a2   :  { %v3740_v16 = vmul.f32 -1.442695, %v2245_v30  ;;  %v3741_v63 = vmul.f32 -1.442695, %v2247_v33  ;;  %v6154_v29 = vld [vmem:[#allocation24_spill] sm:$0xff]  ;;  %v6155_v31 = vld [vmem:[#allocation25_spill] sm:$0xff] }
 0x7a3   :  { %4198 = vpow2.f32 %v3739_v13  ;;  %v6156_v13 = vld [vmem:[#allocation26_spill] sm:$0xff]  ;;  %v6157_v20 = vld [vmem:[#allocation27_spill] sm:$0xff] }
 0x7a4   :  { %4200 = vpow2.f32 %v3740_v16 }
 0x7a5   :  { %4202 = vpow2.f32 %v3741_v63 }
 0x7a6   :  { %4204 = vtanh.f32 %v2246_v5  ;;  %v5760_v5 = vld [vmem:[#allocation4 + $0x1e8] ss:$16 sps:$4 sm:$0xff]  }
 0x7ad   :  { %v4199_v19 = vpop.eup %4198 }
 0x7ae   :  { %v4201_v21 = vpop.eup %4200  ;;  %v2251_v25 = vadd.f32 1.0, %v4199_v19 }
 0x7af   :  { %v2257_v58 = vadd.f32 1.0, %v4201_v21  ;;  %v4203_v24 = vpop.eup %4202 }
 0x7b0   :  { %4206 = vrcp.f32 %v2251_v25  ;;  %v4205_v45 = vpop.eup %4204  ;;  %v2264_v49 = vadd.f32 1.0, %v4203_v24 }
 0x7b1   :  { %4208 = vrcp.f32 %v2257_v58 }
 0x7b2   :  { %4210 = vrcp.f32 %v2264_v49 }
 0x7ba   :  { %v4207_v46 = vpop.eup %4206 }
 0x7bb   :  { %v4209_v48 = vpop.eup %4208  ;;  %v2268_v32 = vmul.f32 %v4207_v46, %v4205_v45 }
 0x7bc   :  { %v2267_v56 = vmul.f32 %v4209_v48, %v5619_v50  ;;  %v4211_v57 = vpop.eup %4210  ;;  %v5730_v50 = vld [vmem:[#allocation4 + $0x1ac] ss:$16 sps:$4 sm:$0xff]  }
 0x7be   :  { %v5668_v47 = vadd.f32 %v2268_v32, %v2267_v56 }
 0x7c0   :  { %4212 = vtanh.f32 %v5668_v47 }
 0x7ca   :  { %v4213_v34 = vpop.eup %4212 }
 0x7cb   :  { %v2271_v35 = vmul.f32 %v4213_v34, %v4211_v57 }
 0x7cd   :  { %3742 = vst [vmem:[%s6069_s4 + $0x60] sm:$0xff] %v2271_v35  ;;  %v2279_v7 = vpack.c.bf16 %v2271_v35, %v2271_v35 }
 0x7cf   :  { %2313 = vmatmul.mubr.bf16.vlgmr.msra.gmra.mrb[60].mxu0 %v2279_v7  ;;  %2354 = vmatmul.mubr.bf16.vlgmr.msra.gmra.mrb[60].mxu1 %v2279_v7 }
 0x7d0   :  { %2558 = vmatpush1.bf16.msra.mxu0 %v5671_v36  ;;  %2599 = vmatpush1.bf16.msra.mxu1 %v5673_v38 }
 0x7d1   :  { %2559 = vmatprep.subr.bf16.mxu0 %v5678_v39  ;;  %2600 = vmatprep.subr.bf16.mxu1 %v5680_v40 }
 0x7d2   :  { %2589 = vmatprep.mubr.bf16.mxu0 %v6136_v10  ;;  %2630 = vmatprep.mubr.bf16.mxu1 %v6136_v10 }
 0x7d4   :  { %2560 = vmatpush1.bf16.msra.mxu0 %v5684_v41  ;;  %2601 = vmatpush1.bf16.msra.mxu1 %v5686_v23 }
 0x7d5   :  { %2561 = vmatprep.subr.bf16.mxu0 %v5690_v43  ;;  %2602 = vmatprep.subr.bf16.mxu1 %v5692_v44 }
 0x7d8   :  { %2562 = vmatpush1.bf16.msra.mxu0 %v5698_v42  ;;  %2603 = vmatpush1.bf16.msra.mxu1 %v5700_v12 }
 0x7d9   :  { %2563 = vmatprep.subr.bf16.mxu0 %v5704_v6  ;;  %2604 = vmatprep.subr.bf16.mxu1 %v5706_v17 }
 0x7dc   :  { %2564 = vmatpush1.bf16.msra.mxu0 %v5710_v27  ;;  %2605 = vmatpush1.bf16.msra.mxu1 %v5712_v28 }
 0x7dd   :  { %2565 = vmatprep.subr.bf16.mxu0 %v5716_v51  ;;  %2606 = vmatprep.subr.bf16.mxu1 %v5718_v14 }
 0x7e0   :  { %2566 = vmatpush1.bf16.msra.mxu0 %v5722_v52  ;;  %2607 = vmatpush1.bf16.msra.mxu1 %v5724_v60 }
 0x7e1   :  { %2567 = vmatprep.subr.bf16.mxu0 %v5728_v9  ;;  %2608 = vmatprep.subr.bf16.mxu1 %v5730_v50 }
 0x7e4   :  { %2568 = vmatpush1.bf16.msra.mxu0 %v5734_v53  ;;  %2609 = vmatpush1.bf16.msra.mxu1 %v5736_v37 }
 0x7e5   :  { %2569 = vmatprep.subr.bf16.mxu0 %v5740_v54  ;;  %2610 = vmatprep.subr.bf16.mxu1 %v5742_v55 }
 0x7e8   :  { %2570 = vmatpush1.bf16.msra.mxu0 %v5746_v0  ;;  %2611 = vmatpush1.bf16.msra.mxu1 %v5748_v1 }
 0x7e9   :  { %2571 = vmatprep.subr.bf16.mxu0 %v5752_v3  ;;  %2612 = vmatprep.subr.bf16.mxu1 %v5754_v2 }
 0x7ec   :  { %2572 = vmatpush1.bf16.msra.mxu0 %v5758_v22  ;;  %2613 = vmatpush1.bf16.msra.mxu1 %v5760_v5 }
 0x7ed   :  { %2674 = vmatprep.subr.bf16.mxu0 %v5657_v26  ;;  %2715 = vmatprep.subr.bf16.mxu1 %v5659_v62 }
 0x7ef   :  { %2590 = vmatmul.mubr.bf16.vlgmr.msra.gmra.mrb[64].mxu0 %v6136_v10  ;;  %2631 = vmatmul.mubr.bf16.vlgmr.msra.gmra.mrb[64].mxu1 %v6136_v10 }
 0x7f0   :  { %2675 = vmatpush1.bf16.msra.mxu0 %v5671_v36  ;;  %2716 = vmatpush1.bf16.msra.mxu1 %v5673_v38 }
 0x7f1   :  { %2676 = vmatprep.subr.bf16.mxu0 %v5678_v39  ;;  %2717 = vmatprep.subr.bf16.mxu1 %v5680_v40 }
 0x7f2   :  { %2706 = vmatprep.mubr.bf16.mxu0 %v6136_v10  ;;  %2747 = vmatprep.mubr.bf16.mxu1 %v6136_v10 }
 0x7f4   :  { %2677 = vmatpush1.bf16.msra.mxu0 %v5684_v41  ;;  %2718 = vmatpush1.bf16.msra.mxu1 %v5686_v23 }
 0x7f5   :  { %2678 = vmatprep.subr.bf16.mxu0 %v5690_v43  ;;  %2719 = vmatprep.subr.bf16.mxu1 %v5692_v44 }
 0x7f8   :  { %2679 = vmatpush1.bf16.msra.mxu0 %v5698_v42  ;;  %2720 = vmatpush1.bf16.msra.mxu1 %v5700_v12 }
 0x7f9   :  { %2680 = vmatprep.subr.bf16.mxu0 %v5704_v6  ;;  %2721 = vmatprep.subr.bf16.mxu1 %v5706_v17 }
 0x7fc   :  { %2681 = vmatpush1.bf16.msra.mxu0 %v5710_v27  ;;  %2722 = vmatpush1.bf16.msra.mxu1 %v5712_v28 }
 0x7fd   :  { %2682 = vmatprep.subr.bf16.mxu0 %v5716_v51  ;;  %2723 = vmatprep.subr.bf16.mxu1 %v5718_v14 }
 0x800   :  { %2683 = vmatpush1.bf16.msra.mxu0 %v5722_v52  ;;  %2724 = vmatpush1.bf16.msra.mxu1 %v5724_v60 }
 0x801   :  { %2684 = vmatprep.subr.bf16.mxu0 %v5728_v9  ;;  %2725 = vmatprep.subr.bf16.mxu1 %v5730_v50 }
 0x804   :  { %2685 = vmatpush1.bf16.msra.mxu0 %v5734_v53  ;;  %2726 = vmatpush1.bf16.msra.mxu1 %v5736_v37 }
 0x805   :  { %2686 = vmatprep.subr.bf16.mxu0 %v5740_v54  ;;  %2727 = vmatprep.subr.bf16.mxu1 %v5742_v55 }
 0x808   :  { %2687 = vmatpush1.bf16.msra.mxu0 %v5746_v0  ;;  %2728 = vmatpush1.bf16.msra.mxu1 %v5748_v1 }
 0x809   :  { %2688 = vmatprep.subr.bf16.mxu0 %v5752_v3  ;;  %2729 = vmatprep.subr.bf16.mxu1 %v5754_v2 }
 0x80c   :  { %2689 = vmatpush1.bf16.msra.mxu0 %v5758_v22  ;;  %2730 = vmatpush1.bf16.msra.mxu1 %v5760_v5 }
 0x80d   :  { %2791 = vmatprep.subr.bf16.mxu0 %v5657_v26  ;;  %2832 = vmatprep.subr.bf16.mxu1 %v5659_v62 }
 0x8a2   :  { %v2314_v8 = vpop.f32.mrb[60].mxu0  ;;  %v2355_v4 = vpop.f32.mrb[60].mxu1 }
 0x8a3   :  { %v2362_v30 = vadd.f32 %v2314_v8, %v6154_v29  ;;  %v2364_v33 = vadd.f32 %v2355_v4, %v6155_v31  ;;  %v2316_v59 = vpop.f32.mrb[61].mxu0  ;;  %v2357_v11 = vpop.f32.mrb[61].mxu1  ;;  %v1117_v29 = vadd.f32 %v5311_v61, %v5225_v18  ;;  %v6159_v31 = vld [vmem:[#allocation58_spill] sm:$0xff] }
 0x8a4   :  { %v2363_v15 = vadd.f32 %v2316_v59, %v6156_v13  ;;  %v2365_v16 = vadd.f32 %v2357_v11, %v6157_v20  ;;  %v2318_v63 = vpop.f32.mrb[62].mxu0  ;;  %v2359_v19 = vpop.f32.mrb[62].mxu1  ;;  %v6160_v11 = vld [vmem:[#allocation29_spill] sm:$0xff]  ;;  %v6161_v13 = vld [vmem:[#allocation59_spill] sm:$0xff] }
 0x8a5   :  { %v3743_v21 = vmul.f32 -1.442695, %v2362_v30  ;;  %v2319_v25 = vpop.f32.mrb[63].mxu0  ;;  %v2360_v58 = vpop.f32.mrb[63].mxu1  ;;  %v6158_v30 = vld [vmem:[#allocation28_spill] sm:$0xff] }
 0x8a6   :  { %v3744_v24 = vmul.f32 -1.442695, %v2363_v15  ;;  %v3745_v45 = vmul.f32 -1.442695, %v2365_v16  ;;  %v1190_v59 = vadd.f32 %v6159_v31, %v6158_v30  ;;  %v6162_v58 = vld [vmem:[#allocation60_spill] sm:$0xff] }
 0x8a7   :  { %4214 = vpow2.f32 %v3743_v21 }
 0x8a8   :  { %4216 = vpow2.f32 %v3744_v24 }
 0x8a9   :  { %4218 = vpow2.f32 %v3745_v45 }
 0x8aa   :  { %4220 = vtanh.f32 %v2364_v33  ;;  %v1192_v33 = vadd.f32 %v6161_v13, %v6160_v11 }
 0x8b1   :  { %v4215_v46 = vpop.eup %4214 }
 0x8b2   :  { %v4217_v48 = vpop.eup %4216  ;;  %v2369_v32 = vadd.f32 1.0, %v4215_v46 }
 0x8b3   :  { %v2375_v49 = vadd.f32 1.0, %v4217_v48  ;;  %v4219_v56 = vpop.eup %4218 }
 0x8b4   :  { %4222 = vrcp.f32 %v2369_v32  ;;  %v4221_v57 = vpop.eup %4220  ;;  %v2382_v8 = vadd.f32 1.0, %v4219_v56 }
 0x8b5   :  { %4224 = vrcp.f32 %v2375_v49 }
 0x8b6   :  { %4226 = vrcp.f32 %v2382_v8 }
 0x8be   :  { %v4223_v34 = vpop.eup %4222 }
 0x8bf   :  { %v4225_v35 = vpop.eup %4224  ;;  %v2386_v7 = vmul.f32 %v4223_v34, %v4221_v57 }
 0x8c0   :  { %v2385_v4 = vmul.f32 %v4225_v35, %v5668_v47  ;;  %v4227_v49 = vpop.eup %4226 }
 0x8c2   :  { %v2387_v15 = vadd.f32 %v2386_v7, %v2385_v4  ;;  %v2591_v20 = vpop.f32.mrb[64].mxu0  ;;  %v2632_v16 = vpop.f32.mrb[64].mxu1 }
 0x8c3   :  { %v2639_v63 = vadd.f32 %v2591_v20, %v1117_v29  ;;  %v2641_v19 = vadd.f32 %v2632_v16, %v1190_v59  ;;  %v2593_v21 = vpop.f32.mrb[65].mxu0  ;;  %v2634_v25 = vpop.f32.mrb[65].mxu1 }
 0x8c4   :  { %4228 = vtanh.f32 %v2387_v15  ;;  %v2640_v47 = vadd.f32 %v2593_v21, %v6162_v58  ;;  %v2642_v24 = vadd.f32 %v2634_v25, %v1192_v33  ;;  %v2595_v45 = vpop.f32.mrb[66].mxu0  ;;  %v2636_v18 = vpop.f32.mrb[66].mxu1  ;;  %v6163_v58 = vld [vmem:[#allocation54_spill] sm:$0xff] }
 0x8c5   :  { %v3779_v61 = vmul.f32 -1.442695, %v2639_v63  ;;  %v2596_v46 = vpop.f32.mrb[67].mxu0  ;;  %v2637_v48 = vpop.f32.mrb[67].mxu1 }
 0x8c6   :  { %v3780_v32 = vmul.f32 -1.442695, %v2640_v47  ;;  %v3781_v57 = vmul.f32 -1.442695, %v2642_v24  ;;  %v6164_v24 = vld [vmem:[#allocation55_spill] sm:$0xff]  ;;  %v6165_v46 = vld [vmem:[#allocation56_spill] sm:$0xff] }
 0x8c7   :  { %4230 = vpow2.f32 %v3779_v61 }
 0x8c8   :  { %4232 = vpow2.f32 %v3780_v32  ;;  %v6166_v32 = vld [vmem:[#allocation57_spill] sm:$0xff] }
 0x8c9   :  { %4234 = vpow2.f32 %v3781_v57 }
 0x8ca   :  { %4236 = vtanh.f32 %v2641_v19 }
 0x8ce   :  { %v4229_v56 = vpop.eup %4228 }
 0x8cf   :  { %v2389_v34 = vmul.f32 %v4229_v56, %v4227_v49 }
 0x8d1   :  { %v4231_v35 = vpop.eup %4230  ;;  %3746 = vst [vmem:[%s6069_s4 + $0x70] sm:$0xff] %v2389_v34 }
 0x8d2   :  { %v4233_v7 = vpop.eup %4232  ;;  %v2646_v8 = vadd.f32 1.0, %v4231_v35 }
 0x8d3   :  { %v2652_v4 = vadd.f32 1.0, %v4233_v7  ;;  %v4235_v29 = vpop.eup %4234 }
 0x8d4   :  { %4238 = vrcp.f32 %v2646_v8  ;;  %v4237_v30 = vpop.eup %4236  ;;  %v2659_v13 = vadd.f32 1.0, %v4235_v29 }
 0x8d5   :  { %4240 = vrcp.f32 %v2652_v4 }
 0x8d6   :  { %4242 = vrcp.f32 %v2659_v13 }
 0x8de   :  { %v4239_v31 = vpop.eup %4238 }
 0x8df   :  { %v4241_v59 = vpop.eup %4240  ;;  %v2663_v11 = vmul.f32 %v4239_v31, %v4237_v30 }
 0x8e0   :  { %v2662_v33 = vmul.f32 0.0, %v4241_v59  ;;  %v4243_v20 = vpop.eup %4242 }
 0x8e2   :  { %v5819_v15 = vadd.f32 %v2663_v11, %v2662_v33 }
 0x8e4   :  { %4244 = vtanh.f32 %v5819_v15 }
 0x8ee   :  { %v4245_v16 = vpop.eup %4244 }
 0x8ef   :  { %v2666_v63 = vmul.f32 %v4245_v16, %v4243_v20 }
 0x8f1   :  { %3782 = vst [vmem:[%s6069_s4 + $0x78] sm:$0xff] %v2666_v63  ;;  %v2673_v19 = vpack.c.bf16 %v2666_v63, %v2666_v63 }
 0x8f3   :  { %2707 = vmatmul.mubr.bf16.vlgmr.msra.gmra.mrb[68].mxu0 %v2673_v19  ;;  %2748 = vmatmul.mubr.bf16.vlgmr.msra.gmra.mrb[68].mxu1 %v2673_v19 }
 0x8f4   :  { %2792 = vmatpush1.bf16.msra.mxu0 %v5671_v36  ;;  %2833 = vmatpush1.bf16.msra.mxu1 %v5673_v38 }
 0x8f5   :  { %2793 = vmatprep.subr.bf16.mxu0 %v5678_v39  ;;  %2834 = vmatprep.subr.bf16.mxu1 %v5680_v40 }
 0x8f6   :  { %2823 = vmatprep.mubr.bf16.mxu0 %v6136_v10  ;;  %2864 = vmatprep.mubr.bf16.mxu1 %v6136_v10 }
 0x8f8   :  { %2794 = vmatpush1.bf16.msra.mxu0 %v5684_v41  ;;  %2835 = vmatpush1.bf16.msra.mxu1 %v5686_v23 }
 0x8f9   :  { %2795 = vmatprep.subr.bf16.mxu0 %v5690_v43  ;;  %2836 = vmatprep.subr.bf16.mxu1 %v5692_v44 }
 0x8fc   :  { %2796 = vmatpush1.bf16.msra.mxu0 %v5698_v42  ;;  %2837 = vmatpush1.bf16.msra.mxu1 %v5700_v12 }
 0x8fd   :  { %2797 = vmatprep.subr.bf16.mxu0 %v5704_v6  ;;  %2838 = vmatprep.subr.bf16.mxu1 %v5706_v17 }
 0x900   :  { %2798 = vmatpush1.bf16.msra.mxu0 %v5710_v27  ;;  %2839 = vmatpush1.bf16.msra.mxu1 %v5712_v28 }
 0x901   :  { %2799 = vmatprep.subr.bf16.mxu0 %v5716_v51  ;;  %2840 = vmatprep.subr.bf16.mxu1 %v5718_v14 }
 0x904   :  { %2800 = vmatpush1.bf16.msra.mxu0 %v5722_v52  ;;  %2841 = vmatpush1.bf16.msra.mxu1 %v5724_v60 }
 0x905   :  { %2801 = vmatprep.subr.bf16.mxu0 %v5728_v9  ;;  %2842 = vmatprep.subr.bf16.mxu1 %v5730_v50 }
 0x908   :  { %2802 = vmatpush1.bf16.msra.mxu0 %v5734_v53  ;;  %2843 = vmatpush1.bf16.msra.mxu1 %v5736_v37 }
 0x909   :  { %2803 = vmatprep.subr.bf16.mxu0 %v5740_v54  ;;  %2844 = vmatprep.subr.bf16.mxu1 %v5742_v55 }
 0x90c   :  { %2804 = vmatpush1.bf16.msra.mxu0 %v5746_v0  ;;  %2845 = vmatpush1.bf16.msra.mxu1 %v5748_v1 }
 0x90d   :  { %2805 = vmatprep.subr.bf16.mxu0 %v5752_v3  ;;  %2846 = vmatprep.subr.bf16.mxu1 %v5754_v2 }
 0x910   :  { %2806 = vmatpush1.bf16.msra.mxu0 %v5758_v22  ;;  %2847 = vmatpush1.bf16.msra.mxu1 %v5760_v5 }
 0x911   :  { %2908 = vmatprep.subr.bf16.mxu0 %v5657_v26  ;;  %2949 = vmatprep.subr.bf16.mxu1 %v5659_v62 }
 0x9c6   :  { %v2708_v21 = vpop.f32.mrb[68].mxu0  ;;  %v2749_v25 = vpop.f32.mrb[68].mxu1 }
 0x9c7   :  { %v2756_v47 = vadd.f32 %v2708_v21, %v6163_v58  ;;  %v2758_v45 = vadd.f32 %v2749_v25, %v6164_v24  ;;  %v2710_v18 = vpop.f32.mrb[69].mxu0  ;;  %v2751_v61 = vpop.f32.mrb[69].mxu1 }
 0x9c8   :  { %v2757_v48 = vadd.f32 %v2710_v18, %v6165_v46  ;;  %v2759_v49 = vadd.f32 %v2751_v61, %v6166_v32  ;;  %v2712_v56 = vpop.f32.mrb[70].mxu0  ;;  %v2753_v57 = vpop.f32.mrb[70].mxu1  ;;  %v6167_v18 = vld [vmem:[#allocation50_spill] sm:$0xff]  ;;  %v6168_v46 = vld [vmem:[#allocation51_spill] sm:$0xff] }
 0x9c9   :  { %v3783_v34 = vmul.f32 -1.442695, %v2756_v47  ;;  %v2713_v35 = vpop.f32.mrb[71].mxu0  ;;  %v2754_v7 = vpop.f32.mrb[71].mxu1  ;;  %v6169_v56 = vld [vmem:[#allocation52_spill] sm:$0xff] }
 0x9ca   :  { %v3784_v8 = vmul.f32 -1.442695, %v2757_v48  ;;  %v3785_v4 = vmul.f32 -1.442695, %v2759_v49 }
 0x9cb   :  { %4246 = vpow2.f32 %v3783_v34  ;;  %v6170_v34 = vld [vmem:[#allocation53_spill] sm:$0xff] }
 0x9cc   :  { %4248 = vpow2.f32 %v3784_v8 }
 0x9cd   :  { %4250 = vpow2.f32 %v3785_v4 }
 0x9ce   :  { %4252 = vtanh.f32 %v2758_v45 }
 0x9d5   :  { %v4247_v29 = vpop.eup %4246 }
 0x9d6   :  { %v4249_v30 = vpop.eup %4248  ;;  %v2763_v31 = vadd.f32 1.0, %v4247_v29 }
 0x9d7   :  { %v2769_v59 = vadd.f32 1.0, %v4249_v30  ;;  %v4251_v11 = vpop.eup %4250 }
 0x9d8   :  { %4254 = vrcp.f32 %v2763_v31  ;;  %v4253_v13 = vpop.eup %4252  ;;  %v2776_v63 = vadd.f32 1.0, %v4251_v11 }
 0x9d9   :  { %4256 = vrcp.f32 %v2769_v59 }
 0x9da   :  { %4258 = vrcp.f32 %v2776_v63 }
 0x9e2   :  { %v4255_v33 = vpop.eup %4254 }
 0x9e3   :  { %v4257_v20 = vpop.eup %4256  ;;  %v2780_v16 = vmul.f32 %v4255_v33, %v4253_v13 }
 0x9e4   :  { %v2779_v19 = vmul.f32 %v4257_v20, %v5819_v15  ;;  %v4259_v25 = vpop.eup %4258 }
 0x9e6   :  { %v5864_v21 = vadd.f32 %v2780_v16, %v2779_v19 }
 0x9e8   :  { %4260 = vtanh.f32 %v5864_v21 }
 0x9f2   :  { %v4261_v58 = vpop.eup %4260 }
 0x9f3   :  { %v2783_v47 = vmul.f32 %v4261_v58, %v4259_v25 }
 0x9f5   :  { %3786 = vst [vmem:[%s6069_s4 + $0x68] sm:$0xff] %v2783_v47  ;;  %v2790_v24 = vpack.c.bf16 %v2783_v47, %v2783_v47 }
 0x9f7   :  { %2824 = vmatmul.mubr.bf16.vlgmr.msra.gmra.mrb[72].mxu0 %v2790_v24  ;;  %2865 = vmatmul.mubr.bf16.vlgmr.msra.gmra.mrb[72].mxu1 %v2790_v24 }
 0x9f8   :  { %2909 = vmatpush1.bf16.msra.mxu0 %v5671_v36  ;;  %2950 = vmatpush1.bf16.msra.mxu1 %v5673_v38 }
 0x9f9   :  { %2910 = vmatprep.subr.bf16.mxu0 %v5678_v39  ;;  %2951 = vmatprep.subr.bf16.mxu1 %v5680_v40 }
 0x9fa   :  { %2940 = vmatprep.mubr.bf16.mxu0 %v6136_v10  ;;  %2981 = vmatprep.mubr.bf16.mxu1 %v6136_v10 }
 0x9fc   :  { %2911 = vmatpush1.bf16.msra.mxu0 %v5684_v41  ;;  %2952 = vmatpush1.bf16.msra.mxu1 %v5686_v23 }
 0x9fd   :  { %2912 = vmatprep.subr.bf16.mxu0 %v5690_v43  ;;  %2953 = vmatprep.subr.bf16.mxu1 %v5692_v44 }
 0xa00   :  { %2913 = vmatpush1.bf16.msra.mxu0 %v5698_v42  ;;  %2954 = vmatpush1.bf16.msra.mxu1 %v5700_v12 }
 0xa01   :  { %2914 = vmatprep.subr.bf16.mxu0 %v5704_v6  ;;  %2955 = vmatprep.subr.bf16.mxu1 %v5706_v17 }
 0xa04   :  { %2915 = vmatpush1.bf16.msra.mxu0 %v5710_v27  ;;  %2956 = vmatpush1.bf16.msra.mxu1 %v5712_v28 }
 0xa05   :  { %2916 = vmatprep.subr.bf16.mxu0 %v5716_v51  ;;  %2957 = vmatprep.subr.bf16.mxu1 %v5718_v14 }
 0xa08   :  { %2917 = vmatpush1.bf16.msra.mxu0 %v5722_v52  ;;  %2958 = vmatpush1.bf16.msra.mxu1 %v5724_v60 }
 0xa09   :  { %2918 = vmatprep.subr.bf16.mxu0 %v5728_v9  ;;  %2959 = vmatprep.subr.bf16.mxu1 %v5730_v50 }
 0xa0c   :  { %2919 = vmatpush1.bf16.msra.mxu0 %v5734_v53  ;;  %2960 = vmatpush1.bf16.msra.mxu1 %v5736_v37 }
 0xa0d   :  { %2920 = vmatprep.subr.bf16.mxu0 %v5740_v54  ;;  %2961 = vmatprep.subr.bf16.mxu1 %v5742_v55 }
 0xa10   :  { %2921 = vmatpush1.bf16.msra.mxu0 %v5746_v0  ;;  %2962 = vmatpush1.bf16.msra.mxu1 %v5748_v1 }
 0xa11   :  { %2922 = vmatprep.subr.bf16.mxu0 %v5752_v3  ;;  %2963 = vmatprep.subr.bf16.mxu1 %v5754_v2 }
 0xa14   :  { %2923 = vmatpush1.bf16.msra.mxu0 %v5758_v22  ;;  %2964 = vmatpush1.bf16.msra.mxu1 %v5760_v5 }
 0xa15   :  { %3025 = vmatprep.subr.bf16.mxu0 %v5657_v26  ;;  %3066 = vmatprep.subr.bf16.mxu1 %v5659_v62 }
 0xaca   :  { %v2825_v15 = vpop.f32.mrb[72].mxu0  ;;  %v2866_v45 = vpop.f32.mrb[72].mxu1 }
 0xacb   :  { %v2873_v61 = vadd.f32 %v2825_v15, %v6167_v18  ;;  %v2875_v48 = vadd.f32 %v2866_v45, %v6168_v46  ;;  %v2827_v32 = vpop.f32.mrb[73].mxu0  ;;  %v2868_v49 = vpop.f32.mrb[73].mxu1 }
 0xacc   :  { %v2874_v57 = vadd.f32 %v2827_v32, %v6169_v56  ;;  %v2876_v35 = vadd.f32 %v2868_v49, %v6170_v34  ;;  %v2829_v7 = vpop.f32.mrb[74].mxu0  ;;  %v2870_v8 = vpop.f32.mrb[74].mxu1  ;;  %v6171_v32 = vld [vmem:[#allocation46_spill] sm:$0xff]  ;;  %v6172_v56 = vld [vmem:[#allocation47_spill] sm:$0xff] }
 0xacd   :  { %v3787_v4 = vmul.f32 -1.442695, %v2873_v61  ;;  %v2830_v29 = vpop.f32.mrb[75].mxu0  ;;  %v2871_v30 = vpop.f32.mrb[75].mxu1  ;;  %v6173_v7 = vld [vmem:[#allocation48_spill] sm:$0xff] }
 0xace   :  { %v3788_v31 = vmul.f32 -1.442695, %v2874_v57  ;;  %v3789_v59 = vmul.f32 -1.442695, %v2876_v35 }
 0xacf   :  { %4262 = vpow2.f32 %v3787_v4  ;;  %v6174_v4 = vld [vmem:[#allocation49_spill] sm:$0xff] }
 0xad0   :  { %4264 = vpow2.f32 %v3788_v31 }
 0xad1   :  { %4266 = vpow2.f32 %v3789_v59 }
 0xad2   :  { %4268 = vtanh.f32 %v2875_v48 }
 0xad9   :  { %v4263_v11 = vpop.eup %4262 }
 0xada   :  { %v4265_v13 = vpop.eup %4264  ;;  %v2880_v33 = vadd.f32 1.0, %v4263_v11 }
 0xadb   :  { %v2886_v20 = vadd.f32 1.0, %v4265_v13  ;;  %v4267_v16 = vpop.eup %4266 }
 0xadc   :  { %4270 = vrcp.f32 %v2880_v33  ;;  %v4269_v63 = vpop.eup %4268  ;;  %v2893_v47 = vadd.f32 1.0, %v4267_v16 }
 0xadd   :  { %4272 = vrcp.f32 %v2886_v20 }
 0xade   :  { %4274 = vrcp.f32 %v2893_v47 }
 0xae6   :  { %v4271_v19 = vpop.eup %4270 }
 0xae7   :  { %v4273_v25 = vpop.eup %4272  ;;  %v2897_v58 = vmul.f32 %v4271_v19, %v4269_v63 }
 0xae8   :  { %v2896_v24 = vmul.f32 %v4273_v25, %v5864_v21  ;;  %v4275_v45 = vpop.eup %4274 }
 0xaea   :  { %v5909_v15 = vadd.f32 %v2897_v58, %v2896_v24 }
 0xaec   :  { %4276 = vtanh.f32 %v5909_v15 }
 0xaf6   :  { %v4277_v18 = vpop.eup %4276 }
 0xaf7   :  { %v2900_v61 = vmul.f32 %v4277_v18, %v4275_v45 }
 0xaf9   :  { %3790 = vst [vmem:[%s6069_s4 + $0x58] sm:$0xff] %v2900_v61  ;;  %v2907_v46 = vpack.c.bf16 %v2900_v61, %v2900_v61 }
 0xafb   :  { %2941 = vmatmul.mubr.bf16.vlgmr.msra.gmra.mrb[76].mxu0 %v2907_v46  ;;  %2982 = vmatmul.mubr.bf16.vlgmr.msra.gmra.mrb[76].mxu1 %v2907_v46 }
 0xafc   :  { %3026 = vmatpush1.bf16.msra.mxu0 %v5671_v36  ;;  %3067 = vmatpush1.bf16.msra.mxu1 %v5673_v38 }
 0xafd   :  { %3027 = vmatprep.subr.bf16.mxu0 %v5678_v39  ;;  %3068 = vmatprep.subr.bf16.mxu1 %v5680_v40 }
 0xafe   :  { %3057 = vmatprep.mubr.bf16.mxu0 %v6136_v10  ;;  %3098 = vmatprep.mubr.bf16.mxu1 %v6136_v10 }
 0xb00   :  { %3028 = vmatpush1.bf16.msra.mxu0 %v5684_v41  ;;  %3069 = vmatpush1.bf16.msra.mxu1 %v5686_v23 }
 0xb01   :  { %3029 = vmatprep.subr.bf16.mxu0 %v5690_v43  ;;  %3070 = vmatprep.subr.bf16.mxu1 %v5692_v44 }
 0xb04   :  { %3030 = vmatpush1.bf16.msra.mxu0 %v5698_v42  ;;  %3071 = vmatpush1.bf16.msra.mxu1 %v5700_v12 }
 0xb05   :  { %3031 = vmatprep.subr.bf16.mxu0 %v5704_v6  ;;  %3072 = vmatprep.subr.bf16.mxu1 %v5706_v17 }
 0xb08   :  { %3032 = vmatpush1.bf16.msra.mxu0 %v5710_v27  ;;  %3073 = vmatpush1.bf16.msra.mxu1 %v5712_v28 }
 0xb09   :  { %3033 = vmatprep.subr.bf16.mxu0 %v5716_v51  ;;  %3074 = vmatprep.subr.bf16.mxu1 %v5718_v14 }
 0xb0c   :  { %3034 = vmatpush1.bf16.msra.mxu0 %v5722_v52  ;;  %3075 = vmatpush1.bf16.msra.mxu1 %v5724_v60 }
 0xb0d   :  { %3035 = vmatprep.subr.bf16.mxu0 %v5728_v9  ;;  %3076 = vmatprep.subr.bf16.mxu1 %v5730_v50 }
 0xb10   :  { %3036 = vmatpush1.bf16.msra.mxu0 %v5734_v53  ;;  %3077 = vmatpush1.bf16.msra.mxu1 %v5736_v37 }
 0xb11   :  { %3037 = vmatprep.subr.bf16.mxu0 %v5740_v54  ;;  %3078 = vmatprep.subr.bf16.mxu1 %v5742_v55 }
 0xb14   :  { %3038 = vmatpush1.bf16.msra.mxu0 %v5746_v0  ;;  %3079 = vmatpush1.bf16.msra.mxu1 %v5748_v1 }
 0xb15   :  { %3039 = vmatprep.subr.bf16.mxu0 %v5752_v3  ;;  %3080 = vmatprep.subr.bf16.mxu1 %v5754_v2 }
 0xb18   :  { %3040 = vmatpush1.bf16.msra.mxu0 %v5758_v22  ;;  %3081 = vmatpush1.bf16.msra.mxu1 %v5760_v5 }
 0xb19   :  { %3142 = vmatprep.subr.bf16.mxu0 %v5657_v26  ;;  %3183 = vmatprep.subr.bf16.mxu1 %v5659_v62 }
 0xbce   :  { %v2942_v21 = vpop.f32.mrb[76].mxu0  ;;  %v2983_v48 = vpop.f32.mrb[76].mxu1 }
 0xbcf   :  { %v2990_v49 = vadd.f32 %v2942_v21, %v6171_v32  ;;  %v2992_v57 = vadd.f32 %v2983_v48, %v6172_v56  ;;  %v2944_v34 = vpop.f32.mrb[77].mxu0  ;;  %v2985_v35 = vpop.f32.mrb[77].mxu1 }
 0xbd0   :  { %v2991_v8 = vadd.f32 %v2944_v34, %v6173_v7  ;;  %v2993_v29 = vadd.f32 %v2985_v35, %v6174_v4  ;;  %v2946_v30 = vpop.f32.mrb[78].mxu0  ;;  %v2987_v31 = vpop.f32.mrb[78].mxu1  ;;  %v6175_v34 = vld [vmem:[#allocation42_spill] sm:$0xff]  ;;  %v6176_v7 = vld [vmem:[#allocation43_spill] sm:$0xff] }
 0xbd1   :  { %v3791_v59 = vmul.f32 -1.442695, %v2990_v49  ;;  %v2947_v11 = vpop.f32.mrb[79].mxu0  ;;  %v2988_v13 = vpop.f32.mrb[79].mxu1  ;;  %v6177_v30 = vld [vmem:[#allocation44_spill] sm:$0xff] }
 0xbd2   :  { %v3792_v33 = vmul.f32 -1.442695, %v2991_v8  ;;  %v3793_v20 = vmul.f32 -1.442695, %v2993_v29 }
 0xbd3   :  { %4278 = vpow2.f32 %v3791_v59  ;;  %v6178_v59 = vld [vmem:[#allocation45_spill] sm:$0xff] }
 0xbd4   :  { %4280 = vpow2.f32 %v3792_v33 }
 0xbd5   :  { %4282 = vpow2.f32 %v3793_v20 }
 0xbd6   :  { %4284 = vtanh.f32 %v2992_v57 }
 0xbdd   :  { %v4279_v16 = vpop.eup %4278 }
 0xbde   :  { %v4281_v63 = vpop.eup %4280  ;;  %v2997_v19 = vadd.f32 1.0, %v4279_v16 }
 0xbdf   :  { %v3003_v25 = vadd.f32 1.0, %v4281_v63  ;;  %v4283_v58 = vpop.eup %4282 }
 0xbe0   :  { %4286 = vrcp.f32 %v2997_v19  ;;  %v4285_v47 = vpop.eup %4284  ;;  %v3010_v61 = vadd.f32 1.0, %v4283_v58 }
 0xbe1   :  { %4288 = vrcp.f32 %v3003_v25 }
 0xbe2   :  { %4290 = vrcp.f32 %v3010_v61 }
 0xbea   :  { %v4287_v24 = vpop.eup %4286 }
 0xbeb   :  { %v4289_v45 = vpop.eup %4288  ;;  %v3014_v18 = vmul.f32 %v4287_v24, %v4285_v47 }
 0xbec   :  { %v3013_v46 = vmul.f32 %v4289_v45, %v5909_v15  ;;  %v4291_v48 = vpop.eup %4290 }
 0xbee   :  { %v5954_v21 = vadd.f32 %v3014_v18, %v3013_v46 }
 0xbf0   :  { %4292 = vtanh.f32 %v5954_v21 }
 0xbfa   :  { %v4293_v32 = vpop.eup %4292 }
 0xbfb   :  { %v3017_v49 = vmul.f32 %v4293_v32, %v4291_v48 }
 0xbfd   :  { %3794 = vst [vmem:[%s6069_s4 + $0x48] sm:$0xff] %v3017_v49  ;;  %v3024_v56 = vpack.c.bf16 %v3017_v49, %v3017_v49 }
 0xbff   :  { %3058 = vmatmul.mubr.bf16.vlgmr.msra.gmra.mrb[80].mxu0 %v3024_v56  ;;  %3099 = vmatmul.mubr.bf16.vlgmr.msra.gmra.mrb[80].mxu1 %v3024_v56 }
 0xc00   :  { %3143 = vmatpush1.bf16.msra.mxu0 %v5671_v36  ;;  %3184 = vmatpush1.bf16.msra.mxu1 %v5673_v38 }
 0xc01   :  { %3144 = vmatprep.subr.bf16.mxu0 %v5678_v39  ;;  %3185 = vmatprep.subr.bf16.mxu1 %v5680_v40 }
 0xc02   :  { %3174 = vmatprep.mubr.bf16.mxu0 %v6136_v10  ;;  %3215 = vmatprep.mubr.bf16.mxu1 %v6136_v10 }
 0xc04   :  { %3145 = vmatpush1.bf16.msra.mxu0 %v5684_v41  ;;  %3186 = vmatpush1.bf16.msra.mxu1 %v5686_v23 }
 0xc05   :  { %3146 = vmatprep.subr.bf16.mxu0 %v5690_v43  ;;  %3187 = vmatprep.subr.bf16.mxu1 %v5692_v44 }
 0xc08   :  { %3147 = vmatpush1.bf16.msra.mxu0 %v5698_v42  ;;  %3188 = vmatpush1.bf16.msra.mxu1 %v5700_v12 }
 0xc09   :  { %3148 = vmatprep.subr.bf16.mxu0 %v5704_v6  ;;  %3189 = vmatprep.subr.bf16.mxu1 %v5706_v17 }
 0xc0c   :  { %3149 = vmatpush1.bf16.msra.mxu0 %v5710_v27  ;;  %3190 = vmatpush1.bf16.msra.mxu1 %v5712_v28 }
 0xc0d   :  { %3150 = vmatprep.subr.bf16.mxu0 %v5716_v51  ;;  %3191 = vmatprep.subr.bf16.mxu1 %v5718_v14 }
 0xc10   :  { %3151 = vmatpush1.bf16.msra.mxu0 %v5722_v52  ;;  %3192 = vmatpush1.bf16.msra.mxu1 %v5724_v60 }
 0xc11   :  { %3152 = vmatprep.subr.bf16.mxu0 %v5728_v9  ;;  %3193 = vmatprep.subr.bf16.mxu1 %v5730_v50 }
 0xc14   :  { %3153 = vmatpush1.bf16.msra.mxu0 %v5734_v53  ;;  %3194 = vmatpush1.bf16.msra.mxu1 %v5736_v37 }
 0xc15   :  { %3154 = vmatprep.subr.bf16.mxu0 %v5740_v54  ;;  %3195 = vmatprep.subr.bf16.mxu1 %v5742_v55 }
 0xc18   :  { %3155 = vmatpush1.bf16.msra.mxu0 %v5746_v0  ;;  %3196 = vmatpush1.bf16.msra.mxu1 %v5748_v1 }
 0xc19   :  { %3156 = vmatprep.subr.bf16.mxu0 %v5752_v3  ;;  %3197 = vmatprep.subr.bf16.mxu1 %v5754_v2 }
 0xc1c   :  { %3157 = vmatpush1.bf16.msra.mxu0 %v5758_v22  ;;  %3198 = vmatpush1.bf16.msra.mxu1 %v5760_v5 }
 0xc1d   :  { %3259 = vmatprep.subr.bf16.mxu0 %v5657_v26  ;;  %3300 = vmatprep.subr.bf16.mxu1 %v5659_v62 }
 0xcd2   :  { %v3059_v15 = vpop.f32.mrb[80].mxu0  ;;  %v3100_v57 = vpop.f32.mrb[80].mxu1 }
 0xcd3   :  { %v3107_v35 = vadd.f32 %v3059_v15, %v6175_v34  ;;  %v3109_v8 = vadd.f32 %v3100_v57, %v6176_v7  ;;  %v3061_v4 = vpop.f32.mrb[81].mxu0  ;;  %v3102_v29 = vpop.f32.mrb[81].mxu1 }
 0xcd4   :  { %v3108_v31 = vadd.f32 %v3061_v4, %v6177_v30  ;;  %v3110_v11 = vadd.f32 %v3102_v29, %v6178_v59  ;;  %v3063_v13 = vpop.f32.mrb[82].mxu0  ;;  %v3104_v33 = vpop.f32.mrb[82].mxu1  ;;  %v4393_v59 = vld [vmem:[#allocation4 + $0x108] ss:$16 sps:$4 sm:$0xff]  }
 0xcd5   :  { %v3795_v20 = vmul.f32 -1.442695, %v3107_v35  ;;  %v3064_v16 = vpop.f32.mrb[83].mxu0  ;;  %v3105_v63 = vpop.f32.mrb[83].mxu1  ;;  %v4395_v13 = vld [vmem:[#allocation4 + $0x12c] ss:$16 sps:$4 sm:$0xff]  }
 0xcd6   :  { %v3796_v26 = vmul.f32 -1.442695, %v3108_v31  ;;  %v3797_v62 = vmul.f32 -1.442695, %v3110_v11  ;;  %v4392_v31 = vld [vmem:[#allocation4 + $0x100] ss:$16 sps:$4 sm:$0xff]  }
 0xcd7   :  { %4294 = vpow2.f32 %v3795_v20  ;;  %v4394_v11 = vld [vmem:[#allocation4 + $0x124] ss:$16 sps:$4 sm:$0xff]   ;;  %v4396_v33 = vld [vmem:[#allocation4 + $0x120] ss:$16 sps:$4 sm:$0xff]   ;;  %v4397_v20 = vld [vmem:[#allocation4 + $0x128] ss:$16 sps:$4 sm:$0xff]  }
 0xcd8   :  { %4296 = vpow2.f32 %v3796_v26  ;;  %v4398_v16 = vld [vmem:[#allocation4 + $0x144] ss:$16 sps:$4 sm:$0xff]   ;;  %v4399_v63 = vld [vmem:[#allocation4 + $0x14c] ss:$16 sps:$4 sm:$0xff]   ;;  %v4400_v26 = vld [vmem:[#allocation4 + $0x140] ss:$16 sps:$4 sm:$0xff]  }
 0xcd9   :  { %4298 = vpow2.f32 %v3797_v62  ;;  %v4401_v62 = vld [vmem:[#allocation4 + $0x148] ss:$16 sps:$4 sm:$0xff]  }
 0xcda   :  { %4300 = vtanh.f32 %v3109_v8 }
 0xce1   :  { %v4295_v19 = vpop.eup %4294 }
 0xce2   :  { %v4297_v25 = vpop.eup %4296  ;;  %v3114_v58 = vadd.f32 1.0, %v4295_v19  ;;  %v4402_v19 = vld [vmem:[#allocation4 + $0x164] ss:$16 sps:$4 sm:$0xff]  }
 0xce3   :  { %v3120_v47 = vadd.f32 1.0, %v4297_v25  ;;  %v4299_v24 = vpop.eup %4298  ;;  %v4403_v25 = vld [vmem:[#allocation4 + $0x16c] ss:$16 sps:$4 sm:$0xff]  }
 0xce4   :  { %4302 = vrcp.f32 %v3114_v58  ;;  %v4301_v45 = vpop.eup %4300  ;;  %v3127_v48 = vadd.f32 1.0, %v4299_v24  ;;  %v4404_v58 = vld [vmem:[#allocation4 + $0x160] ss:$16 sps:$4 sm:$0xff]   ;;  %v4407_v24 = vld [vmem:[#allocation4 + $0x18c] ss:$16 sps:$4 sm:$0xff]  }
 0xce5   :  { %4304 = vrcp.f32 %v3120_v47  ;;  %v4405_v47 = vld [vmem:[#allocation4 + $0x168] ss:$16 sps:$4 sm:$0xff]  }
 0xce6   :  { %4306 = vrcp.f32 %v3127_v48  ;;  %v4412_v48 = vld [vmem:[#allocation4 + $0x1a0] ss:$16 sps:$4 sm:$0xff]  }
 0xcee   :  { %v4303_v18 = vpop.eup %4302 }
 0xcef   :  { %v4305_v61 = vpop.eup %4304  ;;  %v3131_v46 = vmul.f32 %v4303_v18, %v4301_v45  ;;  %v4408_v45 = vld [vmem:[#allocation4 + $0x180] ss:$16 sps:$4 sm:$0xff]   ;;  %v4409_v18 = vld [vmem:[#allocation4 + $0x188] ss:$16 sps:$4 sm:$0xff]  }
 0xcf0   :  { %v3130_v32 = vmul.f32 %v4305_v61, %v5954_v21  ;;  %v4307_v56 = vpop.eup %4306  ;;  %v4410_v61 = vld [vmem:[#allocation4 + $0x1a4] ss:$16 sps:$4 sm:$0xff]  }
 0xcf2   :  { %v5999_v49 = vadd.f32 %v3131_v46, %v3130_v32  ;;  %v4411_v46 = vld [vmem:[#allocation4 + $0x1ac] ss:$16 sps:$4 sm:$0xff]   ;;  %v4413_v32 = vld [vmem:[#allocation4 + $0x1a8] ss:$16 sps:$4 sm:$0xff]  }
 0xcf4   :  { %4308 = vtanh.f32 %v5999_v49 }
 0xcfe   :  { %v4309_v15 = vpop.eup %4308 }
 0xcff   :  { %v3134_v57 = vmul.f32 %v4309_v15, %v4307_v56  ;;  %v4415_v56 = vld [vmem:[#allocation4 + $0x1cc] ss:$16 sps:$4 sm:$0xff]   ;;  %v4416_v15 = vld [vmem:[#allocation4 + $0x1c0] ss:$16 sps:$4 sm:$0xff]  }
 0xd01   :  { %3798 = vst [vmem:[%s6069_s4 + $0x38] sm:$0xff] %v3134_v57  ;;  %v3141_v34 = vpack.c.bf16 %v3134_v57, %v3134_v57  ;;  %v4417_v57 = vld [vmem:[#allocation4 + $0x1c8] ss:$16 sps:$4 sm:$0xff]  }
 0xd03   :  { %3175 = vmatmul.mubr.bf16.vlgmr.msra.gmra.mrb[84].mxu0 %v3141_v34  ;;  %3216 = vmatmul.mubr.bf16.vlgmr.msra.gmra.mrb[84].mxu1 %v3141_v34  ;;  %v4418_v34 = vld [vmem:[#allocation4 + $0x1e4] ss:$16 sps:$4 sm:$0xff]  }
 0xd04   :  { %3260 = vmatpush1.bf16.msra.mxu0 %v5671_v36  ;;  %3301 = vmatpush1.bf16.msra.mxu1 %v5673_v38  ;;  %v4390_v36 = vld [vmem:[#allocation4 + $0x104] ss:$16 sps:$4 sm:$0xff]   ;;  %v4391_v38 = vld [vmem:[#allocation4 + $0x10c] ss:$16 sps:$4 sm:$0xff]  }
 0xd05   :  { %3261 = vmatprep.subr.bf16.mxu0 %v5678_v39  ;;  %3302 = vmatprep.subr.bf16.mxu1 %v5680_v40 }
 0xd06   :  { %3291 = vmatprep.mubr.bf16.mxu0 %v6136_v10  ;;  %3332 = vmatprep.mubr.bf16.mxu1 %v6136_v10 }
 0xd08   :  { %3262 = vmatpush1.bf16.msra.mxu0 %v5684_v41  ;;  %3303 = vmatpush1.bf16.msra.mxu1 %v5686_v23  ;;  %v6179_v41 = vld [vmem:[#allocation38_spill] sm:$0xff] }
 0xd09   :  { %3263 = vmatprep.subr.bf16.mxu0 %v5690_v43  ;;  %3304 = vmatprep.subr.bf16.mxu1 %v5692_v44  ;;  %v6180_v43 = vld [vmem:[#allocation39_spill] sm:$0xff] }
 0xd0c   :  { %3264 = vmatpush1.bf16.msra.mxu0 %v5698_v42  ;;  %3305 = vmatpush1.bf16.msra.mxu1 %v5700_v12 }
 0xd0d   :  { %3265 = vmatprep.subr.bf16.mxu0 %v5704_v6  ;;  %3306 = vmatprep.subr.bf16.mxu1 %v5706_v17  ;;  %v6181_v6 = vld [vmem:[#allocation40_spill] sm:$0xff] }
 0xd10   :  { %3266 = vmatpush1.bf16.msra.mxu0 %v5710_v27  ;;  %3307 = vmatpush1.bf16.msra.mxu1 %v5712_v28  ;;  %v6182_v27 = vld [vmem:[#allocation41_spill] sm:$0xff] }
 0xd11   :  { %3267 = vmatprep.subr.bf16.mxu0 %v5716_v51  ;;  %3308 = vmatprep.subr.bf16.mxu1 %v5718_v14 }
 0xd14   :  { %3268 = vmatpush1.bf16.msra.mxu0 %v5722_v52  ;;  %3309 = vmatpush1.bf16.msra.mxu1 %v5724_v60 }
 0xd15   :  { %3269 = vmatprep.subr.bf16.mxu0 %v5728_v9  ;;  %3310 = vmatprep.subr.bf16.mxu1 %v5730_v50 }
 0xd18   :  { %3270 = vmatpush1.bf16.msra.mxu0 %v5734_v53  ;;  %3311 = vmatpush1.bf16.msra.mxu1 %v5736_v37 }
 0xd19   :  { %3271 = vmatprep.subr.bf16.mxu0 %v5740_v54  ;;  %3312 = vmatprep.subr.bf16.mxu1 %v5742_v55 }
 0xd1c   :  { %3272 = vmatpush1.bf16.msra.mxu0 %v5746_v0  ;;  %3313 = vmatpush1.bf16.msra.mxu1 %v5748_v1 }
 0xd1d   :  { %3273 = vmatprep.subr.bf16.mxu0 %v5752_v3  ;;  %3314 = vmatprep.subr.bf16.mxu1 %v5754_v2 }
 0xd20   :  { %3274 = vmatpush1.bf16.msra.mxu0 %v5758_v22  ;;  %3315 = vmatpush1.bf16.msra.mxu1 %v5760_v5 }
 0xd21   :  { %3375 = vmatprep.subr.bf16.mxu0 %v4390_v36  ;;  %3416 = vmatprep.subr.bf16.mxu1 %v4391_v38  ;;  %v4419_v36 = vld [vmem:[#allocation4 + $0x1ec] ss:$16 sps:$4 sm:$0xff]   ;;  %v4420_v38 = vld [vmem:[#allocation4 + $0x1e0] ss:$16 sps:$4 sm:$0xff]  }
 0xdd6   :  { %v3176_v39 = vpop.f32.mrb[84].mxu0  ;;  %v3217_v40 = vpop.f32.mrb[84].mxu1 }
 0xdd7   :  { %v3224_v23 = vadd.f32 %v3176_v39, %v6179_v41  ;;  %v3226_v44 = vadd.f32 %v3217_v40, %v6180_v43  ;;  %v3178_v42 = vpop.f32.mrb[85].mxu0  ;;  %v3219_v12 = vpop.f32.mrb[85].mxu1  ;;  %v4421_v39 = vld [vmem:[#allocation4 + $0x1e8] ss:$16 sps:$4 sm:$0xff]  }
 0xdd8   :  { %v3225_v17 = vadd.f32 %v3178_v42, %v6181_v6  ;;  %v3227_v28 = vadd.f32 %v3219_v12, %v6182_v27  ;;  %v3180_v51 = vpop.f32.mrb[86].mxu0  ;;  %v3221_v14 = vpop.f32.mrb[86].mxu1 }
 0xdd9   :  { %v3799_v52 = vmul.f32 -1.442695, %v3224_v23  ;;  %v3181_v60 = vpop.f32.mrb[87].mxu0  ;;  %v3222_v9 = vpop.f32.mrb[87].mxu1  ;;  %v6183_v23 = vld [vmem:[#allocation34_spill] sm:$0xff] }
 0xdda   :  { %v3800_v50 = vmul.f32 -1.442695, %v3225_v17  ;;  %v3801_v53 = vmul.f32 -1.442695, %v3227_v28  ;;  %v6185_v17 = vld [vmem:[#allocation36_spill] sm:$0xff]  ;;  %v6186_v28 = vld [vmem:[#allocation37_spill] sm:$0xff] }
 0xddb   :  { %4310 = vpow2.f32 %v3799_v52 }
 0xddc   :  { %4312 = vpow2.f32 %v3800_v50 }
 0xddd   :  { %4314 = vpow2.f32 %v3801_v53 }
 0xdde   :  { %4316 = vtanh.f32 %v3226_v44  ;;  %v6184_v44 = vld [vmem:[#allocation35_spill] sm:$0xff] }
 0xde5   :  { %v4311_v37 = vpop.eup %4310 }
 0xde6   :  { %v4313_v54 = vpop.eup %4312  ;;  %v3231_v55 = vadd.f32 1.0, %v4311_v37 }
 0xde7   :  { %v3237_v0 = vadd.f32 1.0, %v4313_v54  ;;  %v4315_v1 = vpop.eup %4314 }
 0xde8   :  { %4318 = vrcp.f32 %v3231_v55  ;;  %v4317_v3 = vpop.eup %4316  ;;  %v3244_v21 = vadd.f32 1.0, %v4315_v1 }
 0xde9   :  { %4320 = vrcp.f32 %v3237_v0 }
 0xdea   :  { %4322 = vrcp.f32 %v3244_v21 }
 0xdf2   :  { %v4319_v2 = vpop.eup %4318 }
 0xdf3   :  { %v4321_v22 = vpop.eup %4320  ;;  %v3248_v5 = vmul.f32 %v4319_v2, %v4317_v3 }
 0xdf4   :  { %v3247_v35 = vmul.f32 %v4321_v22, %v5999_v49  ;;  %v4323_v8 = vpop.eup %4322  ;;  %v4414_v49 = vld [vmem:[#allocation4 + $0x1c4] ss:$16 sps:$4 sm:$0xff]  }
 0xdf6   :  { %v6042_v7 = vadd.f32 %v3248_v5, %v3247_v35 }
 0xdf8   :  { %4324 = vtanh.f32 %v6042_v7 }
 0xe02   :  { %v4325_v4 = vpop.eup %4324 }
 0xe03   :  { %v3251_v29 = vmul.f32 %v4325_v4, %v4323_v8 }
 0xe05   :  { %3802 = vst [vmem:[%s6069_s4 + $0x28] sm:$0xff] %v3251_v29  ;;  %v3258_v30 = vpack.c.bf16 %v3251_v29, %v3251_v29 }
 0xe07   :  { %3292 = vmatmul.mubr.bf16.vlgmr.msra.gmra.mrb[88].mxu0 %v3258_v30  ;;  %3333 = vmatmul.mubr.bf16.vlgmr.msra.gmra.mrb[88].mxu1 %v3258_v30 }
 0xe08   :  { %3376 = vmatpush1.bf16.msra.mxu0 %v4392_v31  ;;  %3417 = vmatpush1.bf16.msra.mxu1 %v4393_v59 }
 0xe09   :  { %3377 = vmatprep.subr.bf16.mxu0 %v4394_v11  ;;  %3418 = vmatprep.subr.bf16.mxu1 %v4395_v13 }
 0xe0a   :  { %3407 = vmatprep.mubr.bf16.mxu0 %v6136_v10  ;;  %3448 = vmatprep.mubr.bf16.mxu1 %v6136_v10  ;;  %v4406_v10 = vld [vmem:[#allocation4 + $0x184] ss:$16 sps:$4 sm:$0xff]  }
 0xe0c   :  { %3378 = vmatpush1.bf16.msra.mxu0 %v4396_v33  ;;  %3419 = vmatpush1.bf16.msra.mxu1 %v4397_v20  ;;  %v6187_v33 = vld [vmem:[#allocation30_spill] sm:$0xff] }
 0xe0d   :  { %3379 = vmatprep.subr.bf16.mxu0 %v4398_v16  ;;  %3420 = vmatprep.subr.bf16.mxu1 %v4399_v63  ;;  %v6188_v16 = vld [vmem:[#allocation31_spill] sm:$0xff] }
 0xe10   :  { %3380 = vmatpush1.bf16.msra.mxu0 %v4400_v26  ;;  %3421 = vmatpush1.bf16.msra.mxu1 %v4401_v62  ;;  %v6189_v62 = vld [vmem:[#allocation32_spill] sm:$0xff] }
 0xe11   :  { %3381 = vmatprep.subr.bf16.mxu0 %v4402_v19  ;;  %3422 = vmatprep.subr.bf16.mxu1 %v4403_v25  ;;  %v6190_v25 = vld [vmem:[#allocation33_spill] sm:$0xff] }
 0xe14   :  { %3382 = vmatpush1.bf16.msra.mxu0 %v4404_v58  ;;  %3423 = vmatpush1.bf16.msra.mxu1 %v4405_v47 }
 0xe15   :  { %3383 = vmatprep.subr.bf16.mxu0 %v4406_v10  ;;  %3424 = vmatprep.subr.bf16.mxu1 %v4407_v24 }
 0xe18   :  { %3384 = vmatpush1.bf16.msra.mxu0 %v4408_v45  ;;  %3425 = vmatpush1.bf16.msra.mxu1 %v4409_v18 }
 0xe19   :  { %3385 = vmatprep.subr.bf16.mxu0 %v4410_v61  ;;  %3426 = vmatprep.subr.bf16.mxu1 %v4411_v46 }
 0xe1c   :  { %3386 = vmatpush1.bf16.msra.mxu0 %v4412_v48  ;;  %3427 = vmatpush1.bf16.msra.mxu1 %v4413_v32 }
 0xe1d   :  { %3387 = vmatprep.subr.bf16.mxu0 %v4414_v49  ;;  %3428 = vmatprep.subr.bf16.mxu1 %v4415_v56 }
 0xe20   :  { %3388 = vmatpush1.bf16.msra.mxu0 %v4416_v15  ;;  %3429 = vmatpush1.bf16.msra.mxu1 %v4417_v57 }
 0xe21   :  { %3389 = vmatprep.subr.bf16.mxu0 %v4418_v34  ;;  %3430 = vmatprep.subr.bf16.mxu1 %v4419_v36 }
 0xe24   :  { %3390 = vmatpush1.bf16.msra.mxu0 %v4420_v38  ;;  %3431 = vmatpush1.bf16.msra.mxu1 %v4421_v39 }
 0xeda   :  { %v3293_v40 = vpop.f32.mrb[88].mxu0  ;;  %v3334_v41 = vpop.f32.mrb[88].mxu1 }
 0xedb   :  { %v3341_v43 = vadd.f32 %v3293_v40, %v6183_v23  ;;  %v3343_v42 = vadd.f32 %v3334_v41, %v6184_v44  ;;  %v3295_v12 = vpop.f32.mrb[89].mxu0  ;;  %v3336_v6 = vpop.f32.mrb[89].mxu1 }
 0xedc   :  { %v3342_v27 = vadd.f32 %v3295_v12, %v6185_v17  ;;  %v3344_v51 = vadd.f32 %v3336_v6, %v6186_v28  ;;  %v3297_v14 = vpop.f32.mrb[90].mxu0  ;;  %v3338_v52 = vpop.f32.mrb[90].mxu1 }
 0xedd   :  { %v3803_v60 = vmul.f32 -1.442695, %v3341_v43  ;;  %v3298_v9 = vpop.f32.mrb[91].mxu0  ;;  %v3339_v50 = vpop.f32.mrb[91].mxu1 }
 0xede   :  { %v3804_v53 = vmul.f32 -1.442695, %v3342_v27  ;;  %v3805_v37 = vmul.f32 -1.442695, %v3344_v51 }
 0xedf   :  { %4326 = vpow2.f32 %v3803_v60 }
 0xee0   :  { %4328 = vpow2.f32 %v3804_v53 }
 0xee1   :  { %4330 = vpow2.f32 %v3805_v37 }
 0xee2   :  { %4332 = vtanh.f32 %v3343_v42 }
 0xee9   :  { %v4327_v54 = vpop.eup %4326 }
 0xeea   :  { %v4329_v55 = vpop.eup %4328  ;;  %v3348_v0 = vadd.f32 1.0, %v4327_v54 }
 0xeeb   :  { %v3354_v1 = vadd.f32 1.0, %v4329_v55  ;;  %v4331_v3 = vpop.eup %4330 }
 0xeec   :  { %4334 = vrcp.f32 %v3348_v0  ;;  %v4333_v2 = vpop.eup %4332  ;;  %v3361_v35 = vadd.f32 1.0, %v4331_v3 }
 0xeed   :  { %4336 = vrcp.f32 %v3354_v1 }
 0xeee   :  { %4338 = vrcp.f32 %v3361_v35 }
 0xef6   :  { %v4335_v22 = vpop.eup %4334 }
 0xef7   :  { %v4337_v5 = vpop.eup %4336  ;;  %v3365_v21 = vmul.f32 %v4335_v22, %v4333_v2 }
 0xef8   :  { %v3364_v8 = vmul.f32 %v4337_v5, %v6042_v7  ;;  %v4339_v29 = vpop.eup %4338 }
 0xefa   :  { %v3366_v4 = vadd.f32 %v3365_v21, %v3364_v8 }
 0xefc   :  { %4340 = vtanh.f32 %v3366_v4 }
 0xf06   :  { %v4341_v30 = vpop.eup %4340 }
 0xf07   :  { %v3368_v31 = vmul.f32 %v4341_v30, %v4339_v29 }
 0xf09   :  { %3806 = vst [vmem:[%s6069_s4 + $0x18] sm:$0xff] %v3368_v31  ;;  %v3374_v59 = vpack.c.bf16 %v3368_v31, %v3368_v31 }
 0xf0b   :  { %3408 = vmatmul.mubr.bf16.vlgmr.msra.gmra.mrb[92].mxu0 %v3374_v59  ;;  %3449 = vmatmul.mubr.bf16.vlgmr.msra.gmra.mrb[92].mxu1 %v3374_v59 }
 0xfde   :  { %v3409_v11 = vpop.f32.mrb[92].mxu0  ;;  %v3450_v13 = vpop.f32.mrb[92].mxu1 }
 0xfdf   :  { %v3457_v20 = vadd.f32 %v3409_v11, %v6187_v33  ;;  %v3459_v63 = vadd.f32 %v3450_v13, %v6188_v16  ;;  %v3411_v7 = vpop.f32.mrb[93].mxu0  ;;  %v3452_v26 = vpop.f32.mrb[93].mxu1 }
 0xfe0   :  { %v3458_v19 = vadd.f32 %v3411_v7, %v6189_v62  ;;  %v3460_v58 = vadd.f32 %v3452_v26, %v6190_v25  ;;  %v3413_v47 = vpop.f32.mrb[94].mxu0  ;;  %v3454_v10 = vpop.f32.mrb[94].mxu1 }
 0xfe1   :  { %v3807_v24 = vmul.f32 -1.442695, %v3457_v20  ;;  %v3414_v45 = vpop.f32.mrb[95].mxu0  ;;  %v3455_v18 = vpop.f32.mrb[95].mxu1 }
 0xfe2   :  { %v3808_v61 = vmul.f32 -1.442695, %v3458_v19  ;;  %v3809_v46 = vmul.f32 -1.442695, %v3460_v58 }
 0xfe3   :  { %4342 = vpow2.f32 %v3807_v24 }
 0xfe4   :  { %4344 = vpow2.f32 %v3808_v61 }
 0xfe5   :  { %4346 = vpow2.f32 %v3809_v46 }
 0xfe6   :  { %4348 = vtanh.f32 %v3459_v63 }
 0xfed   :  { %v4343_v48 = vpop.eup %4342 }
 0xfee   :  { %v4345_v32 = vpop.eup %4344  ;;  %v3464_v49 = vadd.f32 1.0, %v4343_v48 }
 0xfef   :  { %v3470_v56 = vadd.f32 1.0, %v4345_v32  ;;  %v4347_v15 = vpop.eup %4346 }
 0xff0   :  { %4350 = vrcp.f32 %v3464_v49  ;;  %v4349_v57 = vpop.eup %4348  ;;  %v3477_v39 = vadd.f32 1.0, %v4347_v15 }
 0xff1   :  { %4352 = vrcp.f32 %v3470_v56 }
 0xff2   :  { %4354 = vrcp.f32 %v3477_v39 }
 0xffa   :  { %v4351_v34 = vpop.eup %4350 }
 0xffb   :  { %v4353_v36 = vpop.eup %4352  ;;  %v3481_v38 = vmul.f32 %v4351_v34, %v4349_v57 }
 0xffc   :  { %v3480_v40 = vmul.f32 %v4353_v36, %v3366_v4  ;;  %v4355_v23 = vpop.eup %4354 }
 0xffe   :  { %v3482_v41 = vadd.f32 %v3481_v38, %v3480_v40 }
0x1000   :  { %4356 = vtanh.f32 %v3482_v41 }
0x100a   :  { %v4357_v43 = vpop.eup %4356 }
0x100b   :  { %v3484_v44 = vmul.f32 %v4357_v43, %v4355_v23 }
0x100d   :  { %3485 = vst [vmem:[%s6069_s4 + $0x8] sm:$0xff] %v3484_v44 }
0x100e   :  { %3490 = vsyncpa [#allocation5], 1 }

</bundles_post_ra>
